<compile_context>
chip_gen: v5e
topology: v5e:2x2
jax: 0.10.0
libtpu: 0.0.40
codegen_flags: <defaults>
</compile_context>

<pallas_src>
import functools
import math

import jax
import jax.numpy as jnp
from jax.experimental import pallas as pl
from jax.experimental.pallas import tpu as pltpu


def _round_up(x, m):
    return ((x + m - 1) // m) * m


def _vmem_cap_bytes():
    """Physical VMEM of the current chip (fallback: v7x per-TC 64 MiB)."""
    try:
        return int(pltpu.get_tpu_info().vmem_capacity_bytes)
    except Exception:
        return 64 << 20


def _vmem_limit(needed_bytes, cap_bytes):
    """Scoped-VMEM limit: generous margin over the real buffers, clamped to HW."""
    limit = int(needed_bytes * 1.5) + (4 << 20)
    limit = max(limit, 32 << 20)
    return int(min(limit, int(cap_bytes * 0.85)))


def _spec(shape, index_map, *, single_buffer):
    """BlockSpec; single-buffered when requested (grid=(1,) -> no overlap benefit)."""
    if single_buffer:
        return pl.BlockSpec(shape, index_map, pipeline_mode=pl.Buffered(1))
    return pl.BlockSpec(shape, index_map)


def _pick_tile_v(Vp, rows, Hp, vmem_cap):
    """Largest multiple-of-128 divisor of Vp (<= 2048) whose streamed, double-buffered
    wfc/bias/logit tiles fit comfortably in VMEM."""
    budget = int(vmem_cap * 0.45)
    best = 128
    for t in range(128, min(Vp, 2048) + 1, 128):
        if Vp % t:
            continue
        stream_bytes = 2 * (Hp * t * 2 + t * 4 + rows * t * 4)
        if stream_bytes <= budget:
            best = t
    return best


# --------------------------------------------------------------------------------------
# Kernel A: batched input projection + serial LSTM recurrence -> hidden states.
# --------------------------------------------------------------------------------------
def _lstm_recurrence_kernel(x_ref, wih_ref, whh_ref, b_ref, hs_ref, gx_sc, *, T, Bp, Hp):
    """
    x_ref   : (T*Bp, E)    bf16  time-major flattened inputs (features at t=0, then embeds)
    wih_ref : (E, 4*Hp)    bf16  input-to-hidden weights, gate-padded (i,f,g,o blocks)
    whh_ref : (Hp, 4*Hp)   f32   hidden-to-hidden weights, gate-padded (recurrent path f32)
    b_ref   : (1, 4*Hp)    f32   b_ih + b_hh, gate-padded
    hs_ref  : (T*Bp, Hp)   bf16  OUTPUT: hidden states for all timesteps
    gx_sc   : (T*Bp, 4*Hp) f32   VMEM scratch: precomputed input-projection gates
    """
    # Phase 1 (non-recurrent): bf16 input projection for ALL timesteps, one MXU matmul.
    gx_sc[...] = (jnp.dot(x_ref[...], wih_ref[...],
                          preferred_element_type=jnp.float32)
                  + b_ref[...])

    # Phase 2 (recurrent, f32): only h_prev @ W_hh stays on the serial chain.
    def step(t, carry):
        h, c = carry
        row = pl.multiple_of(t * Bp, Bp)            # aligned dynamic row offset
        # NOTE: whh_ref is indexed inside the dot (not hoisted) so the full (Hp, 4Hp)
        # f32 tile is never held live in vregs across the loop.
        gates = gx_sc[pl.ds(row, Bp), :] + jnp.dot(
            h, whh_ref[...], preferred_element_type=jnp.float32)   # (Bp, 4*Hp)
        i_g = jax.nn.sigmoid(gates[:, 0 * Hp:1 * Hp])
        f_g = jax.nn.sigmoid(gates[:, 1 * Hp:2 * Hp])
        g_g = jnp.tanh(gates[:, 2 * Hp:3 * Hp])
        o_g = jax.nn.sigmoid(gates[:, 3 * Hp:4 * Hp])
        c = f_g * c + i_g * g_g
        h = o_g * jnp.tanh(c)
        hs_ref[pl.ds(row, Bp), :] = h.astype(hs_ref.dtype)
        return h, c

    h0 = jnp.zeros((Bp, Hp), jnp.float32)
    c0 = jnp.zeros((Bp, Hp), jnp.float32)
    jax.lax.fori_loop(0, T, step, (h0, c0), unroll=True)
    # TODO(synk): if the v6e bundle dump shows W_hh re-staged to the MXU every step,
    # drive the recurrence with pltpu.matmul_push_rhs / matmul_acc_lhs / matmul_pop.


# --------------------------------------------------------------------------------------
# Kernel B: vocab projection (hs @ W_fc^T + b_fc), streamed over vocab tiles.
# --------------------------------------------------------------------------------------
def _fc_kernel(hs_ref, wfc_ref, bfc_ref, out_ref):
    out_ref[...] = (jnp.dot(hs_ref[...], wfc_ref[...],
                            preferred_element_type=jnp.float32)
                    + bfc_ref[...]).astype(out_ref.dtype)


def _decoder_rnn_forward_impl(params, features, captions, *, single_buffer):
    embed_w = params["embed_w"]        # (V, E)
    w_ih = params["w_ih"]              # (4H, E)   gate order i,f,g,o
    w_hh = params["w_hh"]              # (4H, H)
    b_ih = params["b_ih"]              # (4H,)
    b_hh = params["b_hh"]              # (4H,)
    fc_w = params["fc_w"]              # (V, H)
    fc_b = params["fc_b"]              # (V,)

    B, E = features.shape
    H = w_hh.shape[1]
    V = fc_w.shape[0]

    Bp = _round_up(B, 16)      # sublane-aligned for both f32 (8) and packed bf16 (16)
    Hp = _round_up(H, 128)     # lane-aligned gate blocks
    Vp = _round_up(V, 128)     # lane-dense (unmasked) logit stores

    # ---- Time-major input sequence: transpose only the tiny int32 ids, then gather.
    cap_tm = jnp.transpose(captions[:, :-1], (1, 0))                  # (T-1, B)
    cap_emb_tm = jnp.take(embed_w, cap_tm, axis=0)                    # (T-1, B, E)
    seq_tm = jnp.concatenate(
        [features[None, :, :].astype(jnp.float32),
         cap_emb_tm.astype(jnp.float32)], axis=0)                     # (T, B, E)
    T = seq_tm.shape[0]
    rows = T * Bp
    # TODO(synk): fuse this embedding gather into kernel A via scalar-prefetched caption
    # ids + a pl.Element row-gather BlockSpec on embed_w (removes the (T,B,E) HBM pass).

    x_flat = jnp.pad(seq_tm, ((0, 0), (0, Bp - B), (0, 0))
                     ).reshape(rows, E).astype(jnp.bfloat16)          # bf16 streaming operand

    # ---- Zero-padded, gate-block-aligned weights (padding keeps real lanes exact).
    wih_p = jnp.pad(w_ih.T.reshape(E, 4, H).astype(jnp.float32),
                    ((0, 0), (0, 0), (0, Hp - H))).reshape(E, 4 * Hp).astype(jnp.bfloat16)
    whh_p = jnp.pad(w_hh.T.reshape(H, 4, H).astype(jnp.float32),
                    ((0, Hp - H), (0, 0), (0, Hp - H))).reshape(Hp, 4 * Hp)   # f32 recurrent
    b_p = jnp.pad((b_ih + b_hh).reshape(4, H).astype(jnp.float32),
                  ((0, 0), (0, Hp - H))).reshape(1, 4 * Hp)
    wfc_p = jnp.pad(fc_w.T.astype(jnp.float32),
                    ((0, Hp - H), (0, Vp - V))).astype(jnp.bfloat16)          # (Hp, Vp)
    bfc_p = jnp.pad(fc_b.astype(jnp.float32), (0, Vp - V)).reshape(1, Vp)

    vmem_cap = _vmem_cap_bytes()
    buf = 1 if single_buffer else 2

    # ---------------- Kernel A: recurrence ----------------
    need_a = (buf * (x_flat.size * 2 + wih_p.size * 2 + whh_p.size * 4
                     + b_p.size * 4 + rows * Hp * 2)
              + rows * 4 * Hp * 4)
    rec_kernel = functools.partial(_lstm_recurrence_kernel, T=T, Bp=Bp, Hp=Hp)
    hs_flat = pl.pallas_call(
        rec_kernel,
        out_shape=jax.ShapeDtypeStruct((rows, Hp), jnp.bfloat16),
        grid_spec=pltpu.PrefetchScalarGridSpec(
            num_scalar_prefetch=0,
            grid=(1,),                                   # single invocation, VMEM-resident
            in_specs=[
                _spec((rows, E), lambda i: (0, 0), single_buffer=single_buffer),
                _spec((E, 4 * Hp), lambda i: (0, 0), single_buffer=single_buffer),
                _spec((Hp, 4 * Hp), lambda i: (0, 0), single_buffer=single_buffer),
                _spec((1, 4 * Hp), lambda i: (0, 0), single_buffer=single_buffer),
            ],
            out_specs=_spec((rows, Hp), lambda i: (0, 0), single_buffer=single_buffer),
            scratch_shapes=[pltpu.VMEM((rows, 4 * Hp), jnp.float32)],
        ),
        compiler_params=pltpu.CompilerParams(
            dimension_semantics=("arbitrary",),
            vmem_limit_bytes=_vmem_limit(need_a, vmem_cap),
        ),
    )(x_flat, wih_p, whh_p, b_p)

    # ---------------- Kernel B: vocab projection (tiled, parallel over TCs) ----------------
    tile_v = _pick_tile_v(Vp, rows, Hp, vmem_cap)
    n_vt = Vp // tile_v
    need_b = (buf * rows * Hp * 2
              + 2 * (Hp * tile_v * 2 + tile_v * 4 + rows * tile_v * 4))
    out_flat = pl.pallas_call(
        _fc_kernel,
        out_shape=jax.ShapeDtypeStruct((rows, Vp), jnp.float32),
        grid_spec=pltpu.PrefetchScalarGridSpec(
            num_scalar_prefetch=0,
            grid=(n_vt,),
            in_specs=[
                _spec((rows, Hp), lambda j: (0, 0), single_buffer=single_buffer),
                pl.BlockSpec((Hp, tile_v), lambda j: (0, j)),   # streamed (double-buffered)
                pl.BlockSpec((1, tile_v), lambda j: (0, j)),
            ],
            out_specs=pl.BlockSpec((rows, tile_v), lambda j: (0, j)),
        ),
        compiler_params=pltpu.CompilerParams(
            dimension_semantics=("parallel",),               # both TensorCores on v7x
            vmem_limit_bytes=_vmem_limit(need_b, vmem_cap),
        ),
    )(hs_flat, wfc_p, bfc_p)

    out_tm = out_flat.reshape(T, Bp, Vp)[:, :B, :V]          # strip batch/vocab padding
    return jnp.transpose(out_tm, (1, 0, 2))                  # (B, T, V) batch-first


def decoder_rnn_forward(params, features, captions):
    """Pallas implementation of DecoderRNN.forward: (B,E),(B,cap_len) -> (B,cap_len,V)."""
    try:
        return _decoder_rnn_forward_impl(params, features, captions, single_buffer=True)
    except Exception:
        # pl.Buffered(1) single-buffering unsupported on this jax/libtpu build ->
        # fall back to default double-buffered BlockSpecs (identical numerics).
        return _decoder_rnn_forward_impl(params, features, captions, single_buffer=False)


def decoder_rnn_reference(params, features, captions):
    """Pure-JAX f32 reference for correctness checking."""
    embed_w = params["embed_w"]
    w_ih, w_hh = params["w_ih"], params["w_hh"]
    b = params["b_ih"] + params["b_hh"]
    fc_w, fc_b = params["fc_w"], params["fc_b"]
    H = w_hh.shape[1]

    cap_emb = jnp.take(embed_w, captions[:, :-1], axis=0)
    seq = jnp.concatenate([features[:, None, :], cap_emb], axis=1)  # (B, T, E)
    B = seq.shape[0]

    def step(carry, x_t):
        h, c = carry
        gates = x_t @ w_ih.T + h @ w_hh.T + b
        i = jax.nn.sigmoid(gates[:, 0 * H:1 * H])
        f = jax.nn.sigmoid(gates[:, 1 * H:2 * H])
        g = jnp.tanh(gates[:, 2 * H:3 * H])
        o = jax.nn.sigmoid(gates[:, 3 * H:4 * H])
        c = f * c + i * g
        h = o * jnp.tanh(c)
        return (h, c), h

    h0 = jnp.zeros((B, H), jnp.float32)
    c0 = jnp.zeros((B, H), jnp.float32)
    _, hs = jax.lax.scan(step, (h0, c0), jnp.transpose(seq, (1, 0, 2)))
    hs = jnp.transpose(hs, (1, 0, 2))  # (B, T, H)
    return hs @ fc_w.T + fc_b


def init_params(key, embed_size, hidden_size, vocab_size):
    """Deterministic init matching the PyTorch module's scheme."""
    k = jax.random.split(key, 7)
    E, H, V = embed_size, hidden_size, vocab_size

    def xavier(kk, shape):  # fan_out, fan_in  (torch Linear/Embedding weight layout)
        fan_out, fan_in = shape
        bound = math.sqrt(6.0 / (fan_in + fan_out))
        return jax.random.uniform(kk, shape, jnp.float32, -bound, bound)

    u = 1.0 / math.sqrt(H)   # PyTorch LSTM default init
    return {
        "embed_w": xavier(k[0], (V, E)),
        "w_ih": jax.random.uniform(k[1], (4 * H, E), jnp.float32, -u, u),
        "w_hh": jax.random.uniform(k[2], (4 * H, H), jnp.float32, -u, u),
        "b_ih": jax.random.uniform(k[3], (4 * H,), jnp.float32, -u, u),
        "b_hh": jax.random.uniform(k[4], (4 * H,), jnp.float32, -u, u),
        "fc_w": xavier(k[5], (V, H)),
        "fc_b": jnp.zeros((V,), jnp.float32),
    }


if __name__ == "__main__":
    # Small shapes: batch=2, embed=32, hidden=32, vocab=64, caption length=9 -> T=9.
    B, E, H, V, CAP_LEN = 2, 32, 32, 64, 9

    key = jax.random.PRNGKey(0)
    kp, kf, kc = jax.random.split(key, 3)

    params = init_params(kp, E, H, V)
    features = jax.random.normal(kf, (B, E), jnp.float32)
    captions = jax.random.randint(kc, (B, CAP_LEN), 0, V, jnp.int32)

    out = decoder_rnn_forward(params, features, captions)
    out = jax.block_until_ready(out)

    ref = decoder_rnn_reference(params, features, captions)
    assert out.shape == (B, CAP_LEN, V), out.shape
    # Streaming (non-recurrent) matmuls use bf16 operands with f32 accumulation, so the
    # tolerance vs the pure-f32 reference is relaxed accordingly (recurrence stays f32).
    max_err = float(jnp.max(jnp.abs(out - ref)))
    assert max_err < 2e-2, max_err
    print("KERNEL_OK")
</pallas_src>

<mosaic_0001>
module attributes {stable_mosaic.version = 11 : i64} {
  func.func @_lstm_recurrence_kernel(%arg0: i32, %arg1: memref<144x32xbf16, #tpu.memory_space<vmem>>, %arg2: memref<32x512xbf16, #tpu.memory_space<vmem>>, %arg3: memref<128x512xf32, #tpu.memory_space<vmem>>, %arg4: memref<1x512xf32, #tpu.memory_space<vmem>>, %arg5: memref<144x128xbf16, #tpu.memory_space<vmem>>, %arg6: memref<144x512xf32, #tpu.memory_space<vmem>>) attributes {dimension_semantics = [#tpu.dimension_semantics<arbitrary>], iteration_bounds = array<i64: 1>, scalar_prefetch = 0 : i64, scratch_operands = 1 : i64, tpu.core_type = #tpu.core_type<tc>, window_params = [{pipeline_mode = #tpu.pipeline_mode<synchronous>, transform_indices = @transform_0, window_bounds = array<i64: 144, 32>}, {pipeline_mode = #tpu.pipeline_mode<synchronous>, transform_indices = @transform_1, window_bounds = array<i64: 32, 512>}, {pipeline_mode = #tpu.pipeline_mode<synchronous>, transform_indices = @transform_2, window_bounds = array<i64: 128, 512>}, {pipeline_mode = #tpu.pipeline_mode<synchronous>, transform_indices = @transform_3, window_bounds = array<i64: 1, 512>}, {pipeline_mode = #tpu.pipeline_mode<synchronous>, transform_indices = @transform_4, window_bounds = array<i64: 144, 128>}]} {
    %c0 = arith.constant 0 : index
    %c0_0 = arith.constant 0 : index
    %0 = vector.load %arg1[%c0, %c0_0] : memref<144x32xbf16, #tpu.memory_space<vmem>>, vector<144x32xbf16>
    %c0_1 = arith.constant 0 : index
    %c0_2 = arith.constant 0 : index
    %1 = vector.load %arg2[%c0_1, %c0_2] : memref<32x512xbf16, #tpu.memory_space<vmem>>, vector<32x512xbf16>
    %cst = arith.constant dense<0.000000e+00> : vector<144x512xf32>
    %2 = tpu.matmul %0, %1, %cst {dimension_numbers = #tpu.dot_dimension_numbers<[1], [0], [0], [1], [0, 0, 1, 1], [], []>} : vector<144x32xbf16>, vector<32x512xbf16>, vector<144x512xf32> -> vector<144x512xf32>
    %c0_3 = arith.constant 0 : index
    %c0_4 = arith.constant 0 : index
    %3 = vector.load %arg4[%c0_3, %c0_4] : memref<1x512xf32, #tpu.memory_space<vmem>>, vector<1x512xf32>
    %4 = vector.broadcast %3 : vector<1x512xf32> to vector<144x512xf32>
    %5 = arith.addf %2, %4 : vector<144x512xf32>
    %c0_5 = arith.constant 0 : index
    %c0_6 = arith.constant 0 : index
    %6 = vector.load %arg6[%c0_5, %c0_6] : memref<144x512xf32, #tpu.memory_space<vmem>>, vector<144x512xf32>
    tpu.vector_store %arg6[%c0_5, %c0_6], %5 {strides = array<i32>} : memref<144x512xf32, #tpu.memory_space<vmem>>, vector<144x512xf32>,
    %cst_7 = arith.constant 0.000000e+00 : f32
    %7 = vector.broadcast %cst_7 : f32 to vector<16x128xf32>
    %cst_8 = arith.constant 0.000000e+00 : f32
    %8 = vector.broadcast %cst_8 : f32 to vector<16x128xf32>
    %c0_i32 = arith.constant 0 : i32
    %c16_i32 = arith.constant 16 : i32
    %9 = arith.muli %c0_i32, %c16_i32 : i32
    %10 = tpu.assume_multiple %9, 16 : i32
    %11 = arith.index_cast %10 : i32 to index
    %c0_9 = arith.constant 0 : index
    %12 = vector.load %arg6[%11, %c0_9] : memref<144x512xf32, #tpu.memory_space<vmem>>, vector<16x512xf32>
    %c0_10 = arith.constant 0 : index
    %c0_11 = arith.constant 0 : index
    %13 = vector.load %arg3[%c0_10, %c0_11] : memref<128x512xf32, #tpu.memory_space<vmem>>, vector<128x512xf32>
    %cst_12 = arith.constant dense<0.000000e+00> : vector<16x512xf32>
    %14 = tpu.matmul %7, %13, %cst_12 {dimension_numbers = #tpu.dot_dimension_numbers<[1], [0], [0], [1], [0, 0, 1, 1], [], []>} : vector<16x128xf32>, vector<128x512xf32>, vector<16x512xf32> -> vector<16x512xf32>
    %15 = arith.addf %12, %14 : vector<16x512xf32>
    %16 = vector.extract_strided_slice %15 {offsets = [0, 0], sizes = [16, 128], strides = [1, 1]} : vector<16x512xf32> to vector<16x128xf32>
    %17 = arith.negf %16 : vector<16x128xf32>
    %18 = math.exp %17 : vector<16x128xf32>
    %cst_13 = arith.constant 1.000000e+00 : f32
    %19 = vector.broadcast %cst_13 : f32 to vector<16x128xf32>
    %20 = arith.addf %19, %18 : vector<16x128xf32>
    %21 = arith.divf %19, %20 : vector<16x128xf32>
    %22 = vector.extract_strided_slice %15 {offsets = [0, 128], sizes = [16, 128], strides = [1, 1]} : vector<16x512xf32> to vector<16x128xf32>
    %23 = arith.negf %22 : vector<16x128xf32>
    %24 = math.exp %23 : vector<16x128xf32>
    %cst_14 = arith.constant 1.000000e+00 : f32
    %25 = vector.broadcast %cst_14 : f32 to vector<16x128xf32>
    %26 = arith.addf %25, %24 : vector<16x128xf32>
    %27 = arith.divf %25, %26 : vector<16x128xf32>
    %28 = vector.extract_strided_slice %15 {offsets = [0, 256], sizes = [16, 128], strides = [1, 1]} : vector<16x512xf32> to vector<16x128xf32>
    %29 = math.tanh %28 : vector<16x128xf32>
    %30 = vector.extract_strided_slice %15 {offsets = [0, 384], sizes = [16, 128], strides = [1, 1]} : vector<16x512xf32> to vector<16x128xf32>
    %31 = arith.negf %30 : vector<16x128xf32>
    %32 = math.exp %31 : vector<16x128xf32>
    %cst_15 = arith.constant 1.000000e+00 : f32
    %33 = vector.broadcast %cst_15 : f32 to vector<16x128xf32>
    %34 = arith.addf %33, %32 : vector<16x128xf32>
    %35 = arith.divf %33, %34 : vector<16x128xf32>
    %36 = arith.mulf %27, %8 : vector<16x128xf32>
    %37 = arith.mulf %21, %29 : vector<16x128xf32>
    %38 = arith.addf %36, %37 : vector<16x128xf32>
    %39 = math.tanh %38 : vector<16x128xf32>
    %40 = arith.mulf %35, %39 : vector<16x128xf32>
    %41 = arith.truncf %40 : vector<16x128xf32> to vector<16x128xbf16>
    %42 = arith.index_cast %10 : i32 to index
    %c0_16 = arith.constant 0 : index
    %43 = vector.load %arg5[%42, %c0_16] : memref<144x128xbf16, #tpu.memory_space<vmem>>, vector<16x128xbf16>
    tpu.vector_store %arg5[%42, %c0_16], %41 {strides = array<i32>} : memref<144x128xbf16, #tpu.memory_space<vmem>>, vector<16x128xbf16>,
    %c1_i32 = arith.constant 1 : i32
    %c16_i32_17 = arith.constant 16 : i32
    %44 = arith.muli %c1_i32, %c16_i32_17 : i32
    %45 = tpu.assume_multiple %44, 16 : i32
    %46 = arith.index_cast %45 : i32 to index
    %c0_18 = arith.constant 0 : index
    %47 = vector.load %arg6[%46, %c0_18] : memref<144x512xf32, #tpu.memory_space<vmem>>, vector<16x512xf32>
    %c0_19 = arith.constant 0 : index
    %c0_20 = arith.constant 0 : index
    %48 = vector.load %arg3[%c0_19, %c0_20] : memref<128x512xf32, #tpu.memory_space<vmem>>, vector<128x512xf32>
    %cst_21 = arith.constant dense<0.000000e+00> : vector<16x512xf32>
    %49 = tpu.matmul %40, %48, %cst_21 {dimension_numbers = #tpu.dot_dimension_numbers<[1], [0], [0], [1], [0, 0, 1, 1], [], []>} : vector<16x128xf32>, vector<128x512xf32>, vector<16x512xf32> -> vector<16x512xf32>
    %50 = arith.addf %47, %49 : vector<16x512xf32>
    %51 = vector.extract_strided_slice %50 {offsets = [0, 0], sizes = [16, 128], strides = [1, 1]} : vector<16x512xf32> to vector<16x128xf32>
    %52 = arith.negf %51 : vector<16x128xf32>
    %53 = math.exp %52 : vector<16x128xf32>
    %cst_22 = arith.constant 1.000000e+00 : f32
    %54 = vector.broadcast %cst_22 : f32 to vector<16x128xf32>
    %55 = arith.addf %54, %53 : vector<16x128xf32>
    %56 = arith.divf %54, %55 : vector<16x128xf32>
    %57 = vector.extract_strided_slice %50 {offsets = [0, 128], sizes = [16, 128], strides = [1, 1]} : vector<16x512xf32> to vector<16x128xf32>
    %58 = arith.negf %57 : vector<16x128xf32>
    %59 = math.exp %58 : vector<16x128xf32>
    %cst_23 = arith.constant 1.000000e+00 : f32
    %60 = vector.broadcast %cst_23 : f32 to vector<16x128xf32>
    %61 = arith.addf %60, %59 : vector<16x128xf32>
    %62 = arith.divf %60, %61 : vector<16x128xf32>
    %63 = vector.extract_strided_slice %50 {offsets = [0, 256], sizes = [16, 128], strides = [1, 1]} : vector<16x512xf32> to vector<16x128xf32>
    %64 = math.tanh %63 : vector<16x128xf32>
    %65 = vector.extract_strided_slice %50 {offsets = [0, 384], sizes = [16, 128], strides = [1, 1]} : vector<16x512xf32> to vector<16x128xf32>
    %66 = arith.negf %65 : vector<16x128xf32>
    %67 = math.exp %66 : vector<16x128xf32>
    %cst_24 = arith.constant 1.000000e+00 : f32
    %68 = vector.broadcast %cst_24 : f32 to vector<16x128xf32>
    %69 = arith.addf %68, %67 : vector<16x128xf32>
    %70 = arith.divf %68, %69 : vector<16x128xf32>
    %71 = arith.mulf %62, %38 : vector<16x128xf32>
    %72 = arith.mulf %56, %64 : vector<16x128xf32>
    %73 = arith.addf %71, %72 : vector<16x128xf32>
    %74 = math.tanh %73 : vector<16x128xf32>
    %75 = arith.mulf %70, %74 : vector<16x128xf32>
    %76 = arith.truncf %75 : vector<16x128xf32> to vector<16x128xbf16>
    %77 = arith.index_cast %45 : i32 to index
    %c0_25 = arith.constant 0 : index
    %78 = vector.load %arg5[%77, %c0_25] : memref<144x128xbf16, #tpu.memory_space<vmem>>, vector<16x128xbf16>
    tpu.vector_store %arg5[%77, %c0_25], %76 {strides = array<i32>} : memref<144x128xbf16, #tpu.memory_space<vmem>>, vector<16x128xbf16>,
    %c2_i32 = arith.constant 2 : i32
    %c16_i32_26 = arith.constant 16 : i32
    %79 = arith.muli %c2_i32, %c16_i32_26 : i32
    %80 = tpu.assume_multiple %79, 16 : i32
    %81 = arith.index_cast %80 : i32 to index
    %c0_27 = arith.constant 0 : index
    %82 = vector.load %arg6[%81, %c0_27] : memref<144x512xf32, #tpu.memory_space<vmem>>, vector<16x512xf32>
    %c0_28 = arith.constant 0 : index
    %c0_29 = arith.constant 0 : index
    %83 = vector.load %arg3[%c0_28, %c0_29] : memref<128x512xf32, #tpu.memory_space<vmem>>, vector<128x512xf32>
    %cst_30 = arith.constant dense<0.000000e+00> : vector<16x512xf32>
    %84 = tpu.matmul %75, %83, %cst_30 {dimension_numbers = #tpu.dot_dimension_numbers<[1], [0], [0], [1], [0, 0, 1, 1], [], []>} : vector<16x128xf32>, vector<128x512xf32>, vector<16x512xf32> -> vector<16x512xf32>
    %85 = arith.addf %82, %84 : vector<16x512xf32>
    %86 = vector.extract_strided_slice %85 {offsets = [0, 0], sizes = [16, 128], strides = [1, 1]} : vector<16x512xf32> to vector<16x128xf32>
    %87 = arith.negf %86 : vector<16x128xf32>
    %88 = math.exp %87 : vector<16x128xf32>
    %cst_31 = arith.constant 1.000000e+00 : f32
    %89 = vector.broadcast %cst_31 : f32 to vector<16x128xf32>
    %90 = arith.addf %89, %88 : vector<16x128xf32>
    %91 = arith.divf %89, %90 : vector<16x128xf32>
    %92 = vector.extract_strided_slice %85 {offsets = [0, 128], sizes = [16, 128], strides = [1, 1]} : vector<16x512xf32> to vector<16x128xf32>
    %93 = arith.negf %92 : vector<16x128xf32>
    %94 = math.exp %93 : vector<16x128xf32>
    %cst_32 = arith.constant 1.000000e+00 : f32
    %95 = vector.broadcast %cst_32 : f32 to vector<16x128xf32>
    %96 = arith.addf %95, %94 : vector<16x128xf32>
    %97 = arith.divf %95, %96 : vector<16x128xf32>
    %98 = vector.extract_strided_slice %85 {offsets = [0, 256], sizes = [16, 128], strides = [1, 1]} : vector<16x512xf32> to vector<16x128xf32>
    %99 = math.tanh %98 : vector<16x128xf32>
    %100 = vector.extract_strided_slice %85 {offsets = [0, 384], sizes = [16, 128], strides = [1, 1]} : vector<16x512xf32> to vector<16x128xf32>
    %101 = arith.negf %100 : vector<16x128xf32>
    %102 = math.exp %101 : vector<16x128xf32>
    %cst_33 = arith.constant 1.000000e+00 : f32
    %103 = vector.broadcast %cst_33 : f32 to vector<16x128xf32>
    %104 = arith.addf %103, %102 : vector<16x128xf32>
    %105 = arith.divf %103, %104 : vector<16x128xf32>
    %106 = arith.mulf %97, %73 : vector<16x128xf32>
    %107 = arith.mulf %91, %99 : vector<16x128xf32>
    %108 = arith.addf %106, %107 : vector<16x128xf32>
    %109 = math.tanh %108 : vector<16x128xf32>
    %110 = arith.mulf %105, %109 : vector<16x128xf32>
    %111 = arith.truncf %110 : vector<16x128xf32> to vector<16x128xbf16>
    %112 = arith.index_cast %80 : i32 to index
    %c0_34 = arith.constant 0 : index
    %113 = vector.load %arg5[%112, %c0_34] : memref<144x128xbf16, #tpu.memory_space<vmem>>, vector<16x128xbf16>
    tpu.vector_store %arg5[%112, %c0_34], %111 {strides = array<i32>} : memref<144x128xbf16, #tpu.memory_space<vmem>>, vector<16x128xbf16>,
    %c3_i32 = arith.constant 3 : i32
    %c16_i32_35 = arith.constant 16 : i32
    %114 = arith.muli %c3_i32, %c16_i32_35 : i32
    %115 = tpu.assume_multiple %114, 16 : i32
    %116 = arith.index_cast %115 : i32 to index
    %c0_36 = arith.constant 0 : index
    %117 = vector.load %arg6[%116, %c0_36] : memref<144x512xf32, #tpu.memory_space<vmem>>, vector<16x512xf32>
    %c0_37 = arith.constant 0 : index
    %c0_38 = arith.constant 0 : index
    %118 = vector.load %arg3[%c0_37, %c0_38] : memref<128x512xf32, #tpu.memory_space<vmem>>, vector<128x512xf32>
    %cst_39 = arith.constant dense<0.000000e+00> : vector<16x512xf32>
    %119 = tpu.matmul %110, %118, %cst_39 {dimension_numbers = #tpu.dot_dimension_numbers<[1], [0], [0], [1], [0, 0, 1, 1], [], []>} : vector<16x128xf32>, vector<128x512xf32>, vector<16x512xf32> -> vector<16x512xf32>
    %120 = arith.addf %117, %119 : vector<16x512xf32>
    %121 = vector.extract_strided_slice %120 {offsets = [0, 0], sizes = [16, 128], strides = [1, 1]} : vector<16x512xf32> to vector<16x128xf32>
    %122 = arith.negf %121 : vector<16x128xf32>
    %123 = math.exp %122 : vector<16x128xf32>
    %cst_40 = arith.constant 1.000000e+00 : f32
    %124 = vector.broadcast %cst_40 : f32 to vector<16x128xf32>
    %125 = arith.addf %124, %123 : vector<16x128xf32>
    %126 = arith.divf %124, %125 : vector<16x128xf32>
    %127 = vector.extract_strided_slice %120 {offsets = [0, 128], sizes = [16, 128], strides = [1, 1]} : vector<16x512xf32> to vector<16x128xf32>
    %128 = arith.negf %127 : vector<16x128xf32>
    %129 = math.exp %128 : vector<16x128xf32>
    %cst_41 = arith.constant 1.000000e+00 : f32
    %130 = vector.broadcast %cst_41 : f32 to vector<16x128xf32>
    %131 = arith.addf %130, %129 : vector<16x128xf32>
    %132 = arith.divf %130, %131 : vector<16x128xf32>
    %133 = vector.extract_strided_slice %120 {offsets = [0, 256], sizes = [16, 128], strides = [1, 1]} : vector<16x512xf32> to vector<16x128xf32>
    %134 = math.tanh %133 : vector<16x128xf32>
    %135 = vector.extract_strided_slice %120 {offsets = [0, 384], sizes = [16, 128], strides = [1, 1]} : vector<16x512xf32> to vector<16x128xf32>
    %136 = arith.negf %135 : vector<16x128xf32>
    %137 = math.exp %136 : vector<16x128xf32>
    %cst_42 = arith.constant 1.000000e+00 : f32
    %138 = vector.broadcast %cst_42 : f32 to vector<16x128xf32>
    %139 = arith.addf %138, %137 : vector<16x128xf32>
    %140 = arith.divf %138, %139 : vector<16x128xf32>
    %141 = arith.mulf %132, %108 : vector<16x128xf32>
    %142 = arith.mulf %126, %134 : vector<16x128xf32>
    %143 = arith.addf %141, %142 : vector<16x128xf32>
    %144 = math.tanh %143 : vector<16x128xf32>
    %145 = arith.mulf %140, %144 : vector<16x128xf32>
    %146 = arith.truncf %145 : vector<16x128xf32> to vector<16x128xbf16>
    %147 = arith.index_cast %115 : i32 to index
    %c0_43 = arith.constant 0 : index
    %148 = vector.load %arg5[%147, %c0_43] : memref<144x128xbf16, #tpu.memory_space<vmem>>, vector<16x128xbf16>
    tpu.vector_store %arg5[%147, %c0_43], %146 {strides = array<i32>} : memref<144x128xbf16, #tpu.memory_space<vmem>>, vector<16x128xbf16>,
    %c4_i32 = arith.constant 4 : i32
    %c16_i32_44 = arith.constant 16 : i32
    %149 = arith.muli %c4_i32, %c16_i32_44 : i32
    %150 = tpu.assume_multiple %149, 16 : i32
    %151 = arith.index_cast %150 : i32 to index
    %c0_45 = arith.constant 0 : index
    %152 = vector.load %arg6[%151, %c0_45] : memref<144x512xf32, #tpu.memory_space<vmem>>, vector<16x512xf32>
    %c0_46 = arith.constant 0 : index
    %c0_47 = arith.constant 0 : index
    %153 = vector.load %arg3[%c0_46, %c0_47] : memref<128x512xf32, #tpu.memory_space<vmem>>, vector<128x512xf32>
    %cst_48 = arith.constant dense<0.000000e+00> : vector<16x512xf32>
    %154 = tpu.matmul %145, %153, %cst_48 {dimension_numbers = #tpu.dot_dimension_numbers<[1], [0], [0], [1], [0, 0, 1, 1], [], []>} : vector<16x128xf32>, vector<128x512xf32>, vector<16x512xf32> -> vector<16x512xf32>
    %155 = arith.addf %152, %154 : vector<16x512xf32>
    %156 = vector.extract_strided_slice %155 {offsets = [0, 0], sizes = [16, 128], strides = [1, 1]} : vector<16x512xf32> to vector<16x128xf32>
    %157 = arith.negf %156 : vector<16x128xf32>
    %158 = math.exp %157 : vector<16x128xf32>
    %cst_49 = arith.constant 1.000000e+00 : f32
    %159 = vector.broadcast %cst_49 : f32 to vector<16x128xf32>
    %160 = arith.addf %159, %158 : vector<16x128xf32>
    %161 = arith.divf %159, %160 : vector<16x128xf32>
    %162 = vector.extract_strided_slice %155 {offsets = [0, 128], sizes = [16, 128], strides = [1, 1]} : vector<16x512xf32> to vector<16x128xf32>
    %163 = arith.negf %162 : vector<16x128xf32>
    %164 = math.exp %163 : vector<16x128xf32>
    %cst_50 = arith.constant 1.000000e+00 : f32
    %165 = vector.broadcast %cst_50 : f32 to vector<16x128xf32>
    %166 = arith.addf %165, %164 : vector<16x128xf32>
    %167 = arith.divf %165, %166 : vector<16x128xf32>
    %168 = vector.extract_strided_slice %155 {offsets = [0, 256], sizes = [16, 128], strides = [1, 1]} : vector<16x512xf32> to vector<16x128xf32>
    %169 = math.tanh %168 : vector<16x128xf32>
    %170 = vector.extract_strided_slice %155 {offsets = [0, 384], sizes = [16, 128], strides = [1, 1]} : vector<16x512xf32> to vector<16x128xf32>
    %171 = arith.negf %170 : vector<16x128xf32>
    %172 = math.exp %171 : vector<16x128xf32>
    %cst_51 = arith.constant 1.000000e+00 : f32
    %173 = vector.broadcast %cst_51 : f32 to vector<16x128xf32>
    %174 = arith.addf %173, %172 : vector<16x128xf32>
    %175 = arith.divf %173, %174 : vector<16x128xf32>
    %176 = arith.mulf %167, %143 : vector<16x128xf32>
    %177 = arith.mulf %161, %169 : vector<16x128xf32>
    %178 = arith.addf %176, %177 : vector<16x128xf32>
    %179 = math.tanh %178 : vector<16x128xf32>
    %180 = arith.mulf %175, %179 : vector<16x128xf32>
    %181 = arith.truncf %180 : vector<16x128xf32> to vector<16x128xbf16>
    %182 = arith.index_cast %150 : i32 to index
    %c0_52 = arith.constant 0 : index
    %183 = vector.load %arg5[%182, %c0_52] : memref<144x128xbf16, #tpu.memory_space<vmem>>, vector<16x128xbf16>
    tpu.vector_store %arg5[%182, %c0_52], %181 {strides = array<i32>} : memref<144x128xbf16, #tpu.memory_space<vmem>>, vector<16x128xbf16>,
    %c5_i32 = arith.constant 5 : i32
    %c16_i32_53 = arith.constant 16 : i32
    %184 = arith.muli %c5_i32, %c16_i32_53 : i32
    %185 = tpu.assume_multiple %184, 16 : i32
    %186 = arith.index_cast %185 : i32 to index
    %c0_54 = arith.constant 0 : index
    %187 = vector.load %arg6[%186, %c0_54] : memref<144x512xf32, #tpu.memory_space<vmem>>, vector<16x512xf32>
    %c0_55 = arith.constant 0 : index
    %c0_56 = arith.constant 0 : index
    %188 = vector.load %arg3[%c0_55, %c0_56] : memref<128x512xf32, #tpu.memory_space<vmem>>, vector<128x512xf32>
    %cst_57 = arith.constant dense<0.000000e+00> : vector<16x512xf32>
    %189 = tpu.matmul %180, %188, %cst_57 {dimension_numbers = #tpu.dot_dimension_numbers<[1], [0], [0], [1], [0, 0, 1, 1], [], []>} : vector<16x128xf32>, vector<128x512xf32>, vector<16x512xf32> -> vector<16x512xf32>
    %190 = arith.addf %187, %189 : vector<16x512xf32>
    %191 = vector.extract_strided_slice %190 {offsets = [0, 0], sizes = [16, 128], strides = [1, 1]} : vector<16x512xf32> to vector<16x128xf32>
    %192 = arith.negf %191 : vector<16x128xf32>
    %193 = math.exp %192 : vector<16x128xf32>
    %cst_58 = arith.constant 1.000000e+00 : f32
    %194 = vector.broadcast %cst_58 : f32 to vector<16x128xf32>
    %195 = arith.addf %194, %193 : vector<16x128xf32>
    %196 = arith.divf %194, %195 : vector<16x128xf32>
    %197 = vector.extract_strided_slice %190 {offsets = [0, 128], sizes = [16, 128], strides = [1, 1]} : vector<16x512xf32> to vector<16x128xf32>
    %198 = arith.negf %197 : vector<16x128xf32>
    %199 = math.exp %198 : vector<16x128xf32>
    %cst_59 = arith.constant 1.000000e+00 : f32
    %200 = vector.broadcast %cst_59 : f32 to vector<16x128xf32>
    %201 = arith.addf %200, %199 : vector<16x128xf32>
    %202 = arith.divf %200, %201 : vector<16x128xf32>
    %203 = vector.extract_strided_slice %190 {offsets = [0, 256], sizes = [16, 128], strides = [1, 1]} : vector<16x512xf32> to vector<16x128xf32>
    %204 = math.tanh %203 : vector<16x128xf32>
    %205 = vector.extract_strided_slice %190 {offsets = [0, 384], sizes = [16, 128], strides = [1, 1]} : vector<16x512xf32> to vector<16x128xf32>
    %206 = arith.negf %205 : vector<16x128xf32>
    %207 = math.exp %206 : vector<16x128xf32>
    %cst_60 = arith.constant 1.000000e+00 : f32
    %208 = vector.broadcast %cst_60 : f32 to vector<16x128xf32>
    %209 = arith.addf %208, %207 : vector<16x128xf32>
    %210 = arith.divf %208, %209 : vector<16x128xf32>
    %211 = arith.mulf %202, %178 : vector<16x128xf32>
    %212 = arith.mulf %196, %204 : vector<16x128xf32>
    %213 = arith.addf %211, %212 : vector<16x128xf32>
    %214 = math.tanh %213 : vector<16x128xf32>
    %215 = arith.mulf %210, %214 : vector<16x128xf32>
    %216 = arith.truncf %215 : vector<16x128xf32> to vector<16x128xbf16>
    %217 = arith.index_cast %185 : i32 to index
    %c0_61 = arith.constant 0 : index
    %218 = vector.load %arg5[%217, %c0_61] : memref<144x128xbf16, #tpu.memory_space<vmem>>, vector<16x128xbf16>
    tpu.vector_store %arg5[%217, %c0_61], %216 {strides = array<i32>} : memref<144x128xbf16, #tpu.memory_space<vmem>>, vector<16x128xbf16>,
    %c6_i32 = arith.constant 6 : i32
    %c16_i32_62 = arith.constant 16 : i32
    %219 = arith.muli %c6_i32, %c16_i32_62 : i32
    %220 = tpu.assume_multiple %219, 16 : i32
    %221 = arith.index_cast %220 : i32 to index
    %c0_63 = arith.constant 0 : index
    %222 = vector.load %arg6[%221, %c0_63] : memref<144x512xf32, #tpu.memory_space<vmem>>, vector<16x512xf32>
    %c0_64 = arith.constant 0 : index
    %c0_65 = arith.constant 0 : index
    %223 = vector.load %arg3[%c0_64, %c0_65] : memref<128x512xf32, #tpu.memory_space<vmem>>, vector<128x512xf32>
    %cst_66 = arith.constant dense<0.000000e+00> : vector<16x512xf32>
    %224 = tpu.matmul %215, %223, %cst_66 {dimension_numbers = #tpu.dot_dimension_numbers<[1], [0], [0], [1], [0, 0, 1, 1], [], []>} : vector<16x128xf32>, vector<128x512xf32>, vector<16x512xf32> -> vector<16x512xf32>
    %225 = arith.addf %222, %224 : vector<16x512xf32>
    %226 = vector.extract_strided_slice %225 {offsets = [0, 0], sizes = [16, 128], strides = [1, 1]} : vector<16x512xf32> to vector<16x128xf32>
    %227 = arith.negf %226 : vector<16x128xf32>
    %228 = math.exp %227 : vector<16x128xf32>
    %cst_67 = arith.constant 1.000000e+00 : f32
    %229 = vector.broadcast %cst_67 : f32 to vector<16x128xf32>
    %230 = arith.addf %229, %228 : vector<16x128xf32>
    %231 = arith.divf %229, %230 : vector<16x128xf32>
    %232 = vector.extract_strided_slice %225 {offsets = [0, 128], sizes = [16, 128], strides = [1, 1]} : vector<16x512xf32> to vector<16x128xf32>
    %233 = arith.negf %232 : vector<16x128xf32>
    %234 = math.exp %233 : vector<16x128xf32>
    %cst_68 = arith.constant 1.000000e+00 : f32
    %235 = vector.broadcast %cst_68 : f32 to vector<16x128xf32>
    %236 = arith.addf %235, %234 : vector<16x128xf32>
    %237 = arith.divf %235, %236 : vector<16x128xf32>
    %238 = vector.extract_strided_slice %225 {offsets = [0, 256], sizes = [16, 128], strides = [1, 1]} : vector<16x512xf32> to vector<16x128xf32>
    %239 = math.tanh %238 : vector<16x128xf32>
    %240 = vector.extract_strided_slice %225 {offsets = [0, 384], sizes = [16, 128], strides = [1, 1]} : vector<16x512xf32> to vector<16x128xf32>
    %241 = arith.negf %240 : vector<16x128xf32>
    %242 = math.exp %241 : vector<16x128xf32>
    %cst_69 = arith.constant 1.000000e+00 : f32
    %243 = vector.broadcast %cst_69 : f32 to vector<16x128xf32>
    %244 = arith.addf %243, %242 : vector<16x128xf32>
    %245 = arith.divf %243, %244 : vector<16x128xf32>
    %246 = arith.mulf %237, %213 : vector<16x128xf32>
    %247 = arith.mulf %231, %239 : vector<16x128xf32>
    %248 = arith.addf %246, %247 : vector<16x128xf32>
    %249 = math.tanh %248 : vector<16x128xf32>
    %250 = arith.mulf %245, %249 : vector<16x128xf32>
    %251 = arith.truncf %250 : vector<16x128xf32> to vector<16x128xbf16>
    %252 = arith.index_cast %220 : i32 to index
    %c0_70 = arith.constant 0 : index
    %253 = vector.load %arg5[%252, %c0_70] : memref<144x128xbf16, #tpu.memory_space<vmem>>, vector<16x128xbf16>
    tpu.vector_store %arg5[%252, %c0_70], %251 {strides = array<i32>} : memref<144x128xbf16, #tpu.memory_space<vmem>>, vector<16x128xbf16>,
    %c7_i32 = arith.constant 7 : i32
    %c16_i32_71 = arith.constant 16 : i32
    %254 = arith.muli %c7_i32, %c16_i32_71 : i32
    %255 = tpu.assume_multiple %254, 16 : i32
    %256 = arith.index_cast %255 : i32 to index
    %c0_72 = arith.constant 0 : index
    %257 = vector.load %arg6[%256, %c0_72] : memref<144x512xf32, #tpu.memory_space<vmem>>, vector<16x512xf32>
    %c0_73 = arith.constant 0 : index
    %c0_74 = arith.constant 0 : index
    %258 = vector.load %arg3[%c0_73, %c0_74] : memref<128x512xf32, #tpu.memory_space<vmem>>, vector<128x512xf32>
    %cst_75 = arith.constant dense<0.000000e+00> : vector<16x512xf32>
    %259 = tpu.matmul %250, %258, %cst_75 {dimension_numbers = #tpu.dot_dimension_numbers<[1], [0], [0], [1], [0, 0, 1, 1], [], []>} : vector<16x128xf32>, vector<128x512xf32>, vector<16x512xf32> -> vector<16x512xf32>
    %260 = arith.addf %257, %259 : vector<16x512xf32>
    %261 = vector.extract_strided_slice %260 {offsets = [0, 0], sizes = [16, 128], strides = [1, 1]} : vector<16x512xf32> to vector<16x128xf32>
    %262 = arith.negf %261 : vector<16x128xf32>
    %263 = math.exp %262 : vector<16x128xf32>
    %cst_76 = arith.constant 1.000000e+00 : f32
    %264 = vector.broadcast %cst_76 : f32 to vector<16x128xf32>
    %265 = arith.addf %264, %263 : vector<16x128xf32>
    %266 = arith.divf %264, %265 : vector<16x128xf32>
    %267 = vector.extract_strided_slice %260 {offsets = [0, 128], sizes = [16, 128], strides = [1, 1]} : vector<16x512xf32> to vector<16x128xf32>
    %268 = arith.negf %267 : vector<16x128xf32>
    %269 = math.exp %268 : vector<16x128xf32>
    %cst_77 = arith.constant 1.000000e+00 : f32
    %270 = vector.broadcast %cst_77 : f32 to vector<16x128xf32>
    %271 = arith.addf %270, %269 : vector<16x128xf32>
    %272 = arith.divf %270, %271 : vector<16x128xf32>
    %273 = vector.extract_strided_slice %260 {offsets = [0, 256], sizes = [16, 128], strides = [1, 1]} : vector<16x512xf32> to vector<16x128xf32>
    %274 = math.tanh %273 : vector<16x128xf32>
    %275 = vector.extract_strided_slice %260 {offsets = [0, 384], sizes = [16, 128], strides = [1, 1]} : vector<16x512xf32> to vector<16x128xf32>
    %276 = arith.negf %275 : vector<16x128xf32>
    %277 = math.exp %276 : vector<16x128xf32>
    %cst_78 = arith.constant 1.000000e+00 : f32
    %278 = vector.broadcast %cst_78 : f32 to vector<16x128xf32>
    %279 = arith.addf %278, %277 : vector<16x128xf32>
    %280 = arith.divf %278, %279 : vector<16x128xf32>
    %281 = arith.mulf %272, %248 : vector<16x128xf32>
    %282 = arith.mulf %266, %274 : vector<16x128xf32>
    %283 = arith.addf %281, %282 : vector<16x128xf32>
    %284 = math.tanh %283 : vector<16x128xf32>
    %285 = arith.mulf %280, %284 : vector<16x128xf32>
    %286 = arith.truncf %285 : vector<16x128xf32> to vector<16x128xbf16>
    %287 = arith.index_cast %255 : i32 to index
    %c0_79 = arith.constant 0 : index
    %288 = vector.load %arg5[%287, %c0_79] : memref<144x128xbf16, #tpu.memory_space<vmem>>, vector<16x128xbf16>
    tpu.vector_store %arg5[%287, %c0_79], %286 {strides = array<i32>} : memref<144x128xbf16, #tpu.memory_space<vmem>>, vector<16x128xbf16>,
    %c8_i32 = arith.constant 8 : i32
    %c16_i32_80 = arith.constant 16 : i32
    %289 = arith.muli %c8_i32, %c16_i32_80 : i32
    %290 = tpu.assume_multiple %289, 16 : i32
    %291 = arith.index_cast %290 : i32 to index
    %c0_81 = arith.constant 0 : index
    %292 = vector.load %arg6[%291, %c0_81] : memref<144x512xf32, #tpu.memory_space<vmem>>, vector<16x512xf32>
    %c0_82 = arith.constant 0 : index
    %c0_83 = arith.constant 0 : index
    %293 = vector.load %arg3[%c0_82, %c0_83] : memref<128x512xf32, #tpu.memory_space<vmem>>, vector<128x512xf32>
    %cst_84 = arith.constant dense<0.000000e+00> : vector<16x512xf32>
    %294 = tpu.matmul %285, %293, %cst_84 {dimension_numbers = #tpu.dot_dimension_numbers<[1], [0], [0], [1], [0, 0, 1, 1], [], []>} : vector<16x128xf32>, vector<128x512xf32>, vector<16x512xf32> -> vector<16x512xf32>
    %295 = arith.addf %292, %294 : vector<16x512xf32>
    %296 = vector.extract_strided_slice %295 {offsets = [0, 0], sizes = [16, 128], strides = [1, 1]} : vector<16x512xf32> to vector<16x128xf32>
    %297 = arith.negf %296 : vector<16x128xf32>
    %298 = math.exp %297 : vector<16x128xf32>
    %cst_85 = arith.constant 1.000000e+00 : f32
    %299 = vector.broadcast %cst_85 : f32 to vector<16x128xf32>
    %300 = arith.addf %299, %298 : vector<16x128xf32>
    %301 = arith.divf %299, %300 : vector<16x128xf32>
    %302 = vector.extract_strided_slice %295 {offsets = [0, 128], sizes = [16, 128], strides = [1, 1]} : vector<16x512xf32> to vector<16x128xf32>
    %303 = arith.negf %302 : vector<16x128xf32>
    %304 = math.exp %303 : vector<16x128xf32>
    %cst_86 = arith.constant 1.000000e+00 : f32
    %305 = vector.broadcast %cst_86 : f32 to vector<16x128xf32>
    %306 = arith.addf %305, %304 : vector<16x128xf32>
    %307 = arith.divf %305, %306 : vector<16x128xf32>
    %308 = vector.extract_strided_slice %295 {offsets = [0, 256], sizes = [16, 128], strides = [1, 1]} : vector<16x512xf32> to vector<16x128xf32>
    %309 = math.tanh %308 : vector<16x128xf32>
    %310 = vector.extract_strided_slice %295 {offsets = [0, 384], sizes = [16, 128], strides = [1, 1]} : vector<16x512xf32> to vector<16x128xf32>
    %311 = arith.negf %310 : vector<16x128xf32>
    %312 = math.exp %311 : vector<16x128xf32>
    %cst_87 = arith.constant 1.000000e+00 : f32
    %313 = vector.broadcast %cst_87 : f32 to vector<16x128xf32>
    %314 = arith.addf %313, %312 : vector<16x128xf32>
    %315 = arith.divf %313, %314 : vector<16x128xf32>
    %316 = arith.mulf %307, %283 : vector<16x128xf32>
    %317 = arith.mulf %301, %309 : vector<16x128xf32>
    %318 = arith.addf %316, %317 : vector<16x128xf32>
    %319 = math.tanh %318 : vector<16x128xf32>
    %320 = arith.mulf %315, %319 : vector<16x128xf32>
    %321 = arith.truncf %320 : vector<16x128xf32> to vector<16x128xbf16>
    %322 = arith.index_cast %290 : i32 to index
    %c0_88 = arith.constant 0 : index
    %323 = vector.load %arg5[%322, %c0_88] : memref<144x128xbf16, #tpu.memory_space<vmem>>, vector<16x128xbf16>
    tpu.vector_store %arg5[%322, %c0_88], %321 {strides = array<i32>} : memref<144x128xbf16, #tpu.memory_space<vmem>>, vector<16x128xbf16>,
    %c9_i32 = arith.constant 9 : i32
    return
  }
  func.func @transform_0(%arg0: i32) -> (i32, i32) {
    %c0_i32 = arith.constant 0 : i32
    %c0_i32_0 = arith.constant 0 : i32
    %c0_i32_1 = arith.constant 0 : i32
    return %c0_i32, %c0_i32_0 : i32, i32
  }
  func.func @transform_1(%arg0: i32) -> (i32, i32) {
    %c0_i32 = arith.constant 0 : i32
    %c0_i32_0 = arith.constant 0 : i32
    %c0_i32_1 = arith.constant 0 : i32
    return %c0_i32, %c0_i32_0 : i32, i32
  }
  func.func @transform_2(%arg0: i32) -> (i32, i32) {
    %c0_i32 = arith.constant 0 : i32
    %c0_i32_0 = arith.constant 0 : i32
    %c0_i32_1 = arith.constant 0 : i32
    return %c0_i32, %c0_i32_0 : i32, i32
  }
  func.func @transform_3(%arg0: i32) -> (i32, i32) {
    %c0_i32 = arith.constant 0 : i32
    %c0_i32_0 = arith.constant 0 : i32
    %c0_i32_1 = arith.constant 0 : i32
    return %c0_i32, %c0_i32_0 : i32, i32
  }
  func.func @transform_4(%arg0: i32) -> (i32, i32) {
    %c0_i32 = arith.constant 0 : i32
    %c0_i32_0 = arith.constant 0 : i32
    %c0_i32_1 = arith.constant 0 : i32
    return %c0_i32, %c0_i32_0 : i32, i32
  }
}

module attributes {stable_mosaic.version = 11 : i64} {
  func.func @_lstm_recurrence_kernel(%arg0: i32, %arg1: memref<144x32xbf16, #tpu.memory_space<vmem>>, %arg2: memref<32x512xbf16, #tpu.memory_space<vmem>>, %arg3: memref<128x512xf32, #tpu.memory_space<vmem>>, %arg4: memref<1x512xf32, #tpu.memory_space<vmem>>, %arg5: memref<144x128xbf16, #tpu.memory_space<vmem>>, %arg6: memref<144x512xf32, #tpu.memory_space<vmem>>) attributes {dimension_semantics = [#tpu.dimension_semantics<arbitrary>], iteration_bounds = array<i64: 1>, scalar_prefetch = 0 : i64, scratch_operands = 1 : i64, tpu.core_type = #tpu.core_type<tc>, window_params = [{pipeline_mode = #tpu.pipeline_mode<synchronous>, transform_indices = @transform_0, window_bounds = array<i64: 144, 32>}, {pipeline_mode = #tpu.pipeline_mode<synchronous>, transform_indices = @transform_1, window_bounds = array<i64: 32, 512>}, {pipeline_mode = #tpu.pipeline_mode<synchronous>, transform_indices = @transform_2, window_bounds = array<i64: 128, 512>}, {pipeline_mode = #tpu.pipeline_mode<synchronous>, transform_indices = @transform_3, window_bounds = array<i64: 1, 512>}, {pipeline_mode = #tpu.pipeline_mode<synchronous>, transform_indices = @transform_4, window_bounds = array<i64: 144, 128>}]} {
    %c0 = arith.constant 0 : index
    %c0_0 = arith.constant 0 : index
    %0 = vector.load %arg1[%c0, %c0_0] : memref<144x32xbf16, #tpu.memory_space<vmem>>, vector<144x32xbf16>
    %c0_1 = arith.constant 0 : index
    %c0_2 = arith.constant 0 : index
    %1 = vector.load %arg2[%c0_1, %c0_2] : memref<32x512xbf16, #tpu.memory_space<vmem>>, vector<32x512xbf16>
    %cst = arith.constant dense<0.000000e+00> : vector<144x512xf32>
    %2 = tpu.matmul %0, %1, %cst {dimension_numbers = #tpu.dot_dimension_numbers<[1], [0], [0], [1], [0, 0, 1, 1], [], []>} : vector<144x32xbf16>, vector<32x512xbf16>, vector<144x512xf32> -> vector<144x512xf32>
    %c0_3 = arith.constant 0 : index
    %c0_4 = arith.constant 0 : index
    %3 = vector.load %arg4[%c0_3, %c0_4] : memref<1x512xf32, #tpu.memory_space<vmem>>, vector<1x512xf32>
    %4 = vector.broadcast %3 : vector<1x512xf32> to vector<144x512xf32>
    %5 = arith.addf %2, %4 : vector<144x512xf32>
    %c0_5 = arith.constant 0 : index
    %c0_6 = arith.constant 0 : index
    %6 = vector.load %arg6[%c0_5, %c0_6] : memref<144x512xf32, #tpu.memory_space<vmem>>, vector<144x512xf32>
    tpu.vector_store %arg6[%c0_5, %c0_6], %5 {strides = array<i32>} : memref<144x512xf32, #tpu.memory_space<vmem>>, vector<144x512xf32>,
    %cst_7 = arith.constant 0.000000e+00 : f32
    %7 = vector.broadcast %cst_7 : f32 to vector<16x128xf32>
    %cst_8 = arith.constant 0.000000e+00 : f32
    %8 = vector.broadcast %cst_8 : f32 to vector<16x128xf32>
    %c0_i32 = arith.constant 0 : i32
    %c16_i32 = arith.constant 16 : i32
    %9 = arith.muli %c0_i32, %c16_i32 : i32
    %10 = tpu.assume_multiple %9, 16 : i32
    %11 = arith.index_cast %10 : i32 to index
    %c0_9 = arith.constant 0 : index
    %12 = vector.load %arg6[%11, %c0_9] : memref<144x512xf32, #tpu.memory_space<vmem>>, vector<16x512xf32>
    %c0_10 = arith.constant 0 : index
    %c0_11 = arith.constant 0 : index
    %13 = vector.load %arg3[%c0_10, %c0_11] : memref<128x512xf32, #tpu.memory_space<vmem>>, vector<128x512xf32>
    %cst_12 = arith.constant dense<0.000000e+00> : vector<16x512xf32>
    %14 = tpu.matmul %7, %13, %cst_12 {dimension_numbers = #tpu.dot_dimension_numbers<[1], [0], [0], [1], [0, 0, 1, 1], [], []>} : vector<16x128xf32>, vector<128x512xf32>, vector<16x512xf32> -> vector<16x512xf32>
    %15 = arith.addf %12, %14 : vector<16x512xf32>
    %16 = vector.extract_strided_slice %15 {offsets = [0, 0], sizes = [16, 128], strides = [1, 1]} : vector<16x512xf32> to vector<16x128xf32>
    %17 = arith.negf %16 : vector<16x128xf32>
    %18 = math.exp %17 : vector<16x128xf32>
    %cst_13 = arith.constant 1.000000e+00 : f32
    %19 = vector.broadcast %cst_13 : f32 to vector<16x128xf32>
    %20 = arith.addf %19, %18 : vector<16x128xf32>
    %21 = arith.divf %19, %20 : vector<16x128xf32>
    %22 = vector.extract_strided_slice %15 {offsets = [0, 128], sizes = [16, 128], strides = [1, 1]} : vector<16x512xf32> to vector<16x128xf32>
    %23 = arith.negf %22 : vector<16x128xf32>
    %24 = math.exp %23 : vector<16x128xf32>
    %cst_14 = arith.constant 1.000000e+00 : f32
    %25 = vector.broadcast %cst_14 : f32 to vector<16x128xf32>
    %26 = arith.addf %25, %24 : vector<16x128xf32>
    %27 = arith.divf %25, %26 : vector<16x128xf32>
    %28 = vector.extract_strided_slice %15 {offsets = [0, 256], sizes = [16, 128], strides = [1, 1]} : vector<16x512xf32> to vector<16x128xf32>
    %29 = math.tanh %28 : vector<16x128xf32>
    %30 = vector.extract_strided_slice %15 {offsets = [0, 384], sizes = [16, 128], strides = [1, 1]} : vector<16x512xf32> to vector<16x128xf32>
    %31 = arith.negf %30 : vector<16x128xf32>
    %32 = math.exp %31 : vector<16x128xf32>
    %cst_15 = arith.constant 1.000000e+00 : f32
    %33 = vector.broadcast %cst_15 : f32 to vector<16x128xf32>
    %34 = arith.addf %33, %32 : vector<16x128xf32>
    %35 = arith.divf %33, %34 : vector<16x128xf32>
    %36 = arith.mulf %27, %8 : vector<16x128xf32>
    %37 = arith.mulf %21, %29 : vector<16x128xf32>
    %38 = arith.addf %36, %37 : vector<16x128xf32>
    %39 = math.tanh %38 : vector<16x128xf32>
    %40 = arith.mulf %35, %39 : vector<16x128xf32>
    %41 = arith.truncf %40 : vector<16x128xf32> to vector<16x128xbf16>
    %42 = arith.index_cast %10 : i32 to index
    %c0_16 = arith.constant 0 : index
    %43 = vector.load %arg5[%42, %c0_16] : memref<144x128xbf16, #tpu.memory_space<vmem>>, vector<16x128xbf16>
    tpu.vector_store %arg5[%42, %c0_16], %41 {strides = array<i32>} : memref<144x128xbf16, #tpu.memory_space<vmem>>, vector<16x128xbf16>,
    %c1_i32 = arith.constant 1 : i32
    %c16_i32_17 = arith.constant 16 : i32
    %44 = arith.muli %c1_i32, %c16_i32_17 : i32
    %45 = tpu.assume_multiple %44, 16 : i32
    %46 = arith.index_cast %45 : i32 to index
    %c0_18 = arith.constant 0 : index
    %47 = vector.load %arg6[%46, %c0_18] : memref<144x512xf32, #tpu.memory_space<vmem>>, vector<16x512xf32>
    %c0_19 = arith.constant 0 : index
    %c0_20 = arith.constant 0 : index
    %48 = vector.load %arg3[%c0_19, %c0_20] : memref<128x512xf32, #tpu.memory_space<vmem>>, vector<128x512xf32>
    %cst_21 = arith.constant dense<0.000000e+00> : vector<16x512xf32>
    %49 = tpu.matmul %40, %48, %cst_21 {dimension_numbers = #tpu.dot_dimension_numbers<[1], [0], [0], [1], [0, 0, 1, 1], [], []>} : vector<16x128xf32>, vector<128x512xf32>, vector<16x512xf32> -> vector<16x512xf32>
    %50 = arith.addf %47, %49 : vector<16x512xf32>
    %51 = vector.extract_strided_slice %50 {offsets = [0, 0], sizes = [16, 128], strides = [1, 1]} : vector<16x512xf32> to vector<16x128xf32>
    %52 = arith.negf %51 : vector<16x128xf32>
    %53 = math.exp %52 : vector<16x128xf32>
    %cst_22 = arith.constant 1.000000e+00 : f32
    %54 = vector.broadcast %cst_22 : f32 to vector<16x128xf32>
    %55 = arith.addf %54, %53 : vector<16x128xf32>
    %56 = arith.divf %54, %55 : vector<16x128xf32>
    %57 = vector.extract_strided_slice %50 {offsets = [0, 128], sizes = [16, 128], strides = [1, 1]} : vector<16x512xf32> to vector<16x128xf32>
    %58 = arith.negf %57 : vector<16x128xf32>
    %59 = math.exp %58 : vector<16x128xf32>
    %cst_23 = arith.constant 1.000000e+00 : f32
    %60 = vector.broadcast %cst_23 : f32 to vector<16x128xf32>
    %61 = arith.addf %60, %59 : vector<16x128xf32>
    %62 = arith.divf %60, %61 : vector<16x128xf32>
    %63 = vector.extract_strided_slice %50 {offsets = [0, 256], sizes = [16, 128], strides = [1, 1]} : vector<16x512xf32> to vector<16x128xf32>
    %64 = math.tanh %63 : vector<16x128xf32>
    %65 = vector.extract_strided_slice %50 {offsets = [0, 384], sizes = [16, 128], strides = [1, 1]} : vector<16x512xf32> to vector<16x128xf32>
    %66 = arith.negf %65 : vector<16x128xf32>
    %67 = math.exp %66 : vector<16x128xf32>
    %cst_24 = arith.constant 1.000000e+00 : f32
    %68 = vector.broadcast %cst_24 : f32 to vector<16x128xf32>
    %69 = arith.addf %68, %67 : vector<16x128xf32>
    %70 = arith.divf %68, %69 : vector<16x128xf32>
    %71 = arith.mulf %62, %38 : vector<16x128xf32>
    %72 = arith.mulf %56, %64 : vector<16x128xf32>
    %73 = arith.addf %71, %72 : vector<16x128xf32>
    %74 = math.tanh %73 : vector<16x128xf32>
    %75 = arith.mulf %70, %74 : vector<16x128xf32>
    %76 = arith.truncf %75 : vector<16x128xf32> to vector<16x128xbf16>
    %77 = arith.index_cast %45 : i32 to index
    %c0_25 = arith.constant 0 : index
    %78 = vector.load %arg5[%77, %c0_25] : memref<144x128xbf16, #tpu.memory_space<vmem>>, vector<16x128xbf16>
    tpu.vector_store %arg5[%77, %c0_25], %76 {strides = array<i32>} : memref<144x128xbf16, #tpu.memory_space<vmem>>, vector<16x128xbf16>,
    %c2_i32 = arith.constant 2 : i32
    %c16_i32_26 = arith.constant 16 : i32
    %79 = arith.muli %c2_i32, %c16_i32_26 : i32
    %80 = tpu.assume_multiple %79, 16 : i32
    %81 = arith.index_cast %80 : i32 to index
    %c0_27 = arith.constant 0 : index
    %82 = vector.load %arg6[%81, %c0_27] : memref<144x512xf32, #tpu.memory_space<vmem>>, vector<16x512xf32>
    %c0_28 = arith.constant 0 : index
    %c0_29 = arith.constant 0 : index
    %83 = vector.load %arg3[%c0_28, %c0_29] : memref<128x512xf32, #tpu.memory_space<vmem>>, vector<128x512xf32>
    %cst_30 = arith.constant dense<0.000000e+00> : vector<16x512xf32>
    %84 = tpu.matmul %75, %83, %cst_30 {dimension_numbers = #tpu.dot_dimension_numbers<[1], [0], [0], [1], [0, 0, 1, 1], [], []>} : vector<16x128xf32>, vector<128x512xf32>, vector<16x512xf32> -> vector<16x512xf32>
    %85 = arith.addf %82, %84 : vector<16x512xf32>
    %86 = vector.extract_strided_slice %85 {offsets = [0, 0], sizes = [16, 128], strides = [1, 1]} : vector<16x512xf32> to vector<16x128xf32>
    %87 = arith.negf %86 : vector<16x128xf32>
    %88 = math.exp %87 : vector<16x128xf32>
    %cst_31 = arith.constant 1.000000e+00 : f32
    %89 = vector.broadcast %cst_31 : f32 to vector<16x128xf32>
    %90 = arith.addf %89, %88 : vector<16x128xf32>
    %91 = arith.divf %89, %90 : vector<16x128xf32>
    %92 = vector.extract_strided_slice %85 {offsets = [0, 128], sizes = [16, 128], strides = [1, 1]} : vector<16x512xf32> to vector<16x128xf32>
    %93 = arith.negf %92 : vector<16x128xf32>
    %94 = math.exp %93 : vector<16x128xf32>
    %cst_32 = arith.constant 1.000000e+00 : f32
    %95 = vector.broadcast %cst_32 : f32 to vector<16x128xf32>
    %96 = arith.addf %95, %94 : vector<16x128xf32>
    %97 = arith.divf %95, %96 : vector<16x128xf32>
    %98 = vector.extract_strided_slice %85 {offsets = [0, 256], sizes = [16, 128], strides = [1, 1]} : vector<16x512xf32> to vector<16x128xf32>
    %99 = math.tanh %98 : vector<16x128xf32>
    %100 = vector.extract_strided_slice %85 {offsets = [0, 384], sizes = [16, 128], strides = [1, 1]} : vector<16x512xf32> to vector<16x128xf32>
    %101 = arith.negf %100 : vector<16x128xf32>
    %102 = math.exp %101 : vector<16x128xf32>
    %cst_33 = arith.constant 1.000000e+00 : f32
    %103 = vector.broadcast %cst_33 : f32 to vector<16x128xf32>
    %104 = arith.addf %103, %102 : vector<16x128xf32>
    %105 = arith.divf %103, %104 : vector<16x128xf32>
    %106 = arith.mulf %97, %73 : vector<16x128xf32>
    %107 = arith.mulf %91, %99 : vector<16x128xf32>
    %108 = arith.addf %106, %107 : vector<16x128xf32>
    %109 = math.tanh %108 : vector<16x128xf32>
    %110 = arith.mulf %105, %109 : vector<16x128xf32>
    %111 = arith.truncf %110 : vector<16x128xf32> to vector<16x128xbf16>
    %112 = arith.index_cast %80 : i32 to index
    %c0_34 = arith.constant 0 : index
    %113 = vector.load %arg5[%112, %c0_34] : memref<144x128xbf16, #tpu.memory_space<vmem>>, vector<16x128xbf16>
    tpu.vector_store %arg5[%112, %c0_34], %111 {strides = array<i32>} : memref<144x128xbf16, #tpu.memory_space<vmem>>, vector<16x128xbf16>,
    %c3_i32 = arith.constant 3 : i32
    %c16_i32_35 = arith.constant 16 : i32
    %114 = arith.muli %c3_i32, %c16_i32_35 : i32
    %115 = tpu.assume_multiple %114, 16 : i32
    %116 = arith.index_cast %115 : i32 to index
    %c0_36 = arith.constant 0 : index
    %117 = vector.load %arg6[%116, %c0_36] : memref<144x512xf32, #tpu.memory_space<vmem>>, vector<16x512xf32>
    %c0_37 = arith.constant 0 : index
    %c0_38 = arith.constant 0 : index
    %118 = vector.load %arg3[%c0_37, %c0_38] : memref<128x512xf32, #tpu.memory_space<vmem>>, vector<128x512xf32>
    %cst_39 = arith.constant dense<0.000000e+00> : vector<16x512xf32>
    %119 = tpu.matmul %110, %118, %cst_39 {dimension_numbers = #tpu.dot_dimension_numbers<[1], [0], [0], [1], [0, 0, 1, 1], [], []>} : vector<16x128xf32>, vector<128x512xf32>, vector<16x512xf32> -> vector<16x512xf32>
    %120 = arith.addf %117, %119 : vector<16x512xf32>
    %121 = vector.extract_strided_slice %120 {offsets = [0, 0], sizes = [16, 128], strides = [1, 1]} : vector<16x512xf32> to vector<16x128xf32>
    %122 = arith.negf %121 : vector<16x128xf32>
    %123 = math.exp %122 : vector<16x128xf32>
    %cst_40 = arith.constant 1.000000e+00 : f32
    %124 = vector.broadcast %cst_40 : f32 to vector<16x128xf32>
    %125 = arith.addf %124, %123 : vector<16x128xf32>
    %126 = arith.divf %124, %125 : vector<16x128xf32>
    %127 = vector.extract_strided_slice %120 {offsets = [0, 128], sizes = [16, 128], strides = [1, 1]} : vector<16x512xf32> to vector<16x128xf32>
    %128 = arith.negf %127 : vector<16x128xf32>
    %129 = math.exp %128 : vector<16x128xf32>
    %cst_41 = arith.constant 1.000000e+00 : f32
    %130 = vector.broadcast %cst_41 : f32 to vector<16x128xf32>
    %131 = arith.addf %130, %129 : vector<16x128xf32>
    %132 = arith.divf %130, %131 : vector<16x128xf32>
    %133 = vector.extract_strided_slice %120 {offsets = [0, 256], sizes = [16, 128], strides = [1, 1]} : vector<16x512xf32> to vector<16x128xf32>
    %134 = math.tanh %133 : vector<16x128xf32>
    %135 = vector.extract_strided_slice %120 {offsets = [0, 384], sizes = [16, 128], strides = [1, 1]} : vector<16x512xf32> to vector<16x128xf32>
    %136 = arith.negf %135 : vector<16x128xf32>
    %137 = math.exp %136 : vector<16x128xf32>
    %cst_42 = arith.constant 1.000000e+00 : f32
    %138 = vector.broadcast %cst_42 : f32 to vector<16x128xf32>
    %139 = arith.addf %138, %137 : vector<16x128xf32>
    %140 = arith.divf %138, %139 : vector<16x128xf32>
    %141 = arith.mulf %132, %108 : vector<16x128xf32>
    %142 = arith.mulf %126, %134 : vector<16x128xf32>
    %143 = arith.addf %141, %142 : vector<16x128xf32>
    %144 = math.tanh %143 : vector<16x128xf32>
    %145 = arith.mulf %140, %144 : vector<16x128xf32>
    %146 = arith.truncf %145 : vector<16x128xf32> to vector<16x128xbf16>
    %147 = arith.index_cast %115 : i32 to index
    %c0_43 = arith.constant 0 : index
    %148 = vector.load %arg5[%147, %c0_43] : memref<144x128xbf16, #tpu.memory_space<vmem>>, vector<16x128xbf16>
    tpu.vector_store %arg5[%147, %c0_43], %146 {strides = array<i32>} : memref<144x128xbf16, #tpu.memory_space<vmem>>, vector<16x128xbf16>,
    %c4_i32 = arith.constant 4 : i32
    %c16_i32_44 = arith.constant 16 : i32
    %149 = arith.muli %c4_i32, %c16_i32_44 : i32
    %150 = tpu.assume_multiple %149, 16 : i32
    %151 = arith.index_cast %150 : i32 to index
    %c0_45 = arith.constant 0 : index
    %152 = vector.load %arg6[%151, %c0_45] : memref<144x512xf32, #tpu.memory_space<vmem>>, vector<16x512xf32>
    %c0_46 = arith.constant 0 : index
    %c0_47 = arith.constant 0 : index
    %153 = vector.load %arg3[%c0_46, %c0_47] : memref<128x512xf32, #tpu.memory_space<vmem>>, vector<128x512xf32>
    %cst_48 = arith.constant dense<0.000000e+00> : vector<16x512xf32>
    %154 = tpu.matmul %145, %153, %cst_48 {dimension_numbers = #tpu.dot_dimension_numbers<[1], [0], [0], [1], [0, 0, 1, 1], [], []>} : vector<16x128xf32>, vector<128x512xf32>, vector<16x512xf32> -> vector<16x512xf32>
    %155 = arith.addf %152, %154 : vector<16x512xf32>
    %156 = vector.extract_strided_slice %155 {offsets = [0, 0], sizes = [16, 128], strides = [1, 1]} : vector<16x512xf32> to vector<16x128xf32>
    %157 = arith.negf %156 : vector<16x128xf32>
    %158 = math.exp %157 : vector<16x128xf32>
    %cst_49 = arith.constant 1.000000e+00 : f32
    %159 = vector.broadcast %cst_49 : f32 to vector<16x128xf32>
    %160 = arith.addf %159, %158 : vector<16x128xf32>
    %161 = arith.divf %159, %160 : vector<16x128xf32>
    %162 = vector.extract_strided_slice %155 {offsets = [0, 128], sizes = [16, 128], strides = [1, 1]} : vector<16x512xf32> to vector<16x128xf32>
    %163 = arith.negf %162 : vector<16x128xf32>
    %164 = math.exp %163 : vector<16x128xf32>
    %cst_50 = arith.constant 1.000000e+00 : f32
    %165 = vector.broadcast %cst_50 : f32 to vector<16x128xf32>
    %166 = arith.addf %165, %164 : vector<16x128xf32>
    %167 = arith.divf %165, %166 : vector<16x128xf32>
    %168 = vector.extract_strided_slice %155 {offsets = [0, 256], sizes = [16, 128], strides = [1, 1]} : vector<16x512xf32> to vector<16x128xf32>
    %169 = math.tanh %168 : vector<16x128xf32>
    %170 = vector.extract_strided_slice %155 {offsets = [0, 384], sizes = [16, 128], strides = [1, 1]} : vector<16x512xf32> to vector<16x128xf32>
    %171 = arith.negf %170 : vector<16x128xf32>
    %172 = math.exp %171 : vector<16x128xf32>
    %cst_51 = arith.constant 1.000000e+00 : f32
    %173 = vector.broadcast %cst_51 : f32 to vector<16x128xf32>
    %174 = arith.addf %173, %172 : vector<16x128xf32>
    %175 = arith.divf %173, %174 : vector<16x128xf32>
    %176 = arith.mulf %167, %143 : vector<16x128xf32>
    %177 = arith.mulf %161, %169 : vector<16x128xf32>
    %178 = arith.addf %176, %177 : vector<16x128xf32>
    %179 = math.tanh %178 : vector<16x128xf32>
    %180 = arith.mulf %175, %179 : vector<16x128xf32>
    %181 = arith.truncf %180 : vector<16x128xf32> to vector<16x128xbf16>
    %182 = arith.index_cast %150 : i32 to index
    %c0_52 = arith.constant 0 : index
    %183 = vector.load %arg5[%182, %c0_52] : memref<144x128xbf16, #tpu.memory_space<vmem>>, vector<16x128xbf16>
    tpu.vector_store %arg5[%182, %c0_52], %181 {strides = array<i32>} : memref<144x128xbf16, #tpu.memory_space<vmem>>, vector<16x128xbf16>,
    %c5_i32 = arith.constant 5 : i32
    %c16_i32_53 = arith.constant 16 : i32
    %184 = arith.muli %c5_i32, %c16_i32_53 : i32
    %185 = tpu.assume_multiple %184, 16 : i32
    %186 = arith.index_cast %185 : i32 to index
    %c0_54 = arith.constant 0 : index
    %187 = vector.load %arg6[%186, %c0_54] : memref<144x512xf32, #tpu.memory_space<vmem>>, vector<16x512xf32>
    %c0_55 = arith.constant 0 : index
    %c0_56 = arith.constant 0 : index
    %188 = vector.load %arg3[%c0_55, %c0_56] : memref<128x512xf32, #tpu.memory_space<vmem>>, vector<128x512xf32>
    %cst_57 = arith.constant dense<0.000000e+00> : vector<16x512xf32>
    %189 = tpu.matmul %180, %188, %cst_57 {dimension_numbers = #tpu.dot_dimension_numbers<[1], [0], [0], [1], [0, 0, 1, 1], [], []>} : vector<16x128xf32>, vector<128x512xf32>, vector<16x512xf32> -> vector<16x512xf32>
    %190 = arith.addf %187, %189 : vector<16x512xf32>
    %191 = vector.extract_strided_slice %190 {offsets = [0, 0], sizes = [16, 128], strides = [1, 1]} : vector<16x512xf32> to vector<16x128xf32>
    %192 = arith.negf %191 : vector<16x128xf32>
    %193 = math.exp %192 : vector<16x128xf32>
    %cst_58 = arith.constant 1.000000e+00 : f32
    %194 = vector.broadcast %cst_58 : f32 to vector<16x128xf32>
    %195 = arith.addf %194, %193 : vector<16x128xf32>
    %196 = arith.divf %194, %195 : vector<16x128xf32>
    %197 = vector.extract_strided_slice %190 {offsets = [0, 128], sizes = [16, 128], strides = [1, 1]} : vector<16x512xf32> to vector<16x128xf32>
    %198 = arith.negf %197 : vector<16x128xf32>
    %199 = math.exp %198 : vector<16x128xf32>
    %cst_59 = arith.constant 1.000000e+00 : f32
    %200 = vector.broadcast %cst_59 : f32 to vector<16x128xf32>
    %201 = arith.addf %200, %199 : vector<16x128xf32>
    %202 = arith.divf %200, %201 : vector<16x128xf32>
    %203 = vector.extract_strided_slice %190 {offsets = [0, 256], sizes = [16, 128], strides = [1, 1]} : vector<16x512xf32> to vector<16x128xf32>
    %204 = math.tanh %203 : vector<16x128xf32>
    %205 = vector.extract_strided_slice %190 {offsets = [0, 384], sizes = [16, 128], strides = [1, 1]} : vector<16x512xf32> to vector<16x128xf32>
    %206 = arith.negf %205 : vector<16x128xf32>
    %207 = math.exp %206 : vector<16x128xf32>
    %cst_60 = arith.constant 1.000000e+00 : f32
    %208 = vector.broadcast %cst_60 : f32 to vector<16x128xf32>
    %209 = arith.addf %208, %207 : vector<16x128xf32>
    %210 = arith.divf %208, %209 : vector<16x128xf32>
    %211 = arith.mulf %202, %178 : vector<16x128xf32>
    %212 = arith.mulf %196, %204 : vector<16x128xf32>
    %213 = arith.addf %211, %212 : vector<16x128xf32>
    %214 = math.tanh %213 : vector<16x128xf32>
    %215 = arith.mulf %210, %214 : vector<16x128xf32>
    %216 = arith.truncf %215 : vector<16x128xf32> to vector<16x128xbf16>
    %217 = arith.index_cast %185 : i32 to index
    %c0_61 = arith.constant 0 : index
    %218 = vector.load %arg5[%217, %c0_61] : memref<144x128xbf16, #tpu.memory_space<vmem>>, vector<16x128xbf16>
    tpu.vector_store %arg5[%217, %c0_61], %216 {strides = array<i32>} : memref<144x128xbf16, #tpu.memory_space<vmem>>, vector<16x128xbf16>,
    %c6_i32 = arith.constant 6 : i32
    %c16_i32_62 = arith.constant 16 : i32
    %219 = arith.muli %c6_i32, %c16_i32_62 : i32
    %220 = tpu.assume_multiple %219, 16 : i32
    %221 = arith.index_cast %220 : i32 to index
    %c0_63 = arith.constant 0 : index
    %222 = vector.load %arg6[%221, %c0_63] : memref<144x512xf32, #tpu.memory_space<vmem>>, vector<16x512xf32>
    %c0_64 = arith.constant 0 : index
    %c0_65 = arith.constant 0 : index
    %223 = vector.load %arg3[%c0_64, %c0_65] : memref<128x512xf32, #tpu.memory_space<vmem>>, vector<128x512xf32>
    %cst_66 = arith.constant dense<0.000000e+00> : vector<16x512xf32>
    %224 = tpu.matmul %215, %223, %cst_66 {dimension_numbers = #tpu.dot_dimension_numbers<[1], [0], [0], [1], [0, 0, 1, 1], [], []>} : vector<16x128xf32>, vector<128x512xf32>, vector<16x512xf32> -> vector<16x512xf32>
    %225 = arith.addf %222, %224 : vector<16x512xf32>
    %226 = vector.extract_strided_slice %225 {offsets = [0, 0], sizes = [16, 128], strides = [1, 1]} : vector<16x512xf32> to vector<16x128xf32>
    %227 = arith.negf %226 : vector<16x128xf32>
    %228 = math.exp %227 : vector<16x128xf32>
    %cst_67 = arith.constant 1.000000e+00 : f32
    %229 = vector.broadcast %cst_67 : f32 to vector<16x128xf32>
    %230 = arith.addf %229, %228 : vector<16x128xf32>
    %231 = arith.divf %229, %230 : vector<16x128xf32>
    %232 = vector.extract_strided_slice %225 {offsets = [0, 128], sizes = [16, 128], strides = [1, 1]} : vector<16x512xf32> to vector<16x128xf32>
    %233 = arith.negf %232 : vector<16x128xf32>
    %234 = math.exp %233 : vector<16x128xf32>
    %cst_68 = arith.constant 1.000000e+00 : f32
    %235 = vector.broadcast %cst_68 : f32 to vector<16x128xf32>
    %236 = arith.addf %235, %234 : vector<16x128xf32>
    %237 = arith.divf %235, %236 : vector<16x128xf32>
    %238 = vector.extract_strided_slice %225 {offsets = [0, 256], sizes = [16, 128], strides = [1, 1]} : vector<16x512xf32> to vector<16x128xf32>
    %239 = math.tanh %238 : vector<16x128xf32>
    %240 = vector.extract_strided_slice %225 {offsets = [0, 384], sizes = [16, 128], strides = [1, 1]} : vector<16x512xf32> to vector<16x128xf32>
    %241 = arith.negf %240 : vector<16x128xf32>
    %242 = math.exp %241 : vector<16x128xf32>
    %cst_69 = arith.constant 1.000000e+00 : f32
    %243 = vector.broadcast %cst_69 : f32 to vector<16x128xf32>
    %244 = arith.addf %243, %242 : vector<16x128xf32>
    %245 = arith.divf %243, %244 : vector<16x128xf32>
    %246 = arith.mulf %237, %213 : vector<16x128xf32>
    %247 = arith.mulf %231, %239 : vector<16x128xf32>
    %248 = arith.addf %246, %247 : vector<16x128xf32>
    %249 = math.tanh %248 : vector<16x128xf32>
    %250 = arith.mulf %245, %249 : vector<16x128xf32>
    %251 = arith.truncf %250 : vector<16x128xf32> to vector<16x128xbf16>
    %252 = arith.index_cast %220 : i32 to index
    %c0_70 = arith.constant 0 : index
    %253 = vector.load %arg5[%252, %c0_70] : memref<144x128xbf16, #tpu.memory_space<vmem>>, vector<16x128xbf16>
    tpu.vector_store %arg5[%252, %c0_70], %251 {strides = array<i32>} : memref<144x128xbf16, #tpu.memory_space<vmem>>, vector<16x128xbf16>,
    %c7_i32 = arith.constant 7 : i32
    %c16_i32_71 = arith.constant 16 : i32
    %254 = arith.muli %c7_i32, %c16_i32_71 : i32
    %255 = tpu.assume_multiple %254, 16 : i32
    %256 = arith.index_cast %255 : i32 to index
    %c0_72 = arith.constant 0 : index
    %257 = vector.load %arg6[%256, %c0_72] : memref<144x512xf32, #tpu.memory_space<vmem>>, vector<16x512xf32>
    %c0_73 = arith.constant 0 : index
    %c0_74 = arith.constant 0 : index
    %258 = vector.load %arg3[%c0_73, %c0_74] : memref<128x512xf32, #tpu.memory_space<vmem>>, vector<128x512xf32>
    %cst_75 = arith.constant dense<0.000000e+00> : vector<16x512xf32>
    %259 = tpu.matmul %250, %258, %cst_75 {dimension_numbers = #tpu.dot_dimension_numbers<[1], [0], [0], [1], [0, 0, 1, 1], [], []>} : vector<16x128xf32>, vector<128x512xf32>, vector<16x512xf32> -> vector<16x512xf32>
    %260 = arith.addf %257, %259 : vector<16x512xf32>
    %261 = vector.extract_strided_slice %260 {offsets = [0, 0], sizes = [16, 128], strides = [1, 1]} : vector<16x512xf32> to vector<16x128xf32>
    %262 = arith.negf %261 : vector<16x128xf32>
    %263 = math.exp %262 : vector<16x128xf32>
    %cst_76 = arith.constant 1.000000e+00 : f32
    %264 = vector.broadcast %cst_76 : f32 to vector<16x128xf32>
    %265 = arith.addf %264, %263 : vector<16x128xf32>
    %266 = arith.divf %264, %265 : vector<16x128xf32>
    %267 = vector.extract_strided_slice %260 {offsets = [0, 128], sizes = [16, 128], strides = [1, 1]} : vector<16x512xf32> to vector<16x128xf32>
    %268 = arith.negf %267 : vector<16x128xf32>
    %269 = math.exp %268 : vector<16x128xf32>
    %cst_77 = arith.constant 1.000000e+00 : f32
    %270 = vector.broadcast %cst_77 : f32 to vector<16x128xf32>
    %271 = arith.addf %270, %269 : vector<16x128xf32>
    %272 = arith.divf %270, %271 : vector<16x128xf32>
    %273 = vector.extract_strided_slice %260 {offsets = [0, 256], sizes = [16, 128], strides = [1, 1]} : vector<16x512xf32> to vector<16x128xf32>
    %274 = math.tanh %273 : vector<16x128xf32>
    %275 = vector.extract_strided_slice %260 {offsets = [0, 384], sizes = [16, 128], strides = [1, 1]} : vector<16x512xf32> to vector<16x128xf32>
    %276 = arith.negf %275 : vector<16x128xf32>
    %277 = math.exp %276 : vector<16x128xf32>
    %cst_78 = arith.constant 1.000000e+00 : f32
    %278 = vector.broadcast %cst_78 : f32 to vector<16x128xf32>
    %279 = arith.addf %278, %277 : vector<16x128xf32>
    %280 = arith.divf %278, %279 : vector<16x128xf32>
    %281 = arith.mulf %272, %248 : vector<16x128xf32>
    %282 = arith.mulf %266, %274 : vector<16x128xf32>
    %283 = arith.addf %281, %282 : vector<16x128xf32>
    %284 = math.tanh %283 : vector<16x128xf32>
    %285 = arith.mulf %280, %284 : vector<16x128xf32>
    %286 = arith.truncf %285 : vector<16x128xf32> to vector<16x128xbf16>
    %287 = arith.index_cast %255 : i32 to index
    %c0_79 = arith.constant 0 : index
    %288 = vector.load %arg5[%287, %c0_79] : memref<144x128xbf16, #tpu.memory_space<vmem>>, vector<16x128xbf16>
    tpu.vector_store %arg5[%287, %c0_79], %286 {strides = array<i32>} : memref<144x128xbf16, #tpu.memory_space<vmem>>, vector<16x128xbf16>,
    %c8_i32 = arith.constant 8 : i32
    %c16_i32_80 = arith.constant 16 : i32
    %289 = arith.muli %c8_i32, %c16_i32_80 : i32
    %290 = tpu.assume_multiple %289, 16 : i32
    %291 = arith.index_cast %290 : i32 to index
    %c0_81 = arith.constant 0 : index
    %292 = vector.load %arg6[%291, %c0_81] : memref<144x512xf32, #tpu.memory_space<vmem>>, vector<16x512xf32>
    %c0_82 = arith.constant 0 : index
    %c0_83 = arith.constant 0 : index
    %293 = vector.load %arg3[%c0_82, %c0_83] : memref<128x512xf32, #tpu.memory_space<vmem>>, vector<128x512xf32>
    %cst_84 = arith.constant dense<0.000000e+00> : vector<16x512xf32>
    %294 = tpu.matmul %285, %293, %cst_84 {dimension_numbers = #tpu.dot_dimension_numbers<[1], [0], [0], [1], [0, 0, 1, 1], [], []>} : vector<16x128xf32>, vector<128x512xf32>, vector<16x512xf32> -> vector<16x512xf32>
    %295 = arith.addf %292, %294 : vector<16x512xf32>
    %296 = vector.extract_strided_slice %295 {offsets = [0, 0], sizes = [16, 128], strides = [1, 1]} : vector<16x512xf32> to vector<16x128xf32>
    %297 = arith.negf %296 : vector<16x128xf32>
    %298 = math.exp %297 : vector<16x128xf32>
    %cst_85 = arith.constant 1.000000e+00 : f32
    %299 = vector.broadcast %cst_85 : f32 to vector<16x128xf32>
    %300 = arith.addf %299, %298 : vector<16x128xf32>
    %301 = arith.divf %299, %300 : vector<16x128xf32>
    %302 = vector.extract_strided_slice %295 {offsets = [0, 128], sizes = [16, 128], strides = [1, 1]} : vector<16x512xf32> to vector<16x128xf32>
    %303 = arith.negf %302 : vector<16x128xf32>
    %304 = math.exp %303 : vector<16x128xf32>
    %cst_86 = arith.constant 1.000000e+00 : f32
    %305 = vector.broadcast %cst_86 : f32 to vector<16x128xf32>
    %306 = arith.addf %305, %304 : vector<16x128xf32>
    %307 = arith.divf %305, %306 : vector<16x128xf32>
    %308 = vector.extract_strided_slice %295 {offsets = [0, 256], sizes = [16, 128], strides = [1, 1]} : vector<16x512xf32> to vector<16x128xf32>
    %309 = math.tanh %308 : vector<16x128xf32>
    %310 = vector.extract_strided_slice %295 {offsets = [0, 384], sizes = [16, 128], strides = [1, 1]} : vector<16x512xf32> to vector<16x128xf32>
    %311 = arith.negf %310 : vector<16x128xf32>
    %312 = math.exp %311 : vector<16x128xf32>
    %cst_87 = arith.constant 1.000000e+00 : f32
    %313 = vector.broadcast %cst_87 : f32 to vector<16x128xf32>
    %314 = arith.addf %313, %312 : vector<16x128xf32>
    %315 = arith.divf %313, %314 : vector<16x128xf32>
    %316 = arith.mulf %307, %283 : vector<16x128xf32>
    %317 = arith.mulf %301, %309 : vector<16x128xf32>
    %318 = arith.addf %316, %317 : vector<16x128xf32>
    %319 = math.tanh %318 : vector<16x128xf32>
    %320 = arith.mulf %315, %319 : vector<16x128xf32>
    %321 = arith.truncf %320 : vector<16x128xf32> to vector<16x128xbf16>
    %322 = arith.index_cast %290 : i32 to index
    %c0_88 = arith.constant 0 : index
    %323 = vector.load %arg5[%322, %c0_88] : memref<144x128xbf16, #tpu.memory_space<vmem>>, vector<16x128xbf16>
    tpu.vector_store %arg5[%322, %c0_88], %321 {strides = array<i32>} : memref<144x128xbf16, #tpu.memory_space<vmem>>, vector<16x128xbf16>,
    %c9_i32 = arith.constant 9 : i32
    return
  }
  func.func @transform_0(%arg0: i32) -> (i32, i32) {
    %c0_i32 = arith.constant 0 : i32
    %c0_i32_0 = arith.constant 0 : i32
    %c0_i32_1 = arith.constant 0 : i32
    return %c0_i32, %c0_i32_0 : i32, i32
  }
  func.func @transform_1(%arg0: i32) -> (i32, i32) {
    %c0_i32 = arith.constant 0 : i32
    %c0_i32_0 = arith.constant 0 : i32
    %c0_i32_1 = arith.constant 0 : i32
    return %c0_i32, %c0_i32_0 : i32, i32
  }
  func.func @transform_2(%arg0: i32) -> (i32, i32) {
    %c0_i32 = arith.constant 0 : i32
    %c0_i32_0 = arith.constant 0 : i32
    %c0_i32_1 = arith.constant 0 : i32
    return %c0_i32, %c0_i32_0 : i32, i32
  }
  func.func @transform_3(%arg0: i32) -> (i32, i32) {
    %c0_i32 = arith.constant 0 : i32
    %c0_i32_0 = arith.constant 0 : i32
    %c0_i32_1 = arith.constant 0 : i32
    return %c0_i32, %c0_i32_0 : i32, i32
  }
  func.func @transform_4(%arg0: i32) -> (i32, i32) {
    %c0_i32 = arith.constant 0 : i32
    %c0_i32_0 = arith.constant 0 : i32
    %c0_i32_1 = arith.constant 0 : i32
    return %c0_i32, %c0_i32_0 : i32, i32
  }
}

</mosaic_0001>

<bundles_post_ra>
// kernel: tpu_custom_call.1
= control target key start
LH: loop header
LB: loop body
LE: loop exit
PB: predicated region body
PF: predicated region fallthrough
CT: control target
= control target key end

     0   :  { %9 = vsyncpa [#allocation4], 0  ;;  %s5817_s0 = inlined_call_operand.vmem [shape: bf16[144,32], index: 0, kind: input, shape index: {}]   ;;  %s5818_s1 = inlined_call_operand.vmem [shape: bf16[32,512], index: 1, kind: input, shape index: {}]   ;;  %s5819_s2 = inlined_call_operand.hbm [shape: f32[128,512], index: 2, kind: input, shape index: {}]   ;;  %s5820_s3 = inlined_call_operand.vmem [shape: f32[1,512], index: 3, kind: input, shape index: {}]   ;;  %s5821_s4 = inlined_call_operand.hbm [shape: bf16[144,128], index: 4, kind: output, shape index: {}]  }
   0x1   :  { %10 = vsyncpa [#allocation5], 0  ;;  %s19_s17 = sshll.u32 %s5819_s2, 4  ;;  %s3819_s18 = smov [#allocation3]   ;;  %s20_s17 = int_to_ptr.hbm [resolvable:$true] %s19_s17 }
   0x2   :  { %s21_s19 = sshll.u32 %s3819_s18, 4  ;;  %s3820_s20 = smov 512   ;;  %s22_s19 = int_to_ptr.vmem [resolvable:$true] %s21_s19 }
   0x3   :  { %s3821_s21 = smov 32  }
   0x4   :  { %27 = dma.hbm_to_vmem [thread:$0]  %s20_s17, 8192, %s22_s19, [#allocation4], %s3820_s20, %s3820_s20, %s3821_s21  }
   0x5   :  { %3815 = dma.done.wait [#allocation4], 8192  }
   0x6   :  { %3816 = vsyncadd [#allocation4], 4294959104  ;;  %v3306_v0 = vld [vmem:[%s5818_s1 + $0x20] sm:$0xf]  ;;  %v3425_v1 = vld [vmem:[%s5818_s1 + $0x2c] sm:$0xf0] }
   0x7   :  { %v3423_v2 = vld [vmem:[%s5818_s1 + $0x24] sm:$0xf]  ;;  %v3307_v3 = vor.u32 %v3425_v1, %v3306_v0  ;;  %v3308_v4 = vld [vmem:[%s5818_s1 + $0x30] sm:$0xf0]  ;;  %v3314_v5 = vld [vmem:[%s5818_s1 + $0x28] sm:$0xf] }
   0x8   :  { %v3426_v6 = vld [vmem:[%s5818_s1 + $0x34] sm:$0xf0]  ;;  %v3311_v7 = vor.u32 %v3423_v2, %v3308_v4  ;;  %v3424_v9 = vld [vmem:[%s5818_s1 + $0x2c] sm:$0xf]  ;;  %v3316_v10 = vld [vmem:[%s5818_s1 + $0x38] sm:$0xf0] }
   0x9   :  { %v3315_v8 = vor.u32 %v3426_v6, %v3314_v5  ;;  %v3290_v11 = vld [vmem:[%s5818_s1] sm:$0xf]  ;;  %190 = vmatpush.bf16.msra.mxu0 %v3307_v3  ;;  %v3319_v12 = vor.u32 %v3424_v9, %v3316_v10  ;;  %v3421_v13 = vld [vmem:[%s5818_s1 + $0xc] sm:$0xf0]  ;;  %v3419_v14 = vld [vmem:[%s5818_s1 + $0x4] sm:$0xf] }
   0xa   :  { %v3292_v15 = vld [vmem:[%s5818_s1 + $0x10] sm:$0xf0]  ;;  %244 = vmatpush.bf16.msra.mxu1 %v3311_v7  ;;  %v3291_v16 = vor.u32 %v3421_v13, %v3290_v11  ;;  %v3298_v18 = vld [vmem:[%s5818_s1 + $0x8] sm:$0xf]  ;;  %v3422_v19 = vld [vmem:[%s5818_s1 + $0x14] sm:$0xf0] }
   0xb   :  { %298 = vmatpush.bf16.msra.mxu2 %v3315_v8  ;;  %v3295_v17 = vor.u32 %v3419_v14, %v3292_v15  ;;  %v3420_v20 = vld [vmem:[%s5818_s1 + $0xc] sm:$0xf]  ;;  %352 = vmatpush.bf16.msra.mxu3 %v3319_v12  ;;  %v3299_v21 = vor.u32 %v3422_v19, %v3298_v18  ;;  %v3300_v22 = vld [vmem:[%s5818_s1 + $0x18] sm:$0xf0]  ;;  %v3410_v24 = vld [vmem:[%s5817_s0] sm:$0xff]  ;;  %vm156_vm0 = vcmask 261120  }
   0xc   :  { %v3303_v23 = vor.u32 %v3420_v20, %v3300_v22  ;;  %v3905_v25 = vld [vmem:[#allocation3 + $0x1e0] sm:$0xff]  ;;  %v3907_v26 = vld [vmem:[#allocation3 + $0x1e8] sm:$0xff]  ;;  %v3914_v28 = vld [vmem:[#allocation3 + $0x1f8] sm:$0xff]  ;;  %s3231_s21 = sshll.u32 %s5821_s4, 4  ;;  %s3824_s22 = smov 64   ;;  %s3232_s21 = int_to_ptr.hbm [resolvable:$true] %s3231_s21 }
   0xd   :  { %191 = vmatpush.bf16.msra.mxu0 %v3291_v16  ;;  %v3910_v27 = vld [vmem:[#allocation3 + $0x1c0] sm:$0xff]  ;;  %v3916_v29 = vld [vmem:[#allocation3 + $0x1c8] sm:$0xff]  ;;  %v3920_v30 = vld [vmem:[#allocation3 + $0x1f0] sm:$0xff]  ;;  %s3825_s23 = smov 4  }
   0xe   :  { %245 = vmatpush.bf16.msra.mxu1 %v3295_v17  ;;  %v3922_v31 = vld [vmem:[#allocation3 + $0x1a0] sm:$0xff]  ;;  %v3926_v32 = vld [vmem:[#allocation3 + $0x1d8] sm:$0xff]  ;;  %v3928_v33 = vld [vmem:[#allocation3 + $0x1a8] sm:$0xff] }
   0xf   :  { %299 = vmatpush.bf16.msra.mxu2 %v3299_v21  ;;  %353 = vmatpush.bf16.msra.mxu3 %v3303_v23  ;;  %v3932_v34 = vld [vmem:[#allocation3 + $0x1d0] sm:$0xff]  ;;  %v3934_v35 = vld [vmem:[#allocation3 + $0x180] sm:$0xff]  ;;  %v3938_v36 = vld [vmem:[#allocation3 + $0x1b8] sm:$0xff] }
  0x10   :  { %3320 = vmatmul.msk.bf16.vlgmr.msra.gmra.mxu0 %vm156_vm0, %v3410_v24  ;;  %v3940_v37 = vld [vmem:[#allocation3 + $0x188] sm:$0xff]  ;;  %v3944_v38 = vld [vmem:[#allocation3 + $0x1b0] sm:$0xff]  ;;  %v3946_v39 = vld [vmem:[#allocation3 + $0x160] sm:$0xff] }
  0x11   :  { %547 = vmatpush.msrb.mxu0 %v3905_v25  ;;  %3329 = vmatmul.msk.bf16.vlgmr.msra.gmra.mxu1 %vm156_vm0, %v3410_v24  ;;  %v3950_v40 = vld [vmem:[#allocation3 + $0x198] sm:$0xff]  ;;  %v3952_v41 = vld [vmem:[#allocation3 + $0x168] sm:$0xff]  ;;  %v3956_v42 = vld [vmem:[#allocation3 + $0x190] sm:$0xff] }
  0x12   :  { %570 = vmatpush.msrb.mxu1 %v3907_v26  ;;  %3338 = vmatmul.msk.bf16.vlgmr.msra.gmra.mxu2 %vm156_vm0, %v3410_v24  ;;  %v3958_v43 = vld [vmem:[#allocation3 + $0x140] sm:$0xff]  ;;  %v3962_v44 = vld [vmem:[#allocation3 + $0x178] sm:$0xff]  ;;  %v3964_v45 = vld [vmem:[#allocation3 + $0x148] sm:$0xff] }
  0x13   :  { %3347 = vmatmul.msk.bf16.vlgmr.msra.gmra.mxu3 %vm156_vm0, %v3410_v24  ;;  %548 = vmatpush.msrb.mxu0 %v3910_v27  ;;  %v3411_v46 = vld [vmem:[%s5817_s0 + $0x8] sm:$0xff]  ;;  %v3979_v47 = vld [vmem:[#allocation3 + $0x158] sm:$0xff]  ;;  %v3981_v48 = vld [vmem:[#allocation3 + $0x170] sm:$0xff] }
  0x14   :  { %616 = vmatpush.msrb.mxu3 %v3914_v28  ;;  %571 = vmatpush.msrb.mxu1 %v3916_v29  ;;  %v3983_v49 = vld [vmem:[#allocation3 + $0x120] sm:$0xff]  ;;  %v3987_v50 = vld [vmem:[#allocation3 + $0x128] sm:$0xff]  ;;  %v3989_v51 = vld [vmem:[#allocation3 + $0x138] sm:$0xff] }
  0x15   :  { %593 = vmatpush.msrb.mxu2 %v3920_v30  ;;  %549 = vmatpush.msrb.mxu0 %v3922_v31  ;;  %v3991_v52 = vld [vmem:[#allocation3 + $0x150] sm:$0xff]  ;;  %v3995_v53 = vld [vmem:[#allocation3 + $0x100] sm:$0xff]  ;;  %v3997_v54 = vld [vmem:[#allocation3 + $0x108] sm:$0xff] }
  0x16   :  { %617 = vmatpush.msrb.mxu3 %v3926_v32  ;;  %572 = vmatpush.msrb.mxu1 %v3928_v33  ;;  %v3412_v55 = vld [vmem:[%s5817_s0 + $0x10] sm:$0xff]  ;;  %v4010_v56 = vld [vmem:[#allocation3 + $0x118] sm:$0xff]  ;;  %v4014_v58 = vld [vmem:[#allocation3 + $0xe0] sm:$0xff] }
  0x17   :  { %594 = vmatpush.msrb.mxu2 %v3932_v34  ;;  %550 = vmatpush.msrb.mxu0 %v3934_v35  ;;  %v4012_v57 = vld [vmem:[#allocation3 + $0x130] sm:$0xff]  ;;  %v4018_v59 = vld [vmem:[#allocation3 + $0xe8] sm:$0xff]  ;;  %v4020_v60 = vld [vmem:[#allocation3 + $0xf8] sm:$0xff] }
  0x18   :  { %618 = vmatpush.msrb.mxu3 %v3938_v36  ;;  %573 = vmatpush.msrb.mxu1 %v3940_v37  ;;  %v4022_v61 = vld [vmem:[#allocation3 + $0x110] sm:$0xff]  ;;  %v3413_v62 = vld [vmem:[%s5817_s0 + $0x18] sm:$0xff]  ;;  %v4035_v63 = vld [vmem:[#allocation3 + $0xc0] sm:$0xff] }
  0x19   :  { %595 = vmatpush.msrb.mxu2 %v3944_v38  ;;  %551 = vmatpush.msrb.mxu0 %v3946_v39  ;;  %v4037_v0 = vld [vmem:[#allocation3 + $0xc8] sm:$0xff]  ;;  %v4039_v1 = vld [vmem:[#allocation3 + $0xd8] sm:$0xff]  ;;  %v4043_v2 = vld [vmem:[#allocation3 + $0xf0] sm:$0xff] }
  0x1a   :  { %619 = vmatpush.msrb.mxu3 %v3950_v40  ;;  %574 = vmatpush.msrb.mxu1 %v3952_v41  ;;  %v4045_v3 = vld [vmem:[#allocation3 + $0xa0] sm:$0xff]  ;;  %v4047_v4 = vld [vmem:[#allocation3 + $0xa8] sm:$0xff]  ;;  %v4051_v5 = vld [vmem:[#allocation3 + $0xb8] sm:$0xff] }
  0x1b   :  { %596 = vmatpush.msrb.mxu2 %v3956_v42  ;;  %552 = vmatpush.msrb.mxu0 %v3958_v43  ;;  %v3414_v6 = vld [vmem:[%s5817_s0 + $0x20] sm:$0xff]  ;;  %v4063_v7 = vld [vmem:[#allocation3 + $0xd0] sm:$0xff]  ;;  %v4067_v9 = vld [vmem:[#allocation3 + $0x88] sm:$0xff] }
  0x1c   :  { %620 = vmatpush.msrb.mxu3 %v3962_v44  ;;  %575 = vmatpush.msrb.mxu1 %v3964_v45  ;;  %v4065_v8 = vld [vmem:[#allocation3 + $0x80] sm:$0xff]  ;;  %v4071_v10 = vld [vmem:[#allocation3 + $0x98] sm:$0xff]  ;;  %v4073_v11 = vld [vmem:[#allocation3 + $0xb0] sm:$0xff] }
  0x1d   :  { %597 = vmatpush.msrb.mxu2 %v3981_v48  ;;  %553 = vmatpush.msrb.mxu0 %v3983_v49  ;;  %v4075_v12 = vld [vmem:[#allocation3 + $0x60] sm:$0xff]  ;;  %v4079_v13 = vld [vmem:[#allocation3 + $0x68] sm:$0xff]  ;;  %v4091_v15 = vld [vmem:[#allocation3 + $0x78] sm:$0xff] }
  0x1e   :  { %621 = vmatpush.msrb.mxu3 %v3979_v47  ;;  %576 = vmatpush.msrb.mxu1 %v3987_v50  ;;  %v3415_v14 = vld [vmem:[%s5817_s0 + $0x28] sm:$0xff]  ;;  %v4093_v16 = vld [vmem:[#allocation3 + $0x90] sm:$0xff]  ;;  %v4095_v17 = vld [vmem:[#allocation3 + $0x40] sm:$0xff] }
  0x1f   :  { %598 = vmatpush.msrb.mxu2 %v3991_v52  ;;  %554 = vmatpush.msrb.mxu0 %v3995_v53  ;;  %v4099_v18 = vld [vmem:[#allocation3 + $0x48] sm:$0xff]  ;;  %v4101_v19 = vld [vmem:[#allocation3 + $0x58] sm:$0xff]  ;;  %v4103_v20 = vld [vmem:[#allocation3 + $0x70] sm:$0xff] }
  0x20   :  { %3321 = vmatmul.msk.bf16.gmra.mxu0 %vm156_vm0, %v3411_v46  ;;  %622 = vmatpush.msrb.mxu3 %v3989_v51  ;;  %v3416_v21 = vld [vmem:[%s5817_s0 + $0x30] sm:$0xff]  ;;  %v4112_v22 = vld [vmem:[#allocation3 + $0x20] sm:$0xff]  ;;  %v4114_v23 = vld [vmem:[#allocation3 + $0x28] sm:$0xff] }
  0x21   :  { %3330 = vmatmul.msk.bf16.gmra.mxu1 %vm156_vm0, %v3411_v46  ;;  %599 = vmatpush.msrb.mxu2 %v4012_v57  ;;  %v4122_v24 = vld [vmem:[#allocation3 + $0x38] sm:$0xff] }
  0x22   :  { %3339 = vmatmul.msk.bf16.gmra.mxu2 %vm156_vm0, %v3411_v46  ;;  %577 = vmatpush.msrb.mxu1 %v3997_v54 }
  0x23   :  { %3348 = vmatmul.msk.bf16.gmra.mxu3 %vm156_vm0, %v3411_v46  ;;  %555 = vmatpush.msrb.mxu0 %v4014_v58  ;;  %v4124_v46 = vld [vmem:[#allocation3 + $0x50] sm:$0xff] }
  0x24   :  { %623 = vmatpush.msrb.mxu3 %v4010_v56  ;;  %578 = vmatpush.msrb.mxu1 %v4018_v59 }
  0x25   :  { %600 = vmatpush.msrb.mxu2 %v4022_v61  ;;  %556 = vmatpush.msrb.mxu0 %v4035_v63 }
  0x26   :  { %624 = vmatpush.msrb.mxu3 %v4020_v60  ;;  %579 = vmatpush.msrb.mxu1 %v4037_v0 }
  0x27   :  { %601 = vmatpush.msrb.mxu2 %v4043_v2  ;;  %557 = vmatpush.msrb.mxu0 %v4045_v3 }
  0x28   :  { %625 = vmatpush.msrb.mxu3 %v4039_v1  ;;  %580 = vmatpush.msrb.mxu1 %v4047_v4 }
  0x29   :  { %602 = vmatpush.msrb.mxu2 %v4063_v7  ;;  %558 = vmatpush.msrb.mxu0 %v4065_v8 }
  0x2a   :  { %626 = vmatpush.msrb.mxu3 %v4051_v5  ;;  %581 = vmatpush.msrb.mxu1 %v4067_v9 }
  0x2b   :  { %603 = vmatpush.msrb.mxu2 %v4073_v11  ;;  %559 = vmatpush.msrb.mxu0 %v4075_v12 }
  0x2c   :  { %627 = vmatpush.msrb.mxu3 %v4071_v10  ;;  %582 = vmatpush.msrb.mxu1 %v4079_v13 }
  0x2d   :  { %604 = vmatpush.msrb.mxu2 %v4093_v16  ;;  %560 = vmatpush.msrb.mxu0 %v4095_v17 }
  0x2e   :  { %628 = vmatpush.msrb.mxu3 %v4091_v15  ;;  %583 = vmatpush.msrb.mxu1 %v4099_v18 }
  0x2f   :  { %605 = vmatpush.msrb.mxu2 %v4103_v20  ;;  %561 = vmatpush.msrb.mxu0 %v4112_v22 }
  0x30   :  { %3322 = vmatmul.msk.bf16.gmra.mxu0 %vm156_vm0, %v3412_v55  ;;  %629 = vmatpush.msrb.mxu3 %v4101_v19 }
  0x31   :  { %3331 = vmatmul.msk.bf16.gmra.mxu1 %vm156_vm0, %v3412_v55  ;;  %606 = vmatpush.msrb.mxu2 %v4124_v46 }
  0x32   :  { %3340 = vmatmul.msk.bf16.gmra.mxu2 %vm156_vm0, %v3412_v55  ;;  %584 = vmatpush.msrb.mxu1 %v4114_v23 }
  0x33   :  { %3349 = vmatmul.msk.bf16.gmra.mxu3 %vm156_vm0, %v3412_v55  ;;  %v4128_v55 = vld [vmem:[#allocation3] sm:$0xff] }
  0x34   :  { %630 = vmatpush.msrb.mxu3 %v4122_v24  ;;  %562 = vmatpush.msrb.mxu0 %v4128_v55 }
  0x36   :  { %852 = vmatpush.msra.mxu0 %v3905_v25  ;;  %v4149_v25 = vld [vmem:[#allocation3 + $0x10] sm:$0xff] }
  0x38   :  { %853 = vmatpush.msra.mxu0 %v3910_v27 }
  0x3a   :  { %854 = vmatpush.msra.mxu0 %v3922_v31 }
  0x3c   :  { %855 = vmatpush.msra.mxu0 %v3934_v35 }
  0x3e   :  { %856 = vmatpush.msra.mxu0 %v3946_v39 }
  0x40   :  { %3323 = vmatmul.msk.bf16.gmra.mxu0 %vm156_vm0, %v3413_v62 }
  0x41   :  { %3332 = vmatmul.msk.bf16.gmra.mxu1 %vm156_vm0, %v3413_v62  ;;  %857 = vmatpush.msra.mxu0 %v3958_v43 }
  0x42   :  { %3341 = vmatmul.msk.bf16.gmra.mxu2 %vm156_vm0, %v3413_v62 }
  0x43   :  { %3350 = vmatmul.msk.bf16.gmra.mxu3 %vm156_vm0, %v3413_v62  ;;  %v4130_v62 = vld [vmem:[#allocation3 + $0x8] sm:$0xff]  ;;  %858 = vmatpush.msra.mxu0 %v3983_v49 }
  0x44   :  { %585 = vmatpush.msrb.mxu1 %v4130_v62 }
  0x45   :  { %859 = vmatpush.msra.mxu0 %v3995_v53 }
  0x46   :  { %875 = vmatpush.msra.mxu1 %v3907_v26  ;;  %v3418_v26 = vld [vmem:[%s5817_s0 + $0x40] sm:$0xff] }
  0x47   :  { %860 = vmatpush.msra.mxu0 %v4014_v58 }
  0x48   :  { %876 = vmatpush.msra.mxu1 %v3916_v29 }
  0x49   :  { %861 = vmatpush.msra.mxu0 %v4035_v63 }
  0x4a   :  { %877 = vmatpush.msra.mxu1 %v3928_v33 }
  0x4b   :  { %862 = vmatpush.msra.mxu0 %v4045_v3 }
  0x4c   :  { %878 = vmatpush.msra.mxu1 %v3940_v37  ;;  %v3822_v37 = vmov 0.0  }
  0x4d   :  { %863 = vmatpush.msra.mxu0 %v4065_v8 }
  0x4e   :  { %879 = vmatpush.msra.mxu1 %v3952_v41 }
  0x4f   :  { %864 = vmatpush.msra.mxu0 %v4075_v12 }
  0x50   :  { %3324 = vmatmul.msk.bf16.gmra.mxu0 %vm156_vm0, %v3414_v6  ;;  %880 = vmatpush.msra.mxu1 %v3964_v45 }
  0x51   :  { %3333 = vmatmul.msk.bf16.gmra.mxu1 %vm156_vm0, %v3414_v6  ;;  %865 = vmatpush.msra.mxu0 %v4095_v17 }
  0x52   :  { %3342 = vmatmul.msk.bf16.gmra.mxu2 %vm156_vm0, %v3414_v6  ;;  %881 = vmatpush.msra.mxu1 %v3987_v50 }
  0x53   :  { %3351 = vmatmul.msk.bf16.gmra.mxu3 %vm156_vm0, %v3414_v6  ;;  %v3417_v6 = vld [vmem:[%s5817_s0 + $0x38] sm:$0xff]  ;;  %866 = vmatpush.msra.mxu0 %v4112_v22 }
  0x54   :  { %882 = vmatpush.msra.mxu1 %v3997_v54 }
  0x55   :  { %867 = vmatpush.msra.mxu0 %v4128_v55 }
  0x56   :  { %883 = vmatpush.msra.mxu1 %v4018_v59 }
  0x58   :  { %884 = vmatpush.msra.mxu1 %v4037_v0 }
  0x5a   :  { %885 = vmatpush.msra.mxu1 %v4047_v4 }
  0x5c   :  { %886 = vmatpush.msra.mxu1 %v4067_v9 }
  0x5e   :  { %887 = vmatpush.msra.mxu1 %v4079_v13 }
  0x60   :  { %3325 = vmatmul.msk.bf16.gmra.mxu0 %vm156_vm0, %v3415_v14  ;;  %888 = vmatpush.msra.mxu1 %v4099_v18 }
  0x61   :  { %3334 = vmatmul.msk.bf16.gmra.mxu1 %vm156_vm0, %v3415_v14 }
  0x62   :  { %3343 = vmatmul.msk.bf16.gmra.mxu2 %vm156_vm0, %v3415_v14  ;;  %889 = vmatpush.msra.mxu1 %v4114_v23 }
  0x63   :  { %3352 = vmatmul.msk.bf16.gmra.mxu3 %vm156_vm0, %v3415_v14  ;;  %v4143_v14 = vld [vmem:[#allocation3 + $0x18] sm:$0xff] }
  0x64   :  { %631 = vmatpush.msrb.mxu3 %v4143_v14  ;;  %890 = vmatpush.msra.mxu1 %v4130_v62 }
  0x66   :  { %921 = vmatpush.msra.mxu3 %v3914_v28 }
  0x68   :  { %922 = vmatpush.msra.mxu3 %v3926_v32 }
  0x6a   :  { %923 = vmatpush.msra.mxu3 %v3938_v36 }
  0x6c   :  { %924 = vmatpush.msra.mxu3 %v3950_v40 }
  0x6e   :  { %925 = vmatpush.msra.mxu3 %v3962_v44 }
  0x70   :  { %3326 = vmatmul.msk.bf16.gmra.mxu0 %vm156_vm0, %v3416_v21  ;;  %926 = vmatpush.msra.mxu3 %v3979_v47 }
  0x71   :  { %3335 = vmatmul.msk.bf16.gmra.mxu1 %vm156_vm0, %v3416_v21 }
  0x72   :  { %3344 = vmatmul.msk.bf16.gmra.mxu2 %vm156_vm0, %v3416_v21  ;;  %927 = vmatpush.msra.mxu3 %v3989_v51 }
  0x73   :  { %3353 = vmatmul.msk.bf16.gmra.mxu3 %vm156_vm0, %v3416_v21  ;;  %v4145_v21 = vld [vmem:[#allocation3 + $0x30] sm:$0xff] }
  0x74   :  { %607 = vmatpush.msrb.mxu2 %v4145_v21  ;;  %928 = vmatpush.msra.mxu3 %v4010_v56 }
  0x76   :  { %608 = vmatpush.msrb.mxu2 %v4149_v25  ;;  %929 = vmatpush.msra.mxu3 %v4020_v60 }
  0x78   :  { %898 = vmatpush.msra.mxu2 %v3920_v30  ;;  %930 = vmatpush.msra.mxu3 %v4039_v1 }
  0x7a   :  { %899 = vmatpush.msra.mxu2 %v3932_v34  ;;  %931 = vmatpush.msra.mxu3 %v4051_v5 }
  0x7c   :  { %900 = vmatpush.msra.mxu2 %v3944_v38  ;;  %932 = vmatpush.msra.mxu3 %v4071_v10 }
  0x7e   :  { %901 = vmatpush.msra.mxu2 %v3956_v42  ;;  %933 = vmatpush.msra.mxu3 %v4091_v15 }
  0x80   :  { %3327 = vmatmul.msk.bf16.gmra.mxu0 %vm156_vm0, %v3417_v6  ;;  %902 = vmatpush.msra.mxu2 %v3981_v48 }
  0x81   :  { %3336 = vmatmul.msk.bf16.gmra.mxu1 %vm156_vm0, %v3417_v6  ;;  %934 = vmatpush.msra.mxu3 %v4101_v19 }
  0x82   :  { %3345 = vmatmul.msk.bf16.gmra.mxu2 %vm156_vm0, %v3417_v6 }
  0x83   :  { %3354 = vmatmul.msk.bf16.gmra.mxu3 %vm156_vm0, %v3417_v6  ;;  %903 = vmatpush.msra.mxu2 %v3991_v52 }
  0x84   :  { %935 = vmatpush.msra.mxu3 %v4122_v24 }
  0x85   :  { %904 = vmatpush.msra.mxu2 %v4012_v57 }
  0x86   :  { %936 = vmatpush.msra.mxu3 %v4143_v14 }
  0x87   :  { %905 = vmatpush.msra.mxu2 %v4022_v61 }
  0x89   :  { %906 = vmatpush.msra.mxu2 %v4043_v2 }
  0x8b   :  { %907 = vmatpush.msra.mxu2 %v4063_v7 }
  0x8d   :  { %v4180_v27 = vpop.f32.mrf.mxu0  ;;  %908 = vmatpush.msra.mxu2 %v4073_v11 }
  0x8e   :  { %v4184_v28 = vpop.f32.mrf.mxu1 }
  0x8f   :  { %909 = vmatpush.msra.mxu2 %v4093_v16 }
  0x90   :  { %3328 = vmatmul.msk.bf16.gmra.mxu0 %vm156_vm0, %v3418_v26 }
  0x91   :  { %3337 = vmatmul.msk.bf16.gmra.mxu1 %vm156_vm0, %v3418_v26  ;;  %910 = vmatpush.msra.mxu2 %v4103_v20 }
  0x92   :  { %3346 = vmatmul.msk.bf16.gmra.mxu2 %vm156_vm0, %v3418_v26 }
  0x93   :  { %3355 = vmatmul.msk.bf16.gmra.mxu3 %vm156_vm0, %v3418_v26  ;;  %911 = vmatpush.msra.mxu2 %v4124_v46 }
  0x95   :  { %v4198_v29 = vpop.f32.mrf.mxu2  ;;  %v4204_v31 = vpop.f32.mrf.mxu0  ;;  %912 = vmatpush.msra.mxu2 %v4145_v21 }
  0x96   :  { %v4202_v30 = vpop.f32.mrf.mxu3  ;;  %v4208_v32 = vpop.f32.mrf.mxu1 }
  0x97   :  { %913 = vmatpush.msra.mxu2 %v4149_v25 }
  0x9d   :  { %v4222_v33 = vpop.f32.mrf.mxu2  ;;  %v4228_v35 = vpop.f32.mrf.mxu0 }
  0x9e   :  { %v4226_v34 = vpop.f32.mrf.mxu3  ;;  %v4232_v36 = vpop.f32.mrf.mxu1 }
  0xa0   :  { %563 = vmatmul.f32.vlgmr.msrb.gmra.mxu0 %v3822_v37 }
  0xa1   :  { %586 = vmatmul.f32.vlgmr.msrb.gmra.mxu1 %v3822_v37 }
  0xa2   :  { %609 = vmatmul.f32.vlgmr.msrb.gmra.mxu2 %v3822_v37 }
  0xa3   :  { %632 = vmatmul.f32.vlgmr.msrb.gmra.mxu3 %v3822_v37 }
  0xa5   :  { %v4241_v38 = vpop.f32.mrf.mxu2  ;;  %v4245_v40 = vpop.f32.mrf.mxu0 }
  0xa6   :  { %v4243_v39 = vpop.f32.mrf.mxu3  ;;  %v4247_v41 = vpop.f32.mrf.mxu1 }
  0xa8   :  { %566 = vmatmul.f32.gmra.mxu0 %v3822_v37 }
  0xa9   :  { %589 = vmatmul.f32.gmra.mxu1 %v3822_v37 }
  0xaa   :  { %612 = vmatmul.f32.gmra.mxu2 %v3822_v37 }
  0xab   :  { %635 = vmatmul.f32.gmra.mxu3 %v3822_v37 }
  0xad   :  { %v4249_v42 = vpop.f32.mrf.mxu2  ;;  %v4253_v44 = vpop.f32.mrf.mxu0 }
  0xae   :  { %v4251_v43 = vpop.f32.mrf.mxu3  ;;  %5894 = vst [vmem:[#allocation9_spill] sm:$0xff] %v4253_v44  ;;  %v4255_v45 = vpop.f32.mrf.mxu1  ;;  %v4589_v44 = vld [vmem:[#allocation3 + $0x90] sm:$0xff] }
  0xaf   :  { %5895 = vst [vmem:[#allocation10_spill] sm:$0xff] %v4255_v45  ;;  %v4585_v45 = vld [vmem:[#allocation3 + $0x80] sm:$0xff] }
  0xb0   :  { %5960 = vst [vmem:[#allocation73_spill] sm:$0xff] %v4589_v44 }
  0xb5   :  { %v4257_v47 = vpop.f32.mrf.mxu2  ;;  %v4261_v49 = vpop.f32.mrf.mxu0 }
  0xb6   :  { %5896 = vst [vmem:[#allocation11_spill] sm:$0xff] %v4257_v47  ;;  %v4259_v48 = vpop.f32.mrf.mxu3  ;;  %v4263_v50 = vpop.f32.mrf.mxu1  ;;  %v4581_v47 = vld [vmem:[#allocation3 + $0xb8] sm:$0xff] }
  0xb7   :  { %5897 = vst [vmem:[#allocation12_spill] sm:$0xff] %v4259_v48 }
  0xb8   :  { %5898 = vst [vmem:[#allocation13_spill] sm:$0xff] %v4261_v49 }
  0xb9   :  { %5899 = vst [vmem:[#allocation14_spill] sm:$0xff] %v4263_v50 }
  0xba   :  { %5958 = vst [vmem:[#allocation71_spill] sm:$0xff] %v4581_v47 }
  0xbd   :  { %v4265_v51 = vpop.f32.mrf.mxu2  ;;  %v4269_v53 = vpop.f32.mrf.mxu0 }
  0xbe   :  { %5900 = vst [vmem:[#allocation15_spill] sm:$0xff] %v4265_v51  ;;  %v4267_v52 = vpop.f32.mrf.mxu3  ;;  %v4271_v54 = vpop.f32.mrf.mxu1  ;;  %v4573_v51 = vld [vmem:[#allocation3 + $0xb0] sm:$0xff] }
  0xbf   :  { %5901 = vst [vmem:[#allocation16_spill] sm:$0xff] %v4267_v52 }
  0xc0   :  { %5902 = vst [vmem:[#allocation17_spill] sm:$0xff] %v4269_v53  ;;  %v4571_v53 = vld [vmem:[#allocation3 + $0xa8] sm:$0xff] }
  0xc1   :  { %5903 = vst [vmem:[#allocation18_spill] sm:$0xff] %v4271_v54 }
  0xc2   :  { %5956 = vst [vmem:[#allocation69_spill] sm:$0xff] %v4571_v53 }
  0xc3   :  { %5957 = vst [vmem:[#allocation70_spill] sm:$0xff] %v4573_v51 }
  0xc5   :  { %v4273_v56 = vpop.f32.mrf.mxu2  ;;  %v4277_v58 = vpop.f32.mrf.mxu0 }
  0xc6   :  { %5904 = vst [vmem:[#allocation19_spill] sm:$0xff] %v4273_v56  ;;  %v4275_v57 = vpop.f32.mrf.mxu3  ;;  %v4279_v59 = vpop.f32.mrf.mxu1  ;;  %v4553_v56 = vld [vmem:[#allocation3 + $0xf8] sm:$0xff] }
  0xc7   :  { %5905 = vst [vmem:[#allocation20_spill] sm:$0xff] %v4275_v57  ;;  %v4561_v57 = vld [vmem:[#allocation3 + $0xd0] sm:$0xff] }
  0xc8   :  { %5906 = vst [vmem:[#allocation21_spill] sm:$0xff] %v4277_v58  ;;  %v4559_v58 = vld [vmem:[#allocation3 + $0xc8] sm:$0xff] }
  0xc9   :  { %5907 = vst [vmem:[#allocation22_spill] sm:$0xff] %v4279_v59  ;;  %v4557_v59 = vld [vmem:[#allocation3 + $0xc0] sm:$0xff] }
  0xcd   :  { %v4281_v60 = vpop.f32.mrf.mxu2  ;;  %v4285_v63 = vpop.f32.mrf.mxu0 }
  0xce   :  { %5908 = vst [vmem:[#allocation23_spill] sm:$0xff] %v4281_v60  ;;  %v4283_v61 = vpop.f32.mrf.mxu3  ;;  %v4287_v0 = vpop.f32.mrf.mxu1  ;;  %v4547_v60 = vld [vmem:[#allocation3 + $0xf0] sm:$0xff] }
  0xcf   :  { %5909 = vst [vmem:[#allocation24_spill] sm:$0xff] %v4283_v61 }
  0xd0   :  { %5910 = vst [vmem:[#allocation25_spill] sm:$0xff] %v4285_v63 }
  0xd1   :  { %5911 = vst [vmem:[#allocation26_spill] sm:$0xff] %v4287_v0 }
  0xd5   :  { %v4289_v1 = vpop.f32.mrf.mxu2  ;;  %v4293_v3 = vpop.f32.mrf.mxu0 }
  0xd6   :  { %5912 = vst [vmem:[#allocation27_spill] sm:$0xff] %v4289_v1  ;;  %v4291_v2 = vpop.f32.mrf.mxu3  ;;  %v4295_v4 = vpop.f32.mrf.mxu1 }
  0xd7   :  { %5913 = vst [vmem:[#allocation28_spill] sm:$0xff] %v4291_v2  ;;  %v4527_v2 = vld [vmem:[#allocation3 + $0x138] sm:$0xff] }
  0xd8   :  { %5914 = vst [vmem:[#allocation29_spill] sm:$0xff] %v4293_v3  ;;  %v4523_v3 = vld [vmem:[#allocation3 + $0x130] sm:$0xff] }
  0xd9   :  { %5915 = vst [vmem:[#allocation30_spill] sm:$0xff] %v4295_v4 }
  0xdd   :  { %v4297_v5 = vpop.f32.mrf.mxu2  ;;  %v4301_v8 = vpop.f32.mrf.mxu0 }
  0xde   :  { %5916 = vst [vmem:[#allocation31_spill] sm:$0xff] %v4297_v5  ;;  %v4299_v7 = vpop.f32.mrf.mxu3  ;;  %v4303_v9 = vpop.f32.mrf.mxu1 }
  0xdf   :  { %5917 = vst [vmem:[#allocation32_spill] sm:$0xff] %v4299_v7 }
  0xe0   :  { %5918 = vst [vmem:[#allocation33_spill] sm:$0xff] %v4301_v8 }
  0xe1   :  { %5919 = vst [vmem:[#allocation34_spill] sm:$0xff] %v4303_v9 }
  0xe5   :  { %v4305_v10 = vpop.f32.mrf.mxu2  ;;  %v4309_v12 = vpop.f32.mrf.mxu0 }
  0xe6   :  { %5920 = vst [vmem:[#allocation35_spill] sm:$0xff] %v4305_v10  ;;  %v4307_v11 = vpop.f32.mrf.mxu3  ;;  %v4311_v13 = vpop.f32.mrf.mxu1 }
  0xe7   :  { %5921 = vst [vmem:[#allocation36_spill] sm:$0xff] %v4307_v11 }
  0xe8   :  { %5922 = vst [vmem:[#allocation37_spill] sm:$0xff] %v4309_v12 }
  0xe9   :  { %5923 = vst [vmem:[#allocation38_spill] sm:$0xff] %v4311_v13 }
  0xed   :  { %v4313_v15 = vpop.f32.mrf.mxu2  ;;  %v4317_v17 = vpop.f32.mrf.mxu0 }
  0xee   :  { %5924 = vst [vmem:[#allocation39_spill] sm:$0xff] %v4313_v15  ;;  %v4315_v16 = vpop.f32.mrf.mxu3  ;;  %v4319_v18 = vpop.f32.mrf.mxu1 }
  0xef   :  { %5925 = vst [vmem:[#allocation40_spill] sm:$0xff] %v4315_v16 }
  0xf0   :  { %5926 = vst [vmem:[#allocation41_spill] sm:$0xff] %v4317_v17 }
  0xf1   :  { %5927 = vst [vmem:[#allocation42_spill] sm:$0xff] %v4319_v18 }
  0xf5   :  { %v4321_v19 = vpop.f32.mrf.mxu2  ;;  %v4325_v22 = vpop.f32.mrf.mxu0 }
  0xf6   :  { %5928 = vst [vmem:[#allocation43_spill] sm:$0xff] %v4321_v19  ;;  %v4323_v20 = vpop.f32.mrf.mxu3  ;;  %v4327_v23 = vpop.f32.mrf.mxu1 }
  0xf7   :  { %5929 = vst [vmem:[#allocation44_spill] sm:$0xff] %v4323_v20 }
  0xf8   :  { %5930 = vst [vmem:[#allocation45_spill] sm:$0xff] %v4325_v22 }
  0xf9   :  { %5931 = vst [vmem:[#allocation46_spill] sm:$0xff] %v4327_v23 }
  0xfd   :  { %v4329_v24 = vpop.f32.mrf.mxu2  ;;  %v4333_v55 = vpop.f32.mrf.mxu0 }
  0xfe   :  { %5932 = vst [vmem:[#allocation47_spill] sm:$0xff] %v4329_v24  ;;  %v4331_v46 = vpop.f32.mrf.mxu3  ;;  %v4335_v62 = vpop.f32.mrf.mxu1 }
  0xff   :  { %5933 = vst [vmem:[#allocation48_spill] sm:$0xff] %v4331_v46 }
 0x100   :  { %5934 = vst [vmem:[#allocation49_spill] sm:$0xff] %v4333_v55 }
 0x101   :  { %5935 = vst [vmem:[#allocation50_spill] sm:$0xff] %v4335_v62  ;;  %v61_v62 = vld [vmem:[%s5820_s3] sm:$0xf]  ;;  %s3823_s3 = smov [#allocation6]  }
 0x102   :  { %v4374_v22 = vperm.slane %v61_v62, 3  ;;  %v4384_v15 = vperm.slane %v61_v62, 2  ;;  %s3229_s18 = sshll.u32 %s3823_s3, 4  ;;  %s3230_s18 = int_to_ptr.vmem [resolvable:$true] %s3229_s18 }
 0x104   :  { %5951 = vst [vmem:[#allocation66_spill] sm:$0xff] %v4374_v22  ;;  %v361_v61 = vadd.f32 %v4243_v39, %v4374_v22  ;;  %v4565_v39 = vld [vmem:[#allocation3 + $0xd8] sm:$0xff] }
 0x105   :  { %v4337_v6 = vpop.f32.mrf.mxu2  ;;  %v4341_v21 = vpop.f32.mrf.mxu0 }
 0x106   :  { %5936 = vst [vmem:[#allocation51_spill] sm:$0xff] %v4337_v6  ;;  %v4339_v14 = vpop.f32.mrf.mxu3  ;;  %v4343_v25 = vpop.f32.mrf.mxu1 }
 0x107   :  { %5937 = vst [vmem:[#allocation52_spill] sm:$0xff] %v4339_v14 }
 0x108   :  { %5938 = vst [vmem:[#allocation53_spill] sm:$0xff] %v4341_v21  ;;  %v4362_v21 = vperm.slane %v61_v62, 0 }
 0x109   :  { %5939 = vst [vmem:[#allocation54_spill] sm:$0xff] %v4343_v25  ;;  %v4364_v25 = vperm.slane %v61_v62, 1 }
 0x10a   :  { %5947 = vst [vmem:[#allocation62_spill] sm:$0xff] %v4362_v21  ;;  %v201_v52 = vadd.f32 %v4245_v40, %v4362_v21  ;;  %v4587_v40 = vld [vmem:[#allocation3 + $0x88] sm:$0xff] }
 0x10b   :  { %5948 = vst [vmem:[#allocation63_spill] sm:$0xff] %v4364_v25 }
 0x10c   :  { %5959 = vst [vmem:[#allocation72_spill] sm:$0xff] %v4587_v40 }
 0x10d   :  { %v4347_v37 = vpop.f32.mrf.mxu0  ;;  %v4351_v24 = vpop.f32.mrf.mxu2 }
 0x10e   :  { %v4345_v26 = vpop.f32.mrf.mxu3  ;;  %5941 = vst [vmem:[#allocation56_spill] sm:$0xff] %v4347_v37  ;;  %v4349_v19 = vpop.f32.mrf.mxu1  ;;  %v248_v37 = vadd.f32 %v4184_v28, %v4364_v25  ;;  %v196_v28 = vadd.f32 %v4204_v31, %v4362_v21  ;;  %v358_v31 = vadd.f32 %v4226_v34, %v4374_v22 }
 0x10f   :  { %5940 = vst [vmem:[#allocation55_spill] sm:$0xff] %v4345_v26 }
 0x110   :  { %5942 = vst [vmem:[#allocation57_spill] sm:$0xff] %v4349_v19  ;;  %v194_v19 = vadd.f32 %v4180_v27, %v4362_v21  ;;  %v356_v27 = vadd.f32 %v4202_v30, %v4374_v22 }
 0x111   :  { %5943 = vst [vmem:[#allocation58_spill] sm:$0xff] %v4351_v24 }
 0x115   :  { %v4358_v6 = vpop.f32.mrf.mxu0  ;;  %v4366_v26 = vpop.f32.mrf.mxu2 }
 0x116   :  { %v4356_v55 = vpop.f32.mrf.mxu3  ;;  %5945 = vst [vmem:[#allocation60_spill] sm:$0xff] %v4358_v6  ;;  %v4360_v14 = vpop.f32.mrf.mxu1 }
 0x117   :  { %5944 = vst [vmem:[#allocation59_spill] sm:$0xff] %v4356_v55 }
 0x118   :  { %5946 = vst [vmem:[#allocation61_spill] sm:$0xff] %v4360_v14 }
 0x119   :  { %5949 = vst [vmem:[#allocation64_spill] sm:$0xff] %v4366_v26 }
 0x11d   :  { %v564_v46 = vpop.f32.mrf.mxu0  ;;  %v4376_v18 = vpop.f32.mrf.mxu2 }
 0x11e   :  { %v4372_v24 = vpop.f32.mrf.mxu3  ;;  %v639_v55 = vadd.f32 %v564_v46, %v194_v19  ;;  %v587_v23 = vpop.f32.mrf.mxu1  ;;  %5952 = vst [vmem:[#allocation67_spill] sm:$0xff] %v4376_v18 }
 0x11f   :  { %5950 = vst [vmem:[#allocation65_spill] sm:$0xff] %v4372_v24  ;;  %v640_v6 = vadd.f32 %v587_v23, %v248_v37  ;;  %v250_v24 = vadd.f32 %v4208_v32, %v4364_v25 }
 0x120   :  { %v3356_v14 = vmul.f32 -1.442695, %v639_v55 }
 0x121   :  { %v3358_v20 = vmul.f32 -1.442695, %v640_v6 }
 0x122   :  { %3479 = vpow2.f32 %v3356_v14 }
 0x123   :  { %3481 = vpow2.f32 %v3358_v20 }
 0x125   :  { %v567_v46 = vpop.f32.mrf.mxu0  ;;  %v610_v32 = vpop.f32.mrf.mxu2 }
 0x126   :  { %v633_v19 = vpop.f32.mrf.mxu3  ;;  %v643_v37 = vadd.f32 %v567_v46, %v196_v28  ;;  %v590_v26 = vpop.f32.mrf.mxu1 }
 0x127   :  { %v642_v23 = vadd.f32 %v633_v19, %v356_v27  ;;  %v644_v55 = vadd.f32 %v590_v26, %v250_v24  ;;  %v302_v24 = vadd.f32 %v4198_v29, %v4384_v15 }
 0x128   :  { %v3480_v6 = vpop.eup %3479  ;;  %v3357_v20 = vmul.f32 -1.442695, %v643_v37 }
 0x129   :  { %v3360_v14 = vmul.f32 -1.442695, %v642_v23  ;;  %v3482_v17 = vpop.eup %3481  ;;  %v653_v18 = vadd.f32 1.0, %v3480_v6  ;;  %v3359_v16 = vmul.f32 -1.442695, %v644_v55  ;;  %v641_v19 = vadd.f32 %v610_v32, %v302_v24 }
 0x12a   :  { %v691_v30 = vadd.f32 1.0, %v3482_v17 }
 0x12b   :  { %3483 = vpow2.f32 %v3360_v14  ;;  %vm660_vm4 = vweird.f32 %v653_v18 }
 0x12c   :  { %3485 = vrcp.f32 %v653_v18  ;;  %vm698_vm3 = vweird.f32 %v691_v30 }
 0x12d   :  { %3487 = vrcp.f32 %v691_v30 }
 0x12e   :  { %3489 = vpow2.f32 %v3357_v20  ;;  %v636_v27 = vpop.f32.mrf.mxu3 }
 0x12f   :  { %3491 = vpow2.f32 %v3359_v16  ;;  %v646_v26 = vadd.f32 %v636_v27, %v358_v31  ;;  %v664_v16 = vand.u32 2147483647, %v653_v18  ;;  %v666_v31 = vand.u32 2147483648, %v653_v18 }
 0x130   :  { %v704_v27 = vand.u32 2147483648, %v691_v30 }
 0x131   :  { %v3484_v28 = vpop.eup %3483  ;;  %v3361_v62 = vmul.f32 -1.442695, %v646_v26  ;;  %vm665_vm6 = vcmp.eq.f32.partialorder %v664_v16, 8.507059e+37 }
 0x132   :  { %v3486_v46 = vpop.eup %3485  ;;  %v4390_v17 = vadd.f32 1.0, %v3484_v28  ;;  %v702_v28 = vand.u32 2147483647, %v691_v30  ;;  %v705_v13 = vor.u32 1.1754944e-38, %v704_v27 }
 0x133   :  { %v3488_v23 = vpop.eup %3487  ;;  %v656_v37 = vmul.f32 %v3486_v46, %v653_v18  ;;  %3493 = vpow2.f32 %v3361_v62  ;;  %vm661_vm1 = vweird.f32 %v3486_v46  ;;  %v613_v62 = vpop.f32.mrf.mxu2 }
 0x134   :  { %v3490_v55 = vpop.eup %3489  ;;  %v694_v34 = vmul.f32 %v3488_v23, %v691_v30  ;;  %3495 = vrcp.f32 %v4390_v17  ;;  %vm699_vm2 = vweird.f32 %v3488_v23  ;;  %vm662_vm5 = vmor %vm660_vm4, %vm661_vm1  ;;  %vm703_vm8 = vcmp.eq.f32.partialorder %v702_v28, 8.507059e+37 }
 0x135   :  { %v3492_v6 = vpop.eup %3491  ;;  %v657_v14 = vsub.f32 1.0, %v656_v37  ;;  %3497 = vtanh.f32 %v641_v19  ;;  %v4393_v20 = vadd.f32 1.0, %v3490_v55  ;;  %v304_v19 = vadd.f32 %v4222_v33, %v4384_v15  ;;  %vm700_vm7 = vmor %vm698_vm3, %vm699_vm2 }
 0x136   :  { %v695_v29 = vsub.f32 1.0, %v694_v34  ;;  %v4395_v32 = vadd.f32 1.0, %v3492_v6  ;;  %v667_v6 = vor.u32 1.1754944e-38, %v666_v31  ;;  %vm738_vm9 = vweird.f32 %v4390_v17 }
 0x137   :  { %v658_v24 = vmul.f32 %v3486_v46, %v657_v14  ;;  %3499 = vrcp.f32 %v4393_v20  ;;  %v645_v33 = vadd.f32 %v613_v62, %v304_v19  ;;  %vm675_vm14 = vweird.f32 %v4393_v20 }
 0x138   :  { %v696_v26 = vmul.f32 %v3488_v23, %v695_v29  ;;  %3501 = vrcp.f32 %v4395_v32  ;;  %vm713_vm15 = vweird.f32 %v4395_v32 }
 0x139   :  { %v3494_v37 = vpop.eup %3493  ;;  %v659_v55 = vadd.f32 %v3486_v46, %v658_v24 }
 0x13a   :  { %v4401_v34 = vpop.eup %3495  ;;  %v697_v14 = vadd.f32 %v3488_v23, %v696_v26  ;;  %v4403_v10 = vadd.f32 1.0, %v3494_v37 }
 0x13b   :  { %v3498_v29 = vpop.eup %3497  ;;  %v663_v12 = vsel %vm662_vm5, %v3486_v46, %v659_v55  ;;  %v734_v11 = vmul.f32 %v4401_v34, %v4390_v17  ;;  %vm739_vm10 = vweird.f32 %v4401_v34  ;;  %v679_v55 = vand.u32 2147483647, %v4393_v20 }
 0x13c   :  { %v668_v30 = vsel %vm665_vm6, %v667_v6, %v663_v12  ;;  %v701_v24 = vsel %vm700_vm7, %v3488_v23, %v697_v14  ;;  %3503 = vrcp.f32 %v4403_v10  ;;  %v744_v23 = vand.u32 2147483648, %v4390_v17  ;;  %vm4426_vm13 = vmor %vm738_vm9, %vm739_vm10 }
 0x13d   :  { %v3500_v18 = vpop.eup %3499  ;;  %v706_v9 = vsel %vm703_vm8, %v705_v13, %v701_v24  ;;  %v765_v8 = vmul.f32 %v3498_v29, %v668_v30  ;;  %v735_v16 = vsub.f32 1.0, %v734_v11  ;;  %3505 = vtanh.f32 %v645_v33  ;;  %v4445_v33 = vld [vmem:[#allocation3 + $0x1e8] sm:$0xff] }
 0x13e   :  { %v3502_v31 = vpop.eup %3501  ;;  %v763_v26 = vmul.f32 0.0, %v706_v9  ;;  %v671_v27 = vmul.f32 %v3500_v18, %v4393_v20  ;;  %v719_v11 = vand.u32 2147483648, %v4395_v32  ;;  %v681_v9 = vand.u32 2147483648, %v4393_v20  ;;  %1181 = vmatpush.msrb.mxu1 %v4445_v33 }
 0x13f   :  { %v736_v46 = vmul.f32 %v4401_v34, %v735_v16  ;;  %v709_v37 = vmul.f32 %v3502_v31, %v4395_v32  ;;  %vm676_vm11 = vweird.f32 %v3500_v18  ;;  %vm714_vm12 = vweird.f32 %v3502_v31 }
 0x140   :  { %v4413_v12 = vadd.f32 %v765_v8, %v763_v26  ;;  %v672_v13 = vsub.f32 1.0, %v671_v27  ;;  %v717_v14 = vand.u32 2147483647, %v4395_v32  ;;  %v742_v29 = vand.u32 2147483647, %v4390_v17  ;;  %vm677_vm0 = vmor %vm675_vm14, %vm676_vm11 }
 0x141   :  { %v710_v28 = vsub.f32 1.0, %v709_v37  ;;  %v737_v62 = vadd.f32 %v4401_v34, %v736_v46  ;;  %v745_v30 = vor.u32 1.1754944e-38, %v744_v23  ;;  %v682_v27 = vor.u32 1.1754944e-38, %v681_v9  ;;  %vm715_vm2 = vmor %vm713_vm15, %vm714_vm12 }
 0x142   :  { %3507 = vtanh.f32 %v4413_v12  ;;  %v673_v19 = vmul.f32 %v3500_v18, %v672_v13  ;;  %v3504_v8 = vpop.eup %3503  ;;  %v720_v37 = vor.u32 1.1754944e-38, %v719_v11  ;;  %vm680_vm1 = vcmp.eq.f32.partialorder %v679_v55, 8.507059e+37 }
 0x143   :  { %v711_v6 = vmul.f32 %v3502_v31, %v710_v28  ;;  %v749_v16 = vmul.f32 %v3504_v8, %v4403_v10  ;;  %v3506_v26 = vpop.eup %3505  ;;  %v741_v17 = vsel %vm4426_vm13, %v4401_v34, %v737_v62  ;;  %vm718_vm3 = vcmp.eq.f32.partialorder %v717_v14, 8.507059e+37 }
 0x144   :  { %v674_v24 = vadd.f32 %v3500_v18, %v673_v19  ;;  %vm743_vm4 = vcmp.eq.f32.partialorder %v742_v29, 8.507059e+37  ;;  %vm754_vm5 = vweird.f32 %v3504_v8  ;;  %vm753_vm6 = vweird.f32 %v4403_v10 }
 0x145   :  { %v712_v46 = vadd.f32 %v3502_v31, %v711_v6  ;;  %v750_v23 = vsub.f32 1.0, %v749_v16  ;;  %v746_v9 = vsel %vm743_vm4, %v745_v30, %v741_v17  ;;  %vm755_vm7 = vmor %vm753_vm6, %vm754_vm5  ;;  %v4447_v30 = vld [vmem:[#allocation3 + $0x1f0] sm:$0xff]  ;;  %v4463_v16 = vld [vmem:[#allocation3 + $0x1d8] sm:$0xff] }
 0x146   :  { %v678_v13 = vsel %vm677_vm0, %v3500_v18, %v674_v24  ;;  %v759_v18 = vand.u32 2147483648, %v4403_v10  ;;  %1204 = vmatpush.msrb.mxu2 %v4447_v30  ;;  %v4459_v24 = vld [vmem:[#allocation3 + $0x1d0] sm:$0xff]  ;;  %v4475_v17 = vld [vmem:[#allocation3 + $0x1b8] sm:$0xff] }
 0x147   :  { %v683_v28 = vsel %vm680_vm1, %v682_v27, %v678_v13  ;;  %v716_v20 = vsel %vm715_vm2, %v3502_v31, %v712_v46  ;;  %v751_v7 = vmul.f32 %v3504_v8, %v750_v23  ;;  %v757_v31 = vand.u32 2147483647, %v4403_v10  ;;  %v4451_v10 = vld [vmem:[#allocation3 + $0x1f8] sm:$0xff]  ;;  %v4469_v27 = vld [vmem:[#allocation3 + $0x1a8] sm:$0xff]  ;;  %v4471_v46 = vld [vmem:[#allocation3 + $0x1b0] sm:$0xff] }
 0x148   :  { %v3508_v19 = vpop.eup %3507  ;;  %v721_v5 = vsel %vm718_vm3, %v720_v37, %v716_v20  ;;  %v766_v32 = vmul.f32 %v3506_v26, %v683_v28  ;;  %1227 = vmatpush.msrb.mxu3 %v4451_v10  ;;  %1205 = vmatpush.msrb.mxu2 %v4459_v24  ;;  %v4467_v26 = vld [vmem:[#allocation3 + $0x1a0] sm:$0xff]  ;;  %v4481_v13 = vld [vmem:[#allocation3 + $0x188] sm:$0xff]  ;;  %v4483_v23 = vld [vmem:[#allocation3 + $0x190] sm:$0xff] }
 0x149   :  { %v764_v6 = vmul.f32 0.0, %v721_v5  ;;  %v771_v1 = vmul.f32 %v3508_v19, %v746_v9  ;;  %v752_v34 = vadd.f32 %v3504_v8, %v751_v7  ;;  %v760_v5 = vor.u32 1.1754944e-38, %v759_v18  ;;  %v4443_v7 = vld [vmem:[#allocation3 + $0x1e0] sm:$0xff]  ;;  %v4487_v28 = vld [vmem:[#allocation3 + $0x198] sm:$0xff]  ;;  %v4493_v19 = vld [vmem:[#allocation3 + $0x168] sm:$0xff] }
 0x14a   :  { %vm758_vm8 = vcmp.eq.f32.partialorder %v757_v31, 8.507059e+37  ;;  %1158 = vmatpush.msrb.mxu0 %v4443_v7  ;;  %1228 = vmatpush.msrb.mxu3 %v4463_v16  ;;  %v4479_v37 = vld [vmem:[#allocation3 + $0x180] sm:$0xff]  ;;  %v4499_v9 = vld [vmem:[#allocation3 + $0x178] sm:$0xff]  ;;  %v4509_v31 = vld [vmem:[#allocation3 + $0x148] sm:$0xff] }
 0x14b   :  { %v4437_v4 = vadd.f32 %v766_v32, %v764_v6  ;;  %868 = vmatmul.f32.vlgmr.msra.gmra.mxu0 %v771_v1  ;;  %891 = vmatmul.f32.vlgmr.msra.gmra.mxu1 %v771_v1  ;;  %v756_v11 = vsel %vm755_vm7, %v3504_v8, %v752_v34  ;;  %v4457_v8 = vld [vmem:[#allocation3 + $0x1c8] sm:$0xff]  ;;  %v4491_v20 = vld [vmem:[#allocation3 + $0x160] sm:$0xff]  ;;  %v4495_v32 = vld [vmem:[#allocation3 + $0x170] sm:$0xff]  ;;  %v199_v6 = vadd.f32 %v4228_v35, %v4362_v21 }
 0x14c   :  { %914 = vmatmul.f32.vlgmr.msra.gmra.mxu2 %v771_v1  ;;  %937 = vmatmul.f32.vlgmr.msra.gmra.mxu3 %v771_v1  ;;  %v761_v55 = vsel %vm758_vm8, %v760_v5, %v756_v11  ;;  %v253_v34 = vadd.f32 %v4232_v36, %v4364_v25  ;;  %v4507_v18 = vld [vmem:[#allocation3 + $0x140] sm:$0xff]  ;;  %v4511_v11 = vld [vmem:[#allocation3 + $0x150] sm:$0xff]  ;;  %v4515_v35 = vld [vmem:[#allocation3 + $0x158] sm:$0xff] }
 0x14d   :  { %5955 = vst [vmem:[#allocation68_spill] sm:$0xff] %v4437_v4  ;;  %3509 = vtanh.f32 %v4437_v4  ;;  %1182 = vmatpush.msrb.mxu1 %v4457_v8  ;;  %1206 = vmatpush.msrb.mxu2 %v4471_v46  ;;  %v4595_v4 = vld [vmem:[#allocation3 + $0x98] sm:$0xff] }
 0x14e   :  { %1229 = vmatpush.msrb.mxu3 %v4475_v17  ;;  %5961 = vst [vmem:[#allocation74_spill] sm:$0xff] %v4595_v4 }
 0x14f   :  { %1183 = vmatpush.msrb.mxu1 %v4469_v27  ;;  %1207 = vmatpush.msrb.mxu2 %v4483_v23 }
 0x150   :  { %1230 = vmatpush.msrb.mxu3 %v4487_v28 }
 0x151   :  { %1184 = vmatpush.msrb.mxu1 %v4481_v13  ;;  %1208 = vmatpush.msrb.mxu2 %v4495_v32 }
 0x152   :  { %1231 = vmatpush.msrb.mxu3 %v4499_v9 }
 0x153   :  { %v3510_v62 = vpop.eup %3509  ;;  %1185 = vmatpush.msrb.mxu1 %v4493_v19  ;;  %1209 = vmatpush.msrb.mxu2 %v4511_v11 }
 0x154   :  { %v772_v14 = vmul.f32 %v3510_v62, %v761_v55  ;;  %1232 = vmatpush.msrb.mxu3 %v4515_v35 }
 0x155   :  { %1186 = vmatpush.msrb.mxu1 %v4509_v31  ;;  %1210 = vmatpush.msrb.mxu2 %v4523_v3 }
 0x156   :  { %v3430_v29 = vpack.c.bf16 %v772_v14, %v771_v1  ;;  %871 = vmatmul.f32.gmra.mxu0 %v772_v14  ;;  %894 = vmatmul.f32.gmra.mxu1 %v772_v14  ;;  %v4455_v1 = vld [vmem:[#allocation3 + $0x1c0] sm:$0xff] }
 0x157   :  { %917 = vmatmul.f32.gmra.mxu2 %v772_v14  ;;  %940 = vmatmul.f32.gmra.mxu3 %v772_v14  ;;  %v4519_v14 = vld [vmem:[#allocation3 + $0x120] sm:$0xff] }
 0x158   :  { %3431 = vst [vmem:[#allocation6] sm:$0xff] %v3430_v29   ;;  %1159 = vmatpush.msrb.mxu0 %v4455_v1  ;;  %v4521_v29 = vld [vmem:[#allocation3 + $0x128] sm:$0xff]  ;;  %1233 = vmatpush.msrb.mxu3 %v4527_v2 }
 0x159   :  { %1187 = vmatpush.msrb.mxu1 %v4521_v29 }
 0x15a   :  { %1160 = vmatpush.msrb.mxu0 %v4467_v26 }
 0x15c   :  { %1161 = vmatpush.msrb.mxu0 %v4479_v37 }
 0x15e   :  { %1162 = vmatpush.msrb.mxu0 %v4491_v20 }
 0x160   :  { %1163 = vmatpush.msrb.mxu0 %v4507_v18 }
 0x162   :  { %1164 = vmatpush.msrb.mxu0 %v4519_v14 }
 0x1c8   :  { %v869_v5 = vpop.f32.mrf.mxu0  ;;  %v892_v62 = vpop.f32.mrf.mxu1 }
 0x1c9   :  { %v944_v55 = vadd.f32 %v869_v5, %v199_v6  ;;  %v945_v36 = vadd.f32 %v892_v62, %v253_v34  ;;  %v4531_v6 = vld [vmem:[#allocation3 + $0x100] sm:$0xff]  ;;  %v4533_v34 = vld [vmem:[#allocation3 + $0x108] sm:$0xff]  ;;  %v4537_v5 = vld [vmem:[#allocation3 + $0x110] sm:$0xff] }
 0x1ca   :  { %1165 = vmatpush.msrb.mxu0 %v4531_v6  ;;  %1188 = vmatpush.msrb.mxu1 %v4533_v34  ;;  %v4539_v62 = vld [vmem:[#allocation3 + $0x118] sm:$0xff] }
 0x1cb   :  { %v3362_v0 = vmul.f32 -1.442695, %v944_v55  ;;  %v3364_v63 = vmul.f32 -1.442695, %v945_v36  ;;  %1211 = vmatpush.msrb.mxu2 %v4537_v5  ;;  %1234 = vmatpush.msrb.mxu3 %v4539_v62  ;;  %v4543_v55 = vld [vmem:[#allocation3 + $0xe0] sm:$0xff]  ;;  %v4545_v36 = vld [vmem:[#allocation3 + $0xe8] sm:$0xff] }
 0x1cc   :  { %1166 = vmatpush.msrb.mxu0 %v4543_v55  ;;  %1189 = vmatpush.msrb.mxu1 %v4545_v36 }
 0x1cd   :  { %3511 = vpow2.f32 %v3362_v0  ;;  %1212 = vmatpush.msrb.mxu2 %v4547_v60  ;;  %1235 = vmatpush.msrb.mxu3 %v4553_v56 }
 0x1ce   :  { %3513 = vpow2.f32 %v3364_v63  ;;  %1167 = vmatpush.msrb.mxu0 %v4557_v59  ;;  %1190 = vmatpush.msrb.mxu1 %v4559_v58  ;;  %v4569_v63 = vld [vmem:[#allocation3 + $0xa0] sm:$0xff] }
 0x1cf   :  { %v938_v0 = vpop.f32.mrf.mxu3  ;;  %1213 = vmatpush.msrb.mxu2 %v4561_v57  ;;  %1236 = vmatpush.msrb.mxu3 %v4565_v39 }
 0x1d0   :  { %v947_v54 = vadd.f32 %v938_v0, %v361_v61  ;;  %v255_v61 = vadd.f32 %v4247_v41, %v4364_v25  ;;  %1168 = vmatpush.msrb.mxu0 %v4569_v63  ;;  %1191 = vmatpush.msrb.mxu1 %v4571_v53  ;;  %v4603_v53 = vld [vmem:[#allocation3 + $0x68] sm:$0xff] }
 0x1d1   :  { %1214 = vmatpush.msrb.mxu2 %v4573_v51  ;;  %1237 = vmatpush.msrb.mxu3 %v4581_v47  ;;  %v4601_v47 = vld [vmem:[#allocation3 + $0x60] sm:$0xff]  ;;  %5963 = vst [vmem:[#allocation76_spill] sm:$0xff] %v4603_v53 }
 0x1d2   :  { %v3366_v0 = vmul.f32 -1.442695, %v947_v54  ;;  %1169 = vmatpush.msrb.mxu0 %v4585_v45  ;;  %1192 = vmatpush.msrb.mxu1 %v4587_v40  ;;  %5962 = vst [vmem:[#allocation75_spill] sm:$0xff] %v4601_v47 }
 0x1d3   :  { %v3512_v50 = vpop.eup %3511  ;;  %v872_v49 = vpop.f32.mrf.mxu0  ;;  %1215 = vmatpush.msrb.mxu2 %v4589_v44  ;;  %1238 = vmatpush.msrb.mxu3 %v4595_v4  ;;  %v4632_v44 = vld [vmem:[#allocation3 + $0x28] sm:$0xff] }
 0x1d4   :  { %v895_v48 = vpop.f32.mrf.mxu1  ;;  %v3514_v41 = vpop.eup %3513  ;;  %v4591_v54 = vadd.f32 1.0, %v3512_v50  ;;  %3515 = vpow2.f32 %v3366_v0  ;;  %v948_v25 = vadd.f32 %v872_v49, %v201_v52  ;;  %v4605_v50 = vld [vmem:[#allocation3 + $0x70] sm:$0xff]  ;;  %1170 = vmatpush.msrb.mxu0 %v4601_v47  ;;  %1193 = vmatpush.msrb.mxu1 %v4603_v53  ;;  %v4615_v49 = vld [vmem:[#allocation3 + $0x40] sm:$0xff]  ;;  %v4617_v52 = vld [vmem:[#allocation3 + $0x48] sm:$0xff]  ;;  %v307_v53 = vadd.f32 %v4241_v38, %v4384_v15 }
 0x1d5   :  { %v949_v21 = vadd.f32 %v895_v48, %v255_v61  ;;  %v4597_v51 = vadd.f32 1.0, %v3514_v41  ;;  %5964 = vst [vmem:[#allocation77_spill] sm:$0xff] %v4605_v50  ;;  %v4610_v48 = vld [vmem:[#allocation3 + $0x78] sm:$0xff]  ;;  %1216 = vmatpush.msrb.mxu2 %v4605_v50  ;;  %v4619_v61 = vld [vmem:[#allocation3 + $0x50] sm:$0xff]  ;;  %v915_v0 = vpop.f32.mrf.mxu2  ;;  %v363_v50 = vadd.f32 %v4251_v43, %v4374_v22  ;;  %v4630_v47 = vld [vmem:[#allocation3 + $0x20] sm:$0xff] }
 0x1d6   :  { %3517 = vrcp.f32 %v4591_v54  ;;  %5965 = vst [vmem:[#allocation78_spill] sm:$0xff] %v4610_v48  ;;  %1239 = vmatpush.msrb.mxu3 %v4610_v48  ;;  %v3363_v41 = vmul.f32 -1.442695, %v948_v25  ;;  %1171 = vmatpush.msrb.mxu0 %v4615_v49  ;;  %v4628_v48 = vld [vmem:[#allocation3 + $0x58] sm:$0xff]  ;;  %v4640_v43 = vld [vmem:[#allocation3] sm:$0xff]  ;;  %v946_v22 = vadd.f32 %v915_v0, %v307_v53  ;;  %vm965_vm12 = vweird.f32 %v4591_v54 }
 0x1d7   :  { %3519 = vrcp.f32 %v4597_v51  ;;  %5966 = vst [vmem:[#allocation79_spill] sm:$0xff] %v4615_v49  ;;  %v3365_v4 = vmul.f32 -1.442695, %v949_v21  ;;  %1194 = vmatpush.msrb.mxu1 %v4617_v52  ;;  %1217 = vmatpush.msrb.mxu2 %v4619_v61  ;;  %v4638_v38 = vld [vmem:[#allocation3 + $0x38] sm:$0xff]  ;;  %vm1003_vm11 = vweird.f32 %v4597_v51 }
 0x1d8   :  { %5967 = vst [vmem:[#allocation80_spill] sm:$0xff] %v4617_v52  ;;  %3521 = vpow2.f32 %v3363_v41  ;;  %1240 = vmatpush.msrb.mxu3 %v4628_v48  ;;  %1172 = vmatpush.msrb.mxu0 %v4630_v47  ;;  %v4636_v52 = vld [vmem:[#allocation3 + $0x30] sm:$0xff]  ;;  %v4646_v41 = vld [vmem:[#allocation3 + $0x8] sm:$0xff] }
 0x1d9   :  { %5968 = vst [vmem:[#allocation81_spill] sm:$0xff] %v4619_v61  ;;  %3523 = vpow2.f32 %v3365_v4  ;;  %1195 = vmatpush.msrb.mxu1 %v4632_v44  ;;  %1218 = vmatpush.msrb.mxu2 %v4636_v52 }
 0x1da   :  { %5969 = vst [vmem:[#allocation82_spill] sm:$0xff] %v4628_v48  ;;  %v3516_v25 = vpop.eup %3515  ;;  %v941_v21 = vpop.f32.mrf.mxu3  ;;  %v4648_v48 = vld [vmem:[#allocation3 + $0x10] sm:$0xff]  ;;  %1241 = vmatpush.msrb.mxu3 %v4638_v38  ;;  %1173 = vmatpush.msrb.mxu0 %v4640_v43 }
 0x1db   :  { %5970 = vst [vmem:[#allocation83_spill] sm:$0xff] %v4630_v47  ;;  %v4642_v61 = vadd.f32 1.0, %v3516_v25  ;;  %v951_v49 = vadd.f32 %v941_v21, %v363_v50  ;;  %v4650_v47 = vld [vmem:[#allocation3 + $0x18] sm:$0xff]  ;;  %1196 = vmatpush.msrb.mxu1 %v4646_v41  ;;  %1219 = vmatpush.msrb.mxu2 %v4648_v48 }
 0x1dc   :  { %5971 = vst [vmem:[#allocation84_spill] sm:$0xff] %v4638_v38  ;;  %v3518_v40 = vpop.eup %3517  ;;  %1242 = vmatpush.msrb.mxu3 %v4650_v47  ;;  %1464 = vmatpush.msra.mxu0 %v4443_v7  ;;  %v971_v38 = vand.u32 2147483648, %v4591_v54 }
 0x1dd   :  { %5972 = vst [vmem:[#allocation85_spill] sm:$0xff] %v4640_v43  ;;  %v4654_v53 = vpop.eup %3519  ;;  %v961_v4 = vmul.f32 %v3518_v40, %v4591_v54  ;;  %3525 = vrcp.f32 %v4642_v61  ;;  %v3367_v25 = vmul.f32 -1.442695, %v951_v49  ;;  %1487 = vmatpush.msra.mxu1 %v4445_v33  ;;  %1510 = vmatpush.msra.mxu2 %v4447_v30  ;;  %vm966_vm9 = vweird.f32 %v3518_v40 }
 0x1de   :  { %5973 = vst [vmem:[#allocation86_spill] sm:$0xff] %v4646_v41  ;;  %v999_v50 = vmul.f32 %v4654_v53, %v4597_v51  ;;  %3527 = vtanh.f32 %v946_v22  ;;  %v3522_v21 = vpop.eup %3521  ;;  %v1009_v41 = vand.u32 2147483648, %v4597_v51  ;;  %1533 = vmatpush.msra.mxu3 %v4451_v10  ;;  %1465 = vmatpush.msra.mxu0 %v4455_v1  ;;  %vm1004_vm10 = vweird.f32 %v4654_v53  ;;  %vm967_vm13 = vmor %vm965_vm12, %vm966_vm9 }
 0x1df   :  { %5974 = vst [vmem:[#allocation87_spill] sm:$0xff] %v4648_v48  ;;  %v962_v0 = vsub.f32 1.0, %v961_v4  ;;  %v969_v48 = vand.u32 2147483647, %v4591_v54  ;;  %v3524_v7 = vpop.eup %3523  ;;  %v4671_v22 = vadd.f32 1.0, %v3522_v21  ;;  %3529 = vpow2.f32 %v3367_v25  ;;  %1488 = vmatpush.msra.mxu1 %v4457_v8  ;;  %1511 = vmatpush.msra.mxu2 %v4459_v24  ;;  %vm4698_vm14 = vmor %vm1003_vm11, %vm1004_vm10 }
 0x1e0   :  { %v1000_v43 = vsub.f32 1.0, %v999_v50  ;;  %v1007_v30 = vand.u32 2147483647, %v4597_v51  ;;  %v4678_v49 = vadd.f32 1.0, %v3524_v7  ;;  %1534 = vmatpush.msra.mxu3 %v4463_v16  ;;  %1466 = vmatpush.msra.mxu0 %v4467_v26  ;;  %v972_v8 = vor.u32 1.1754944e-38, %v971_v38  ;;  %v918_v38 = vpop.f32.mrf.mxu2  ;;  %v5986_v26 = vld [vmem:[#allocation73_spill] sm:$0xff] }
 0x1e1   :  { %v963_v4 = vmul.f32 %v3518_v40, %v962_v0  ;;  %3531 = vrcp.f32 %v4671_v22  ;;  %1489 = vmatpush.msra.mxu1 %v4469_v27  ;;  %1512 = vmatpush.msra.mxu2 %v4471_v46  ;;  %v1010_v27 = vor.u32 1.1754944e-38, %v1009_v41  ;;  %vm970_vm15 = vcmp.eq.f32.partialorder %v969_v48, 8.507059e+37 }
 0x1e2   :  { %v1001_v33 = vmul.f32 %v4654_v53, %v1000_v43  ;;  %3533 = vrcp.f32 %v4678_v49  ;;  %1535 = vmatpush.msra.mxu3 %v4475_v17  ;;  %1467 = vmatpush.msra.mxu0 %v4479_v37  ;;  %vm1008_vm0 = vcmp.eq.f32.partialorder %v1007_v30, 8.507059e+37  ;;  %vm1043_vm1 = vweird.f32 %v4642_v61  ;;  %v5981_v30 = vld [vmem:[#allocation69_spill] sm:$0xff] }
 0x1e3   :  { %v4682_v10 = vpop.eup %3525  ;;  %v964_v1 = vadd.f32 %v3518_v40, %v963_v4  ;;  %1490 = vmatpush.msra.mxu1 %v4481_v13  ;;  %1513 = vmatpush.msra.mxu2 %v4483_v23  ;;  %v986_v50 = vand.u32 2147483648, %v4671_v22  ;;  %vm1018_vm6 = vweird.f32 %v4678_v49  ;;  %vm980_vm7 = vweird.f32 %v4671_v22 }
 0x1e4   :  { %v1002_v24 = vadd.f32 %v4654_v53, %v1001_v33  ;;  %v1039_v16 = vmul.f32 %v4682_v10, %v4642_v61  ;;  %v3528_v51 = vpop.eup %3527  ;;  %1536 = vmatpush.msra.mxu3 %v4487_v28  ;;  %1468 = vmatpush.msra.mxu0 %v4491_v20  ;;  %vm1044_vm2 = vweird.f32 %v4682_v10 }
 0x1e5   :  { %v968_v46 = vsel %vm967_vm13, %v3518_v40, %v964_v1  ;;  %v3530_v43 = vpop.eup %3529  ;;  %v309_v40 = vadd.f32 %v4249_v42, %v4384_v15  ;;  %1491 = vmatpush.msra.mxu1 %v4493_v19  ;;  %1514 = vmatpush.msra.mxu2 %v4495_v32  ;;  %v1049_v32 = vand.u32 2147483648, %v4642_v61  ;;  %vm4752_vm3 = vmor %vm1043_vm1, %vm1044_vm2 }
 0x1e6   :  { %v973_v54 = vsel %vm970_vm15, %v972_v8, %v968_v46  ;;  %v1006_v17 = vsel %vm4698_vm14, %v4654_v53, %v1002_v24  ;;  %v1040_v37 = vsub.f32 1.0, %v1039_v16  ;;  %v4715_v53 = vadd.f32 1.0, %v3530_v43  ;;  %1537 = vmatpush.msra.mxu3 %v4499_v9  ;;  %1469 = vmatpush.msra.mxu0 %v4507_v18  ;;  %v5983_v8 = vld [vmem:[#allocation71_spill] sm:$0xff]  ;;  %v5984_v24 = vld [vmem:[#allocation68_spill] sm:$0xff]  ;;  %v5987_v46 = vld [vmem:[#allocation74_spill] sm:$0xff] }
 0x1e7   :  { %v1011_v48 = vsel %vm1008_vm0, %v1010_v27, %v1006_v17  ;;  %v1070_v13 = vmul.f32 %v3528_v51, %v973_v54  ;;  %v4719_v28 = vpop.eup %3531  ;;  %v950_v20 = vadd.f32 %v918_v38, %v309_v40  ;;  %1492 = vmatpush.msra.mxu1 %v4509_v31  ;;  %1515 = vmatpush.msra.mxu2 %v4511_v11  ;;  %v1047_v11 = vand.u32 2147483647, %v4642_v61  ;;  %v5985_v51 = vld [vmem:[#allocation72_spill] sm:$0xff]  ;;  %v5991_v43 = vld [vmem:[#allocation78_spill] sm:$0xff]  ;;  %v5992_v40 = vld [vmem:[#allocation79_spill] sm:$0xff] }
 0x1e8   :  { %v1068_v23 = vmul.f32 %v1011_v48, %v4413_v12  ;;  %v1041_v41 = vmul.f32 %v4682_v10, %v1040_v37  ;;  %v4723_v42 = vpop.eup %3533  ;;  %v976_v12 = vmul.f32 %v4719_v28, %v4671_v22  ;;  %3535 = vrcp.f32 %v4715_v53  ;;  %1538 = vmatpush.msra.mxu3 %v4515_v35  ;;  %1470 = vmatpush.msra.mxu0 %v4519_v14  ;;  %v5989_v17 = vld [vmem:[#allocation76_spill] sm:$0xff]  ;;  %v5990_v37 = vld [vmem:[#allocation77_spill] sm:$0xff] }
 0x1e9   :  { %v1014_v9 = vmul.f32 %v4723_v42, %v4678_v49  ;;  %1493 = vmatpush.msra.mxu1 %v4521_v29  ;;  %1516 = vmatpush.msra.mxu2 %v4523_v3  ;;  %v984_v14 = vand.u32 2147483647, %v4671_v22  ;;  %vm981_vm4 = vweird.f32 %v4719_v28  ;;  %vm1019_vm5 = vweird.f32 %v4723_v42  ;;  %v5993_v48 = vld [vmem:[#allocation80_spill] sm:$0xff] }
 0x1ea   :  { %v4725_v19 = vadd.f32 %v1070_v13, %v1068_v23  ;;  %v977_v18 = vsub.f32 1.0, %v976_v12  ;;  %v1042_v31 = vadd.f32 %v4682_v10, %v1041_v41  ;;  %1539 = vmatpush.msra.mxu3 %v4527_v2  ;;  %1471 = vmatpush.msra.mxu0 %v4531_v6  ;;  %v1024_v2 = vand.u32 2147483648, %v4678_v49  ;;  %vm4778_vm9 = vmor %vm980_vm7, %vm981_vm4  ;;  %v5994_v13 = vld [vmem:[#allocation81_spill] sm:$0xff]  ;;  %v5995_v41 = vld [vmem:[#allocation82_spill] sm:$0xff] }
 0x1eb   :  { %v1015_v35 = vsub.f32 1.0, %v1014_v9  ;;  %1494 = vmatpush.msra.mxu1 %v4533_v34  ;;  %1517 = vmatpush.msra.mxu2 %v4537_v5  ;;  %v1022_v6 = vand.u32 2147483647, %v4678_v49  ;;  %v1050_v34 = vor.u32 1.1754944e-38, %v1049_v32  ;;  %vm1048_vm8 = vcmp.eq.f32.partialorder %v1047_v11, 8.507059e+37  ;;  %vm1020_vm11 = vmor %vm1018_vm6, %vm1019_vm5  ;;  %v5982_v49 = vld [vmem:[#allocation70_spill] sm:$0xff] }
 0x1ec   :  { %3537 = vtanh.f32 %v4725_v19  ;;  %v978_v29 = vmul.f32 %v4719_v28, %v977_v18  ;;  %1540 = vmatpush.msra.mxu3 %v4539_v62  ;;  %1472 = vmatpush.msra.mxu0 %v4543_v55  ;;  %v1046_v61 = vsel %vm4752_vm3, %v4682_v10, %v1042_v31  ;;  %vm985_vm10 = vcmp.eq.f32.partialorder %v984_v14, 8.507059e+37  ;;  %v5999_v9 = vld [vmem:[#allocation86_spill] sm:$0xff]  ;;  %v6000_v18 = vld [vmem:[#allocation87_spill] sm:$0xff] }
 0x1ed   :  { %3539 = vtanh.f32 %v950_v20  ;;  %v1016_v5 = vmul.f32 %v4723_v42, %v1015_v35  ;;  %1495 = vmatpush.msra.mxu1 %v4545_v36  ;;  %1518 = vmatpush.msra.mxu2 %v4547_v60  ;;  %v987_v60 = vor.u32 1.1754944e-38, %v986_v50  ;;  %vm1023_vm12 = vcmp.eq.f32.partialorder %v1022_v6, 8.507059e+37  ;;  %v6003_v14 = vld [vmem:[#allocation63_spill] sm:$0xff]  ;;  %v6004_v50 = vld [vmem:[#allocation10_spill] sm:$0xff] }
 0x1ee   :  { %v4769_v0 = vpop.eup %3535  ;;  %v979_v62 = vadd.f32 %v4719_v28, %v978_v29  ;;  %1541 = vmatpush.msra.mxu3 %v4553_v56  ;;  %1473 = vmatpush.msra.mxu0 %v4557_v59  ;;  %v1025_v59 = vor.u32 1.1754944e-38, %v1024_v2  ;;  %v1051_v7 = vsel %vm1048_vm8, %v1050_v34, %v1046_v61  ;;  %v1064_v54 = vand.u32 2147483648, %v4715_v53 }
 0x1ef   :  { %v1017_v36 = vadd.f32 %v4723_v42, %v1016_v5  ;;  %v1054_v25 = vmul.f32 %v4769_v0, %v4715_v53  ;;  %1496 = vmatpush.msra.mxu1 %v4559_v58  ;;  %1519 = vmatpush.msra.mxu2 %v4561_v57  ;;  %vm1059_vm13 = vweird.f32 %v4769_v0  ;;  %vm1058_vm14 = vweird.f32 %v4715_v53 }
 0x1f0   :  { %v983_v21 = vsel %vm4778_vm9, %v4719_v28, %v979_v62  ;;  %1542 = vmatpush.msra.mxu3 %v4565_v39  ;;  %1474 = vmatpush.msra.mxu0 %v4569_v63  ;;  %v1062_v38 = vand.u32 2147483647, %v4715_v53  ;;  %vm1060_vm15 = vmor %vm1058_vm14, %vm1059_vm13  ;;  %v5996_v28 = vld [vmem:[#allocation83_spill] sm:$0xff]  ;;  %v1065_v20 = vor.u32 1.1754944e-38, %v1064_v54  ;;  %v5997_v53 = vld [vmem:[#allocation84_spill] sm:$0xff]  ;;  %v258_v3 = vadd.f32 %v6004_v50, %v6003_v14 }
 0x1f1   :  { %v988_v22 = vsel %vm985_vm10, %v987_v60, %v983_v21  ;;  %v1021_v58 = vsel %vm1020_vm11, %v4723_v42, %v1017_v36  ;;  %v1055_v57 = vsub.f32 1.0, %v1054_v25  ;;  %1497 = vmatpush.msra.mxu1 %v5981_v30  ;;  %1520 = vmatpush.msra.mxu2 %v5982_v49  ;;  %v5998_v42 = vld [vmem:[#allocation85_spill] sm:$0xff]  ;;  %v6010_v54 = vld [vmem:[#allocation16_spill] sm:$0xff] }
 0x1f2   :  { %v3538_v56 = vpop.eup %3537  ;;  %v1026_v10 = vsel %vm1023_vm12, %v1025_v59, %v1021_v58  ;;  %1543 = vmatpush.msra.mxu3 %v5983_v8  ;;  %1475 = vmatpush.msra.mxu0 %v4585_v45  ;;  %v5988_v45 = vld [vmem:[#allocation75_spill] sm:$0xff]  ;;  %vm1063_vm0 = vcmp.eq.f32.partialorder %v1062_v38, 8.507059e+37 }
 0x1f3   :  { %v3540_v4 = vpop.eup %3539  ;;  %v1076_v33 = vmul.f32 %v3538_v56, %v1051_v7  ;;  %v1069_v39 = vmul.f32 %v1026_v10, %v5984_v24  ;;  %v1056_v63 = vmul.f32 %v4769_v0, %v1055_v57  ;;  %1498 = vmatpush.msra.mxu1 %v5985_v51  ;;  %1521 = vmatpush.msra.mxu2 %v5986_v26  ;;  %v6008_v57 = vld [vmem:[#allocation14_spill] sm:$0xff]  ;;  %v6009_v8 = vld [vmem:[#allocation11_spill] sm:$0xff] }
 0x1f4   :  { %v1071_v1 = vmul.f32 %v3540_v4, %v988_v22  ;;  %1544 = vmatpush.msra.mxu3 %v5987_v46  ;;  %1476 = vmatpush.msra.mxu0 %v5988_v45  ;;  %v6007_v22 = vld [vmem:[#allocation13_spill] sm:$0xff]  ;;  %v312_v24 = vadd.f32 %v6009_v8, %v4384_v15 }
 0x1f5   :  { %1174 = vmatmul.f32.vlgmr.msrb.gmra.mxu0 %v1076_v33  ;;  %1197 = vmatmul.f32.vlgmr.msrb.gmra.mxu1 %v1076_v33  ;;  %v1057_v27 = vadd.f32 %v4769_v0, %v1056_v63 }
 0x1f6   :  { %1220 = vmatmul.f32.vlgmr.msrb.gmra.mxu2 %v1076_v33  ;;  %1243 = vmatmul.f32.vlgmr.msrb.gmra.mxu3 %v1076_v33  ;;  %v4801_v16 = vadd.f32 %v1071_v1, %v1069_v39 }
 0x1f7   :  { %1499 = vmatpush.msra.mxu1 %v5989_v17  ;;  %1522 = vmatpush.msra.mxu2 %v5990_v37  ;;  %v1061_v23 = vsel %vm1060_vm15, %v4769_v0, %v1057_v27  ;;  %v6006_v0 = vld [vmem:[#allocation12_spill] sm:$0xff] }
 0x1f8   :  { %3541 = vtanh.f32 %v4801_v16  ;;  %1545 = vmatpush.msra.mxu3 %v5991_v43  ;;  %1477 = vmatpush.msra.mxu0 %v5992_v40  ;;  %v1066_v32 = vsel %vm1063_vm0, %v1065_v20, %v1061_v23 }
 0x1f9   :  { %1500 = vmatpush.msra.mxu1 %v5993_v48  ;;  %1523 = vmatpush.msra.mxu2 %v5994_v13 }
 0x1fa   :  { %1546 = vmatpush.msra.mxu3 %v5995_v41  ;;  %1478 = vmatpush.msra.mxu0 %v5996_v28 }
 0x1fb   :  { %1501 = vmatpush.msra.mxu1 %v4632_v44  ;;  %1524 = vmatpush.msra.mxu2 %v4636_v52  ;;  %v6001_v44 = vld [vmem:[#allocation62_spill] sm:$0xff]  ;;  %v6002_v52 = vld [vmem:[#allocation9_spill] sm:$0xff] }
 0x1fc   :  { %1547 = vmatpush.msra.mxu3 %v5997_v53  ;;  %1479 = vmatpush.msra.mxu0 %v5998_v42  ;;  %v204_v35 = vadd.f32 %v6002_v52, %v6001_v44  ;;  %v206_v58 = vadd.f32 %v6007_v22, %v6001_v44 }
 0x1fd   :  { %1502 = vmatpush.msra.mxu1 %v5999_v9  ;;  %1525 = vmatpush.msra.mxu2 %v6000_v18 }
 0x1fe   :  { %v3542_v12 = vpop.eup %3541  ;;  %1548 = vmatpush.msra.mxu3 %v4650_v47  ;;  %v6005_v47 = vld [vmem:[#allocation66_spill] sm:$0xff] }
 0x1ff   :  { %v1077_v31 = vmul.f32 %v3542_v12, %v1066_v32  ;;  %v366_v62 = vadd.f32 %v6006_v0, %v6005_v47  ;;  %v368_v17 = vadd.f32 %v6010_v54, %v6005_v47 }
 0x201   :  { %v3435_v11 = vpack.c.bf16 %v1077_v31, %v1076_v33  ;;  %1177 = vmatmul.f32.gmra.mxu0 %v1077_v31  ;;  %1200 = vmatmul.f32.gmra.mxu1 %v1077_v31  ;;  %v260_v33 = vadd.f32 %v6008_v57, %v6003_v14 }
 0x202   :  { %1223 = vmatmul.f32.gmra.mxu2 %v1077_v31  ;;  %1246 = vmatmul.f32.gmra.mxu3 %v1077_v31 }
 0x203   :  { %3436 = vst [vmem:[#allocation6 + $0x8] sm:$0xff] %v3435_v11  }
 0x272   :  { %v1175_v2 = vpop.f32.mrf.mxu0  ;;  %v1198_v29 = vpop.f32.mrf.mxu1 }
 0x273   :  { %v1250_v6 = vadd.f32 %v1175_v2, %v204_v35  ;;  %v1251_v34 = vadd.f32 %v1198_v29, %v258_v3 }
 0x275   :  { %v3368_v5 = vmul.f32 -1.442695, %v1250_v6  ;;  %v3370_v61 = vmul.f32 -1.442695, %v1251_v34 }
 0x277   :  { %3543 = vpow2.f32 %v3368_v5 }
 0x278   :  { %3545 = vpow2.f32 %v3370_v61 }
 0x279   :  { %v1244_v55 = vpop.f32.mrf.mxu3  ;;  %v1221_v10 = vpop.f32.mrf.mxu2 }
 0x27a   :  { %v1253_v60 = vadd.f32 %v1244_v55, %v366_v62  ;;  %v1252_v27 = vadd.f32 %v1221_v10, %v312_v24 }
 0x27c   :  { %v3372_v36 = vmul.f32 -1.442695, %v1253_v60 }
 0x27d   :  { %v3544_v25 = vpop.eup %3543 }
 0x27e   :  { %v3546_v56 = vpop.eup %3545  ;;  %v1264_v59 = vadd.f32 1.0, %v3544_v25  ;;  %3547 = vpow2.f32 %v3372_v36  ;;  %v1178_v7 = vpop.f32.mrf.mxu0  ;;  %v6011_v25 = vld [vmem:[#allocation15_spill] sm:$0xff] }
 0x27f   :  { %v1302_v21 = vadd.f32 1.0, %v3546_v56  ;;  %v1201_v4 = vpop.f32.mrf.mxu1  ;;  %v1254_v30 = vadd.f32 %v1178_v7, %v206_v58  ;;  %v314_v56 = vadd.f32 %v6011_v25, %v4384_v15  ;;  %v4920_v25 = vld [vmem:[#allocation3 + $0x1a8] sm:$0xff] }
 0x280   :  { %3549 = vrcp.f32 %v1264_v59  ;;  %v1255_v49 = vadd.f32 %v1201_v4, %v260_v33  ;;  %v1275_v13 = vand.u32 2147483647, %v1264_v59  ;;  %v1277_v23 = vand.u32 2147483648, %v1264_v59 }
 0x281   :  { %3551 = vrcp.f32 %v1302_v21  ;;  %v3369_v39 = vmul.f32 -1.442695, %v1254_v30  ;;  %v1315_v41 = vand.u32 2147483648, %v1302_v21  ;;  %vm1271_vm3 = vweird.f32 %v1264_v59 }
 0x282   :  { %v3371_v63 = vmul.f32 -1.442695, %v1255_v49  ;;  %v1313_v12 = vand.u32 2147483647, %v1302_v21  ;;  %vm1309_vm4 = vweird.f32 %v1302_v21  ;;  %vm1276_vm6 = vcmp.eq.f32.partialorder %v1275_v13, 8.507059e+37 }
 0x283   :  { %3553 = vpow2.f32 %v3369_v39  ;;  %v1278_v11 = vor.u32 1.1754944e-38, %v1277_v23  ;;  %v1316_v50 = vor.u32 1.1754944e-38, %v1315_v41 }
 0x284   :  { %v3548_v1 = vpop.eup %3547  ;;  %vm1314_vm8 = vcmp.eq.f32.partialorder %v1313_v12, 8.507059e+37 }
 0x285   :  { %v4841_v51 = vadd.f32 1.0, %v3548_v1  ;;  %v1247_v46 = vpop.f32.mrf.mxu3  ;;  %v1224_v60 = vpop.f32.mrf.mxu2 }
 0x286   :  { %v3550_v26 = vpop.eup %3549  ;;  %v1257_v40 = vadd.f32 %v1247_v46, %v368_v17  ;;  %v1256_v22 = vadd.f32 %v1224_v60, %v314_v56  ;;  %v4914_v60 = vld [vmem:[#allocation3 + $0x1d8] sm:$0xff]  ;;  %v4922_v56 = vld [vmem:[#allocation3 + $0x1b0] sm:$0xff] }
 0x287   :  { %v3552_v45 = vpop.eup %3551  ;;  %v1267_v37 = vmul.f32 %v3550_v26, %v1264_v59  ;;  %3555 = vrcp.f32 %v4841_v51  ;;  %vm1272_vm1 = vweird.f32 %v3550_v26  ;;  %v1355_v4 = vand.u32 2147483648, %v4841_v51 }
 0x288   :  { %v1305_v38 = vmul.f32 %v3552_v45, %v1302_v21  ;;  %3557 = vpow2.f32 %v3371_v63  ;;  %v3373_v20 = vmul.f32 -1.442695, %v1257_v40  ;;  %vm1310_vm2 = vweird.f32 %v3552_v45  ;;  %vm1273_vm5 = vmor %vm1271_vm3, %vm1272_vm1 }
 0x289   :  { %v1268_v43 = vsub.f32 1.0, %v1267_v37  ;;  %3559 = vtanh.f32 %v1252_v27  ;;  %v3554_v53 = vpop.eup %3553  ;;  %vm1311_vm7 = vmor %vm1309_vm4, %vm1310_vm2  ;;  %vm1349_vm10 = vweird.f32 %v4841_v51  ;;  %v1353_v33 = vand.u32 2147483647, %v4841_v51 }
 0x28a   :  { %v1306_v48 = vsub.f32 1.0, %v1305_v38  ;;  %v4848_v18 = vadd.f32 1.0, %v3554_v53  ;;  %3561 = vpow2.f32 %v3373_v20  ;;  %v1356_v1 = vor.u32 1.1754944e-38, %v1355_v4  ;;  %v4932_v4 = vld [vmem:[#allocation3 + $0x188] sm:$0xff] }
 0x28b   :  { %v1269_v28 = vmul.f32 %v3550_v26, %v1268_v43  ;;  %vm1354_vm14 = vcmp.eq.f32.partialorder %v1353_v33, 8.507059e+37  ;;  %v6016_v33 = vld [vmem:[#allocation18_spill] sm:$0xff] }
 0x28c   :  { %v1307_v42 = vmul.f32 %v3552_v45, %v1306_v48  ;;  %3563 = vrcp.f32 %v4848_v18  ;;  %v1292_v8 = vand.u32 2147483648, %v4848_v18  ;;  %vm1286_vm13 = vweird.f32 %v4848_v18 }
 0x28d   :  { %v4846_v32 = vpop.eup %3555  ;;  %v1270_v9 = vadd.f32 %v3550_v26, %v1269_v28  ;;  %v263_v30 = vadd.f32 %v6016_v33, %v6003_v14 }
 0x28e   :  { %v3558_v31 = vpop.eup %3557  ;;  %v1308_v52 = vadd.f32 %v3552_v45, %v1307_v42  ;;  %v1345_v35 = vmul.f32 %v4846_v32, %v4841_v51  ;;  %vm1350_vm9 = vweird.f32 %v4846_v32  ;;  %v1290_v51 = vand.u32 2147483647, %v4848_v18 }
 0x28f   :  { %v1274_v3 = vsel %vm1273_vm5, %v3550_v26, %v1270_v9  ;;  %v4853_v2 = vadd.f32 1.0, %v3558_v31  ;;  %v3560_v29 = vpop.eup %3559  ;;  %vm4872_vm11 = vmor %vm1349_vm10, %vm1350_vm9  ;;  %v1293_v38 = vor.u32 1.1754944e-38, %v1292_v8 }
 0x290   :  { %v1279_v6 = vsel %vm1276_vm6, %v1278_v11, %v1274_v3  ;;  %v1312_v34 = vsel %vm1311_vm7, %v3552_v45, %v1308_v52  ;;  %v1346_v5 = vsub.f32 1.0, %v1345_v35  ;;  %v3562_v36 = vpop.eup %3561  ;;  %vm1291_vm2 = vcmp.eq.f32.partialorder %v1290_v51, 8.507059e+37 }
 0x291   :  { %v1317_v61 = vsel %vm1314_vm8, %v1316_v50, %v1312_v34  ;;  %v1376_v0 = vmul.f32 %v3560_v29, %v1279_v6  ;;  %3565 = vrcp.f32 %v4853_v2  ;;  %v4862_v21 = vadd.f32 1.0, %v3562_v36  ;;  %v4894_v6 = vld [vmem:[#allocation3 + $0x1e0] sm:$0xff]  ;;  %v4896_v34 = vld [vmem:[#allocation3 + $0x1e8] sm:$0xff] }
 0x292   :  { %v1374_v62 = vmul.f32 %v1317_v61, %v4725_v19  ;;  %v1347_v55 = vmul.f32 %v4846_v32, %v1346_v5  ;;  %v3564_v7 = vpop.eup %3563  ;;  %v1330_v26 = vand.u32 2147483648, %v4853_v2  ;;  %v1328_v27 = vand.u32 2147483647, %v4853_v2  ;;  %v4898_v5 = vld [vmem:[#allocation3 + $0x1f0] sm:$0xff]  ;;  %1770 = vmatpush.msrb.mxu0 %v4894_v6  ;;  %1793 = vmatpush.msrb.mxu1 %v4896_v34  ;;  %v4902_v61 = vld [vmem:[#allocation3 + $0x1f8] sm:$0xff]  ;;  %v4918_v36 = vld [vmem:[#allocation3 + $0x1a0] sm:$0xff] }
 0x293   :  { %v1282_v19 = vmul.f32 %v3564_v7, %v4848_v18  ;;  %vm1287_vm12 = vweird.f32 %v3564_v7  ;;  %vm1324_vm0 = vweird.f32 %v4853_v2  ;;  %v1370_v11 = vand.u32 2147483648, %v4862_v21  ;;  %1816 = vmatpush.msrb.mxu2 %v4898_v5  ;;  %1839 = vmatpush.msrb.mxu3 %v4902_v61 }
 0x294   :  { %v4860_v59 = vadd.f32 %v1376_v0, %v1374_v62  ;;  %v1348_v58 = vadd.f32 %v4846_v32, %v1347_v55  ;;  %vm1288_vm1 = vmor %vm1286_vm13, %vm1287_vm12  ;;  %v1331_v41 = vor.u32 1.1754944e-38, %v1330_v26  ;;  %vm1329_vm4 = vcmp.eq.f32.partialorder %v1328_v27, 8.507059e+37  ;;  %v4906_v0 = vld [vmem:[#allocation3 + $0x1c0] sm:$0xff]  ;;  %v4908_v62 = vld [vmem:[#allocation3 + $0x1c8] sm:$0xff] }
 0x295   :  { %v1283_v49 = vsub.f32 1.0, %v1282_v19  ;;  %vm1364_vm6 = vweird.f32 %v4862_v21  ;;  %v1368_v52 = vand.u32 2147483647, %v4862_v21  ;;  %v1371_v50 = vor.u32 1.1754944e-38, %v1370_v11  ;;  %v4910_v55 = vld [vmem:[#allocation3 + $0x1d0] sm:$0xff]  ;;  %1771 = vmatpush.msrb.mxu0 %v4906_v0  ;;  %1794 = vmatpush.msrb.mxu1 %v4908_v62  ;;  %v6015_v19 = vld [vmem:[#allocation17_spill] sm:$0xff] }
 0x296   :  { %3567 = vtanh.f32 %v4860_v59  ;;  %v1352_v24 = vsel %vm4872_vm11, %v4846_v32, %v1348_v58  ;;  %1817 = vmatpush.msrb.mxu2 %v4910_v55  ;;  %1840 = vmatpush.msrb.mxu3 %v4914_v60  ;;  %v4938_v58 = vld [vmem:[#allocation3 + $0x198] sm:$0xff]  ;;  %v4958_v26 = vld [vmem:[#allocation3 + $0x140] sm:$0xff]  ;;  %v4960_v27 = vld [vmem:[#allocation3 + $0x148] sm:$0xff] }
 0x297   :  { %v3566_v57 = vpop.eup %3565  ;;  %3569 = vrcp.f32 %v4862_v21  ;;  %v1284_v63 = vmul.f32 %v3564_v7, %v1283_v49  ;;  %v1357_v17 = vsel %vm1354_vm14, %v1356_v1, %v1352_v24  ;;  %vm1369_vm8 = vcmp.eq.f32.partialorder %v1368_v52, 8.507059e+37  ;;  %1772 = vmatpush.msrb.mxu0 %v4918_v36  ;;  %1795 = vmatpush.msrb.mxu1 %v4920_v25  ;;  %v4946_v49 = vld [vmem:[#allocation3 + $0x160] sm:$0xff]  ;;  %v4950_v1 = vld [vmem:[#allocation3 + $0x170] sm:$0xff]  ;;  %v5010_v52 = vld [vmem:[#allocation3 + $0xc8] sm:$0xff] }
 0x298   :  { %v1320_v10 = vmul.f32 %v3566_v57, %v4853_v2  ;;  %3571 = vtanh.f32 %v1256_v22  ;;  %vm1325_vm15 = vweird.f32 %v3566_v57  ;;  %1818 = vmatpush.msrb.mxu2 %v4922_v56  ;;  %v4934_v22 = vld [vmem:[#allocation3 + $0x190] sm:$0xff]  ;;  %v5008_v11 = vld [vmem:[#allocation3 + $0xc0] sm:$0xff] }
 0x299   :  { %v1285_v54 = vadd.f32 %v3564_v7, %v1284_v63  ;;  %vm1326_vm3 = vmor %vm1324_vm0, %vm1325_vm15  ;;  %1796 = vmatpush.msrb.mxu1 %v4932_v4 }
 0x29a   :  { %v1321_v39 = vsub.f32 1.0, %v1320_v10  ;;  %1819 = vmatpush.msrb.mxu2 %v4934_v22  ;;  %v4948_v10 = vld [vmem:[#allocation3 + $0x168] sm:$0xff] }
 0x29b   :  { %v1289_v40 = vsel %vm1288_vm1, %v3564_v7, %v1285_v54  ;;  %v4930_v7 = vld [vmem:[#allocation3 + $0x180] sm:$0xff]  ;;  %1797 = vmatpush.msrb.mxu1 %v4948_v10 }
 0x29c   :  { %v3568_v46 = vpop.eup %3567  ;;  %v1322_v45 = vmul.f32 %v3566_v57, %v1321_v39  ;;  %v1294_v28 = vsel %vm1291_vm2, %v1293_v38, %v1289_v40  ;;  %1773 = vmatpush.msrb.mxu0 %v4930_v7  ;;  %v4954_v39 = vld [vmem:[#allocation3 + $0x178] sm:$0xff]  ;;  %1820 = vmatpush.msrb.mxu2 %v4950_v1  ;;  %v4972_v38 = vld [vmem:[#allocation3 + $0x128] sm:$0xff] }
 0x29d   :  { %v3570_v37 = vpop.eup %3569  ;;  %v1382_v43 = vmul.f32 %v3568_v46, %v1357_v17  ;;  %v4962_v46 = vld [vmem:[#allocation3 + $0x150] sm:$0xff]  ;;  %1798 = vmatpush.msrb.mxu1 %v4960_v27  ;;  %v4978_v40 = vld [vmem:[#allocation3 + $0x138] sm:$0xff] }
 0x29e   :  { %v1323_v48 = vadd.f32 %v3566_v57, %v1322_v45  ;;  %v1360_v13 = vmul.f32 %v3570_v37, %v4862_v21  ;;  %v3572_v23 = vpop.eup %3571  ;;  %vm1365_vm5 = vweird.f32 %v3570_v37  ;;  %v4926_v21 = vld [vmem:[#allocation3 + $0x1b8] sm:$0xff]  ;;  %1774 = vmatpush.msrb.mxu0 %v4946_v49  ;;  %1821 = vmatpush.msrb.mxu2 %v4962_v46 }
 0x29f   :  { %1480 = vmatmul.f32.vlgmr.msra.gmra.mxu0 %v1382_v43  ;;  %1503 = vmatmul.f32.vlgmr.msra.gmra.mxu1 %v1382_v43  ;;  %v1377_v53 = vmul.f32 %v3572_v23, %v1294_v28  ;;  %vm1366_vm7 = vmor %vm1364_vm6, %vm1365_vm5  ;;  %v4966_v45 = vld [vmem:[#allocation3 + $0x158] sm:$0xff]  ;;  %v4986_v23 = vld [vmem:[#allocation3 + $0x110] sm:$0xff] }
 0x2a0   :  { %v1327_v20 = vsel %vm1326_vm3, %v3566_v57, %v1323_v48  ;;  %v1361_v42 = vsub.f32 1.0, %v1360_v13  ;;  %1526 = vmatmul.f32.vlgmr.msra.gmra.mxu2 %v1382_v43  ;;  %1549 = vmatmul.f32.vlgmr.msra.gmra.mxu3 %v1382_v43  ;;  %v209_v57 = vadd.f32 %v6015_v19, %v6001_v44  ;;  %v4982_v48 = vld [vmem:[#allocation3 + $0x100] sm:$0xff]  ;;  %v4984_v13 = vld [vmem:[#allocation3 + $0x108] sm:$0xff]  ;;  %v5024_v19 = vld [vmem:[#allocation3 + $0xb0] sm:$0xff] }
 0x2a1   :  { %v1332_v12 = vsel %vm1329_vm4, %v1331_v41, %v1327_v20  ;;  %1841 = vmatpush.msrb.mxu3 %v4926_v21  ;;  %1775 = vmatpush.msrb.mxu0 %v4958_v26  ;;  %v6017_v41 = vld [vmem:[#allocation20_spill] sm:$0xff]  ;;  %v4992_v20 = vld [vmem:[#allocation3 + $0x118] sm:$0xff]  ;;  %6019 = vst [vmem:[#allocation71_spill] sm:$0xff] %v5024_v19 }
 0x2a2   :  { %v1375_v32 = vmul.f32 %v1332_v12, %v4801_v16  ;;  %v1362_v9 = vmul.f32 %v3570_v37, %v1361_v42  ;;  %1799 = vmatpush.msrb.mxu1 %v4972_v38  ;;  %v371_v28 = vadd.f32 %v6017_v41, %v6005_v47  ;;  %v4996_v42 = vld [vmem:[#allocation3 + $0xe0] sm:$0xff]  ;;  %v4998_v12 = vld [vmem:[#allocation3 + $0xe8] sm:$0xff] }
 0x2a3   :  { %1842 = vmatpush.msrb.mxu3 %v4938_v58 }
 0x2a4   :  { %v4888_v18 = vadd.f32 %v1377_v53, %v1375_v32  ;;  %v1363_v31 = vadd.f32 %v3570_v37, %v1362_v9  ;;  %1800 = vmatpush.msrb.mxu1 %v4984_v13  ;;  %v5000_v32 = vld [vmem:[#allocation3 + $0xf0] sm:$0xff] }
 0x2a5   :  { %1843 = vmatpush.msrb.mxu3 %v4954_v39 }
 0x2a6   :  { %6014 = vst [vmem:[#allocation69_spill] sm:$0xff] %v4888_v18  ;;  %3573 = vtanh.f32 %v4888_v18  ;;  %v1367_v35 = vsel %vm1366_vm7, %v3570_v37, %v1363_v31  ;;  %v4970_v37 = vld [vmem:[#allocation3 + $0x120] sm:$0xff]  ;;  %1801 = vmatpush.msrb.mxu1 %v4998_v12  ;;  %v5004_v31 = vld [vmem:[#allocation3 + $0xf8] sm:$0xff]  ;;  %v5070_v18 = vld [vmem:[#allocation3 + $0x50] sm:$0xff] }
 0x2a7   :  { %v1372_v2 = vsel %vm1369_vm8, %v1371_v50, %v1367_v35  ;;  %1844 = vmatpush.msrb.mxu3 %v4966_v45  ;;  %1776 = vmatpush.msrb.mxu0 %v4970_v37  ;;  %v5012_v35 = vld [vmem:[#allocation3 + $0xd0] sm:$0xff]  ;;  %6033 = vst [vmem:[#allocation82_spill] sm:$0xff] %v5070_v18 }
 0x2a8   :  { %1802 = vmatpush.msrb.mxu1 %v5010_v52 }
 0x2a9   :  { %1845 = vmatpush.msrb.mxu3 %v4978_v40  ;;  %1777 = vmatpush.msrb.mxu0 %v4982_v48 }
 0x2ab   :  { %1846 = vmatpush.msrb.mxu3 %v4992_v20  ;;  %1778 = vmatpush.msrb.mxu0 %v4996_v42 }
 0x2ac   :  { %v3574_v3 = vpop.eup %3573 }
 0x2ad   :  { %v1383_v16 = vmul.f32 %v3574_v3, %v1372_v2  ;;  %1847 = vmatpush.msrb.mxu3 %v5004_v31  ;;  %1779 = vmatpush.msrb.mxu0 %v5008_v11  ;;  %v5016_v3 = vld [vmem:[#allocation3 + $0xd8] sm:$0xff] }
 0x2af   :  { %v3440_v29 = vpack.c.bf16 %v1383_v16, %v1382_v43  ;;  %1483 = vmatmul.f32.gmra.mxu0 %v1383_v16  ;;  %1506 = vmatmul.f32.gmra.mxu1 %v1383_v16  ;;  %v4976_v43 = vld [vmem:[#allocation3 + $0x130] sm:$0xff] }
 0x2b0   :  { %1529 = vmatmul.f32.gmra.mxu2 %v1383_v16  ;;  %1552 = vmatmul.f32.gmra.mxu3 %v1383_v16  ;;  %v5020_v16 = vld [vmem:[#allocation3 + $0xa0] sm:$0xff] }
 0x2b1   :  { %3441 = vst [vmem:[#allocation6 + $0x10] sm:$0xff] %v3440_v29   ;;  %1822 = vmatpush.msrb.mxu2 %v4976_v43  ;;  %1848 = vmatpush.msrb.mxu3 %v5016_v3  ;;  %v5022_v29 = vld [vmem:[#allocation3 + $0xa8] sm:$0xff] }
 0x2b2   :  { %6018 = vst [vmem:[#allocation70_spill] sm:$0xff] %v5022_v29  ;;  %1780 = vmatpush.msrb.mxu0 %v5020_v16  ;;  %1803 = vmatpush.msrb.mxu1 %v5022_v29 }
 0x2b3   :  { %1823 = vmatpush.msrb.mxu2 %v4986_v23 }
 0x2b5   :  { %1824 = vmatpush.msrb.mxu2 %v5000_v32 }
 0x2b7   :  { %1825 = vmatpush.msrb.mxu2 %v5012_v35 }
 0x2b9   :  { %1826 = vmatpush.msrb.mxu2 %v5024_v19 }
 0x31c   :  { %v1481_v8 = vpop.f32.mrf.mxu0  ;;  %v1504_v24 = vpop.f32.mrf.mxu1 }
 0x31d   :  { %v1556_v63 = vadd.f32 %v1481_v8, %v209_v57  ;;  %v1557_v51 = vadd.f32 %v1504_v24, %v263_v30  ;;  %v5030_v30 = vld [vmem:[#allocation3 + $0xb8] sm:$0xff]  ;;  %v5036_v24 = vld [vmem:[#allocation3 + $0x80] sm:$0xff] }
 0x31e   :  { %6020 = vst [vmem:[#allocation68_spill] sm:$0xff] %v5030_v30  ;;  %1849 = vmatpush.msrb.mxu3 %v5030_v30  ;;  %1781 = vmatpush.msrb.mxu0 %v5036_v24 }
 0x31f   :  { %v3374_v54 = vmul.f32 -1.442695, %v1556_v63  ;;  %v3376_v17 = vmul.f32 -1.442695, %v1557_v51  ;;  %6021 = vst [vmem:[#allocation72_spill] sm:$0xff] %v5036_v24  ;;  %v5038_v63 = vld [vmem:[#allocation3 + $0x88] sm:$0xff] }
 0x320   :  { %6022 = vst [vmem:[#allocation73_spill] sm:$0xff] %v5038_v63  ;;  %v5040_v51 = vld [vmem:[#allocation3 + $0x90] sm:$0xff]  ;;  %1804 = vmatpush.msrb.mxu1 %v5038_v63 }
 0x321   :  { %3575 = vpow2.f32 %v3374_v54  ;;  %6023 = vst [vmem:[#allocation74_spill] sm:$0xff] %v5040_v51  ;;  %v5045_v54 = vld [vmem:[#allocation3 + $0x98] sm:$0xff]  ;;  %1827 = vmatpush.msrb.mxu2 %v5040_v51  ;;  %v5068_v51 = vld [vmem:[#allocation3 + $0x48] sm:$0xff] }
 0x322   :  { %3577 = vpow2.f32 %v3376_v17  ;;  %6024 = vst [vmem:[#allocation75_spill] sm:$0xff] %v5045_v54  ;;  %v6025_v17 = vld [vmem:[#allocation21_spill] sm:$0xff]  ;;  %1850 = vmatpush.msrb.mxu3 %v5045_v54  ;;  %v5066_v54 = vld [vmem:[#allocation3 + $0x40] sm:$0xff] }
 0x323   :  { %v1550_v53 = vpop.f32.mrf.mxu3  ;;  %v211_v41 = vadd.f32 %v6025_v17, %v6001_v44  ;;  %v5062_v17 = vld [vmem:[#allocation3 + $0x78] sm:$0xff]  ;;  %6031 = vst [vmem:[#allocation80_spill] sm:$0xff] %v5066_v54 }
 0x324   :  { %v1559_v9 = vadd.f32 %v1550_v53, %v371_v28  ;;  %v6026_v28 = vld [vmem:[#allocation22_spill] sm:$0xff]  ;;  %6030 = vst [vmem:[#allocation79_spill] sm:$0xff] %v5062_v17  ;;  %1851 = vmatpush.msrb.mxu3 %v5062_v17  ;;  %v5082_v17 = vld [vmem:[#allocation3 + $0x20] sm:$0xff] }
 0x325   :  { %v265_v53 = vadd.f32 %v6026_v28, %v6003_v14  ;;  %v1527_v28 = vpop.f32.mrf.mxu2  ;;  %6032 = vst [vmem:[#allocation81_spill] sm:$0xff] %v5068_v51 }
 0x326   :  { %v3378_v50 = vmul.f32 -1.442695, %v1559_v9  ;;  %v5054_v9 = vld [vmem:[#allocation3 + $0x60] sm:$0xff]  ;;  %6036 = vst [vmem:[#allocation84_spill] sm:$0xff] %v5082_v17 }
 0x327   :  { %v3576_v2 = vpop.eup %3575  ;;  %6027 = vst [vmem:[#allocation76_spill] sm:$0xff] %v5054_v9  ;;  %1782 = vmatpush.msrb.mxu0 %v5054_v9  ;;  %v6034_v9 = vld [vmem:[#allocation19_spill] sm:$0xff] }
 0x328   :  { %v3578_v57 = vpop.eup %3577  ;;  %v5026_v33 = vadd.f32 1.0, %v3576_v2  ;;  %3579 = vpow2.f32 %v3378_v50  ;;  %v5056_v50 = vld [vmem:[#allocation3 + $0x68] sm:$0xff]  ;;  %v5058_v2 = vld [vmem:[#allocation3 + $0x70] sm:$0xff]  ;;  %v317_v30 = vadd.f32 %v6034_v9, %v4384_v15 }
 0x329   :  { %v5032_v8 = vadd.f32 1.0, %v3578_v57  ;;  %6028 = vst [vmem:[#allocation77_spill] sm:$0xff] %v5056_v50  ;;  %1805 = vmatpush.msrb.mxu1 %v5056_v50  ;;  %1828 = vmatpush.msrb.mxu2 %v5058_v2  ;;  %v5087_v9 = vld [vmem:[#allocation3 + $0x28] sm:$0xff] }
 0x32a   :  { %3581 = vrcp.f32 %v5026_v33  ;;  %6029 = vst [vmem:[#allocation78_spill] sm:$0xff] %v5058_v2  ;;  %1783 = vmatpush.msrb.mxu0 %v5066_v54  ;;  %v1558_v50 = vadd.f32 %v1527_v28, %v317_v30  ;;  %v5091_v54 = vld [vmem:[#allocation3 + $0x38] sm:$0xff]  ;;  %v5102_v30 = vld [vmem:[#allocation3 + $0x8] sm:$0xff]  ;;  %v5104_v28 = vld [vmem:[#allocation3 + $0x10] sm:$0xff]  ;;  %v1581_v19 = vand.u32 2147483647, %v5026_v33  ;;  %vm1577_vm12 = vweird.f32 %v5026_v33 }
 0x32b   :  { %3583 = vrcp.f32 %v5032_v8  ;;  %1806 = vmatpush.msrb.mxu1 %v5068_v51  ;;  %1829 = vmatpush.msrb.mxu2 %v5070_v18  ;;  %6037 = vst [vmem:[#allocation85_spill] sm:$0xff] %v5087_v9  ;;  %v5089_v51 = vld [vmem:[#allocation3 + $0x30] sm:$0xff]  ;;  %vm1615_vm11 = vweird.f32 %v5032_v8 }
 0x32c   :  { %v1484_v57 = vpop.f32.mrf.mxu0  ;;  %v1507_v63 = vpop.f32.mrf.mxu1  ;;  %1784 = vmatpush.msrb.mxu0 %v5082_v17  ;;  %6038 = vst [vmem:[#allocation86_spill] sm:$0xff] %v5089_v51  ;;  %v6040_v17 = vld [vmem:[#allocation24_spill] sm:$0xff]  ;;  %vm5135_vm13 = vcmp.eq.f32.partialorder %v1581_v19, 8.507059e+37 }
 0x32d   :  { %v1560_v14 = vadd.f32 %v1484_v57, %v211_v41  ;;  %v1561_v44 = vadd.f32 %v1507_v63, %v265_v53  ;;  %v5076_v41 = vld [vmem:[#allocation3 + $0x58] sm:$0xff]  ;;  %1807 = vmatpush.msrb.mxu1 %v5087_v9  ;;  %1830 = vmatpush.msrb.mxu2 %v5089_v51 }
 0x32e   :  { %v3580_v24 = vpop.eup %3579  ;;  %6035 = vst [vmem:[#allocation83_spill] sm:$0xff] %v5076_v41  ;;  %1852 = vmatpush.msrb.mxu3 %v5076_v41  ;;  %v373_v41 = vadd.f32 %v6040_v17, %v6005_v47  ;;  %v5112_v9 = vld [vmem:[#allocation3 + $0x18] sm:$0xff]  ;;  %v1583_v47 = vand.u32 2147483648, %v5026_v33 }
 0x32f   :  { %v5078_v63 = vadd.f32 1.0, %v3580_v24  ;;  %v3375_v53 = vmul.f32 -1.442695, %v1560_v14  ;;  %v3377_v57 = vmul.f32 -1.442695, %v1561_v44  ;;  %v5100_v14 = vld [vmem:[#allocation3] sm:$0xff]  ;;  %1808 = vmatpush.msrb.mxu1 %v5102_v30  ;;  %1831 = vmatpush.msrb.mxu2 %v5104_v28 }
 0x330   :  { %v5084_v2 = vpop.eup %3581  ;;  %6039 = vst [vmem:[#allocation87_spill] sm:$0xff] %v5100_v14  ;;  %1853 = vmatpush.msrb.mxu3 %v5091_v54  ;;  %1785 = vmatpush.msrb.mxu0 %v5100_v14  ;;  %v1621_v14 = vand.u32 2147483648, %v5032_v8 }
 0x331   :  { %v5093_v24 = vpop.eup %3583  ;;  %v1573_v44 = vmul.f32 %v5084_v2, %v5026_v33  ;;  %3585 = vrcp.f32 %v5078_v63  ;;  %vm1578_vm9 = vweird.f32 %v5084_v2  ;;  %2099 = vmatpush.msra.mxu1 %v4896_v34  ;;  %2122 = vmatpush.msra.mxu2 %v4898_v5  ;;  %vm1655_vm2 = vweird.f32 %v5078_v63  ;;  %v6049_v34 = vld [vmem:[#allocation71_spill] sm:$0xff] }
 0x332   :  { %v1611_v18 = vmul.f32 %v5093_v24, %v5032_v8  ;;  %3587 = vpow2.f32 %v3375_v53  ;;  %1854 = vmatpush.msrb.mxu3 %v5112_v9  ;;  %2076 = vmatpush.msra.mxu0 %v4894_v6  ;;  %vm1616_vm10 = vweird.f32 %v5093_v24  ;;  %vm5143_vm14 = vmor %vm1577_vm12, %vm1578_vm9 }
 0x333   :  { %v1574_v51 = vsub.f32 1.0, %v1573_v44  ;;  %3589 = vpow2.f32 %v3377_v57  ;;  %v1553_v29 = vpop.f32.mrf.mxu3  ;;  %v1619_v57 = vand.u32 2147483647, %v5032_v8  ;;  %2100 = vmatpush.msra.mxu1 %v4908_v62  ;;  %2123 = vmatpush.msra.mxu2 %v4910_v55  ;;  %vm1617_vm15 = vmor %vm1615_vm11, %vm1616_vm10  ;;  %v1622_v55 = vor.u32 1.1754944e-38, %v1621_v14 }
 0x334   :  { %v1612_v17 = vsub.f32 1.0, %v1611_v18  ;;  %3591 = vtanh.f32 %v1558_v50  ;;  %v1563_v53 = vadd.f32 %v1553_v29, %v373_v41  ;;  %2145 = vmatpush.msra.mxu3 %v4902_v61  ;;  %2077 = vmatpush.msra.mxu0 %v4906_v0  ;;  %v1584_v0 = vor.u32 1.1754944e-38, %v1583_v47 }
 0x335   :  { %v1575_v44 = vmul.f32 %v5084_v2, %v1574_v51  ;;  %vm1620_vm0 = vcmp.eq.f32.partialorder %v1619_v57, 8.507059e+37  ;;  %2101 = vmatpush.msra.mxu1 %v4920_v25  ;;  %2124 = vmatpush.msra.mxu2 %v4922_v56 }
 0x336   :  { %v1613_v18 = vmul.f32 %v5093_v24, %v1612_v17  ;;  %v3379_v29 = vmul.f32 -1.442695, %v1563_v53  ;;  %2146 = vmatpush.msra.mxu3 %v4914_v60  ;;  %2078 = vmatpush.msra.mxu0 %v4918_v36 }
 0x337   :  { %v5130_v6 = vpop.eup %3585  ;;  %v1576_v51 = vadd.f32 %v5084_v2, %v1575_v44  ;;  %2102 = vmatpush.msra.mxu1 %v4932_v4  ;;  %2125 = vmatpush.msra.mxu2 %v4934_v22  ;;  %v1530_v4 = vpop.f32.mrf.mxu2 }
 0x338   :  { %v3588_v5 = vpop.eup %3587  ;;  %v1614_v50 = vadd.f32 %v5093_v24, %v1613_v18  ;;  %v1651_v19 = vmul.f32 %v5130_v6, %v5078_v63  ;;  %3593 = vpow2.f32 %v3379_v29  ;;  %2147 = vmatpush.msra.mxu3 %v4926_v21  ;;  %2079 = vmatpush.msra.mxu0 %v4930_v7  ;;  %vm1656_vm1 = vweird.f32 %v5130_v6 }
 0x339   :  { %v3590_v62 = vpop.eup %3589  ;;  %v1580_v47 = vsel %vm5143_vm14, %v5084_v2, %v1576_v51  ;;  %v5159_v33 = vadd.f32 1.0, %v3588_v5  ;;  %2103 = vmatpush.msra.mxu1 %v4948_v10  ;;  %2126 = vmatpush.msra.mxu2 %v4950_v1  ;;  %v1659_v1 = vand.u32 2147483647, %v5078_v63  ;;  %vm5202_vm3 = vmor %vm1655_vm2, %vm1656_vm1  ;;  %v6048_v51 = vld [vmem:[#allocation70_spill] sm:$0xff] }
 0x33a   :  { %v3592_v60 = vpop.eup %3591  ;;  %v1585_v36 = vsel %vm5135_vm13, %v1584_v0, %v1580_v47  ;;  %v1618_v41 = vsel %vm1617_vm15, %v5093_v24, %v1614_v50  ;;  %v1652_v8 = vsub.f32 1.0, %v1651_v19  ;;  %v5166_v17 = vadd.f32 1.0, %v3590_v62  ;;  %2148 = vmatpush.msra.mxu3 %v4938_v58  ;;  %2080 = vmatpush.msra.mxu0 %v4946_v49  ;;  %v6050_v0 = vld [vmem:[#allocation68_spill] sm:$0xff]  ;;  %v6052_v19 = vld [vmem:[#allocation69_spill] sm:$0xff] }
 0x33b   :  { %v1623_v2 = vsel %vm1620_vm0, %v1622_v55, %v1618_v41  ;;  %v1682_v14 = vmul.f32 %v3592_v60, %v1585_v36  ;;  %3595 = vrcp.f32 %v5159_v33  ;;  %2104 = vmatpush.msra.mxu1 %v4960_v27  ;;  %2127 = vmatpush.msra.mxu2 %v4962_v46  ;;  %v1661_v49 = vand.u32 2147483648, %v5078_v63  ;;  %v6051_v50 = vld [vmem:[#allocation72_spill] sm:$0xff]  ;;  %v6053_v47 = vld [vmem:[#allocation73_spill] sm:$0xff]  ;;  %v6055_v60 = vld [vmem:[#allocation75_spill] sm:$0xff] }
 0x33c   :  { %v1680_v25 = vmul.f32 %v1623_v2, %v4860_v59  ;;  %v1653_v56 = vmul.f32 %v5130_v6, %v1652_v8  ;;  %3597 = vrcp.f32 %v5166_v17  ;;  %2149 = vmatpush.msra.mxu3 %v4954_v39  ;;  %2081 = vmatpush.msra.mxu0 %v4958_v26  ;;  %v6045_v59 = vld [vmem:[#allocation23_spill] sm:$0xff]  ;;  %vm1660_vm4 = vcmp.eq.f32.partialorder %v1659_v1, 8.507059e+37  ;;  %v6056_v36 = vld [vmem:[#allocation76_spill] sm:$0xff]  ;;  %v6057_v8 = vld [vmem:[#allocation77_spill] sm:$0xff] }
 0x33d   :  { %v319_v22 = vadd.f32 %v6045_v59, %v4384_v15  ;;  %2105 = vmatpush.msra.mxu1 %v4972_v38  ;;  %2128 = vmatpush.msra.mxu2 %v4976_v43  ;;  %v1662_v38 = vor.u32 1.1754944e-38, %v1661_v49  ;;  %v1598_v63 = vand.u32 2147483648, %v5159_v33  ;;  %vm1592_vm7 = vweird.f32 %v5159_v33  ;;  %v6065_v49 = vld [vmem:[#allocation85_spill] sm:$0xff]  ;;  %v6066_v1 = vld [vmem:[#allocation86_spill] sm:$0xff] }
 0x33e   :  { %v3594_v21 = vpop.eup %3593  ;;  %v5180_v7 = vadd.f32 %v1682_v14, %v1680_v25  ;;  %v1654_v58 = vadd.f32 %v5130_v6, %v1653_v56  ;;  %2150 = vmatpush.msra.mxu3 %v4966_v45  ;;  %2082 = vmatpush.msra.mxu0 %v4970_v37  ;;  %vm1630_vm8 = vweird.f32 %v5166_v17  ;;  %v6059_v14 = vld [vmem:[#allocation79_spill] sm:$0xff]  ;;  %v6060_v25 = vld [vmem:[#allocation80_spill] sm:$0xff] }
 0x33f   :  { %v5192_v10 = vadd.f32 1.0, %v3594_v21  ;;  %v1562_v26 = vadd.f32 %v1530_v4, %v319_v22  ;;  %2106 = vmatpush.msra.mxu1 %v4984_v13  ;;  %2129 = vmatpush.msra.mxu2 %v4986_v23  ;;  %v1596_v23 = vand.u32 2147483647, %v5159_v33  ;;  %v6061_v21 = vld [vmem:[#allocation81_spill] sm:$0xff]  ;;  %v6062_v4 = vld [vmem:[#allocation82_spill] sm:$0xff]  ;;  %v6063_v22 = vld [vmem:[#allocation83_spill] sm:$0xff] }
 0x340   :  { %3599 = vtanh.f32 %v5180_v7  ;;  %2151 = vmatpush.msra.mxu3 %v4978_v40  ;;  %2083 = vmatpush.msra.mxu0 %v4982_v48  ;;  %v1658_v37 = vsel %vm5202_vm3, %v5130_v6, %v1654_v58  ;;  %v1636_v48 = vand.u32 2147483648, %v5166_v17  ;;  %v6064_v58 = vld [vmem:[#allocation84_spill] sm:$0xff] }
 0x341   :  { %v3596_v39 = vpop.eup %3595  ;;  %3601 = vrcp.f32 %v5192_v10  ;;  %2107 = vmatpush.msra.mxu1 %v4998_v12  ;;  %2130 = vmatpush.msra.mxu2 %v5000_v32  ;;  %v1663_v44 = vsel %vm1660_vm4, %v1662_v38, %v1658_v37  ;;  %vm1597_vm11 = vcmp.eq.f32.partialorder %v1596_v23, 8.507059e+37  ;;  %v1676_v56 = vand.u32 2147483648, %v5192_v10  ;;  %v6069_v37 = vld [vmem:[#allocation25_spill] sm:$0xff]  ;;  %v6072_v23 = vld [vmem:[#allocation66_spill] sm:$0xff] }
 0x342   :  { %v3598_v27 = vpop.eup %3597  ;;  %v1588_v24 = vmul.f32 %v3596_v39, %v5159_v33  ;;  %2152 = vmatpush.msra.mxu3 %v4992_v20  ;;  %2084 = vmatpush.msra.mxu0 %v4996_v42  ;;  %3603 = vtanh.f32 %v1562_v26  ;;  %vm1593_vm5 = vweird.f32 %v3596_v39  ;;  %v1634_v42 = vand.u32 2147483647, %v5166_v17  ;;  %v6054_v33 = vld [vmem:[#allocation74_spill] sm:$0xff]  ;;  %v6067_v26 = vld [vmem:[#allocation87_spill] sm:$0xff] }
 0x343   :  { %v1626_v45 = vmul.f32 %v3598_v27, %v5166_v17  ;;  %vm1631_vm6 = vweird.f32 %v3598_v27  ;;  %2108 = vmatpush.msra.mxu1 %v5010_v52  ;;  %2131 = vmatpush.msra.mxu2 %v5012_v35  ;;  %vm1594_vm9 = vmor %vm1592_vm7, %vm1593_vm5  ;;  %v1637_v35 = vor.u32 1.1754944e-38, %v1636_v48  ;;  %v6058_v17 = vld [vmem:[#allocation78_spill] sm:$0xff]  ;;  %vm1670_vm14 = vweird.f32 %v5192_v10 }
 0x344   :  { %v1589_v43 = vsub.f32 1.0, %v1588_v24  ;;  %2153 = vmatpush.msra.mxu3 %v5004_v31  ;;  %2085 = vmatpush.msra.mxu0 %v5008_v11  ;;  %v1599_v31 = vor.u32 1.1754944e-38, %v1598_v63  ;;  %vm1632_vm10 = vmor %vm1630_vm8, %vm1631_vm6  ;;  %vm1635_vm12 = vcmp.eq.f32.partialorder %v1634_v42, 8.507059e+37  ;;  %v1674_v59 = vand.u32 2147483647, %v5192_v10 }
 0x345   :  { %v1627_v40 = vsub.f32 1.0, %v1626_v45  ;;  %2109 = vmatpush.msra.mxu1 %v6048_v51  ;;  %2132 = vmatpush.msra.mxu2 %v6049_v34 }
 0x346   :  { %v3600_v13 = vpop.eup %3599  ;;  %v1590_v53 = vmul.f32 %v3596_v39, %v1589_v43  ;;  %2154 = vmatpush.msra.mxu3 %v5016_v3  ;;  %2086 = vmatpush.msra.mxu0 %v5020_v16  ;;  %vm1675_vm0 = vcmp.eq.f32.partialorder %v1674_v59, 8.507059e+37  ;;  %v6070_v43 = vld [vmem:[#allocation63_spill] sm:$0xff] }
 0x347   :  { %v1628_v20 = vmul.f32 %v3598_v27, %v1627_v40  ;;  %v5226_v57 = vmul.f32 %v3600_v13, %v1663_v44  ;;  %v5230_v12 = vpop.eup %3601  ;;  %2110 = vmatpush.msra.mxu1 %v6053_v47  ;;  %2133 = vmatpush.msra.mxu2 %v6054_v33  ;;  %v6073_v44 = vld [vmem:[#allocation28_spill] sm:$0xff] }
 0x348   :  { %v1591_v32 = vadd.f32 %v3596_v39, %v1590_v53  ;;  %v1666_v52 = vmul.f32 %v5230_v12, %v5192_v10  ;;  %v3604_v3 = vpop.eup %3603  ;;  %2155 = vmatpush.msra.mxu3 %v6050_v0  ;;  %2087 = vmatpush.msra.mxu0 %v6051_v50  ;;  %vm1671_vm13 = vweird.f32 %v5230_v12 }
 0x349   :  { %v1629_v11 = vadd.f32 %v3598_v27, %v1628_v20  ;;  %1786 = vmatmul.f32.vlgmr.msrb.gmra.mxu0 %v5226_v57  ;;  %1809 = vmatmul.f32.vlgmr.msrb.gmra.mxu1 %v5226_v57  ;;  %vm1672_vm15 = vmor %vm1670_vm14, %vm1671_vm13  ;;  %v376_v20 = vadd.f32 %v6073_v44, %v6072_v23 }
 0x34a   :  { %v1595_v18 = vsel %vm1594_vm9, %v3596_v39, %v1591_v32  ;;  %1832 = vmatmul.f32.vlgmr.msrb.gmra.mxu2 %v5226_v57  ;;  %1855 = vmatmul.f32.vlgmr.msrb.gmra.mxu3 %v5226_v57  ;;  %v1667_v6 = vsub.f32 1.0, %v1666_v52 }
 0x34b   :  { %v1600_v16 = vsel %vm1597_vm11, %v1599_v31, %v1595_v18  ;;  %v1633_v29 = vsel %vm1632_vm10, %v3598_v27, %v1629_v11  ;;  %2156 = vmatpush.msra.mxu3 %v6055_v60  ;;  %2088 = vmatpush.msra.mxu0 %v6056_v36  ;;  %v1677_v27 = vor.u32 1.1754944e-38, %v1676_v56 }
 0x34c   :  { %v1638_v5 = vsel %vm1635_vm12, %v1637_v35, %v1633_v29  ;;  %v1683_v61 = vmul.f32 %v3604_v3, %v1600_v16  ;;  %v1668_v55 = vmul.f32 %v5230_v12, %v1667_v6  ;;  %2111 = vmatpush.msra.mxu1 %v6057_v8  ;;  %2134 = vmatpush.msra.mxu2 %v6058_v17  ;;  %v6074_v35 = vld [vmem:[#allocation29_spill] sm:$0xff]  ;;  %v6075_v3 = vld [vmem:[#allocation30_spill] sm:$0xff]  ;;  %v6077_v17 = vld [vmem:[#allocation32_spill] sm:$0xff] }
 0x34d   :  { %v1681_v62 = vmul.f32 %v1638_v5, %v6052_v19  ;;  %2157 = vmatpush.msra.mxu3 %v6059_v14  ;;  %2089 = vmatpush.msra.mxu0 %v6060_v25  ;;  %v270_v16 = vadd.f32 %v6075_v3, %v6070_v43  ;;  %v6076_v5 = vld [vmem:[#allocation27_spill] sm:$0xff] }
 0x34e   :  { %v1669_v2 = vadd.f32 %v5230_v12, %v1668_v55  ;;  %2112 = vmatpush.msra.mxu1 %v6061_v21  ;;  %2135 = vmatpush.msra.mxu2 %v6062_v4 }
 0x34f   :  { %v5254_v41 = vadd.f32 %v1683_v61, %v1681_v62  ;;  %2158 = vmatpush.msra.mxu3 %v6063_v22  ;;  %2090 = vmatpush.msra.mxu0 %v6064_v58  ;;  %v322_v61 = vadd.f32 %v6076_v5, %v4384_v15 }
 0x350   :  { %2113 = vmatpush.msra.mxu1 %v6065_v49  ;;  %2136 = vmatpush.msra.mxu2 %v6066_v1  ;;  %v1673_v39 = vsel %vm1672_vm15, %v5230_v12, %v1669_v2  ;;  %v378_v2 = vadd.f32 %v6077_v17, %v6072_v23 }
 0x351   :  { %3605 = vtanh.f32 %v5254_v41  ;;  %2159 = vmatpush.msra.mxu3 %v5091_v54  ;;  %2091 = vmatpush.msra.mxu0 %v6067_v26  ;;  %v1678_v46 = vsel %vm1675_vm0, %v1677_v27, %v1673_v39  ;;  %v6068_v54 = vld [vmem:[#allocation62_spill] sm:$0xff] }
 0x352   :  { %2114 = vmatpush.msra.mxu1 %v5102_v30  ;;  %2137 = vmatpush.msra.mxu2 %v5104_v28  ;;  %v214_v38 = vadd.f32 %v6069_v37, %v6068_v54  ;;  %v6071_v30 = vld [vmem:[#allocation26_spill] sm:$0xff]  ;;  %v216_v18 = vadd.f32 %v6074_v35, %v6068_v54 }
 0x353   :  { %2160 = vmatpush.msra.mxu3 %v5112_v9  ;;  %v268_v40 = vadd.f32 %v6071_v30, %v6070_v43 }
 0x357   :  { %v3606_v10 = vpop.eup %3605 }
 0x358   :  { %v1689_v24 = vmul.f32 %v3606_v10, %v1678_v46 }
 0x35a   :  { %v3445_v45 = vpack.c.bf16 %v1689_v24, %v5226_v57  ;;  %1789 = vmatmul.f32.gmra.mxu0 %v1689_v24  ;;  %1812 = vmatmul.f32.gmra.mxu1 %v1689_v24 }
 0x35b   :  { %1835 = vmatmul.f32.gmra.mxu2 %v1689_v24  ;;  %1858 = vmatmul.f32.gmra.mxu3 %v1689_v24 }
 0x35c   :  { %3446 = vst [vmem:[#allocation6 + $0x18] sm:$0xff] %v3445_v45  }
 0x3c6   :  { %v1787_v28 = vpop.f32.mrf.mxu0  ;;  %v1810_v48 = vpop.f32.mrf.mxu1 }
 0x3c7   :  { %v1862_v63 = vadd.f32 %v1787_v28, %v214_v38  ;;  %v1863_v9 = vadd.f32 %v1810_v48, %v268_v40 }
 0x3c9   :  { %v3380_v13 = vmul.f32 -1.442695, %v1862_v63  ;;  %v3382_v53 = vmul.f32 -1.442695, %v1863_v9 }
 0x3cb   :  { %3607 = vpow2.f32 %v3380_v13 }
 0x3cc   :  { %3609 = vpow2.f32 %v3382_v53 }
 0x3cd   :  { %v1856_v42 = vpop.f32.mrf.mxu3  ;;  %v1833_v29 = vpop.f32.mrf.mxu2 }
 0x3ce   :  { %v1865_v57 = vadd.f32 %v1856_v42, %v376_v20  ;;  %v1864_v55 = vadd.f32 %v1833_v29, %v322_v61 }
 0x3d0   :  { %v3384_v12 = vmul.f32 -1.442695, %v1865_v57 }
 0x3d1   :  { %v3608_v32 = vpop.eup %3607 }
 0x3d2   :  { %v3610_v31 = vpop.eup %3609  ;;  %v1876_v11 = vadd.f32 1.0, %v3608_v32  ;;  %3611 = vpow2.f32 %v3384_v12 }
 0x3d3   :  { %v1914_v52 = vadd.f32 1.0, %v3610_v31  ;;  %v6078_v31 = vld [vmem:[#allocation31_spill] sm:$0xff] }
 0x3d4   :  { %3613 = vrcp.f32 %v1876_v11  ;;  %v1887_v25 = vand.u32 2147483647, %v1876_v11  ;;  %v1889_v4 = vand.u32 2147483648, %v1876_v11  ;;  %vm1883_vm3 = vweird.f32 %v1876_v11 }
 0x3d5   :  { %3615 = vrcp.f32 %v1914_v52  ;;  %v1927_v21 = vand.u32 2147483648, %v1914_v52  ;;  %v1925_v58 = vand.u32 2147483647, %v1914_v52  ;;  %vm1921_vm4 = vweird.f32 %v1914_v52 }
 0x3d6   :  { %vm1888_vm5 = vcmp.eq.f32.partialorder %v1887_v25, 8.507059e+37  ;;  %v1890_v24 = vor.u32 1.1754944e-38, %v1889_v4 }
 0x3d7   :  { %v1790_v6 = vpop.f32.mrf.mxu0  ;;  %v1813_v51 = vpop.f32.mrf.mxu1  ;;  %v1928_v46 = vor.u32 1.1754944e-38, %v1927_v21  ;;  %vm1926_vm8 = vcmp.eq.f32.partialorder %v1925_v58, 8.507059e+37 }
 0x3d8   :  { %v3612_v34 = vpop.eup %3611  ;;  %v1866_v0 = vadd.f32 %v1790_v6, %v216_v18  ;;  %v1867_v50 = vadd.f32 %v1813_v51, %v270_v16  ;;  %v6083_v6 = vld [vmem:[#allocation34_spill] sm:$0xff] }
 0x3d9   :  { %v5291_v19 = vadd.f32 1.0, %v3612_v34 }
 0x3da   :  { %v3614_v62 = vpop.eup %3613  ;;  %v3381_v47 = vmul.f32 -1.442695, %v1866_v0  ;;  %v3383_v33 = vmul.f32 -1.442695, %v1867_v50 }
 0x3db   :  { %v3616_v60 = vpop.eup %3615  ;;  %v1879_v36 = vmul.f32 %v3614_v62, %v1876_v11  ;;  %3617 = vrcp.f32 %v5291_v19  ;;  %vm1884_vm1 = vweird.f32 %v3614_v62  ;;  %v324_v11 = vadd.f32 %v6078_v31, %v4384_v15  ;;  %v5342_v31 = vld [vmem:[#allocation3 + $0x1a8] sm:$0xff] }
 0x3dc   :  { %v1917_v8 = vmul.f32 %v3616_v60, %v1914_v52  ;;  %3619 = vpow2.f32 %v3381_v47  ;;  %vm1922_vm2 = vweird.f32 %v3616_v60  ;;  %vm1885_vm6 = vmor %vm1883_vm3, %vm1884_vm1  ;;  %v1967_v35 = vand.u32 2147483648, %v5291_v19 }
 0x3dd   :  { %v1880_v14 = vsub.f32 1.0, %v1879_v36  ;;  %3621 = vpow2.f32 %v3383_v33  ;;  %vm1923_vm7 = vmor %vm1921_vm4, %vm1922_vm2  ;;  %v1965_v3 = vand.u32 2147483647, %v5291_v19  ;;  %vm1961_vm10 = vweird.f32 %v5291_v19 }
 0x3de   :  { %v1918_v56 = vsub.f32 1.0, %v1917_v8  ;;  %3623 = vtanh.f32 %v1864_v55  ;;  %v1859_v59 = vpop.f32.mrf.mxu3  ;;  %v1836_v12 = vpop.f32.mrf.mxu2  ;;  %v1968_v61 = vor.u32 1.1754944e-38, %v1967_v35  ;;  %v5352_v35 = vld [vmem:[#allocation3 + $0x180] sm:$0xff] }
 0x3df   :  { %v1881_v22 = vmul.f32 %v3614_v62, %v1880_v14  ;;  %v1869_v49 = vadd.f32 %v1859_v59, %v378_v2  ;;  %vm1966_vm12 = vcmp.eq.f32.partialorder %v1965_v3, 8.507059e+37  ;;  %v5356_v3 = vld [vmem:[#allocation3 + $0x190] sm:$0xff] }
 0x3e0   :  { %v1919_v1 = vmul.f32 %v3616_v60, %v1918_v56 }
 0x3e1   :  { %v3618_v39 = vpop.eup %3617  ;;  %v1882_v26 = vadd.f32 %v3614_v62, %v1881_v22  ;;  %v3385_v27 = vmul.f32 -1.442695, %v1869_v49 }
 0x3e2   :  { %v3620_v10 = vpop.eup %3619  ;;  %v1920_v45 = vadd.f32 %v3616_v60, %v1919_v1  ;;  %v1957_v37 = vmul.f32 %v3618_v39, %v5291_v19  ;;  %vm1962_vm9 = vweird.f32 %v3618_v39 }
 0x3e3   :  { %v3622_v38 = vpop.eup %3621  ;;  %v1886_v30 = vsel %vm1885_vm6, %v3614_v62, %v1882_v26  ;;  %v1877_v40 = vadd.f32 1.0, %v3620_v10  ;;  %3625 = vpow2.f32 %v3385_v27  ;;  %vm5306_vm11 = vmor %vm1961_vm10, %vm1962_vm9 }
 0x3e4   :  { %v3624_v28 = vpop.eup %3623  ;;  %v1891_v48 = vsel %vm1888_vm5, %v1890_v24, %v1886_v30  ;;  %v1924_v63 = vsel %vm1923_vm7, %v3616_v60, %v1920_v45  ;;  %v1958_v9 = vsub.f32 1.0, %v1957_v37  ;;  %v1915_v13 = vadd.f32 1.0, %v3622_v38 }
 0x3e5   :  { %v1929_v53 = vsel %vm1926_vm8, %v1928_v46, %v1924_v63  ;;  %v1988_v44 = vmul.f32 %v3624_v28, %v1891_v48  ;;  %3627 = vrcp.f32 %v1877_v40  ;;  %v1904_v55 = vand.u32 2147483648, %v1877_v40 }
 0x3e6   :  { %v1986_v20 = vmul.f32 %v1929_v53, %v5180_v7  ;;  %v1959_v42 = vmul.f32 %v3618_v39, %v1958_v9  ;;  %3629 = vrcp.f32 %v1915_v13  ;;  %v1868_v7 = vadd.f32 %v1836_v12, %v324_v11  ;;  %v5318_v9 = vld [vmem:[#allocation3 + $0x1e8] sm:$0xff]  ;;  %v5324_v53 = vld [vmem:[#allocation3 + $0x1f8] sm:$0xff]  ;;  %v5344_v11 = vld [vmem:[#allocation3 + $0x1b0] sm:$0xff] }
 0x3e7   :  { %v1942_v62 = vand.u32 2147483648, %v1915_v13  ;;  %v1902_v33 = vand.u32 2147483647, %v1877_v40  ;;  %v1940_v8 = vand.u32 2147483647, %v1915_v13  ;;  %vm1898_vm15 = vweird.f32 %v1877_v40  ;;  %2405 = vmatpush.msrb.mxu1 %v5318_v9  ;;  %2451 = vmatpush.msrb.mxu3 %v5324_v53  ;;  %v5336_v12 = vld [vmem:[#allocation3 + $0x1d8] sm:$0xff] }
 0x3e8   :  { %v5298_v57 = vadd.f32 %v1988_v44, %v1986_v20  ;;  %v1960_v52 = vadd.f32 %v3618_v39, %v1959_v42  ;;  %vm1936_vm0 = vweird.f32 %v1915_v13  ;;  %v1905_v25 = vor.u32 1.1754944e-38, %v1904_v55  ;;  %v5328_v44 = vld [vmem:[#allocation3 + $0x1c0] sm:$0xff]  ;;  %v5330_v20 = vld [vmem:[#allocation3 + $0x1c8] sm:$0xff]  ;;  %v5332_v42 = vld [vmem:[#allocation3 + $0x1d0] sm:$0xff] }
 0x3e9   :  { %v3626_v32 = vpop.eup %3625  ;;  %v1943_v4 = vor.u32 1.1754944e-38, %v1942_v62  ;;  %vm1903_vm3 = vcmp.eq.f32.partialorder %v1902_v33, 8.507059e+37  ;;  %vm1941_vm4 = vcmp.eq.f32.partialorder %v1940_v8, 8.507059e+37  ;;  %2406 = vmatpush.msrb.mxu1 %v5330_v20  ;;  %2452 = vmatpush.msrb.mxu3 %v5336_v12  ;;  %v5376_v62 = vld [vmem:[#allocation3 + $0x178] sm:$0xff]  ;;  %v5382_v33 = vld [vmem:[#allocation3 + $0x148] sm:$0xff] }
 0x3ea   :  { %3631 = vtanh.f32 %v5298_v57  ;;  %v1955_v18 = vadd.f32 1.0, %v3626_v32  ;;  %v1964_v5 = vsel %vm5306_vm11, %v3618_v39, %v1960_v52  ;;  %v5340_v32 = vld [vmem:[#allocation3 + $0x1a0] sm:$0xff]  ;;  %v5348_v52 = vld [vmem:[#allocation3 + $0x1b8] sm:$0xff] }
 0x3eb   :  { %v3628_v16 = vpop.eup %3627  ;;  %v1969_v60 = vsel %vm1966_vm12, %v1968_v61, %v1964_v5  ;;  %2407 = vmatpush.msrb.mxu1 %v5342_v31  ;;  %2453 = vmatpush.msrb.mxu3 %v5348_v52  ;;  %v5370_v5 = vld [vmem:[#allocation3 + $0x168] sm:$0xff]  ;;  %v5372_v61 = vld [vmem:[#allocation3 + $0x170] sm:$0xff] }
 0x3ec   :  { %v3630_v29 = vpop.eup %3629  ;;  %v1894_v51 = vmul.f32 %v3628_v16, %v1877_v40  ;;  %3633 = vrcp.f32 %v1955_v18  ;;  %vm1899_vm13 = vweird.f32 %v3628_v16  ;;  %v1982_v45 = vand.u32 2147483648, %v1955_v18 }
 0x3ed   :  { %v1932_v34 = vmul.f32 %v3630_v29, %v1915_v13  ;;  %3635 = vtanh.f32 %v1868_v7  ;;  %vm1937_vm14 = vweird.f32 %v3630_v29  ;;  %vm1900_vm1 = vmor %vm1898_vm15, %vm1899_vm13  ;;  %vm1976_vm6 = vweird.f32 %v1955_v18  ;;  %v5320_v13 = vld [vmem:[#allocation3 + $0x1f0] sm:$0xff]  ;;  %v6082_v7 = vld [vmem:[#allocation33_spill] sm:$0xff] }
 0x3ee   :  { %v1895_v0 = vsub.f32 1.0, %v1894_v51  ;;  %vm1938_vm2 = vmor %vm1936_vm0, %vm1937_vm14  ;;  %v1980_v37 = vand.u32 2147483647, %v1955_v18  ;;  %v1983_v30 = vor.u32 1.1754944e-38, %v1982_v45  ;;  %2428 = vmatpush.msrb.mxu2 %v5320_v13  ;;  %v273_v51 = vadd.f32 %v6083_v6, %v6070_v43  ;;  %v5430_v45 = vld [vmem:[#allocation3 + $0xc0] sm:$0xff] }
 0x3ef   :  { %v1933_v50 = vsub.f32 1.0, %v1932_v34  ;;  %v5368_v34 = vld [vmem:[#allocation3 + $0x160] sm:$0xff] }
 0x3f0   :  { %v3632_v19 = vpop.eup %3631  ;;  %v1896_v47 = vmul.f32 %v3628_v16, %v1895_v0  ;;  %vm1981_vm8 = vcmp.eq.f32.partialorder %v1980_v37, 8.507059e+37  ;;  %2429 = vmatpush.msrb.mxu2 %v5332_v42  ;;  %v5432_v37 = vld [vmem:[#allocation3 + $0xc8] sm:$0xff] }
 0x3f1   :  { %v1934_v36 = vmul.f32 %v3630_v29, %v1933_v50  ;;  %v1994_v17 = vmul.f32 %v3632_v19, %v1969_v60  ;;  %v5384_v60 = vld [vmem:[#allocation3 + $0x150] sm:$0xff] }
 0x3f2   :  { %v3634_v2 = vpop.eup %3633  ;;  %v1897_v14 = vadd.f32 %v3628_v16, %v1896_v47  ;;  %2430 = vmatpush.msrb.mxu2 %v5344_v11  ;;  %v5380_v47 = vld [vmem:[#allocation3 + $0x140] sm:$0xff] }
 0x3f3   :  { %v1935_v56 = vadd.f32 %v3630_v29, %v1934_v36  ;;  %v1972_v21 = vmul.f32 %v3634_v2, %v1955_v18  ;;  %2092 = vmatmul.f32.vlgmr.msra.gmra.mxu0 %v1994_v17  ;;  %2115 = vmatmul.f32.vlgmr.msra.gmra.mxu1 %v1994_v17  ;;  %v3636_v22 = vpop.eup %3635  ;;  %vm1977_vm5 = vweird.f32 %v3634_v2  ;;  %v5354_v18 = vld [vmem:[#allocation3 + $0x188] sm:$0xff]  ;;  %v5388_v36 = vld [vmem:[#allocation3 + $0x158] sm:$0xff] }
 0x3f4   :  { %v1901_v59 = vsel %vm1900_vm1, %v3628_v16, %v1897_v14  ;;  %2138 = vmatmul.f32.vlgmr.msra.gmra.mxu2 %v1994_v17  ;;  %2161 = vmatmul.f32.vlgmr.msra.gmra.mxu3 %v1994_v17  ;;  %vm1978_vm7 = vmor %vm1976_vm6, %vm1977_vm5  ;;  %v5360_v16 = vld [vmem:[#allocation3 + $0x198] sm:$0xff]  ;;  %v5394_v14 = vld [vmem:[#allocation3 + $0x128] sm:$0xff] }
 0x3f5   :  { %v1906_v58 = vsel %vm1903_vm3, %v1905_v25, %v1901_v59  ;;  %v1939_v49 = vsel %vm1938_vm2, %v3630_v29, %v1935_v56  ;;  %v1973_v1 = vsub.f32 1.0, %v1972_v21  ;;  %2408 = vmatpush.msrb.mxu1 %v5354_v18  ;;  %v219_v29 = vadd.f32 %v6082_v7, %v6068_v54  ;;  %2431 = vmatpush.msrb.mxu2 %v5356_v3  ;;  %v5398_v25 = vld [vmem:[#allocation3 + $0x130] sm:$0xff]  ;;  %v5400_v56 = vld [vmem:[#allocation3 + $0x138] sm:$0xff]  ;;  %v5404_v21 = vld [vmem:[#allocation3 + $0x100] sm:$0xff] }
 0x3f6   :  { %v1944_v39 = vsel %vm1941_vm4, %v1943_v4, %v1939_v49  ;;  %v1989_v26 = vmul.f32 %v3636_v22, %v1906_v58  ;;  %2454 = vmatpush.msrb.mxu3 %v5360_v16  ;;  %v5406_v4 = vld [vmem:[#allocation3 + $0x108] sm:$0xff]  ;;  %v5408_v59 = vld [vmem:[#allocation3 + $0x110] sm:$0xff]  ;;  %v6084_v22 = vld [vmem:[#allocation36_spill] sm:$0xff] }
 0x3f7   :  { %v1987_v27 = vmul.f32 %v1944_v39, %v5254_v41  ;;  %v1974_v10 = vmul.f32 %v3634_v2, %v1973_v1  ;;  %v5316_v41 = vld [vmem:[#allocation3 + $0x1e0] sm:$0xff]  ;;  %2409 = vmatpush.msrb.mxu1 %v5370_v5  ;;  %2432 = vmatpush.msrb.mxu2 %v5372_v61  ;;  %v381_v58 = vadd.f32 %v6084_v22, %v6072_v23  ;;  %v5414_v49 = vld [vmem:[#allocation3 + $0x118] sm:$0xff]  ;;  %v5446_v7 = vld [vmem:[#allocation3 + $0xb0] sm:$0xff] }
 0x3f8   :  { %2382 = vmatpush.msrb.mxu0 %v5316_v41  ;;  %2455 = vmatpush.msrb.mxu3 %v5376_v62  ;;  %v5418_v39 = vld [vmem:[#allocation3 + $0xe0] sm:$0xff]  ;;  %6086 = vst [vmem:[#allocation12_spill] sm:$0xff] %v5446_v7  ;;  %v5474_v22 = vld [vmem:[#allocation3 + $0x68] sm:$0xff] }
 0x3f9   :  { %v5313_v46 = vadd.f32 %v1989_v26, %v1987_v27  ;;  %v1975_v24 = vadd.f32 %v3634_v2, %v1974_v10  ;;  %2410 = vmatpush.msrb.mxu1 %v5382_v33  ;;  %2433 = vmatpush.msrb.mxu2 %v5384_v60  ;;  %v5420_v26 = vld [vmem:[#allocation3 + $0xe8] sm:$0xff]  ;;  %v5422_v27 = vld [vmem:[#allocation3 + $0xf0] sm:$0xff]  ;;  %6093 = vst [vmem:[#allocation18_spill] sm:$0xff] %v5474_v22 }
 0x3fa   :  { %2383 = vmatpush.msrb.mxu0 %v5328_v44  ;;  %2456 = vmatpush.msrb.mxu3 %v5388_v36 }
 0x3fb   :  { %6081 = vst [vmem:[#allocation9_spill] sm:$0xff] %v5313_v46  ;;  %3637 = vtanh.f32 %v5313_v46  ;;  %v1979_v38 = vsel %vm1978_vm7, %v3634_v2, %v1975_v24  ;;  %v5392_v2 = vld [vmem:[#allocation3 + $0x120] sm:$0xff]  ;;  %2411 = vmatpush.msrb.mxu1 %v5394_v14  ;;  %2434 = vmatpush.msrb.mxu2 %v5398_v25  ;;  %v5426_v24 = vld [vmem:[#allocation3 + $0xf8] sm:$0xff] }
 0x3fc   :  { %v1984_v28 = vsel %vm1981_vm8, %v1983_v30, %v1979_v38  ;;  %2384 = vmatpush.msrb.mxu0 %v5340_v32  ;;  %2457 = vmatpush.msrb.mxu3 %v5400_v56  ;;  %v5434_v38 = vld [vmem:[#allocation3 + $0xd0] sm:$0xff] }
 0x3fd   :  { %2412 = vmatpush.msrb.mxu1 %v5406_v4  ;;  %2435 = vmatpush.msrb.mxu2 %v5408_v59 }
 0x3fe   :  { %2385 = vmatpush.msrb.mxu0 %v5352_v35  ;;  %2458 = vmatpush.msrb.mxu3 %v5414_v49 }
 0x3ff   :  { %2413 = vmatpush.msrb.mxu1 %v5420_v26  ;;  %2436 = vmatpush.msrb.mxu2 %v5422_v27 }
 0x400   :  { %2386 = vmatpush.msrb.mxu0 %v5368_v34  ;;  %2459 = vmatpush.msrb.mxu3 %v5426_v24 }
 0x401   :  { %v3638_v40 = vpop.eup %3637  ;;  %2414 = vmatpush.msrb.mxu1 %v5432_v37  ;;  %2437 = vmatpush.msrb.mxu2 %v5434_v38 }
 0x402   :  { %v1995_v48 = vmul.f32 %v3638_v40, %v1984_v28  ;;  %2387 = vmatpush.msrb.mxu0 %v5380_v47  ;;  %v5438_v40 = vld [vmem:[#allocation3 + $0xd8] sm:$0xff] }
 0x403   :  { %2460 = vmatpush.msrb.mxu3 %v5438_v40  ;;  %2438 = vmatpush.msrb.mxu2 %v5446_v7  ;;  %v5506_v7 = vld [vmem:[#allocation3 + $0x28] sm:$0xff] }
 0x404   :  { %v3450_v63 = vpack.c.bf16 %v1995_v48, %v1994_v17  ;;  %2095 = vmatmul.f32.gmra.mxu0 %v1995_v48  ;;  %2118 = vmatmul.f32.gmra.mxu1 %v1995_v48  ;;  %6103 = vst [vmem:[#allocation70_spill] sm:$0xff] %v5506_v7 }
 0x405   :  { %2141 = vmatmul.f32.gmra.mxu2 %v1995_v48  ;;  %2164 = vmatmul.f32.gmra.mxu3 %v1995_v48  ;;  %v5442_v48 = vld [vmem:[#allocation3 + $0xa0] sm:$0xff] }
 0x406   :  { %3451 = vst [vmem:[#allocation6 + $0x20] sm:$0xff] %v3450_v63   ;;  %2388 = vmatpush.msrb.mxu0 %v5392_v2  ;;  %v5444_v63 = vld [vmem:[#allocation3 + $0xa8] sm:$0xff] }
 0x407   :  { %6085 = vst [vmem:[#allocation10_spill] sm:$0xff] %v5444_v63  ;;  %2415 = vmatpush.msrb.mxu1 %v5444_v63  ;;  %v5508_v63 = vld [vmem:[#allocation3 + $0x30] sm:$0xff] }
 0x408   :  { %2389 = vmatpush.msrb.mxu0 %v5404_v21  ;;  %6104 = vst [vmem:[#allocation71_spill] sm:$0xff] %v5508_v63 }
 0x40a   :  { %2390 = vmatpush.msrb.mxu0 %v5418_v39 }
 0x40c   :  { %2391 = vmatpush.msrb.mxu0 %v5430_v45 }
 0x40e   :  { %2392 = vmatpush.msrb.mxu0 %v5442_v48 }
 0x470   :  { %v2093_v0 = vpop.f32.mrf.mxu0  ;;  %v2116_v50 = vpop.f32.mrf.mxu1 }
 0x471   :  { %v2168_v55 = vadd.f32 %v2093_v0, %v219_v29  ;;  %v2169_v19 = vadd.f32 %v2116_v50, %v273_v51  ;;  %v5452_v51 = vld [vmem:[#allocation3 + $0xb8] sm:$0xff]  ;;  %v5458_v50 = vld [vmem:[#allocation3 + $0x80] sm:$0xff] }
 0x472   :  { %6087 = vst [vmem:[#allocation13_spill] sm:$0xff] %v5452_v51  ;;  %2461 = vmatpush.msrb.mxu3 %v5452_v51  ;;  %2393 = vmatpush.msrb.mxu0 %v5458_v50  ;;  %v5498_v51 = vld [vmem:[#allocation3 + $0x58] sm:$0xff] }
 0x473   :  { %v3386_v8 = vmul.f32 -1.442695, %v2168_v55  ;;  %v3388_v17 = vmul.f32 -1.442695, %v2169_v19  ;;  %6088 = vst [vmem:[#allocation14_spill] sm:$0xff] %v5458_v50  ;;  %v5460_v55 = vld [vmem:[#allocation3 + $0x88] sm:$0xff] }
 0x474   :  { %6089 = vst [vmem:[#allocation11_spill] sm:$0xff] %v5460_v55  ;;  %v5462_v19 = vld [vmem:[#allocation3 + $0x90] sm:$0xff]  ;;  %2416 = vmatpush.msrb.mxu1 %v5460_v55  ;;  %v5488_v55 = vld [vmem:[#allocation3 + $0x40] sm:$0xff]  ;;  %v5490_v50 = vld [vmem:[#allocation3 + $0x48] sm:$0xff] }
 0x475   :  { %3639 = vpow2.f32 %v3386_v8  ;;  %6090 = vst [vmem:[#allocation16_spill] sm:$0xff] %v5462_v19  ;;  %v5467_v8 = vld [vmem:[#allocation3 + $0x98] sm:$0xff]  ;;  %2439 = vmatpush.msrb.mxu2 %v5462_v19 }
 0x476   :  { %3641 = vpow2.f32 %v3388_v17  ;;  %6091 = vst [vmem:[#allocation15_spill] sm:$0xff] %v5467_v8  ;;  %2462 = vmatpush.msrb.mxu3 %v5467_v8  ;;  %v5472_v17 = vld [vmem:[#allocation3 + $0x60] sm:$0xff]  ;;  %2417 = vmatpush.msrb.mxu1 %v5474_v22  ;;  %v5484_v19 = vld [vmem:[#allocation3 + $0x78] sm:$0xff] }
 0x477   :  { %v2162_v1 = vpop.f32.mrf.mxu3  ;;  %6092 = vst [vmem:[#allocation17_spill] sm:$0xff] %v5472_v17  ;;  %2394 = vmatpush.msrb.mxu0 %v5472_v17 }
 0x478   :  { %v2171_v10 = vadd.f32 %v2162_v1, %v381_v58  ;;  %v5476_v58 = vld [vmem:[#allocation3 + $0x70] sm:$0xff]  ;;  %v6095_v1 = vld [vmem:[#allocation37_spill] sm:$0xff]  ;;  %6097 = vst [vmem:[#allocation21_spill] sm:$0xff] %v5484_v19  ;;  %2463 = vmatpush.msrb.mxu3 %v5484_v19  ;;  %2418 = vmatpush.msrb.mxu1 %v5490_v50  ;;  %v5504_v19 = vld [vmem:[#allocation3 + $0x20] sm:$0xff] }
 0x479   :  { %6094 = vst [vmem:[#allocation20_spill] sm:$0xff] %v5476_v58  ;;  %2440 = vmatpush.msrb.mxu2 %v5476_v58  ;;  %2395 = vmatpush.msrb.mxu0 %v5488_v55 }
 0x47a   :  { %v3390_v30 = vmul.f32 -1.442695, %v2171_v10  ;;  %v221_v10 = vadd.f32 %v6095_v1, %v6068_v54  ;;  %6098 = vst [vmem:[#allocation22_spill] sm:$0xff] %v5490_v50  ;;  %v5492_v1 = vld [vmem:[#allocation3 + $0x50] sm:$0xff]  ;;  %2464 = vmatpush.msrb.mxu3 %v5498_v51  ;;  %2419 = vmatpush.msrb.mxu1 %v5506_v7  ;;  %v5533_v7 = vld [vmem:[#allocation3 + $0x18] sm:$0xff] }
 0x47b   :  { %v3640_v28 = vpop.eup %3639  ;;  %6099 = vst [vmem:[#allocation19_spill] sm:$0xff] %v5492_v1  ;;  %2441 = vmatpush.msrb.mxu2 %v5492_v1  ;;  %2396 = vmatpush.msrb.mxu0 %v5504_v19 }
 0x47c   :  { %v3642_v29 = vpop.eup %3641  ;;  %v5448_v6 = vadd.f32 1.0, %v3640_v28  ;;  %3643 = vpow2.f32 %v3390_v30  ;;  %v6096_v30 = vld [vmem:[#allocation38_spill] sm:$0xff]  ;;  %6101 = vst [vmem:[#allocation24_spill] sm:$0xff] %v5498_v51 }
 0x47d   :  { %v5454_v0 = vadd.f32 1.0, %v3642_v29  ;;  %v275_v28 = vadd.f32 %v6096_v30, %v6070_v43  ;;  %v2139_v29 = vpop.f32.mrf.mxu2  ;;  %v6100_v43 = vld [vmem:[#allocation35_spill] sm:$0xff]  ;;  %6102 = vst [vmem:[#allocation23_spill] sm:$0xff] %v5504_v19  ;;  %2442 = vmatpush.msrb.mxu2 %v5508_v63  ;;  %v6108_v63 = vld [vmem:[#allocation40_spill] sm:$0xff] }
 0x47e   :  { %3645 = vrcp.f32 %v5448_v6  ;;  %v327_v54 = vadd.f32 %v6100_v43, %v4384_v15  ;;  %v383_v19 = vadd.f32 %v6108_v63, %v6072_v23  ;;  %v2193_v1 = vand.u32 2147483647, %v5448_v6 }
 0x47f   :  { %3647 = vrcp.f32 %v5454_v0  ;;  %vm2189_vm11 = vweird.f32 %v5448_v6  ;;  %vm2227_vm12 = vweird.f32 %v5454_v0 }
 0x480   :  { %vm5558_vm13 = vcmp.eq.f32.partialorder %v2193_v1, 8.507059e+37 }
 0x481   :  { %v2096_v8 = vpop.f32.mrf.mxu0  ;;  %v2119_v46 = vpop.f32.mrf.mxu1 }
 0x482   :  { %v3644_v30 = vpop.eup %3643  ;;  %v2172_v17 = vadd.f32 %v2096_v8, %v221_v10  ;;  %v2173_v22 = vadd.f32 %v2119_v46, %v275_v28  ;;  %v2170_v46 = vadd.f32 %v2139_v29, %v327_v54  ;;  %v5514_v28 = vld [vmem:[#allocation3 + $0x38] sm:$0xff]  ;;  %v5523_v54 = vld [vmem:[#allocation3] sm:$0xff] }
 0x483   :  { %v5500_v58 = vadd.f32 1.0, %v3644_v30  ;;  %6105 = vst [vmem:[#allocation68_spill] sm:$0xff] %v5514_v28  ;;  %2465 = vmatpush.msrb.mxu3 %v5514_v28  ;;  %2397 = vmatpush.msrb.mxu0 %v5523_v54 }
 0x484   :  { %v5510_v43 = vpop.eup %3645  ;;  %v3387_v8 = vmul.f32 -1.442695, %v2172_v17  ;;  %v3389_v10 = vmul.f32 -1.442695, %v2173_v22  ;;  %6106 = vst [vmem:[#allocation72_spill] sm:$0xff] %v5523_v54  ;;  %v5525_v17 = vld [vmem:[#allocation3 + $0x8] sm:$0xff] }
 0x485   :  { %v5516_v30 = vpop.eup %3647  ;;  %v2185_v51 = vmul.f32 %v5510_v43, %v5448_v6  ;;  %3649 = vrcp.f32 %v5500_v58  ;;  %6107 = vst [vmem:[#allocation69_spill] sm:$0xff] %v5525_v17  ;;  %v5527_v22 = vld [vmem:[#allocation3 + $0x10] sm:$0xff]  ;;  %2420 = vmatpush.msrb.mxu1 %v5525_v17  ;;  %2466 = vmatpush.msrb.mxu3 %v5533_v7  ;;  %v2195_v54 = vand.u32 2147483648, %v5448_v6  ;;  %vm2190_vm9 = vweird.f32 %v5510_v43 }
 0x486   :  { %v2223_v29 = vmul.f32 %v5516_v30, %v5454_v0  ;;  %3651 = vpow2.f32 %v3387_v8  ;;  %2443 = vmatpush.msrb.mxu2 %v5527_v22  ;;  %v2233_v8 = vand.u32 2147483648, %v5454_v0  ;;  %2688 = vmatpush.msra.mxu0 %v5316_v41  ;;  %vm2228_vm10 = vweird.f32 %v5516_v30  ;;  %vm5566_vm14 = vmor %vm2189_vm11, %vm2190_vm9 }
 0x487   :  { %v2186_v28 = vsub.f32 1.0, %v2185_v51  ;;  %3653 = vpow2.f32 %v3389_v10  ;;  %2711 = vmatpush.msra.mxu1 %v5318_v9  ;;  %v2231_v51 = vand.u32 2147483647, %v5454_v0  ;;  %2757 = vmatpush.msra.mxu3 %v5324_v53  ;;  %vm2229_vm15 = vmor %vm2227_vm12, %vm2228_vm10  ;;  %vm2267_vm2 = vweird.f32 %v5500_v58 }
 0x488   :  { %v2224_v50 = vsub.f32 1.0, %v2223_v29  ;;  %3655 = vtanh.f32 %v2170_v46  ;;  %v2165_v17 = vpop.f32.mrf.mxu3  ;;  %2734 = vmatpush.msra.mxu2 %v5320_v13  ;;  %2689 = vmatpush.msra.mxu0 %v5328_v44 }
 0x489   :  { %v2187_v63 = vmul.f32 %v5510_v43, %v2186_v28  ;;  %v2175_v10 = vadd.f32 %v2165_v17, %v383_v19  ;;  %2712 = vmatpush.msra.mxu1 %v5330_v20  ;;  %2758 = vmatpush.msra.mxu3 %v5336_v12  ;;  %v2196_v20 = vor.u32 1.1754944e-38, %v2195_v54  ;;  %vm2232_vm0 = vcmp.eq.f32.partialorder %v2231_v51, 8.507059e+37 }
 0x48a   :  { %v2225_v29 = vmul.f32 %v5516_v30, %v2224_v50  ;;  %2735 = vmatpush.msra.mxu2 %v5332_v42  ;;  %v2234_v50 = vor.u32 1.1754944e-38, %v2233_v8  ;;  %2690 = vmatpush.msra.mxu0 %v5340_v32 }
 0x48b   :  { %v5554_v41 = vpop.eup %3649  ;;  %v2188_v9 = vadd.f32 %v5510_v43, %v2187_v63  ;;  %v3391_v53 = vmul.f32 -1.442695, %v2175_v10  ;;  %2713 = vmatpush.msra.mxu1 %v5342_v31  ;;  %2759 = vmatpush.msra.mxu3 %v5348_v52 }
 0x48c   :  { %v3652_v6 = vpop.eup %3651  ;;  %v2226_v19 = vadd.f32 %v5516_v30, %v2225_v29  ;;  %v2263_v1 = vmul.f32 %v5554_v41, %v5500_v58  ;;  %2736 = vmatpush.msra.mxu2 %v5344_v11  ;;  %2691 = vmatpush.msra.mxu0 %v5352_v35  ;;  %vm2268_vm1 = vweird.f32 %v5554_v41 }
 0x48d   :  { %v3654_v42 = vpop.eup %3653  ;;  %v2192_v12 = vsel %vm5566_vm14, %v5510_v43, %v2188_v9  ;;  %v5582_v46 = vadd.f32 1.0, %v3652_v6  ;;  %3657 = vpow2.f32 %v3391_v53  ;;  %2714 = vmatpush.msra.mxu1 %v5354_v18  ;;  %2760 = vmatpush.msra.mxu3 %v5360_v16  ;;  %v2142_v18 = vpop.f32.mrf.mxu2  ;;  %vm5625_vm3 = vmor %vm2267_vm2, %vm2268_vm1  ;;  %v6117_v53 = vld [vmem:[#allocation12_spill] sm:$0xff]  ;;  %v6118_v6 = vld [vmem:[#allocation13_spill] sm:$0xff] }
 0x48e   :  { %v3656_v32 = vpop.eup %3655  ;;  %v2197_v31 = vsel %vm5558_vm13, %v2196_v20, %v2192_v12  ;;  %v2230_v28 = vsel %vm2229_vm15, %v5516_v30, %v2226_v19  ;;  %v2264_v0 = vsub.f32 1.0, %v2263_v1  ;;  %v5589_v54 = vadd.f32 1.0, %v3654_v42  ;;  %2737 = vmatpush.msra.mxu2 %v5356_v3  ;;  %2692 = vmatpush.msra.mxu0 %v5368_v34  ;;  %v6113_v3 = vld [vmem:[#allocation39_spill] sm:$0xff]  ;;  %v6119_v20 = vld [vmem:[#allocation14_spill] sm:$0xff]  ;;  %v6121_v1 = vld [vmem:[#allocation9_spill] sm:$0xff] }
 0x48f   :  { %v2235_v43 = vsel %vm2232_vm0, %v2234_v50, %v2230_v28  ;;  %v2294_v17 = vmul.f32 %v3656_v32, %v2197_v31  ;;  %3659 = vrcp.f32 %v5582_v46  ;;  %2715 = vmatpush.msra.mxu1 %v5370_v5  ;;  %2761 = vmatpush.msra.mxu3 %v5376_v62  ;;  %v329_v16 = vadd.f32 %v6113_v3, %v4384_v15  ;;  %v6120_v19 = vld [vmem:[#allocation11_spill] sm:$0xff]  ;;  %v6124_v31 = vld [vmem:[#allocation17_spill] sm:$0xff]  ;;  %v6125_v28 = vld [vmem:[#allocation18_spill] sm:$0xff] }
 0x490   :  { %v2292_v11 = vmul.f32 %v2235_v43, %v5298_v57  ;;  %v2265_v52 = vmul.f32 %v5554_v41, %v2264_v0  ;;  %3661 = vrcp.f32 %v5589_v54  ;;  %2738 = vmatpush.msra.mxu2 %v5372_v61  ;;  %2693 = vmatpush.msra.mxu0 %v5380_v47  ;;  %v2273_v5 = vand.u32 2147483648, %v5500_v58  ;;  %v6123_v32 = vld [vmem:[#allocation15_spill] sm:$0xff]  ;;  %v6127_v43 = vld [vmem:[#allocation21_spill] sm:$0xff] }
 0x491   :  { %2716 = vmatpush.msra.mxu1 %v5382_v33  ;;  %2762 = vmatpush.msra.mxu3 %v5388_v36  ;;  %v2271_v62 = vand.u32 2147483647, %v5500_v58  ;;  %v2174_v33 = vadd.f32 %v2142_v18, %v329_v16  ;;  %v2210_v58 = vand.u32 2147483648, %v5582_v46  ;;  %vm2204_vm7 = vweird.f32 %v5582_v46  ;;  %v6129_v18 = vld [vmem:[#allocation19_spill] sm:$0xff] }
 0x492   :  { %v5603_v35 = vadd.f32 %v2294_v17, %v2292_v11  ;;  %v2266_v34 = vadd.f32 %v5554_v41, %v2265_v52  ;;  %2739 = vmatpush.msra.mxu2 %v5384_v60  ;;  %2694 = vmatpush.msra.mxu0 %v5392_v2  ;;  %vm2242_vm8 = vweird.f32 %v5589_v54  ;;  %v6128_v11 = vld [vmem:[#allocation22_spill] sm:$0xff]  ;;  %v6131_v16 = vld [vmem:[#allocation23_spill] sm:$0xff] }
 0x493   :  { %v3658_v57 = vpop.eup %3657  ;;  %2717 = vmatpush.msra.mxu1 %v5394_v14  ;;  %2763 = vmatpush.msra.mxu3 %v5400_v56  ;;  %vm2272_vm4 = vcmp.eq.f32.partialorder %v2271_v62, 8.507059e+37 }
 0x494   :  { %3663 = vtanh.f32 %v5603_v35  ;;  %v5615_v61 = vadd.f32 1.0, %v3658_v57  ;;  %2740 = vmatpush.msra.mxu2 %v5398_v25  ;;  %2695 = vmatpush.msra.mxu0 %v5404_v21  ;;  %v2270_v14 = vsel %vm5625_vm3, %v5554_v41, %v2266_v34  ;;  %v2274_v25 = vor.u32 1.1754944e-38, %v2273_v5  ;;  %v6130_v57 = vld [vmem:[#allocation24_spill] sm:$0xff]  ;;  %v6132_v34 = vld [vmem:[#allocation70_spill] sm:$0xff] }
 0x495   :  { %v3660_v47 = vpop.eup %3659  ;;  %2718 = vmatpush.msra.mxu1 %v5406_v4  ;;  %2764 = vmatpush.msra.mxu3 %v5414_v49  ;;  %v2248_v4 = vand.u32 2147483648, %v5589_v54  ;;  %v2208_v49 = vand.u32 2147483647, %v5582_v46  ;;  %v6134_v5 = vld [vmem:[#allocation68_spill] sm:$0xff] }
 0x496   :  { %v3662_v60 = vpop.eup %3661  ;;  %v2200_v30 = vmul.f32 %v3660_v47, %v5582_v46  ;;  %3665 = vrcp.f32 %v5615_v61  ;;  %2741 = vmatpush.msra.mxu2 %v5408_v59  ;;  %2696 = vmatpush.msra.mxu0 %v5418_v39  ;;  %vm2205_vm5 = vweird.f32 %v3660_v47  ;;  %v2275_v63 = vsel %vm2272_vm4, %v2274_v25, %v2270_v14  ;;  %v6122_v46 = vld [vmem:[#allocation16_spill] sm:$0xff]  ;;  %v6137_v14 = vld [vmem:[#allocation62_spill] sm:$0xff]  ;;  %v6138_v25 = vld [vmem:[#allocation41_spill] sm:$0xff] }
 0x497   :  { %v2238_v2 = vmul.f32 %v3662_v60, %v5589_v54  ;;  %2719 = vmatpush.msra.mxu1 %v5420_v26  ;;  %3667 = vtanh.f32 %v2174_v33  ;;  %2765 = vmatpush.msra.mxu3 %v5426_v24  ;;  %vm2243_vm6 = vweird.f32 %v3662_v60  ;;  %v2246_v26 = vand.u32 2147483647, %v5589_v54  ;;  %vm2206_vm9 = vmor %vm2204_vm7, %vm2205_vm5  ;;  %v6126_v54 = vld [vmem:[#allocation20_spill] sm:$0xff]  ;;  %v6136_v33 = vld [vmem:[#allocation69_spill] sm:$0xff] }
 0x498   :  { %v2201_v56 = vsub.f32 1.0, %v2200_v30  ;;  %2742 = vmatpush.msra.mxu2 %v5422_v27  ;;  %2697 = vmatpush.msra.mxu0 %v5430_v45  ;;  %v6116_v45 = vld [vmem:[#allocation10_spill] sm:$0xff]  ;;  %vm2244_vm10 = vmor %vm2242_vm8, %vm2243_vm6  ;;  %vm2209_vm11 = vcmp.eq.f32.partialorder %v2208_v49, 8.507059e+37  ;;  %v2288_v52 = vand.u32 2147483648, %v5615_v61  ;;  %vm2282_vm14 = vweird.f32 %v5615_v61 }
 0x499   :  { %v2239_v21 = vsub.f32 1.0, %v2238_v2  ;;  %2720 = vmatpush.msra.mxu1 %v5432_v37  ;;  %2766 = vmatpush.msra.mxu3 %v5438_v40  ;;  %v2211_v37 = vor.u32 1.1754944e-38, %v2210_v58  ;;  %v2249_v40 = vor.u32 1.1754944e-38, %v2248_v4  ;;  %vm2247_vm12 = vcmp.eq.f32.partialorder %v2246_v26, 8.507059e+37  ;;  %v6140_v4 = vld [vmem:[#allocation42_spill] sm:$0xff] }
 0x49a   :  { %v3664_v59 = vpop.eup %3663  ;;  %v2202_v8 = vmul.f32 %v3660_v47, %v2201_v56  ;;  %2743 = vmatpush.msra.mxu2 %v5434_v38  ;;  %2698 = vmatpush.msra.mxu0 %v5442_v48  ;;  %v2286_v3 = vand.u32 2147483647, %v5615_v61  ;;  %v224_v56 = vadd.f32 %v6138_v25, %v6137_v14 }
 0x49b   :  { %v2240_v39 = vmul.f32 %v3662_v60, %v2239_v21  ;;  %v5649_v51 = vmul.f32 %v3664_v59, %v2275_v63  ;;  %2721 = vmatpush.msra.mxu1 %v6116_v45  ;;  %2767 = vmatpush.msra.mxu3 %v6118_v6  ;;  %v6139_v21 = vld [vmem:[#allocation63_spill] sm:$0xff] }
 0x49c   :  { %v5653_v27 = vpop.eup %3665  ;;  %v2203_v24 = vadd.f32 %v3660_v47, %v2202_v8  ;;  %2744 = vmatpush.msra.mxu2 %v6117_v53  ;;  %2699 = vmatpush.msra.mxu0 %v6119_v20  ;;  %vm2287_vm0 = vcmp.eq.f32.partialorder %v2286_v3, 8.507059e+37  ;;  %v278_v58 = vadd.f32 %v6140_v4, %v6139_v21 }
 0x49d   :  { %v2241_v10 = vadd.f32 %v3662_v60, %v2240_v39  ;;  %v2278_v38 = vmul.f32 %v5653_v27, %v5615_v61  ;;  %2398 = vmatmul.f32.vlgmr.msrb.gmra.mxu0 %v5649_v51  ;;  %2421 = vmatmul.f32.vlgmr.msrb.gmra.mxu1 %v5649_v51  ;;  %v3668_v48 = vpop.eup %3667  ;;  %vm2283_vm13 = vweird.f32 %v5653_v27  ;;  %v6141_v39 = vld [vmem:[#allocation44_spill] sm:$0xff] }
 0x49e   :  { %v2207_v29 = vsel %vm2206_vm9, %v3660_v47, %v2203_v24  ;;  %2444 = vmatmul.f32.vlgmr.msrb.gmra.mxu2 %v5649_v51  ;;  %2467 = vmatmul.f32.vlgmr.msrb.gmra.mxu3 %v5649_v51  ;;  %vm2284_vm15 = vmor %vm2282_vm14, %vm2283_vm13  ;;  %v6135_v47 = vld [vmem:[#allocation72_spill] sm:$0xff]  ;;  %v386_v26 = vadd.f32 %v6141_v39, %v6072_v23 }
 0x49f   :  { %v2212_v41 = vsel %vm2209_vm11, %v2211_v37, %v2207_v29  ;;  %v2245_v9 = vsel %vm2244_vm10, %v3662_v60, %v2241_v10  ;;  %v2279_v13 = vsub.f32 1.0, %v2278_v38  ;;  %2722 = vmatpush.msra.mxu1 %v6120_v19  ;;  %2745 = vmatpush.msra.mxu2 %v6122_v46  ;;  %v2289_v60 = vor.u32 1.1754944e-38, %v2288_v52 }
 0x4a0   :  { %v2250_v50 = vsel %vm2247_vm12, %v2249_v40, %v2245_v9  ;;  %v2295_v44 = vmul.f32 %v3668_v48, %v2212_v41  ;;  %2768 = vmatpush.msra.mxu3 %v6123_v32  ;;  %2700 = vmatpush.msra.mxu0 %v6124_v31  ;;  %v6142_v40 = vld [vmem:[#allocation45_spill] sm:$0xff]  ;;  %v6143_v48 = vld [vmem:[#allocation46_spill] sm:$0xff] }
 0x4a1   :  { %v2293_v42 = vmul.f32 %v2250_v50, %v6121_v1  ;;  %v2280_v12 = vmul.f32 %v5653_v27, %v2279_v13  ;;  %2723 = vmatpush.msra.mxu1 %v6125_v28  ;;  %2746 = vmatpush.msra.mxu2 %v6126_v54  ;;  %v226_v29 = vadd.f32 %v6142_v40, %v6137_v14  ;;  %v6144_v50 = vld [vmem:[#allocation43_spill] sm:$0xff] }
 0x4a2   :  { %2769 = vmatpush.msra.mxu3 %v6127_v43  ;;  %2701 = vmatpush.msra.mxu0 %v5488_v55  ;;  %v6133_v55 = vld [vmem:[#allocation71_spill] sm:$0xff]  ;;  %v280_v41 = vadd.f32 %v6143_v48, %v6139_v21  ;;  %v6145_v43 = vld [vmem:[#allocation48_spill] sm:$0xff] }
 0x4a3   :  { %v5677_v0 = vadd.f32 %v2295_v44, %v2293_v42  ;;  %v2281_v17 = vadd.f32 %v5653_v27, %v2280_v12  ;;  %2724 = vmatpush.msra.mxu1 %v6128_v11  ;;  %2747 = vmatpush.msra.mxu2 %v6129_v18  ;;  %v332_v44 = vadd.f32 %v6144_v50, %v4384_v15 }
 0x4a4   :  { %2770 = vmatpush.msra.mxu3 %v6130_v57  ;;  %2702 = vmatpush.msra.mxu0 %v6131_v16 }
 0x4a5   :  { %3669 = vtanh.f32 %v5677_v0  ;;  %2725 = vmatpush.msra.mxu1 %v6132_v34  ;;  %2748 = vmatpush.msra.mxu2 %v6133_v55  ;;  %v2285_v62 = vsel %vm2284_vm15, %v5653_v27, %v2281_v17  ;;  %v388_v17 = vadd.f32 %v6145_v43, %v6072_v23 }
 0x4a6   :  { %2771 = vmatpush.msra.mxu3 %v6134_v5  ;;  %2703 = vmatpush.msra.mxu0 %v6135_v47  ;;  %v2290_v36 = vsel %vm2287_vm0, %v2289_v60, %v2285_v62 }
 0x4a7   :  { %2726 = vmatpush.msra.mxu1 %v6136_v33  ;;  %2749 = vmatpush.msra.mxu2 %v5527_v22 }
 0x4a8   :  { %2772 = vmatpush.msra.mxu3 %v5533_v7 }
 0x4ab   :  { %v3670_v61 = vpop.eup %3669 }
 0x4ac   :  { %v2301_v30 = vmul.f32 %v3670_v61, %v2290_v36 }
 0x4ae   :  { %v3455_v2 = vpack.c.bf16 %v2301_v30, %v5649_v51  ;;  %2401 = vmatmul.f32.gmra.mxu0 %v2301_v30  ;;  %2424 = vmatmul.f32.gmra.mxu1 %v2301_v30 }
 0x4af   :  { %2447 = vmatmul.f32.gmra.mxu2 %v2301_v30  ;;  %2470 = vmatmul.f32.gmra.mxu3 %v2301_v30 }
 0x4b0   :  { %3456 = vst [vmem:[#allocation6 + $0x28] sm:$0xff] %v3455_v2  }
 0x51a   :  { %v2399_v22 = vpop.f32.mrf.mxu0  ;;  %v2422_v59 = vpop.f32.mrf.mxu1 }
 0x51b   :  { %v2474_v7 = vadd.f32 %v2399_v22, %v224_v56  ;;  %v2475_v8 = vadd.f32 %v2422_v59, %v278_v58 }
 0x51d   :  { %v3392_v49 = vmul.f32 -1.442695, %v2474_v7  ;;  %v3394_v63 = vmul.f32 -1.442695, %v2475_v8 }
 0x51f   :  { %3671 = vpow2.f32 %v3392_v49 }
 0x520   :  { %3673 = vpow2.f32 %v3394_v63 }
 0x521   :  { %v2468_v51 = vpop.f32.mrf.mxu3  ;;  %v2445_v9 = vpop.f32.mrf.mxu2 }
 0x522   :  { %v2477_v27 = vadd.f32 %v2468_v51, %v386_v26  ;;  %v2476_v12 = vadd.f32 %v2445_v9, %v332_v44 }
 0x524   :  { %v3396_v24 = vmul.f32 -1.442695, %v2477_v27 }
 0x525   :  { %v3672_v45 = vpop.eup %3671 }
 0x526   :  { %v3674_v37 = vpop.eup %3673  ;;  %v2488_v10 = vadd.f32 1.0, %v3672_v45  ;;  %3675 = vpow2.f32 %v3396_v24 }
 0x527   :  { %v2526_v38 = vadd.f32 1.0, %v3674_v37  ;;  %v6146_v37 = vld [vmem:[#allocation47_spill] sm:$0xff] }
 0x528   :  { %3677 = vrcp.f32 %v2488_v10  ;;  %v2499_v52 = vand.u32 2147483647, %v2488_v10  ;;  %v2501_v3 = vand.u32 2147483648, %v2488_v10  ;;  %vm2495_vm3 = vweird.f32 %v2488_v10 }
 0x529   :  { %3679 = vrcp.f32 %v2526_v38  ;;  %v2539_v57 = vand.u32 2147483648, %v2526_v38  ;;  %v2537_v55 = vand.u32 2147483647, %v2526_v38  ;;  %vm2533_vm4 = vweird.f32 %v2526_v38 }
 0x52a   :  { %vm2500_vm5 = vcmp.eq.f32.partialorder %v2499_v52, 8.507059e+37  ;;  %v2502_v30 = vor.u32 1.1754944e-38, %v2501_v3 }
 0x52b   :  { %v2402_v13 = vpop.f32.mrf.mxu0  ;;  %v2425_v53 = vpop.f32.mrf.mxu1  ;;  %v2540_v36 = vor.u32 1.1754944e-38, %v2539_v57  ;;  %vm2538_vm8 = vcmp.eq.f32.partialorder %v2537_v55, 8.507059e+37 }
 0x52c   :  { %v3676_v6 = vpop.eup %3675  ;;  %v2478_v20 = vadd.f32 %v2402_v13, %v226_v29  ;;  %v2479_v19 = vadd.f32 %v2425_v53, %v280_v41  ;;  %v6150_v13 = vld [vmem:[#allocation50_spill] sm:$0xff] }
 0x52d   :  { %v5713_v1 = vadd.f32 1.0, %v3676_v6 }
 0x52e   :  { %v3678_v42 = vpop.eup %3677  ;;  %v3393_v46 = vmul.f32 -1.442695, %v2478_v20  ;;  %v3395_v32 = vmul.f32 -1.442695, %v2479_v19 }
 0x52f   :  { %v3680_v31 = vpop.eup %3679  ;;  %v2491_v28 = vmul.f32 %v3678_v42, %v2488_v10  ;;  %3681 = vrcp.f32 %v5713_v1  ;;  %vm2496_vm1 = vweird.f32 %v3678_v42  ;;  %v334_v10 = vadd.f32 %v6146_v37, %v4384_v15  ;;  %v2983_v37 = vld [vmem:[#allocation3 + $0x1a8] sm:$0xff] }
 0x530   :  { %v2529_v54 = vmul.f32 %v3680_v31, %v2526_v38  ;;  %3683 = vpow2.f32 %v3393_v46  ;;  %vm2534_vm2 = vweird.f32 %v3680_v31  ;;  %vm2497_vm6 = vmor %vm2495_vm3, %vm2496_vm1  ;;  %v2579_v40 = vand.u32 2147483648, %v5713_v1 }
 0x531   :  { %v2492_v11 = vsub.f32 1.0, %v2491_v28  ;;  %3685 = vpow2.f32 %v3395_v32  ;;  %vm2535_vm7 = vmor %vm2533_vm4, %vm2534_vm2  ;;  %v2577_v48 = vand.u32 2147483647, %v5713_v1  ;;  %vm2573_vm10 = vweird.f32 %v5713_v1 }
 0x532   :  { %v2530_v18 = vsub.f32 1.0, %v2529_v54  ;;  %3687 = vtanh.f32 %v2476_v12  ;;  %v2471_v16 = vpop.f32.mrf.mxu3  ;;  %v2448_v24 = vpop.f32.mrf.mxu2  ;;  %v2580_v44 = vor.u32 1.1754944e-38, %v2579_v40  ;;  %v2978_v40 = vld [vmem:[#allocation3 + $0x180] sm:$0xff] }
 0x533   :  { %v2493_v34 = vmul.f32 %v3678_v42, %v2492_v11  ;;  %v2481_v5 = vadd.f32 %v2471_v16, %v388_v17  ;;  %vm2578_vm12 = vcmp.eq.f32.partialorder %v2577_v48, 8.507059e+37  ;;  %v2980_v48 = vld [vmem:[#allocation3 + $0x190] sm:$0xff] }
 0x534   :  { %v2531_v62 = vmul.f32 %v3680_v31, %v2530_v18 }
 0x535   :  { %v3682_v47 = vpop.eup %3681  ;;  %v2494_v33 = vadd.f32 %v3678_v42, %v2493_v34  ;;  %v3397_v60 = vmul.f32 -1.442695, %v2481_v5 }
 0x536   :  { %v3684_v61 = vpop.eup %3683  ;;  %v2532_v2 = vadd.f32 %v3680_v31, %v2531_v62  ;;  %v2569_v25 = vmul.f32 %v3682_v47, %v5713_v1  ;;  %vm2574_vm9 = vweird.f32 %v3682_v47 }
 0x537   :  { %v3686_v56 = vpop.eup %3685  ;;  %v2498_v4 = vsel %vm2497_vm6, %v3678_v42, %v2494_v33  ;;  %v2489_v58 = vadd.f32 1.0, %v3684_v61  ;;  %3689 = vpow2.f32 %v3397_v60  ;;  %vm5728_vm11 = vmor %vm2573_vm10, %vm2574_vm9 }
 0x538   :  { %v3688_v22 = vpop.eup %3687  ;;  %v2503_v59 = vsel %vm2500_vm5, %v2502_v30, %v2498_v4  ;;  %v2536_v7 = vsel %vm2535_vm7, %v3680_v31, %v2532_v2  ;;  %v2570_v8 = vsub.f32 1.0, %v2569_v25  ;;  %v2527_v49 = vadd.f32 1.0, %v3686_v56 }
 0x539   :  { %v2541_v63 = vsel %vm2538_vm8, %v2540_v36, %v2536_v7  ;;  %v2600_v39 = vmul.f32 %v3688_v22, %v2503_v59  ;;  %3691 = vrcp.f32 %v2489_v58  ;;  %v2516_v12 = vand.u32 2147483648, %v2489_v58 }
 0x53a   :  { %v2598_v26 = vmul.f32 %v2541_v63, %v5603_v35  ;;  %v2571_v51 = vmul.f32 %v3682_v47, %v2570_v8  ;;  %3693 = vrcp.f32 %v2527_v49  ;;  %v2480_v35 = vadd.f32 %v2448_v24, %v334_v10  ;;  %v2991_v8 = vld [vmem:[#allocation3 + $0x1e8] sm:$0xff]  ;;  %v2993_v63 = vld [vmem:[#allocation3 + $0x1f8] sm:$0xff]  ;;  %v2984_v10 = vld [vmem:[#allocation3 + $0x1b0] sm:$0xff] }
 0x53b   :  { %v2554_v42 = vand.u32 2147483648, %v2527_v49  ;;  %v2514_v32 = vand.u32 2147483647, %v2489_v58  ;;  %v2552_v54 = vand.u32 2147483647, %v2527_v49  ;;  %vm2510_vm15 = vweird.f32 %v2489_v58  ;;  %3017 = vmatpush.msrb.mxu1 %v2991_v8  ;;  %3063 = vmatpush.msrb.mxu3 %v2993_v63  ;;  %v2989_v24 = vld [vmem:[#allocation3 + $0x1d8] sm:$0xff] }
 0x53c   :  { %v5720_v27 = vadd.f32 %v2600_v39, %v2598_v26  ;;  %v2572_v38 = vadd.f32 %v3682_v47, %v2571_v51  ;;  %vm2548_vm0 = vweird.f32 %v2527_v49  ;;  %v2517_v52 = vor.u32 1.1754944e-38, %v2516_v12  ;;  %v2986_v39 = vld [vmem:[#allocation3 + $0x1c0] sm:$0xff]  ;;  %v2987_v26 = vld [vmem:[#allocation3 + $0x1c8] sm:$0xff]  ;;  %v2988_v51 = vld [vmem:[#allocation3 + $0x1d0] sm:$0xff] }
 0x53d   :  { %v3690_v45 = vpop.eup %3689  ;;  %v2555_v3 = vor.u32 1.1754944e-38, %v2554_v42  ;;  %vm2515_vm3 = vcmp.eq.f32.partialorder %v2514_v32, 8.507059e+37  ;;  %vm2553_vm4 = vcmp.eq.f32.partialorder %v2552_v54, 8.507059e+37  ;;  %3018 = vmatpush.msrb.mxu1 %v2987_v26  ;;  %3064 = vmatpush.msrb.mxu3 %v2989_v24  ;;  %v2977_v42 = vld [vmem:[#allocation3 + $0x178] sm:$0xff]  ;;  %v2971_v32 = vld [vmem:[#allocation3 + $0x148] sm:$0xff]  ;;  %v2946_v26 = vld [vmem:[#allocation3 + $0x80] sm:$0xff] }
 0x53e   :  { %3695 = vtanh.f32 %v5720_v27  ;;  %v2567_v29 = vadd.f32 1.0, %v3690_v45  ;;  %v2576_v50 = vsel %vm5728_vm11, %v3682_v47, %v2572_v38  ;;  %v2982_v45 = vld [vmem:[#allocation3 + $0x1a0] sm:$0xff]  ;;  %v2985_v38 = vld [vmem:[#allocation3 + $0x1b8] sm:$0xff]  ;;  %v2948_v24 = vld [vmem:[#allocation3 + $0x90] sm:$0xff] }
 0x53f   :  { %v3692_v41 = vpop.eup %3691  ;;  %v2581_v31 = vsel %vm2578_vm12, %v2580_v44, %v2576_v50  ;;  %3019 = vmatpush.msrb.mxu1 %v2983_v37  ;;  %3065 = vmatpush.msrb.mxu3 %v2985_v38  ;;  %v2975_v50 = vld [vmem:[#allocation3 + $0x168] sm:$0xff]  ;;  %v2976_v44 = vld [vmem:[#allocation3 + $0x170] sm:$0xff]  ;;  %v2953_v63 = vld [vmem:[#allocation3 + $0xb8] sm:$0xff] }
 0x540   :  { %v3694_v9 = vpop.eup %3693  ;;  %v2506_v53 = vmul.f32 %v3692_v41, %v2489_v58  ;;  %3697 = vrcp.f32 %v2567_v29  ;;  %vm2511_vm13 = vweird.f32 %v3692_v41  ;;  %v2594_v2 = vand.u32 2147483648, %v2567_v29  ;;  %v2942_v37 = vld [vmem:[#allocation3 + $0x60] sm:$0xff]  ;;  %v2944_v38 = vld [vmem:[#allocation3 + $0x70] sm:$0xff] }
 0x541   :  { %v2544_v6 = vmul.f32 %v3694_v9, %v2527_v49  ;;  %3699 = vtanh.f32 %v2480_v35  ;;  %vm2549_vm14 = vweird.f32 %v3694_v9  ;;  %vm2512_vm1 = vmor %vm2510_vm15, %vm2511_vm13  ;;  %vm2588_vm6 = vweird.f32 %v2567_v29  ;;  %v2992_v49 = vld [vmem:[#allocation3 + $0x1f0] sm:$0xff]  ;;  %v6149_v35 = vld [vmem:[#allocation49_spill] sm:$0xff] }
 0x542   :  { %v2507_v20 = vsub.f32 1.0, %v2506_v53  ;;  %vm2550_vm2 = vmor %vm2548_vm0, %vm2549_vm14  ;;  %v2592_v25 = vand.u32 2147483647, %v2567_v29  ;;  %v2595_v4 = vor.u32 1.1754944e-38, %v2594_v2  ;;  %3040 = vmatpush.msrb.mxu2 %v2992_v49  ;;  %v283_v53 = vadd.f32 %v6150_v13, %v6139_v21  ;;  %v2954_v2 = vld [vmem:[#allocation3 + $0xc0] sm:$0xff] }
 0x543   :  { %v2545_v19 = vsub.f32 1.0, %v2544_v6  ;;  %v2974_v6 = vld [vmem:[#allocation3 + $0x160] sm:$0xff] }
 0x544   :  { %v3696_v1 = vpop.eup %3695  ;;  %v2508_v46 = vmul.f32 %v3692_v41, %v2507_v20  ;;  %vm2593_vm8 = vcmp.eq.f32.partialorder %v2592_v25, 8.507059e+37  ;;  %3041 = vmatpush.msrb.mxu2 %v2988_v51  ;;  %v2955_v25 = vld [vmem:[#allocation3 + $0xc8] sm:$0xff] }
 0x545   :  { %v2546_v28 = vmul.f32 %v3694_v9, %v2545_v19  ;;  %v2606_v43 = vmul.f32 %v3696_v1, %v2581_v31  ;;  %v2972_v31 = vld [vmem:[#allocation3 + $0x150] sm:$0xff]  ;;  %v2947_v51 = vld [vmem:[#allocation3 + $0x88] sm:$0xff] }
 0x546   :  { %v3698_v17 = vpop.eup %3697  ;;  %v2509_v11 = vadd.f32 %v3692_v41, %v2508_v46  ;;  %3042 = vmatpush.msrb.mxu2 %v2984_v10  ;;  %v2970_v46 = vld [vmem:[#allocation3 + $0x140] sm:$0xff]  ;;  %v2943_v10 = vld [vmem:[#allocation3 + $0x68] sm:$0xff] }
 0x547   :  { %v2547_v18 = vadd.f32 %v3694_v9, %v2546_v28  ;;  %v2584_v57 = vmul.f32 %v3698_v17, %v2567_v29  ;;  %2704 = vmatmul.f32.vlgmr.msra.gmra.mxu0 %v2606_v43  ;;  %2727 = vmatmul.f32.vlgmr.msra.gmra.mxu1 %v2606_v43  ;;  %v3700_v34 = vpop.eup %3699  ;;  %vm2589_vm5 = vweird.f32 %v3698_v17  ;;  %v2979_v29 = vld [vmem:[#allocation3 + $0x188] sm:$0xff]  ;;  %v2973_v28 = vld [vmem:[#allocation3 + $0x158] sm:$0xff] }
 0x548   :  { %v2513_v16 = vsel %vm2512_vm1, %v3692_v41, %v2509_v11  ;;  %2750 = vmatmul.f32.vlgmr.msra.gmra.mxu2 %v2606_v43  ;;  %2773 = vmatmul.f32.vlgmr.msra.gmra.mxu3 %v2606_v43  ;;  %vm2590_vm7 = vmor %vm2588_vm6, %vm2589_vm5  ;;  %v2981_v41 = vld [vmem:[#allocation3 + $0x198] sm:$0xff]  ;;  %v2967_v11 = vld [vmem:[#allocation3 + $0x128] sm:$0xff] }
 0x549   :  { %v2518_v55 = vsel %vm2515_vm3, %v2517_v52, %v2513_v16  ;;  %v2551_v5 = vsel %vm2550_vm2, %v3694_v9, %v2547_v18  ;;  %v2585_v62 = vsub.f32 1.0, %v2584_v57  ;;  %3020 = vmatpush.msrb.mxu1 %v2979_v29  ;;  %v229_v9 = vadd.f32 %v6149_v35, %v6137_v14  ;;  %3043 = vmatpush.msrb.mxu2 %v2980_v48  ;;  %v2968_v52 = vld [vmem:[#allocation3 + $0x130] sm:$0xff]  ;;  %v2969_v18 = vld [vmem:[#allocation3 + $0x138] sm:$0xff]  ;;  %v2962_v57 = vld [vmem:[#allocation3 + $0x100] sm:$0xff] }
 0x54a   :  { %v2556_v47 = vsel %vm2553_vm4, %v2555_v3, %v2551_v5  ;;  %v2601_v33 = vmul.f32 %v3700_v34, %v2518_v55  ;;  %3066 = vmatpush.msrb.mxu3 %v2981_v41  ;;  %v2963_v3 = vld [vmem:[#allocation3 + $0x108] sm:$0xff]  ;;  %v2964_v16 = vld [vmem:[#allocation3 + $0x110] sm:$0xff]  ;;  %v6151_v34 = vld [vmem:[#allocation52_spill] sm:$0xff] }
 0x54b   :  { %v2599_v60 = vmul.f32 %v2556_v47, %v5677_v0  ;;  %v2586_v61 = vmul.f32 %v3698_v17, %v2585_v62  ;;  %v2990_v0 = vld [vmem:[#allocation3 + $0x1e0] sm:$0xff]  ;;  %3021 = vmatpush.msrb.mxu1 %v2975_v50  ;;  %3044 = vmatpush.msrb.mxu2 %v2976_v44  ;;  %v391_v55 = vadd.f32 %v6151_v34, %v6072_v23  ;;  %v2965_v5 = vld [vmem:[#allocation3 + $0x118] sm:$0xff]  ;;  %v6153_v48 = vld [vmem:[#allocation54_spill] sm:$0xff] }
 0x54c   :  { %2994 = vmatpush.msrb.mxu0 %v2990_v0  ;;  %3067 = vmatpush.msrb.mxu3 %v2977_v42  ;;  %v2958_v47 = vld [vmem:[#allocation3 + $0xe0] sm:$0xff]  ;;  %v2952_v0 = vld [vmem:[#allocation3 + $0xb0] sm:$0xff]  ;;  %v285_v41 = vadd.f32 %v6153_v48, %v6139_v21  ;;  %v2939_v50 = vld [vmem:[#allocation3 + $0x48] sm:$0xff] }
 0x54d   :  { %v5735_v36 = vadd.f32 %v2601_v33, %v2599_v60  ;;  %v2587_v30 = vadd.f32 %v3698_v17, %v2586_v61  ;;  %3022 = vmatpush.msrb.mxu1 %v2971_v32  ;;  %3045 = vmatpush.msrb.mxu2 %v2972_v31  ;;  %v2959_v33 = vld [vmem:[#allocation3 + $0xe8] sm:$0xff]  ;;  %v2960_v60 = vld [vmem:[#allocation3 + $0xf0] sm:$0xff]  ;;  %v2934_v31 = vld [vmem:[#allocation3 + $0x20] sm:$0xff] }
 0x54e   :  { %2995 = vmatpush.msrb.mxu0 %v2986_v39  ;;  %3068 = vmatpush.msrb.mxu3 %v2973_v28  ;;  %v2940_v44 = vld [vmem:[#allocation3 + $0x50] sm:$0xff]  ;;  %v2935_v28 = vld [vmem:[#allocation3 + $0x28] sm:$0xff] }
 0x54f   :  { %3701 = vtanh.f32 %v5735_v36  ;;  %v2591_v56 = vsel %vm2590_vm7, %v3698_v17, %v2587_v30  ;;  %v2966_v17 = vld [vmem:[#allocation3 + $0x120] sm:$0xff]  ;;  %3023 = vmatpush.msrb.mxu1 %v2967_v11  ;;  %3046 = vmatpush.msrb.mxu2 %v2968_v52  ;;  %v2961_v30 = vld [vmem:[#allocation3 + $0xf8] sm:$0xff]  ;;  %v2931_v34 = vld [vmem:[#allocation3 + $0x8] sm:$0xff] }
 0x550   :  { %v2596_v22 = vsel %vm2593_vm8, %v2595_v4, %v2591_v56  ;;  %2996 = vmatpush.msrb.mxu0 %v2982_v45  ;;  %3069 = vmatpush.msrb.mxu3 %v2969_v18  ;;  %v2956_v56 = vld [vmem:[#allocation3 + $0xd0] sm:$0xff]  ;;  %v2949_v45 = vld [vmem:[#allocation3 + $0x98] sm:$0xff] }
 0x551   :  { %3024 = vmatpush.msrb.mxu1 %v2963_v3  ;;  %3047 = vmatpush.msrb.mxu2 %v2964_v16  ;;  %v2937_v18 = vld [vmem:[#allocation3 + $0x38] sm:$0xff]  ;;  %v2930_v16 = vld [vmem:[#allocation3] sm:$0xff] }
 0x552   :  { %2997 = vmatpush.msrb.mxu0 %v2978_v40  ;;  %3070 = vmatpush.msrb.mxu3 %v2965_v5  ;;  %v6152_v40 = vld [vmem:[#allocation53_spill] sm:$0xff] }
 0x553   :  { %3025 = vmatpush.msrb.mxu1 %v2959_v33  ;;  %3048 = vmatpush.msrb.mxu2 %v2960_v60  ;;  %v231_v29 = vadd.f32 %v6152_v40, %v6137_v14 }
 0x554   :  { %2998 = vmatpush.msrb.mxu0 %v2974_v6  ;;  %3071 = vmatpush.msrb.mxu3 %v2961_v30  ;;  %v2938_v6 = vld [vmem:[#allocation3 + $0x40] sm:$0xff] }
 0x555   :  { %v3702_v58 = vpop.eup %3701  ;;  %3026 = vmatpush.msrb.mxu1 %v2955_v25  ;;  %3049 = vmatpush.msrb.mxu2 %v2956_v56 }
 0x556   :  { %v2607_v59 = vmul.f32 %v3702_v58, %v2596_v22  ;;  %2999 = vmatpush.msrb.mxu0 %v2970_v46  ;;  %v2957_v58 = vld [vmem:[#allocation3 + $0xd8] sm:$0xff] }
 0x557   :  { %3072 = vmatpush.msrb.mxu3 %v2957_v58  ;;  %3050 = vmatpush.msrb.mxu2 %v2952_v0  ;;  %v2941_v46 = vld [vmem:[#allocation3 + $0x58] sm:$0xff] }
 0x558   :  { %v3460_v7 = vpack.c.bf16 %v2607_v59, %v2606_v43  ;;  %2707 = vmatmul.f32.gmra.mxu0 %v2607_v59  ;;  %2730 = vmatmul.f32.gmra.mxu1 %v2607_v59 }
 0x559   :  { %2753 = vmatmul.f32.gmra.mxu2 %v2607_v59  ;;  %2776 = vmatmul.f32.gmra.mxu3 %v2607_v59  ;;  %v2950_v59 = vld [vmem:[#allocation3 + $0xa0] sm:$0xff] }
 0x55a   :  { %3461 = vst [vmem:[#allocation6 + $0x30] sm:$0xff] %v3460_v7   ;;  %3000 = vmatpush.msrb.mxu0 %v2966_v17  ;;  %v2951_v7 = vld [vmem:[#allocation3 + $0xa8] sm:$0xff]  ;;  %3073 = vmatpush.msrb.mxu3 %v2953_v63 }
 0x55b   :  { %3027 = vmatpush.msrb.mxu1 %v2951_v7  ;;  %3051 = vmatpush.msrb.mxu2 %v2948_v24 }
 0x55c   :  { %3001 = vmatpush.msrb.mxu0 %v2962_v57  ;;  %3074 = vmatpush.msrb.mxu3 %v2949_v45 }
 0x55d   :  { %3028 = vmatpush.msrb.mxu1 %v2947_v51  ;;  %3052 = vmatpush.msrb.mxu2 %v2944_v38 }
 0x55e   :  { %3002 = vmatpush.msrb.mxu0 %v2958_v47  ;;  %v6155_v47 = vld [vmem:[#allocation55_spill] sm:$0xff] }
 0x55f   :  { %3029 = vmatpush.msrb.mxu1 %v2943_v10  ;;  %3053 = vmatpush.msrb.mxu2 %v2940_v44  ;;  %v393_v33 = vadd.f32 %v6155_v47, %v6072_v23  ;;  %v6156_v44 = vld [vmem:[#allocation58_spill] sm:$0xff] }
 0x560   :  { %3003 = vmatpush.msrb.mxu0 %v2954_v2 }
 0x561   :  { %3030 = vmatpush.msrb.mxu1 %v2939_v50 }
 0x562   :  { %3004 = vmatpush.msrb.mxu0 %v2950_v59 }
 0x563   :  { %3031 = vmatpush.msrb.mxu1 %v2935_v28 }
 0x564   :  { %3005 = vmatpush.msrb.mxu0 %v2946_v26 }
 0x565   :  { %3032 = vmatpush.msrb.mxu1 %v2931_v34 }
 0x566   :  { %3006 = vmatpush.msrb.mxu0 %v2942_v37 }
 0x568   :  { %3007 = vmatpush.msrb.mxu0 %v2938_v6 }
 0x56a   :  { %3008 = vmatpush.msrb.mxu0 %v2934_v31 }
 0x56c   :  { %3009 = vmatpush.msrb.mxu0 %v2930_v16 }
 0x5c4   :  { %v2705_v20 = vpop.f32.mrf.mxu0  ;;  %v2728_v19 = vpop.f32.mrf.mxu1 }
 0x5c5   :  { %v2780_v12 = vadd.f32 %v2705_v20, %v229_v9  ;;  %v2781_v1 = vadd.f32 %v2728_v19, %v283_v53  ;;  %v2945_v9 = vld [vmem:[#allocation3 + $0x78] sm:$0xff] }
 0x5c6   :  { %3075 = vmatpush.msrb.mxu3 %v2945_v9  ;;  %v6154_v19 = vld [vmem:[#allocation51_spill] sm:$0xff] }
 0x5c7   :  { %v3398_v54 = vmul.f32 -1.442695, %v2780_v12  ;;  %v3400_v43 = vmul.f32 -1.442695, %v2781_v1  ;;  %v337_v42 = vadd.f32 %v6154_v19, %v4384_v15 }
 0x5c8   :  { %3076 = vmatpush.msrb.mxu3 %v2941_v46 }
 0x5c9   :  { %3703 = vpow2.f32 %v3398_v54  ;;  %v2936_v54 = vld [vmem:[#allocation3 + $0x30] sm:$0xff] }
 0x5ca   :  { %3705 = vpow2.f32 %v3400_v43  ;;  %3054 = vmatpush.msrb.mxu2 %v2936_v54  ;;  %3077 = vmatpush.msrb.mxu3 %v2937_v18 }
 0x5cb   :  { %v2774_v62 = vpop.f32.mrf.mxu3  ;;  %v2751_v35 = vpop.f32.mrf.mxu2 }
 0x5cc   :  { %v2783_v61 = vadd.f32 %v2774_v62, %v391_v55  ;;  %v2782_v17 = vadd.f32 %v2751_v35, %v337_v42  ;;  %v2932_v55 = vld [vmem:[#allocation3 + $0x10] sm:$0xff]  ;;  %v2933_v62 = vld [vmem:[#allocation3 + $0x18] sm:$0xff] }
 0x5cd   :  { %3055 = vmatpush.msrb.mxu2 %v2932_v55  ;;  %3078 = vmatpush.msrb.mxu3 %v2933_v62 }
 0x5ce   :  { %v3402_v4 = vmul.f32 -1.442695, %v2783_v61 }
 0x5cf   :  { %v3704_v22 = vpop.eup %3703 }
 0x5d0   :  { %v3706_v8 = vpop.eup %3705  ;;  %v5744_v49 = vadd.f32 1.0, %v3704_v22  ;;  %3707 = vpow2.f32 %v3402_v4 }
 0x5d1   :  { %v5746_v39 = vadd.f32 1.0, %v3706_v8 }
 0x5d2   :  { %3709 = vrcp.f32 %v5744_v49  ;;  %v2805_v61 = vand.u32 2147483647, %v5744_v49  ;;  %v2807_v25 = vand.u32 2147483648, %v5744_v49  ;;  %vm2801_vm11 = vweird.f32 %v5744_v49 }
 0x5d3   :  { %3711 = vrcp.f32 %v5746_v39  ;;  %v2845_v2 = vand.u32 2147483648, %v5746_v39  ;;  %v2843_v58 = vand.u32 2147483647, %v5746_v39  ;;  %vm2839_vm12 = vweird.f32 %v5746_v39 }
 0x5d4   :  { %vm2806_vm13 = vcmp.eq.f32.partialorder %v2805_v61, 8.507059e+37  ;;  %v2808_v51 = vor.u32 1.1754944e-38, %v2807_v25 }
 0x5d5   :  { %v2708_v13 = vpop.f32.mrf.mxu0  ;;  %v2731_v53 = vpop.f32.mrf.mxu1  ;;  %v2846_v26 = vor.u32 1.1754944e-38, %v2845_v2  ;;  %vm2844_vm0 = vcmp.eq.f32.partialorder %v2843_v58, 8.507059e+37 }
 0x5d6   :  { %v3708_v20 = vpop.eup %3707  ;;  %v2784_v12 = vadd.f32 %v2708_v13, %v231_v29  ;;  %v2785_v1 = vadd.f32 %v2731_v53, %v285_v41 }
 0x5d7   :  { %v5756_v32 = vadd.f32 1.0, %v3708_v20  ;;  %v339_v20 = vadd.f32 %v6156_v44, %v4384_v15 }
 0x5d8   :  { %v3710_v43 = vpop.eup %3709  ;;  %v3399_v11 = vmul.f32 -1.442695, %v2784_v12  ;;  %v3401_v52 = vmul.f32 -1.442695, %v2785_v1 }
 0x5d9   :  { %v3712_v57 = vpop.eup %3711  ;;  %v2797_v3 = vmul.f32 %v3710_v43, %v5744_v49  ;;  %3713 = vrcp.f32 %v5756_v32  ;;  %vm2802_vm9 = vweird.f32 %v3710_v43  ;;  %v2885_v42 = vand.u32 2147483648, %v5756_v32 }
 0x5da   :  { %v2835_v5 = vmul.f32 %v3712_v57, %v5746_v39  ;;  %3715 = vpow2.f32 %v3399_v11  ;;  %vm2840_vm10 = vweird.f32 %v3712_v57  ;;  %vm2803_vm14 = vmor %vm2801_vm11, %vm2802_vm9  ;;  %v2883_v1 = vand.u32 2147483647, %v5756_v32 }
 0x5db   :  { %v2798_v60 = vsub.f32 1.0, %v2797_v3  ;;  %3717 = vpow2.f32 %v3401_v52  ;;  %vm2841_vm15 = vmor %vm2839_vm12, %vm2840_vm10  ;;  %vm2879_vm2 = vweird.f32 %v5756_v32  ;;  %v2886_v11 = vor.u32 1.1754944e-38, %v2885_v42 }
 0x5dc   :  { %v2836_v30 = vsub.f32 1.0, %v2835_v5  ;;  %3719 = vtanh.f32 %v2782_v17  ;;  %v2777_v56 = vpop.f32.mrf.mxu3  ;;  %v2754_v6 = vpop.f32.mrf.mxu2  ;;  %vm2884_vm4 = vcmp.eq.f32.partialorder %v2883_v1, 8.507059e+37 }
 0x5dd   :  { %v2799_v4 = vmul.f32 %v3710_v43, %v2798_v60  ;;  %v2787_v22 = vadd.f32 %v2777_v56, %v393_v33 }
 0x5de   :  { %v2837_v59 = vmul.f32 %v3712_v57, %v2836_v30 }
 0x5df   :  { %v3714_v7 = vpop.eup %3713  ;;  %v2800_v0 = vadd.f32 %v3710_v43, %v2799_v4  ;;  %v3403_v8 = vmul.f32 -1.442695, %v2787_v22 }
 0x5e0   :  { %v3716_v63 = vpop.eup %3715  ;;  %v2838_v24 = vadd.f32 %v3712_v57, %v2837_v59  ;;  %v2875_v45 = vmul.f32 %v3714_v7, %v5756_v32  ;;  %vm2880_vm1 = vweird.f32 %v3714_v7 }
 0x5e1   :  { %v3718_v37 = vpop.eup %3717  ;;  %v2804_v10 = vsel %vm2803_vm14, %v3710_v43, %v2800_v0  ;;  %v2795_v38 = vadd.f32 1.0, %v3716_v63  ;;  %3721 = vpow2.f32 %v3403_v8  ;;  %vm5779_vm3 = vmor %vm2879_vm2, %vm2880_vm1 }
 0x5e2   :  { %v3720_v49 = vpop.eup %3719  ;;  %v2809_v40 = vsel %vm2806_vm13, %v2808_v51, %v2804_v10  ;;  %v2842_v29 = vsel %vm2841_vm15, %v3712_v57, %v2838_v24  ;;  %v2876_v39 = vsub.f32 1.0, %v2875_v45  ;;  %v2833_v48 = vadd.f32 1.0, %v3718_v37 }
 0x5e3   :  { %v2847_v41 = vsel %vm2844_vm0, %v2846_v26, %v2842_v29  ;;  %v2906_v35 = vmul.f32 %v3720_v49, %v2809_v40  ;;  %3723 = vrcp.f32 %v2795_v38  ;;  %v2822_v3 = vand.u32 2147483648, %v2795_v38 }
 0x5e4   :  { %v2904_v9 = vmul.f32 %v2847_v41, %v5720_v27  ;;  %v2877_v13 = vmul.f32 %v3714_v7, %v2876_v39  ;;  %3725 = vrcp.f32 %v2833_v48  ;;  %v2786_v27 = vadd.f32 %v2754_v6, %v339_v20  ;;  %v6161_v20 = vld [vmem:[#allocation59_spill] sm:$0xff] }
 0x5e5   :  { %v2860_v57 = vand.u32 2147483648, %v2833_v48  ;;  %v2820_v34 = vand.u32 2147483647, %v2795_v38  ;;  %v2858_v62 = vand.u32 2147483647, %v2833_v48  ;;  %vm2816_vm7 = vweird.f32 %v2795_v38 }
 0x5e6   :  { %v5771_v53 = vadd.f32 %v2906_v35, %v2904_v9  ;;  %v2878_v19 = vadd.f32 %v3714_v7, %v2877_v13  ;;  %vm2854_vm8 = vweird.f32 %v2833_v48  ;;  %v2823_v61 = vor.u32 1.1754944e-38, %v2822_v3 }
 0x5e7   :  { %v3722_v50 = vpop.eup %3721  ;;  %v2861_v25 = vor.u32 1.1754944e-38, %v2860_v57  ;;  %vm2821_vm11 = vcmp.eq.f32.partialorder %v2820_v34, 8.507059e+37  ;;  %vm2859_vm12 = vcmp.eq.f32.partialorder %v2858_v62, 8.507059e+37 }
 0x5e8   :  { %3727 = vtanh.f32 %v5771_v53  ;;  %v2873_v12 = vadd.f32 1.0, %v3722_v50  ;;  %v2882_v17 = vsel %vm5779_vm3, %v3714_v7, %v2878_v19  ;;  %v396_v19 = vadd.f32 %v6161_v20, %v6072_v23 }
 0x5e9   :  { %v3724_v46 = vpop.eup %3723  ;;  %v2887_v55 = vsel %vm2884_vm4, %v2886_v11, %v2882_v17  ;;  %v6163_v11 = vld [vmem:[#allocation60_spill] sm:$0xff] }
 0x5ea   :  { %v3726_v31 = vpop.eup %3725  ;;  %v2812_v54 = vmul.f32 %v3724_v46, %v2795_v38  ;;  %3729 = vrcp.f32 %v2873_v12  ;;  %vm2817_vm5 = vweird.f32 %v3724_v46  ;;  %v2900_v24 = vand.u32 2147483648, %v2873_v12 }
 0x5eb   :  { %v2850_v43 = vmul.f32 %v3726_v31, %v2833_v48  ;;  %3731 = vtanh.f32 %v2786_v27  ;;  %vm2855_vm6 = vweird.f32 %v3726_v31  ;;  %vm2818_vm9 = vmor %vm2816_vm7, %vm2817_vm5  ;;  %vm2894_vm14 = vweird.f32 %v2873_v12  ;;  %v6160_v48 = vld [vmem:[#allocation57_spill] sm:$0xff] }
 0x5ec   :  { %v2813_v52 = vsub.f32 1.0, %v2812_v54  ;;  %vm2856_vm10 = vmor %vm2854_vm8, %vm2855_vm6  ;;  %v2898_v45 = vand.u32 2147483647, %v2873_v12  ;;  %v2901_v10 = vor.u32 1.1754944e-38, %v2900_v24  ;;  %v288_v41 = vadd.f32 %v6160_v48, %v6139_v21 }
 0x5ed   :  { %v2851_v18 = vsub.f32 1.0, %v2850_v43  ;;  %v6162_v43 = vld [vmem:[#allocation64_spill] sm:$0xff] }
 0x5ee   :  { %v3728_v32 = vpop.eup %3727  ;;  %v2814_v16 = vmul.f32 %v3724_v46, %v2813_v52  ;;  %vm2899_vm0 = vcmp.eq.f32.partialorder %v2898_v45, 8.507059e+37  ;;  %v342_v17 = vadd.f32 %v6162_v43, %v4384_v15  ;;  %v236_v52 = vadd.f32 %v6163_v11, %v6137_v14 }
 0x5ef   :  { %v2852_v5 = vmul.f32 %v3726_v31, %v2851_v18  ;;  %v2912_v47 = vmul.f32 %v3728_v32, %v2887_v55  ;;  %v6164_v18 = vld [vmem:[#allocation61_spill] sm:$0xff] }
 0x5f0   :  { %v3730_v33 = vpop.eup %3729  ;;  %v2815_v60 = vadd.f32 %v3724_v46, %v2814_v16  ;;  %v290_v57 = vadd.f32 %v6164_v18, %v6139_v21 }
 0x5f1   :  { %v2853_v30 = vadd.f32 %v3726_v31, %v2852_v5  ;;  %v2890_v2 = vmul.f32 %v3730_v33, %v2873_v12  ;;  %3010 = vmatmul.f32.vlgmr.msrb.gmra.mxu0 %v2912_v47  ;;  %3033 = vmatmul.f32.vlgmr.msrb.gmra.mxu1 %v2912_v47  ;;  %v3732_v4 = vpop.eup %3731  ;;  %vm2895_vm13 = vweird.f32 %v3730_v33 }
 0x5f2   :  { %v2819_v56 = vsel %vm2818_vm9, %v3724_v46, %v2815_v60  ;;  %3056 = vmatmul.f32.vlgmr.msrb.gmra.mxu2 %v2912_v47  ;;  %3079 = vmatmul.f32.vlgmr.msrb.gmra.mxu3 %v2912_v47  ;;  %vm2896_vm15 = vmor %vm2894_vm14, %vm2895_vm13 }
 0x5f3   :  { %v2824_v58 = vsel %vm2821_vm11, %v2823_v61, %v2819_v56  ;;  %v2857_v22 = vsel %vm2856_vm10, %v3726_v31, %v2853_v30  ;;  %v2891_v59 = vsub.f32 1.0, %v2890_v2 }
 0x5f4   :  { %v2862_v7 = vsel %vm2859_vm12, %v2861_v25, %v2857_v22  ;;  %v2907_v0 = vmul.f32 %v3732_v4, %v2824_v58 }
 0x5f5   :  { %v2905_v8 = vmul.f32 %v2862_v7, %v5735_v36  ;;  %v2892_v63 = vmul.f32 %v3730_v33, %v2891_v59  ;;  %v6159_v36 = vld [vmem:[#allocation56_spill] sm:$0xff] }
 0x5f6   :  { %v234_v39 = vadd.f32 %v6159_v36, %v6137_v14  ;;  %v6165_v14 = vld [vmem:[#allocation65_spill] sm:$0xff] }
 0x5f7   :  { %v5786_v26 = vadd.f32 %v2907_v0, %v2905_v8  ;;  %v2893_v51 = vadd.f32 %v3730_v33, %v2892_v63  ;;  %v398_v21 = vadd.f32 %v6165_v14, %v6072_v23 }
 0x5f9   :  { %3733 = vtanh.f32 %v5786_v26  ;;  %v2897_v37 = vsel %vm2896_vm15, %v3730_v33, %v2893_v51 }
 0x5fa   :  { %v2902_v49 = vsel %vm2899_vm0, %v2901_v10, %v2897_v37 }
 0x5ff   :  { %v3734_v38 = vpop.eup %3733 }
 0x600   :  { %v2913_v40 = vmul.f32 %v3734_v38, %v2902_v49 }
 0x602   :  { %v3465_v29 = vpack.c.bf16 %v2913_v40, %v2912_v47  ;;  %3013 = vmatmul.f32.gmra.mxu0 %v2913_v40  ;;  %3036 = vmatmul.f32.gmra.mxu1 %v2913_v40 }
 0x603   :  { %3059 = vmatmul.f32.gmra.mxu2 %v2913_v40  ;;  %3082 = vmatmul.f32.gmra.mxu3 %v2913_v40 }
 0x604   :  { %3466 = vst [vmem:[#allocation6 + $0x38] sm:$0xff] %v3465_v29  }
 0x66e   :  { %v3011_v35 = vpop.f32.mrf.mxu0  ;;  %v3034_v9 = vpop.f32.mrf.mxu1 }
 0x66f   :  { %v3086_v13 = vadd.f32 %v3011_v35, %v234_v39  ;;  %v3087_v6 = vadd.f32 %v3034_v9, %v288_v41 }
 0x671   :  { %v3404_v50 = vmul.f32 -1.442695, %v3086_v13  ;;  %v3406_v44 = vmul.f32 -1.442695, %v3087_v6 }
 0x673   :  { %3735 = vpow2.f32 %v3404_v50 }
 0x674   :  { %3737 = vpow2.f32 %v3406_v44 }
 0x675   :  { %v3080_v42 = vpop.f32.mrf.mxu3  ;;  %v3057_v54 = vpop.f32.mrf.mxu2 }
 0x676   :  { %v3089_v12 = vadd.f32 %v3080_v42, %v396_v19  ;;  %v3088_v34 = vadd.f32 %v3057_v54, %v342_v17 }
 0x678   :  { %v3408_v1 = vmul.f32 -1.442695, %v3089_v12  ;;  %v6166_v12 = vld [vmem:[#allocation67_spill] sm:$0xff] }
 0x679   :  { %v3736_v46 = vpop.eup %3735 }
 0x67a   :  { %v3738_v27 = vpop.eup %3737  ;;  %v3100_v31 = vadd.f32 1.0, %v3736_v46  ;;  %3739 = vpow2.f32 %v3408_v1  ;;  %v344_v1 = vadd.f32 %v6166_v12, %v4384_v15 }
 0x67b   :  { %v3138_v28 = vadd.f32 1.0, %v3738_v27 }
 0x67c   :  { %3741 = vrcp.f32 %v3100_v31  ;;  %v3111_v56 = vand.u32 2147483647, %v3100_v31  ;;  %v3113_v22 = vand.u32 2147483648, %v3100_v31  ;;  %vm3107_vm4 = vweird.f32 %v3100_v31 }
 0x67d   :  { %3743 = vrcp.f32 %v3138_v28  ;;  %v3151_v58 = vand.u32 2147483648, %v3138_v28  ;;  %v3149_v0 = vand.u32 2147483647, %v3138_v28  ;;  %vm3145_vm3 = vweird.f32 %v3138_v28 }
 0x67e   :  { %vm3112_vm6 = vcmp.eq.f32.partialorder %v3111_v56, 8.507059e+37  ;;  %v3114_v37 = vor.u32 1.1754944e-38, %v3113_v22 }
 0x67f   :  { %v3014_v3 = vpop.f32.mrf.mxu0  ;;  %v3037_v32 = vpop.f32.mrf.mxu1  ;;  %v3152_v40 = vor.u32 1.1754944e-38, %v3151_v58  ;;  %vm3150_vm8 = vcmp.eq.f32.partialorder %v3149_v0, 8.507059e+37 }
 0x680   :  { %v3740_v16 = vpop.eup %3739  ;;  %v3090_v55 = vadd.f32 %v3014_v3, %v236_v52  ;;  %v3091_v5 = vadd.f32 %v3037_v32, %v290_v57 }
 0x681   :  { %v5801_v62 = vadd.f32 1.0, %v3740_v16 }
 0x682   :  { %v3742_v47 = vpop.eup %3741  ;;  %v3405_v33 = vmul.f32 -1.442695, %v3090_v55  ;;  %v3407_v60 = vmul.f32 -1.442695, %v3091_v5 }
 0x683   :  { %v3744_v61 = vpop.eup %3743  ;;  %v3103_v30 = vmul.f32 %v3742_v47, %v3100_v31  ;;  %3745 = vrcp.f32 %v5801_v62  ;;  %vm3108_vm1 = vweird.f32 %v3742_v47  ;;  %v3191_v27 = vand.u32 2147483648, %v5801_v62 }
 0x684   :  { %v3141_v2 = vmul.f32 %v3744_v61, %v3138_v28  ;;  %3747 = vtanh.f32 %v3088_v34  ;;  %vm3146_vm2 = vweird.f32 %v3744_v61  ;;  %vm3109_vm5 = vmor %vm3107_vm4, %vm3108_vm1  ;;  %vm3185_vm10 = vweird.f32 %v5801_v62 }
 0x685   :  { %v3104_v25 = vsub.f32 1.0, %v3103_v30  ;;  %3749 = vpow2.f32 %v3405_v33  ;;  %vm3147_vm7 = vmor %vm3145_vm3, %vm3146_vm2  ;;  %v3189_v31 = vand.u32 2147483647, %v5801_v62  ;;  %v3192_v52 = vor.u32 1.1754944e-38, %v3191_v27 }
 0x686   :  { %v3142_v4 = vsub.f32 1.0, %v3141_v2  ;;  %3751 = vpow2.f32 %v3407_v60  ;;  %v3083_v59 = vpop.f32.mrf.mxu3  ;;  %v3060_v19 = vpop.f32.mrf.mxu2 }
 0x687   :  { %v3105_v7 = vmul.f32 %v3742_v47, %v3104_v25  ;;  %v3093_v8 = vadd.f32 %v3083_v59, %v398_v21  ;;  %v3092_v28 = vadd.f32 %v3060_v19, %v344_v1  ;;  %vm3190_vm12 = vcmp.eq.f32.partialorder %v3189_v31, 8.507059e+37 }
 0x688   :  { %v3143_v63 = vmul.f32 %v3744_v61, %v3142_v4 }
 0x689   :  { %v3746_v51 = vpop.eup %3745  ;;  %v3106_v24 = vadd.f32 %v3742_v47, %v3105_v7  ;;  %v3409_v45 = vmul.f32 -1.442695, %v3093_v8 }
 0x68a   :  { %v3748_v23 = vpop.eup %3747  ;;  %v3144_v10 = vadd.f32 %v3744_v61, %v3143_v63  ;;  %v3181_v38 = vmul.f32 %v3746_v51, %v5801_v62  ;;  %vm3186_vm9 = vweird.f32 %v3746_v51 }
 0x68b   :  { %v3750_v49 = vpop.eup %3749  ;;  %v3110_v29 = vsel %vm3109_vm5, %v3742_v47, %v3106_v24  ;;  %3753 = vpow2.f32 %v3409_v45  ;;  %vm3187_vm11 = vmor %vm3185_vm10, %vm3186_vm9 }
 0x68c   :  { %v3752_v36 = vpop.eup %3751  ;;  %v3115_v39 = vsel %vm3112_vm6, %v3114_v37, %v3110_v29  ;;  %v3148_v48 = vsel %vm3147_vm7, %v3744_v61, %v3144_v10  ;;  %v3182_v41 = vsub.f32 1.0, %v3181_v38  ;;  %v3101_v35 = vadd.f32 1.0, %v3750_v49 }
 0x68d   :  { %v3153_v9 = vsel %vm3150_vm8, %v3152_v40, %v3148_v48  ;;  %v3212_v13 = vmul.f32 %v3748_v23, %v3115_v39  ;;  %v3139_v6 = vadd.f32 1.0, %v3752_v36 }
 0x68e   :  { %v3210_v50 = vmul.f32 %v3153_v9, %v5771_v53  ;;  %v3183_v44 = vmul.f32 %v3746_v51, %v3182_v41  ;;  %3755 = vrcp.f32 %v3101_v35  ;;  %v3128_v34 = vand.u32 2147483648, %v3101_v35 }
 0x68f   :  { %3757 = vrcp.f32 %v3139_v6  ;;  %v3166_v16 = vand.u32 2147483648, %v3139_v6  ;;  %v3126_v62 = vand.u32 2147483647, %v3101_v35  ;;  %v3164_v33 = vand.u32 2147483647, %v3139_v6 }
 0x690   :  { %v3214_v20 = vadd.f32 %v3212_v13, %v3210_v50  ;;  %v3184_v46 = vadd.f32 %v3746_v51, %v3183_v44  ;;  %vm3122_vm15 = vweird.f32 %v3101_v35  ;;  %vm3160_vm0 = vweird.f32 %v3139_v6 }
 0x691   :  { %v3754_v42 = vpop.eup %3753  ;;  %v3129_v30 = vor.u32 1.1754944e-38, %v3128_v34  ;;  %v3167_v25 = vor.u32 1.1754944e-38, %v3166_v16  ;;  %vm3127_vm3 = vcmp.eq.f32.partialorder %v3126_v62, 8.507059e+37  ;;  %vm3165_vm4 = vcmp.eq.f32.partialorder %v3164_v33, 8.507059e+37 }
 0x692   :  { %3759 = vtanh.f32 %v3214_v20  ;;  %v3179_v53 = vadd.f32 1.0, %v3754_v42  ;;  %v3188_v17 = vsel %vm3187_vm11, %v3746_v51, %v3184_v46 }
 0x693   :  { %v3193_v3 = vsel %vm3190_vm12, %v3192_v52, %v3188_v17 }
 0x694   :  { %v3756_v54 = vpop.eup %3755  ;;  %3761 = vrcp.f32 %v3179_v53  ;;  %v3206_v24 = vand.u32 2147483648, %v3179_v53  ;;  %vm3200_vm6 = vweird.f32 %v3179_v53  ;;  %v3204_v45 = vand.u32 2147483647, %v3179_v53 }
 0x695   :  { %v3758_v43 = vpop.eup %3757  ;;  %v3118_v11 = vmul.f32 %v3756_v54, %v3101_v35  ;;  %3763 = vtanh.f32 %v3092_v28  ;;  %vm3123_vm13 = vweird.f32 %v3756_v54 }
 0x696   :  { %v3156_v18 = vmul.f32 %v3758_v43, %v3139_v6  ;;  %vm3161_vm14 = vweird.f32 %v3758_v43  ;;  %vm3124_vm1 = vmor %vm3122_vm15, %vm3123_vm13  ;;  %v3207_v37 = vor.u32 1.1754944e-38, %v3206_v24  ;;  %vm3205_vm8 = vcmp.eq.f32.partialorder %v3204_v45, 8.507059e+37 }
 0x697   :  { %v3119_v15 = vsub.f32 1.0, %v3118_v11  ;;  %vm3162_vm2 = vmor %vm3160_vm0, %vm3161_vm14 }
 0x698   :  { %v3760_v57 = vpop.eup %3759  ;;  %v3157_v32 = vsub.f32 1.0, %v3156_v18 }
 0x699   :  { %v3218_v55 = vmul.f32 %v3760_v57, %v3193_v3  ;;  %v3120_v5 = vmul.f32 %v3756_v54, %v3119_v15 }
 0x69a   :  { %v3158_v47 = vmul.f32 %v3758_v43, %v3157_v32  ;;  %v3762_v60 = vpop.eup %3761 }
 0x69b   :  { %v3121_v61 = vadd.f32 %v3756_v54, %v3120_v5  ;;  %v3196_v14 = vmul.f32 %v3762_v60, %v3179_v53  ;;  %v3764_v21 = vpop.eup %3763  ;;  %vm3201_vm5 = vweird.f32 %v3762_v60 }
 0x69c   :  { %v3159_v2 = vadd.f32 %v3758_v43, %v3158_v47  ;;  %vm3202_vm7 = vmor %vm3200_vm6, %vm3201_vm5 }
 0x69d   :  { %v3125_v56 = vsel %vm3124_vm1, %v3756_v54, %v3121_v61  ;;  %v3197_v22 = vsub.f32 1.0, %v3196_v14 }
 0x69e   :  { %v3130_v4 = vsel %vm3127_vm3, %v3129_v30, %v3125_v56  ;;  %v3163_v58 = vsel %vm3162_vm2, %v3758_v43, %v3159_v2 }
 0x69f   :  { %v3168_v59 = vsel %vm3165_vm4, %v3167_v25, %v3163_v58  ;;  %v3213_v7 = vmul.f32 %v3764_v21, %v3130_v4  ;;  %v3198_v8 = vmul.f32 %v3762_v60, %v3197_v22 }
 0x6a0   :  { %v3211_v0 = vmul.f32 %v3168_v59, %v5786_v26 }
 0x6a1   :  { %v3199_v51 = vadd.f32 %v3762_v60, %v3198_v8 }
 0x6a2   :  { %v3215_v63 = vadd.f32 %v3213_v7, %v3211_v0 }
 0x6a3   :  { %v3203_v23 = vsel %vm3202_vm7, %v3762_v60, %v3199_v51 }
 0x6a4   :  { %3765 = vtanh.f32 %v3215_v63  ;;  %v3208_v26 = vsel %vm3205_vm8, %v3207_v37, %v3203_v23 }
 0x6aa   :  { %v3766_v10 = vpop.eup %3765 }
 0x6ab   :  { %v3219_v38 = vmul.f32 %v3766_v10, %v3208_v26 }
 0x6ad   :  { %v3470_v49 = vpack.c.bf16 %v3219_v38, %v3218_v55 }
 0x6af   :  { %3471 = vst [vmem:[#allocation6 + $0x40] sm:$0xff] %v3470_v49  }
 0x6b0   :  { %3237 = dma.vmem_to_hbm [thread:$0]  %s3230_s18, 1152, %s3232_s21, [#allocation5], %s3824_s22, %s3824_s22, %s3825_s23  }
 0x6b1   :  { %3817 = dma.done.wait [#allocation5], 1152  }
 0x6b2   :  { %3818 = vsyncadd [#allocation5], 4294966144 }
 0x6b3   :  { %3242 = vsyncpa [#allocation4], 1 }
 0x6b4   :  { %3243 = vsyncpa [#allocation5], 1 }

// kernel: tpu_custom_call.1
= control target key start
LH: loop header
LB: loop body
LE: loop exit
PB: predicated region body
PF: predicated region fallthrough
CT: control target
= control target key end

     0   :  { %9 = vsyncpa [#allocation4], 0  ;;  %s5817_s0 = inlined_call_operand.vmem [shape: bf16[144,32], index: 0, kind: input, shape index: {}]   ;;  %s5818_s1 = inlined_call_operand.vmem [shape: bf16[32,512], index: 1, kind: input, shape index: {}]   ;;  %s5819_s2 = inlined_call_operand.hbm [shape: f32[128,512], index: 2, kind: input, shape index: {}]   ;;  %s5820_s3 = inlined_call_operand.vmem [shape: f32[1,512], index: 3, kind: input, shape index: {}]   ;;  %s5821_s4 = inlined_call_operand.hbm [shape: bf16[144,128], index: 4, kind: output, shape index: {}]  }
   0x1   :  { %10 = vsyncpa [#allocation5], 0  ;;  %s19_s17 = sshll.u32 %s5819_s2, 4  ;;  %s3819_s18 = smov [#allocation3]   ;;  %s20_s17 = int_to_ptr.hbm [resolvable:$true] %s19_s17 }
   0x2   :  { %s21_s19 = sshll.u32 %s3819_s18, 4  ;;  %s3820_s20 = smov 512   ;;  %s22_s19 = int_to_ptr.vmem [resolvable:$true] %s21_s19 }
   0x3   :  { %s3821_s21 = smov 32  }
   0x4   :  { %27 = dma.hbm_to_vmem [thread:$0]  %s20_s17, 8192, %s22_s19, [#allocation4], %s3820_s20, %s3820_s20, %s3821_s21  }
   0x5   :  { %3815 = dma.done.wait [#allocation4], 8192  }
   0x6   :  { %3816 = vsyncadd [#allocation4], 4294959104  ;;  %v3306_v0 = vld [vmem:[%s5818_s1 + $0x20] sm:$0xf]  ;;  %v3425_v1 = vld [vmem:[%s5818_s1 + $0x2c] sm:$0xf0] }
   0x7   :  { %v3423_v2 = vld [vmem:[%s5818_s1 + $0x24] sm:$0xf]  ;;  %v3307_v3 = vor.u32 %v3425_v1, %v3306_v0  ;;  %v3308_v4 = vld [vmem:[%s5818_s1 + $0x30] sm:$0xf0]  ;;  %v3314_v5 = vld [vmem:[%s5818_s1 + $0x28] sm:$0xf] }
   0x8   :  { %v3426_v6 = vld [vmem:[%s5818_s1 + $0x34] sm:$0xf0]  ;;  %v3311_v7 = vor.u32 %v3423_v2, %v3308_v4  ;;  %v3424_v9 = vld [vmem:[%s5818_s1 + $0x2c] sm:$0xf]  ;;  %v3316_v10 = vld [vmem:[%s5818_s1 + $0x38] sm:$0xf0] }
   0x9   :  { %v3315_v8 = vor.u32 %v3426_v6, %v3314_v5  ;;  %v3290_v11 = vld [vmem:[%s5818_s1] sm:$0xf]  ;;  %190 = vmatpush.bf16.msra.mxu0 %v3307_v3  ;;  %v3319_v12 = vor.u32 %v3424_v9, %v3316_v10  ;;  %v3421_v13 = vld [vmem:[%s5818_s1 + $0xc] sm:$0xf0]  ;;  %v3419_v14 = vld [vmem:[%s5818_s1 + $0x4] sm:$0xf] }
   0xa   :  { %v3292_v15 = vld [vmem:[%s5818_s1 + $0x10] sm:$0xf0]  ;;  %244 = vmatpush.bf16.msra.mxu1 %v3311_v7  ;;  %v3291_v16 = vor.u32 %v3421_v13, %v3290_v11  ;;  %v3298_v18 = vld [vmem:[%s5818_s1 + $0x8] sm:$0xf]  ;;  %v3422_v19 = vld [vmem:[%s5818_s1 + $0x14] sm:$0xf0] }
   0xb   :  { %298 = vmatpush.bf16.msra.mxu2 %v3315_v8  ;;  %v3295_v17 = vor.u32 %v3419_v14, %v3292_v15  ;;  %v3420_v20 = vld [vmem:[%s5818_s1 + $0xc] sm:$0xf]  ;;  %352 = vmatpush.bf16.msra.mxu3 %v3319_v12  ;;  %v3299_v21 = vor.u32 %v3422_v19, %v3298_v18  ;;  %v3300_v22 = vld [vmem:[%s5818_s1 + $0x18] sm:$0xf0]  ;;  %v3410_v24 = vld [vmem:[%s5817_s0] sm:$0xff]  ;;  %vm156_vm0 = vcmask 261120  }
   0xc   :  { %v3303_v23 = vor.u32 %v3420_v20, %v3300_v22  ;;  %v3905_v25 = vld [vmem:[#allocation3 + $0x1e0] sm:$0xff]  ;;  %v3907_v26 = vld [vmem:[#allocation3 + $0x1e8] sm:$0xff]  ;;  %v3914_v28 = vld [vmem:[#allocation3 + $0x1f8] sm:$0xff]  ;;  %s3231_s21 = sshll.u32 %s5821_s4, 4  ;;  %s3824_s22 = smov 64   ;;  %s3232_s21 = int_to_ptr.hbm [resolvable:$true] %s3231_s21 }
   0xd   :  { %191 = vmatpush.bf16.msra.mxu0 %v3291_v16  ;;  %v3910_v27 = vld [vmem:[#allocation3 + $0x1c0] sm:$0xff]  ;;  %v3916_v29 = vld [vmem:[#allocation3 + $0x1c8] sm:$0xff]  ;;  %v3920_v30 = vld [vmem:[#allocation3 + $0x1f0] sm:$0xff]  ;;  %s3825_s23 = smov 4  }
   0xe   :  { %245 = vmatpush.bf16.msra.mxu1 %v3295_v17  ;;  %v3922_v31 = vld [vmem:[#allocation3 + $0x1a0] sm:$0xff]  ;;  %v3926_v32 = vld [vmem:[#allocation3 + $0x1d8] sm:$0xff]  ;;  %v3928_v33 = vld [vmem:[#allocation3 + $0x1a8] sm:$0xff] }
   0xf   :  { %299 = vmatpush.bf16.msra.mxu2 %v3299_v21  ;;  %353 = vmatpush.bf16.msra.mxu3 %v3303_v23  ;;  %v3932_v34 = vld [vmem:[#allocation3 + $0x1d0] sm:$0xff]  ;;  %v3934_v35 = vld [vmem:[#allocation3 + $0x180] sm:$0xff]  ;;  %v3938_v36 = vld [vmem:[#allocation3 + $0x1b8] sm:$0xff] }
  0x10   :  { %3320 = vmatmul.msk.bf16.vlgmr.msra.gmra.mxu0 %vm156_vm0, %v3410_v24  ;;  %v3940_v37 = vld [vmem:[#allocation3 + $0x188] sm:$0xff]  ;;  %v3944_v38 = vld [vmem:[#allocation3 + $0x1b0] sm:$0xff]  ;;  %v3946_v39 = vld [vmem:[#allocation3 + $0x160] sm:$0xff] }
  0x11   :  { %547 = vmatpush.msrb.mxu0 %v3905_v25  ;;  %3329 = vmatmul.msk.bf16.vlgmr.msra.gmra.mxu1 %vm156_vm0, %v3410_v24  ;;  %v3950_v40 = vld [vmem:[#allocation3 + $0x198] sm:$0xff]  ;;  %v3952_v41 = vld [vmem:[#allocation3 + $0x168] sm:$0xff]  ;;  %v3956_v42 = vld [vmem:[#allocation3 + $0x190] sm:$0xff] }
  0x12   :  { %570 = vmatpush.msrb.mxu1 %v3907_v26  ;;  %3338 = vmatmul.msk.bf16.vlgmr.msra.gmra.mxu2 %vm156_vm0, %v3410_v24  ;;  %v3958_v43 = vld [vmem:[#allocation3 + $0x140] sm:$0xff]  ;;  %v3962_v44 = vld [vmem:[#allocation3 + $0x178] sm:$0xff]  ;;  %v3964_v45 = vld [vmem:[#allocation3 + $0x148] sm:$0xff] }
  0x13   :  { %3347 = vmatmul.msk.bf16.vlgmr.msra.gmra.mxu3 %vm156_vm0, %v3410_v24  ;;  %548 = vmatpush.msrb.mxu0 %v3910_v27  ;;  %v3411_v46 = vld [vmem:[%s5817_s0 + $0x8] sm:$0xff]  ;;  %v3979_v47 = vld [vmem:[#allocation3 + $0x158] sm:$0xff]  ;;  %v3981_v48 = vld [vmem:[#allocation3 + $0x170] sm:$0xff] }
  0x14   :  { %616 = vmatpush.msrb.mxu3 %v3914_v28  ;;  %571 = vmatpush.msrb.mxu1 %v3916_v29  ;;  %v3983_v49 = vld [vmem:[#allocation3 + $0x120] sm:$0xff]  ;;  %v3987_v50 = vld [vmem:[#allocation3 + $0x128] sm:$0xff]  ;;  %v3989_v51 = vld [vmem:[#allocation3 + $0x138] sm:$0xff] }
  0x15   :  { %593 = vmatpush.msrb.mxu2 %v3920_v30  ;;  %549 = vmatpush.msrb.mxu0 %v3922_v31  ;;  %v3991_v52 = vld [vmem:[#allocation3 + $0x150] sm:$0xff]  ;;  %v3995_v53 = vld [vmem:[#allocation3 + $0x100] sm:$0xff]  ;;  %v3997_v54 = vld [vmem:[#allocation3 + $0x108] sm:$0xff] }
  0x16   :  { %617 = vmatpush.msrb.mxu3 %v3926_v32  ;;  %572 = vmatpush.msrb.mxu1 %v3928_v33  ;;  %v3412_v55 = vld [vmem:[%s5817_s0 + $0x10] sm:$0xff]  ;;  %v4010_v56 = vld [vmem:[#allocation3 + $0x118] sm:$0xff]  ;;  %v4014_v58 = vld [vmem:[#allocation3 + $0xe0] sm:$0xff] }
  0x17   :  { %594 = vmatpush.msrb.mxu2 %v3932_v34  ;;  %550 = vmatpush.msrb.mxu0 %v3934_v35  ;;  %v4012_v57 = vld [vmem:[#allocation3 + $0x130] sm:$0xff]  ;;  %v4018_v59 = vld [vmem:[#allocation3 + $0xe8] sm:$0xff]  ;;  %v4020_v60 = vld [vmem:[#allocation3 + $0xf8] sm:$0xff] }
  0x18   :  { %618 = vmatpush.msrb.mxu3 %v3938_v36  ;;  %573 = vmatpush.msrb.mxu1 %v3940_v37  ;;  %v4022_v61 = vld [vmem:[#allocation3 + $0x110] sm:$0xff]  ;;  %v3413_v62 = vld [vmem:[%s5817_s0 + $0x18] sm:$0xff]  ;;  %v4035_v63 = vld [vmem:[#allocation3 + $0xc0] sm:$0xff] }
  0x19   :  { %595 = vmatpush.msrb.mxu2 %v3944_v38  ;;  %551 = vmatpush.msrb.mxu0 %v3946_v39  ;;  %v4037_v0 = vld [vmem:[#allocation3 + $0xc8] sm:$0xff]  ;;  %v4039_v1 = vld [vmem:[#allocation3 + $0xd8] sm:$0xff]  ;;  %v4043_v2 = vld [vmem:[#allocation3 + $0xf0] sm:$0xff] }
  0x1a   :  { %619 = vmatpush.msrb.mxu3 %v3950_v40  ;;  %574 = vmatpush.msrb.mxu1 %v3952_v41  ;;  %v4045_v3 = vld [vmem:[#allocation3 + $0xa0] sm:$0xff]  ;;  %v4047_v4 = vld [vmem:[#allocation3 + $0xa8] sm:$0xff]  ;;  %v4051_v5 = vld [vmem:[#allocation3 + $0xb8] sm:$0xff] }
  0x1b   :  { %596 = vmatpush.msrb.mxu2 %v3956_v42  ;;  %552 = vmatpush.msrb.mxu0 %v3958_v43  ;;  %v3414_v6 = vld [vmem:[%s5817_s0 + $0x20] sm:$0xff]  ;;  %v4063_v7 = vld [vmem:[#allocation3 + $0xd0] sm:$0xff]  ;;  %v4067_v9 = vld [vmem:[#allocation3 + $0x88] sm:$0xff] }
  0x1c   :  { %620 = vmatpush.msrb.mxu3 %v3962_v44  ;;  %575 = vmatpush.msrb.mxu1 %v3964_v45  ;;  %v4065_v8 = vld [vmem:[#allocation3 + $0x80] sm:$0xff]  ;;  %v4071_v10 = vld [vmem:[#allocation3 + $0x98] sm:$0xff]  ;;  %v4073_v11 = vld [vmem:[#allocation3 + $0xb0] sm:$0xff] }
  0x1d   :  { %597 = vmatpush.msrb.mxu2 %v3981_v48  ;;  %553 = vmatpush.msrb.mxu0 %v3983_v49  ;;  %v4075_v12 = vld [vmem:[#allocation3 + $0x60] sm:$0xff]  ;;  %v4079_v13 = vld [vmem:[#allocation3 + $0x68] sm:$0xff]  ;;  %v4091_v15 = vld [vmem:[#allocation3 + $0x78] sm:$0xff] }
  0x1e   :  { %621 = vmatpush.msrb.mxu3 %v3979_v47  ;;  %576 = vmatpush.msrb.mxu1 %v3987_v50  ;;  %v3415_v14 = vld [vmem:[%s5817_s0 + $0x28] sm:$0xff]  ;;  %v4093_v16 = vld [vmem:[#allocation3 + $0x90] sm:$0xff]  ;;  %v4095_v17 = vld [vmem:[#allocation3 + $0x40] sm:$0xff] }
  0x1f   :  { %598 = vmatpush.msrb.mxu2 %v3991_v52  ;;  %554 = vmatpush.msrb.mxu0 %v3995_v53  ;;  %v4099_v18 = vld [vmem:[#allocation3 + $0x48] sm:$0xff]  ;;  %v4101_v19 = vld [vmem:[#allocation3 + $0x58] sm:$0xff]  ;;  %v4103_v20 = vld [vmem:[#allocation3 + $0x70] sm:$0xff] }
  0x20   :  { %3321 = vmatmul.msk.bf16.gmra.mxu0 %vm156_vm0, %v3411_v46  ;;  %622 = vmatpush.msrb.mxu3 %v3989_v51  ;;  %v3416_v21 = vld [vmem:[%s5817_s0 + $0x30] sm:$0xff]  ;;  %v4112_v22 = vld [vmem:[#allocation3 + $0x20] sm:$0xff]  ;;  %v4114_v23 = vld [vmem:[#allocation3 + $0x28] sm:$0xff] }
  0x21   :  { %3330 = vmatmul.msk.bf16.gmra.mxu1 %vm156_vm0, %v3411_v46  ;;  %599 = vmatpush.msrb.mxu2 %v4012_v57  ;;  %v4122_v24 = vld [vmem:[#allocation3 + $0x38] sm:$0xff] }
  0x22   :  { %3339 = vmatmul.msk.bf16.gmra.mxu2 %vm156_vm0, %v3411_v46  ;;  %577 = vmatpush.msrb.mxu1 %v3997_v54 }
  0x23   :  { %3348 = vmatmul.msk.bf16.gmra.mxu3 %vm156_vm0, %v3411_v46  ;;  %555 = vmatpush.msrb.mxu0 %v4014_v58  ;;  %v4124_v46 = vld [vmem:[#allocation3 + $0x50] sm:$0xff] }
  0x24   :  { %623 = vmatpush.msrb.mxu3 %v4010_v56  ;;  %578 = vmatpush.msrb.mxu1 %v4018_v59 }
  0x25   :  { %600 = vmatpush.msrb.mxu2 %v4022_v61  ;;  %556 = vmatpush.msrb.mxu0 %v4035_v63 }
  0x26   :  { %624 = vmatpush.msrb.mxu3 %v4020_v60  ;;  %579 = vmatpush.msrb.mxu1 %v4037_v0 }
  0x27   :  { %601 = vmatpush.msrb.mxu2 %v4043_v2  ;;  %557 = vmatpush.msrb.mxu0 %v4045_v3 }
  0x28   :  { %625 = vmatpush.msrb.mxu3 %v4039_v1  ;;  %580 = vmatpush.msrb.mxu1 %v4047_v4 }
  0x29   :  { %602 = vmatpush.msrb.mxu2 %v4063_v7  ;;  %558 = vmatpush.msrb.mxu0 %v4065_v8 }
  0x2a   :  { %626 = vmatpush.msrb.mxu3 %v4051_v5  ;;  %581 = vmatpush.msrb.mxu1 %v4067_v9 }
  0x2b   :  { %603 = vmatpush.msrb.mxu2 %v4073_v11  ;;  %559 = vmatpush.msrb.mxu0 %v4075_v12 }
  0x2c   :  { %627 = vmatpush.msrb.mxu3 %v4071_v10  ;;  %582 = vmatpush.msrb.mxu1 %v4079_v13 }
  0x2d   :  { %604 = vmatpush.msrb.mxu2 %v4093_v16  ;;  %560 = vmatpush.msrb.mxu0 %v4095_v17 }
  0x2e   :  { %628 = vmatpush.msrb.mxu3 %v4091_v15  ;;  %583 = vmatpush.msrb.mxu1 %v4099_v18 }
  0x2f   :  { %605 = vmatpush.msrb.mxu2 %v4103_v20  ;;  %561 = vmatpush.msrb.mxu0 %v4112_v22 }
  0x30   :  { %3322 = vmatmul.msk.bf16.gmra.mxu0 %vm156_vm0, %v3412_v55  ;;  %629 = vmatpush.msrb.mxu3 %v4101_v19 }
  0x31   :  { %3331 = vmatmul.msk.bf16.gmra.mxu1 %vm156_vm0, %v3412_v55  ;;  %606 = vmatpush.msrb.mxu2 %v4124_v46 }
  0x32   :  { %3340 = vmatmul.msk.bf16.gmra.mxu2 %vm156_vm0, %v3412_v55  ;;  %584 = vmatpush.msrb.mxu1 %v4114_v23 }
  0x33   :  { %3349 = vmatmul.msk.bf16.gmra.mxu3 %vm156_vm0, %v3412_v55  ;;  %v4128_v55 = vld [vmem:[#allocation3] sm:$0xff] }
  0x34   :  { %630 = vmatpush.msrb.mxu3 %v4122_v24  ;;  %562 = vmatpush.msrb.mxu0 %v4128_v55 }
  0x36   :  { %852 = vmatpush.msra.mxu0 %v3905_v25  ;;  %v4149_v25 = vld [vmem:[#allocation3 + $0x10] sm:$0xff] }
  0x38   :  { %853 = vmatpush.msra.mxu0 %v3910_v27 }
  0x3a   :  { %854 = vmatpush.msra.mxu0 %v3922_v31 }
  0x3c   :  { %855 = vmatpush.msra.mxu0 %v3934_v35 }
  0x3e   :  { %856 = vmatpush.msra.mxu0 %v3946_v39 }
  0x40   :  { %3323 = vmatmul.msk.bf16.gmra.mxu0 %vm156_vm0, %v3413_v62 }
  0x41   :  { %3332 = vmatmul.msk.bf16.gmra.mxu1 %vm156_vm0, %v3413_v62  ;;  %857 = vmatpush.msra.mxu0 %v3958_v43 }
  0x42   :  { %3341 = vmatmul.msk.bf16.gmra.mxu2 %vm156_vm0, %v3413_v62 }
  0x43   :  { %3350 = vmatmul.msk.bf16.gmra.mxu3 %vm156_vm0, %v3413_v62  ;;  %v4130_v62 = vld [vmem:[#allocation3 + $0x8] sm:$0xff]  ;;  %858 = vmatpush.msra.mxu0 %v3983_v49 }
  0x44   :  { %585 = vmatpush.msrb.mxu1 %v4130_v62 }
  0x45   :  { %859 = vmatpush.msra.mxu0 %v3995_v53 }
  0x46   :  { %875 = vmatpush.msra.mxu1 %v3907_v26  ;;  %v3418_v26 = vld [vmem:[%s5817_s0 + $0x40] sm:$0xff] }
  0x47   :  { %860 = vmatpush.msra.mxu0 %v4014_v58 }
  0x48   :  { %876 = vmatpush.msra.mxu1 %v3916_v29 }
  0x49   :  { %861 = vmatpush.msra.mxu0 %v4035_v63 }
  0x4a   :  { %877 = vmatpush.msra.mxu1 %v3928_v33 }
  0x4b   :  { %862 = vmatpush.msra.mxu0 %v4045_v3 }
  0x4c   :  { %878 = vmatpush.msra.mxu1 %v3940_v37  ;;  %v3822_v37 = vmov 0.0  }
  0x4d   :  { %863 = vmatpush.msra.mxu0 %v4065_v8 }
  0x4e   :  { %879 = vmatpush.msra.mxu1 %v3952_v41 }
  0x4f   :  { %864 = vmatpush.msra.mxu0 %v4075_v12 }
  0x50   :  { %3324 = vmatmul.msk.bf16.gmra.mxu0 %vm156_vm0, %v3414_v6  ;;  %880 = vmatpush.msra.mxu1 %v3964_v45 }
  0x51   :  { %3333 = vmatmul.msk.bf16.gmra.mxu1 %vm156_vm0, %v3414_v6  ;;  %865 = vmatpush.msra.mxu0 %v4095_v17 }
  0x52   :  { %3342 = vmatmul.msk.bf16.gmra.mxu2 %vm156_vm0, %v3414_v6  ;;  %881 = vmatpush.msra.mxu1 %v3987_v50 }
  0x53   :  { %3351 = vmatmul.msk.bf16.gmra.mxu3 %vm156_vm0, %v3414_v6  ;;  %v3417_v6 = vld [vmem:[%s5817_s0 + $0x38] sm:$0xff]  ;;  %866 = vmatpush.msra.mxu0 %v4112_v22 }
  0x54   :  { %882 = vmatpush.msra.mxu1 %v3997_v54 }
  0x55   :  { %867 = vmatpush.msra.mxu0 %v4128_v55 }
  0x56   :  { %883 = vmatpush.msra.mxu1 %v4018_v59 }
  0x58   :  { %884 = vmatpush.msra.mxu1 %v4037_v0 }
  0x5a   :  { %885 = vmatpush.msra.mxu1 %v4047_v4 }
  0x5c   :  { %886 = vmatpush.msra.mxu1 %v4067_v9 }
  0x5e   :  { %887 = vmatpush.msra.mxu1 %v4079_v13 }
  0x60   :  { %3325 = vmatmul.msk.bf16.gmra.mxu0 %vm156_vm0, %v3415_v14  ;;  %888 = vmatpush.msra.mxu1 %v4099_v18 }
  0x61   :  { %3334 = vmatmul.msk.bf16.gmra.mxu1 %vm156_vm0, %v3415_v14 }
  0x62   :  { %3343 = vmatmul.msk.bf16.gmra.mxu2 %vm156_vm0, %v3415_v14  ;;  %889 = vmatpush.msra.mxu1 %v4114_v23 }
  0x63   :  { %3352 = vmatmul.msk.bf16.gmra.mxu3 %vm156_vm0, %v3415_v14  ;;  %v4143_v14 = vld [vmem:[#allocation3 + $0x18] sm:$0xff] }
  0x64   :  { %631 = vmatpush.msrb.mxu3 %v4143_v14  ;;  %890 = vmatpush.msra.mxu1 %v4130_v62 }
  0x66   :  { %921 = vmatpush.msra.mxu3 %v3914_v28 }
  0x68   :  { %922 = vmatpush.msra.mxu3 %v3926_v32 }
  0x6a   :  { %923 = vmatpush.msra.mxu3 %v3938_v36 }
  0x6c   :  { %924 = vmatpush.msra.mxu3 %v3950_v40 }
  0x6e   :  { %925 = vmatpush.msra.mxu3 %v3962_v44 }
  0x70   :  { %3326 = vmatmul.msk.bf16.gmra.mxu0 %vm156_vm0, %v3416_v21  ;;  %926 = vmatpush.msra.mxu3 %v3979_v47 }
  0x71   :  { %3335 = vmatmul.msk.bf16.gmra.mxu1 %vm156_vm0, %v3416_v21 }
  0x72   :  { %3344 = vmatmul.msk.bf16.gmra.mxu2 %vm156_vm0, %v3416_v21  ;;  %927 = vmatpush.msra.mxu3 %v3989_v51 }
  0x73   :  { %3353 = vmatmul.msk.bf16.gmra.mxu3 %vm156_vm0, %v3416_v21  ;;  %v4145_v21 = vld [vmem:[#allocation3 + $0x30] sm:$0xff] }
  0x74   :  { %607 = vmatpush.msrb.mxu2 %v4145_v21  ;;  %928 = vmatpush.msra.mxu3 %v4010_v56 }
  0x76   :  { %608 = vmatpush.msrb.mxu2 %v4149_v25  ;;  %929 = vmatpush.msra.mxu3 %v4020_v60 }
  0x78   :  { %898 = vmatpush.msra.mxu2 %v3920_v30  ;;  %930 = vmatpush.msra.mxu3 %v4039_v1 }
  0x7a   :  { %899 = vmatpush.msra.mxu2 %v3932_v34  ;;  %931 = vmatpush.msra.mxu3 %v4051_v5 }
  0x7c   :  { %900 = vmatpush.msra.mxu2 %v3944_v38  ;;  %932 = vmatpush.msra.mxu3 %v4071_v10 }
  0x7e   :  { %901 = vmatpush.msra.mxu2 %v3956_v42  ;;  %933 = vmatpush.msra.mxu3 %v4091_v15 }
  0x80   :  { %3327 = vmatmul.msk.bf16.gmra.mxu0 %vm156_vm0, %v3417_v6  ;;  %902 = vmatpush.msra.mxu2 %v3981_v48 }
  0x81   :  { %3336 = vmatmul.msk.bf16.gmra.mxu1 %vm156_vm0, %v3417_v6  ;;  %934 = vmatpush.msra.mxu3 %v4101_v19 }
  0x82   :  { %3345 = vmatmul.msk.bf16.gmra.mxu2 %vm156_vm0, %v3417_v6 }
  0x83   :  { %3354 = vmatmul.msk.bf16.gmra.mxu3 %vm156_vm0, %v3417_v6  ;;  %903 = vmatpush.msra.mxu2 %v3991_v52 }
  0x84   :  { %935 = vmatpush.msra.mxu3 %v4122_v24 }
  0x85   :  { %904 = vmatpush.msra.mxu2 %v4012_v57 }
  0x86   :  { %936 = vmatpush.msra.mxu3 %v4143_v14 }
  0x87   :  { %905 = vmatpush.msra.mxu2 %v4022_v61 }
  0x89   :  { %906 = vmatpush.msra.mxu2 %v4043_v2 }
  0x8b   :  { %907 = vmatpush.msra.mxu2 %v4063_v7 }
  0x8d   :  { %v4180_v27 = vpop.f32.mrf.mxu0  ;;  %908 = vmatpush.msra.mxu2 %v4073_v11 }
  0x8e   :  { %v4184_v28 = vpop.f32.mrf.mxu1 }
  0x8f   :  { %909 = vmatpush.msra.mxu2 %v4093_v16 }
  0x90   :  { %3328 = vmatmul.msk.bf16.gmra.mxu0 %vm156_vm0, %v3418_v26 }
  0x91   :  { %3337 = vmatmul.msk.bf16.gmra.mxu1 %vm156_vm0, %v3418_v26  ;;  %910 = vmatpush.msra.mxu2 %v4103_v20 }
  0x92   :  { %3346 = vmatmul.msk.bf16.gmra.mxu2 %vm156_vm0, %v3418_v26 }
  0x93   :  { %3355 = vmatmul.msk.bf16.gmra.mxu3 %vm156_vm0, %v3418_v26  ;;  %911 = vmatpush.msra.mxu2 %v4124_v46 }
  0x95   :  { %v4198_v29 = vpop.f32.mrf.mxu2  ;;  %v4204_v31 = vpop.f32.mrf.mxu0  ;;  %912 = vmatpush.msra.mxu2 %v4145_v21 }
  0x96   :  { %v4202_v30 = vpop.f32.mrf.mxu3  ;;  %v4208_v32 = vpop.f32.mrf.mxu1 }
  0x97   :  { %913 = vmatpush.msra.mxu2 %v4149_v25 }
  0x9d   :  { %v4222_v33 = vpop.f32.mrf.mxu2  ;;  %v4228_v35 = vpop.f32.mrf.mxu0 }
  0x9e   :  { %v4226_v34 = vpop.f32.mrf.mxu3  ;;  %v4232_v36 = vpop.f32.mrf.mxu1 }
  0xa0   :  { %563 = vmatmul.f32.vlgmr.msrb.gmra.mxu0 %v3822_v37 }
  0xa1   :  { %586 = vmatmul.f32.vlgmr.msrb.gmra.mxu1 %v3822_v37 }
  0xa2   :  { %609 = vmatmul.f32.vlgmr.msrb.gmra.mxu2 %v3822_v37 }
  0xa3   :  { %632 = vmatmul.f32.vlgmr.msrb.gmra.mxu3 %v3822_v37 }
  0xa5   :  { %v4241_v38 = vpop.f32.mrf.mxu2  ;;  %v4245_v40 = vpop.f32.mrf.mxu0 }
  0xa6   :  { %v4243_v39 = vpop.f32.mrf.mxu3  ;;  %v4247_v41 = vpop.f32.mrf.mxu1 }
  0xa8   :  { %566 = vmatmul.f32.gmra.mxu0 %v3822_v37 }
  0xa9   :  { %589 = vmatmul.f32.gmra.mxu1 %v3822_v37 }
  0xaa   :  { %612 = vmatmul.f32.gmra.mxu2 %v3822_v37 }
  0xab   :  { %635 = vmatmul.f32.gmra.mxu3 %v3822_v37 }
  0xad   :  { %v4249_v42 = vpop.f32.mrf.mxu2  ;;  %v4253_v44 = vpop.f32.mrf.mxu0 }
  0xae   :  { %v4251_v43 = vpop.f32.mrf.mxu3  ;;  %5894 = vst [vmem:[#allocation9_spill] sm:$0xff] %v4253_v44  ;;  %v4255_v45 = vpop.f32.mrf.mxu1  ;;  %v4589_v44 = vld [vmem:[#allocation3 + $0x90] sm:$0xff] }
  0xaf   :  { %5895 = vst [vmem:[#allocation10_spill] sm:$0xff] %v4255_v45  ;;  %v4585_v45 = vld [vmem:[#allocation3 + $0x80] sm:$0xff] }
  0xb0   :  { %5960 = vst [vmem:[#allocation73_spill] sm:$0xff] %v4589_v44 }
  0xb5   :  { %v4257_v47 = vpop.f32.mrf.mxu2  ;;  %v4261_v49 = vpop.f32.mrf.mxu0 }
  0xb6   :  { %5896 = vst [vmem:[#allocation11_spill] sm:$0xff] %v4257_v47  ;;  %v4259_v48 = vpop.f32.mrf.mxu3  ;;  %v4263_v50 = vpop.f32.mrf.mxu1  ;;  %v4581_v47 = vld [vmem:[#allocation3 + $0xb8] sm:$0xff] }
  0xb7   :  { %5897 = vst [vmem:[#allocation12_spill] sm:$0xff] %v4259_v48 }
  0xb8   :  { %5898 = vst [vmem:[#allocation13_spill] sm:$0xff] %v4261_v49 }
  0xb9   :  { %5899 = vst [vmem:[#allocation14_spill] sm:$0xff] %v4263_v50 }
  0xba   :  { %5958 = vst [vmem:[#allocation71_spill] sm:$0xff] %v4581_v47 }
  0xbd   :  { %v4265_v51 = vpop.f32.mrf.mxu2  ;;  %v4269_v53 = vpop.f32.mrf.mxu0 }
  0xbe   :  { %5900 = vst [vmem:[#allocation15_spill] sm:$0xff] %v4265_v51  ;;  %v4267_v52 = vpop.f32.mrf.mxu3  ;;  %v4271_v54 = vpop.f32.mrf.mxu1  ;;  %v4573_v51 = vld [vmem:[#allocation3 + $0xb0] sm:$0xff] }
  0xbf   :  { %5901 = vst [vmem:[#allocation16_spill] sm:$0xff] %v4267_v52 }
  0xc0   :  { %5902 = vst [vmem:[#allocation17_spill] sm:$0xff] %v4269_v53  ;;  %v4571_v53 = vld [vmem:[#allocation3 + $0xa8] sm:$0xff] }
  0xc1   :  { %5903 = vst [vmem:[#allocation18_spill] sm:$0xff] %v4271_v54 }
  0xc2   :  { %5956 = vst [vmem:[#allocation69_spill] sm:$0xff] %v4571_v53 }
  0xc3   :  { %5957 = vst [vmem:[#allocation70_spill] sm:$0xff] %v4573_v51 }
  0xc5   :  { %v4273_v56 = vpop.f32.mrf.mxu2  ;;  %v4277_v58 = vpop.f32.mrf.mxu0 }
  0xc6   :  { %5904 = vst [vmem:[#allocation19_spill] sm:$0xff] %v4273_v56  ;;  %v4275_v57 = vpop.f32.mrf.mxu3  ;;  %v4279_v59 = vpop.f32.mrf.mxu1  ;;  %v4553_v56 = vld [vmem:[#allocation3 + $0xf8] sm:$0xff] }
  0xc7   :  { %5905 = vst [vmem:[#allocation20_spill] sm:$0xff] %v4275_v57  ;;  %v4561_v57 = vld [vmem:[#allocation3 + $0xd0] sm:$0xff] }
  0xc8   :  { %5906 = vst [vmem:[#allocation21_spill] sm:$0xff] %v4277_v58  ;;  %v4559_v58 = vld [vmem:[#allocation3 + $0xc8] sm:$0xff] }
  0xc9   :  { %5907 = vst [vmem:[#allocation22_spill] sm:$0xff] %v4279_v59  ;;  %v4557_v59 = vld [vmem:[#allocation3 + $0xc0] sm:$0xff] }
  0xcd   :  { %v4281_v60 = vpop.f32.mrf.mxu2  ;;  %v4285_v63 = vpop.f32.mrf.mxu0 }
  0xce   :  { %5908 = vst [vmem:[#allocation23_spill] sm:$0xff] %v4281_v60  ;;  %v4283_v61 = vpop.f32.mrf.mxu3  ;;  %v4287_v0 = vpop.f32.mrf.mxu1  ;;  %v4547_v60 = vld [vmem:[#allocation3 + $0xf0] sm:$0xff] }
  0xcf   :  { %5909 = vst [vmem:[#allocation24_spill] sm:$0xff] %v4283_v61 }
  0xd0   :  { %5910 = vst [vmem:[#allocation25_spill] sm:$0xff] %v4285_v63 }
  0xd1   :  { %5911 = vst [vmem:[#allocation26_spill] sm:$0xff] %v4287_v0 }
  0xd5   :  { %v4289_v1 = vpop.f32.mrf.mxu2  ;;  %v4293_v3 = vpop.f32.mrf.mxu0 }
  0xd6   :  { %5912 = vst [vmem:[#allocation27_spill] sm:$0xff] %v4289_v1  ;;  %v4291_v2 = vpop.f32.mrf.mxu3  ;;  %v4295_v4 = vpop.f32.mrf.mxu1 }
  0xd7   :  { %5913 = vst [vmem:[#allocation28_spill] sm:$0xff] %v4291_v2  ;;  %v4527_v2 = vld [vmem:[#allocation3 + $0x138] sm:$0xff] }
  0xd8   :  { %5914 = vst [vmem:[#allocation29_spill] sm:$0xff] %v4293_v3  ;;  %v4523_v3 = vld [vmem:[#allocation3 + $0x130] sm:$0xff] }
  0xd9   :  { %5915 = vst [vmem:[#allocation30_spill] sm:$0xff] %v4295_v4 }
  0xdd   :  { %v4297_v5 = vpop.f32.mrf.mxu2  ;;  %v4301_v8 = vpop.f32.mrf.mxu0 }
  0xde   :  { %5916 = vst [vmem:[#allocation31_spill] sm:$0xff] %v4297_v5  ;;  %v4299_v7 = vpop.f32.mrf.mxu3  ;;  %v4303_v9 = vpop.f32.mrf.mxu1 }
  0xdf   :  { %5917 = vst [vmem:[#allocation32_spill] sm:$0xff] %v4299_v7 }
  0xe0   :  { %5918 = vst [vmem:[#allocation33_spill] sm:$0xff] %v4301_v8 }
  0xe1   :  { %5919 = vst [vmem:[#allocation34_spill] sm:$0xff] %v4303_v9 }
  0xe5   :  { %v4305_v10 = vpop.f32.mrf.mxu2  ;;  %v4309_v12 = vpop.f32.mrf.mxu0 }
  0xe6   :  { %5920 = vst [vmem:[#allocation35_spill] sm:$0xff] %v4305_v10  ;;  %v4307_v11 = vpop.f32.mrf.mxu3  ;;  %v4311_v13 = vpop.f32.mrf.mxu1 }
  0xe7   :  { %5921 = vst [vmem:[#allocation36_spill] sm:$0xff] %v4307_v11 }
  0xe8   :  { %5922 = vst [vmem:[#allocation37_spill] sm:$0xff] %v4309_v12 }
  0xe9   :  { %5923 = vst [vmem:[#allocation38_spill] sm:$0xff] %v4311_v13 }
  0xed   :  { %v4313_v15 = vpop.f32.mrf.mxu2  ;;  %v4317_v17 = vpop.f32.mrf.mxu0 }
  0xee   :  { %5924 = vst [vmem:[#allocation39_spill] sm:$0xff] %v4313_v15  ;;  %v4315_v16 = vpop.f32.mrf.mxu3  ;;  %v4319_v18 = vpop.f32.mrf.mxu1 }
  0xef   :  { %5925 = vst [vmem:[#allocation40_spill] sm:$0xff] %v4315_v16 }
  0xf0   :  { %5926 = vst [vmem:[#allocation41_spill] sm:$0xff] %v4317_v17 }
  0xf1   :  { %5927 = vst [vmem:[#allocation42_spill] sm:$0xff] %v4319_v18 }
  0xf5   :  { %v4321_v19 = vpop.f32.mrf.mxu2  ;;  %v4325_v22 = vpop.f32.mrf.mxu0 }
  0xf6   :  { %5928 = vst [vmem:[#allocation43_spill] sm:$0xff] %v4321_v19  ;;  %v4323_v20 = vpop.f32.mrf.mxu3  ;;  %v4327_v23 = vpop.f32.mrf.mxu1 }
  0xf7   :  { %5929 = vst [vmem:[#allocation44_spill] sm:$0xff] %v4323_v20 }
  0xf8   :  { %5930 = vst [vmem:[#allocation45_spill] sm:$0xff] %v4325_v22 }
  0xf9   :  { %5931 = vst [vmem:[#allocation46_spill] sm:$0xff] %v4327_v23 }
  0xfd   :  { %v4329_v24 = vpop.f32.mrf.mxu2  ;;  %v4333_v55 = vpop.f32.mrf.mxu0 }
  0xfe   :  { %5932 = vst [vmem:[#allocation47_spill] sm:$0xff] %v4329_v24  ;;  %v4331_v46 = vpop.f32.mrf.mxu3  ;;  %v4335_v62 = vpop.f32.mrf.mxu1 }
  0xff   :  { %5933 = vst [vmem:[#allocation48_spill] sm:$0xff] %v4331_v46 }
 0x100   :  { %5934 = vst [vmem:[#allocation49_spill] sm:$0xff] %v4333_v55 }
 0x101   :  { %5935 = vst [vmem:[#allocation50_spill] sm:$0xff] %v4335_v62  ;;  %v61_v62 = vld [vmem:[%s5820_s3] sm:$0xf]  ;;  %s3823_s3 = smov [#allocation6]  }
 0x102   :  { %v4374_v22 = vperm.slane %v61_v62, 3  ;;  %v4384_v15 = vperm.slane %v61_v62, 2  ;;  %s3229_s18 = sshll.u32 %s3823_s3, 4  ;;  %s3230_s18 = int_to_ptr.vmem [resolvable:$true] %s3229_s18 }
 0x104   :  { %5951 = vst [vmem:[#allocation66_spill] sm:$0xff] %v4374_v22  ;;  %v361_v61 = vadd.f32 %v4243_v39, %v4374_v22  ;;  %v4565_v39 = vld [vmem:[#allocation3 + $0xd8] sm:$0xff] }
 0x105   :  { %v4337_v6 = vpop.f32.mrf.mxu2  ;;  %v4341_v21 = vpop.f32.mrf.mxu0 }
 0x106   :  { %5936 = vst [vmem:[#allocation51_spill] sm:$0xff] %v4337_v6  ;;  %v4339_v14 = vpop.f32.mrf.mxu3  ;;  %v4343_v25 = vpop.f32.mrf.mxu1 }
 0x107   :  { %5937 = vst [vmem:[#allocation52_spill] sm:$0xff] %v4339_v14 }
 0x108   :  { %5938 = vst [vmem:[#allocation53_spill] sm:$0xff] %v4341_v21  ;;  %v4362_v21 = vperm.slane %v61_v62, 0 }
 0x109   :  { %5939 = vst [vmem:[#allocation54_spill] sm:$0xff] %v4343_v25  ;;  %v4364_v25 = vperm.slane %v61_v62, 1 }
 0x10a   :  { %5947 = vst [vmem:[#allocation62_spill] sm:$0xff] %v4362_v21  ;;  %v201_v52 = vadd.f32 %v4245_v40, %v4362_v21  ;;  %v4587_v40 = vld [vmem:[#allocation3 + $0x88] sm:$0xff] }
 0x10b   :  { %5948 = vst [vmem:[#allocation63_spill] sm:$0xff] %v4364_v25 }
 0x10c   :  { %5959 = vst [vmem:[#allocation72_spill] sm:$0xff] %v4587_v40 }
 0x10d   :  { %v4347_v37 = vpop.f32.mrf.mxu0  ;;  %v4351_v24 = vpop.f32.mrf.mxu2 }
 0x10e   :  { %v4345_v26 = vpop.f32.mrf.mxu3  ;;  %5941 = vst [vmem:[#allocation56_spill] sm:$0xff] %v4347_v37  ;;  %v4349_v19 = vpop.f32.mrf.mxu1  ;;  %v248_v37 = vadd.f32 %v4184_v28, %v4364_v25  ;;  %v196_v28 = vadd.f32 %v4204_v31, %v4362_v21  ;;  %v358_v31 = vadd.f32 %v4226_v34, %v4374_v22 }
 0x10f   :  { %5940 = vst [vmem:[#allocation55_spill] sm:$0xff] %v4345_v26 }
 0x110   :  { %5942 = vst [vmem:[#allocation57_spill] sm:$0xff] %v4349_v19  ;;  %v194_v19 = vadd.f32 %v4180_v27, %v4362_v21  ;;  %v356_v27 = vadd.f32 %v4202_v30, %v4374_v22 }
 0x111   :  { %5943 = vst [vmem:[#allocation58_spill] sm:$0xff] %v4351_v24 }
 0x115   :  { %v4358_v6 = vpop.f32.mrf.mxu0  ;;  %v4366_v26 = vpop.f32.mrf.mxu2 }
 0x116   :  { %v4356_v55 = vpop.f32.mrf.mxu3  ;;  %5945 = vst [vmem:[#allocation60_spill] sm:$0xff] %v4358_v6  ;;  %v4360_v14 = vpop.f32.mrf.mxu1 }
 0x117   :  { %5944 = vst [vmem:[#allocation59_spill] sm:$0xff] %v4356_v55 }
 0x118   :  { %5946 = vst [vmem:[#allocation61_spill] sm:$0xff] %v4360_v14 }
 0x119   :  { %5949 = vst [vmem:[#allocation64_spill] sm:$0xff] %v4366_v26 }
 0x11d   :  { %v564_v46 = vpop.f32.mrf.mxu0  ;;  %v4376_v18 = vpop.f32.mrf.mxu2 }
 0x11e   :  { %v4372_v24 = vpop.f32.mrf.mxu3  ;;  %v639_v55 = vadd.f32 %v564_v46, %v194_v19  ;;  %v587_v23 = vpop.f32.mrf.mxu1  ;;  %5952 = vst [vmem:[#allocation67_spill] sm:$0xff] %v4376_v18 }
 0x11f   :  { %5950 = vst [vmem:[#allocation65_spill] sm:$0xff] %v4372_v24  ;;  %v640_v6 = vadd.f32 %v587_v23, %v248_v37  ;;  %v250_v24 = vadd.f32 %v4208_v32, %v4364_v25 }
 0x120   :  { %v3356_v14 = vmul.f32 -1.442695, %v639_v55 }
 0x121   :  { %v3358_v20 = vmul.f32 -1.442695, %v640_v6 }
 0x122   :  { %3479 = vpow2.f32 %v3356_v14 }
 0x123   :  { %3481 = vpow2.f32 %v3358_v20 }
 0x125   :  { %v567_v46 = vpop.f32.mrf.mxu0  ;;  %v610_v32 = vpop.f32.mrf.mxu2 }
 0x126   :  { %v633_v19 = vpop.f32.mrf.mxu3  ;;  %v643_v37 = vadd.f32 %v567_v46, %v196_v28  ;;  %v590_v26 = vpop.f32.mrf.mxu1 }
 0x127   :  { %v642_v23 = vadd.f32 %v633_v19, %v356_v27  ;;  %v644_v55 = vadd.f32 %v590_v26, %v250_v24  ;;  %v302_v24 = vadd.f32 %v4198_v29, %v4384_v15 }
 0x128   :  { %v3480_v6 = vpop.eup %3479  ;;  %v3357_v20 = vmul.f32 -1.442695, %v643_v37 }
 0x129   :  { %v3360_v14 = vmul.f32 -1.442695, %v642_v23  ;;  %v3482_v17 = vpop.eup %3481  ;;  %v653_v18 = vadd.f32 1.0, %v3480_v6  ;;  %v3359_v16 = vmul.f32 -1.442695, %v644_v55  ;;  %v641_v19 = vadd.f32 %v610_v32, %v302_v24 }
 0x12a   :  { %v691_v30 = vadd.f32 1.0, %v3482_v17 }
 0x12b   :  { %3483 = vpow2.f32 %v3360_v14  ;;  %vm660_vm4 = vweird.f32 %v653_v18 }
 0x12c   :  { %3485 = vrcp.f32 %v653_v18  ;;  %vm698_vm3 = vweird.f32 %v691_v30 }
 0x12d   :  { %3487 = vrcp.f32 %v691_v30 }
 0x12e   :  { %3489 = vpow2.f32 %v3357_v20  ;;  %v636_v27 = vpop.f32.mrf.mxu3 }
 0x12f   :  { %3491 = vpow2.f32 %v3359_v16  ;;  %v646_v26 = vadd.f32 %v636_v27, %v358_v31  ;;  %v664_v16 = vand.u32 2147483647, %v653_v18  ;;  %v666_v31 = vand.u32 2147483648, %v653_v18 }
 0x130   :  { %v704_v27 = vand.u32 2147483648, %v691_v30 }
 0x131   :  { %v3484_v28 = vpop.eup %3483  ;;  %v3361_v62 = vmul.f32 -1.442695, %v646_v26  ;;  %vm665_vm6 = vcmp.eq.f32.partialorder %v664_v16, 8.507059e+37 }
 0x132   :  { %v3486_v46 = vpop.eup %3485  ;;  %v4390_v17 = vadd.f32 1.0, %v3484_v28  ;;  %v702_v28 = vand.u32 2147483647, %v691_v30  ;;  %v705_v13 = vor.u32 1.1754944e-38, %v704_v27 }
 0x133   :  { %v3488_v23 = vpop.eup %3487  ;;  %v656_v37 = vmul.f32 %v3486_v46, %v653_v18  ;;  %3493 = vpow2.f32 %v3361_v62  ;;  %vm661_vm1 = vweird.f32 %v3486_v46  ;;  %v613_v62 = vpop.f32.mrf.mxu2 }
 0x134   :  { %v3490_v55 = vpop.eup %3489  ;;  %v694_v34 = vmul.f32 %v3488_v23, %v691_v30  ;;  %3495 = vrcp.f32 %v4390_v17  ;;  %vm699_vm2 = vweird.f32 %v3488_v23  ;;  %vm662_vm5 = vmor %vm660_vm4, %vm661_vm1  ;;  %vm703_vm8 = vcmp.eq.f32.partialorder %v702_v28, 8.507059e+37 }
 0x135   :  { %v3492_v6 = vpop.eup %3491  ;;  %v657_v14 = vsub.f32 1.0, %v656_v37  ;;  %3497 = vtanh.f32 %v641_v19  ;;  %v4393_v20 = vadd.f32 1.0, %v3490_v55  ;;  %v304_v19 = vadd.f32 %v4222_v33, %v4384_v15  ;;  %vm700_vm7 = vmor %vm698_vm3, %vm699_vm2 }
 0x136   :  { %v695_v29 = vsub.f32 1.0, %v694_v34  ;;  %v4395_v32 = vadd.f32 1.0, %v3492_v6  ;;  %v667_v6 = vor.u32 1.1754944e-38, %v666_v31  ;;  %vm738_vm9 = vweird.f32 %v4390_v17 }
 0x137   :  { %v658_v24 = vmul.f32 %v3486_v46, %v657_v14  ;;  %3499 = vrcp.f32 %v4393_v20  ;;  %v645_v33 = vadd.f32 %v613_v62, %v304_v19  ;;  %vm675_vm14 = vweird.f32 %v4393_v20 }
 0x138   :  { %v696_v26 = vmul.f32 %v3488_v23, %v695_v29  ;;  %3501 = vrcp.f32 %v4395_v32  ;;  %vm713_vm15 = vweird.f32 %v4395_v32 }
 0x139   :  { %v3494_v37 = vpop.eup %3493  ;;  %v659_v55 = vadd.f32 %v3486_v46, %v658_v24 }
 0x13a   :  { %v4401_v34 = vpop.eup %3495  ;;  %v697_v14 = vadd.f32 %v3488_v23, %v696_v26  ;;  %v4403_v10 = vadd.f32 1.0, %v3494_v37 }
 0x13b   :  { %v3498_v29 = vpop.eup %3497  ;;  %v663_v12 = vsel %vm662_vm5, %v3486_v46, %v659_v55  ;;  %v734_v11 = vmul.f32 %v4401_v34, %v4390_v17  ;;  %vm739_vm10 = vweird.f32 %v4401_v34  ;;  %v679_v55 = vand.u32 2147483647, %v4393_v20 }
 0x13c   :  { %v668_v30 = vsel %vm665_vm6, %v667_v6, %v663_v12  ;;  %v701_v24 = vsel %vm700_vm7, %v3488_v23, %v697_v14  ;;  %3503 = vrcp.f32 %v4403_v10  ;;  %v744_v23 = vand.u32 2147483648, %v4390_v17  ;;  %vm4426_vm13 = vmor %vm738_vm9, %vm739_vm10 }
 0x13d   :  { %v3500_v18 = vpop.eup %3499  ;;  %v706_v9 = vsel %vm703_vm8, %v705_v13, %v701_v24  ;;  %v765_v8 = vmul.f32 %v3498_v29, %v668_v30  ;;  %v735_v16 = vsub.f32 1.0, %v734_v11  ;;  %3505 = vtanh.f32 %v645_v33  ;;  %v4445_v33 = vld [vmem:[#allocation3 + $0x1e8] sm:$0xff] }
 0x13e   :  { %v3502_v31 = vpop.eup %3501  ;;  %v763_v26 = vmul.f32 0.0, %v706_v9  ;;  %v671_v27 = vmul.f32 %v3500_v18, %v4393_v20  ;;  %v719_v11 = vand.u32 2147483648, %v4395_v32  ;;  %v681_v9 = vand.u32 2147483648, %v4393_v20  ;;  %1181 = vmatpush.msrb.mxu1 %v4445_v33 }
 0x13f   :  { %v736_v46 = vmul.f32 %v4401_v34, %v735_v16  ;;  %v709_v37 = vmul.f32 %v3502_v31, %v4395_v32  ;;  %vm676_vm11 = vweird.f32 %v3500_v18  ;;  %vm714_vm12 = vweird.f32 %v3502_v31 }
 0x140   :  { %v4413_v12 = vadd.f32 %v765_v8, %v763_v26  ;;  %v672_v13 = vsub.f32 1.0, %v671_v27  ;;  %v717_v14 = vand.u32 2147483647, %v4395_v32  ;;  %v742_v29 = vand.u32 2147483647, %v4390_v17  ;;  %vm677_vm0 = vmor %vm675_vm14, %vm676_vm11 }
 0x141   :  { %v710_v28 = vsub.f32 1.0, %v709_v37  ;;  %v737_v62 = vadd.f32 %v4401_v34, %v736_v46  ;;  %v745_v30 = vor.u32 1.1754944e-38, %v744_v23  ;;  %v682_v27 = vor.u32 1.1754944e-38, %v681_v9  ;;  %vm715_vm2 = vmor %vm713_vm15, %vm714_vm12 }
 0x142   :  { %3507 = vtanh.f32 %v4413_v12  ;;  %v673_v19 = vmul.f32 %v3500_v18, %v672_v13  ;;  %v3504_v8 = vpop.eup %3503  ;;  %v720_v37 = vor.u32 1.1754944e-38, %v719_v11  ;;  %vm680_vm1 = vcmp.eq.f32.partialorder %v679_v55, 8.507059e+37 }
 0x143   :  { %v711_v6 = vmul.f32 %v3502_v31, %v710_v28  ;;  %v749_v16 = vmul.f32 %v3504_v8, %v4403_v10  ;;  %v3506_v26 = vpop.eup %3505  ;;  %v741_v17 = vsel %vm4426_vm13, %v4401_v34, %v737_v62  ;;  %vm718_vm3 = vcmp.eq.f32.partialorder %v717_v14, 8.507059e+37 }
 0x144   :  { %v674_v24 = vadd.f32 %v3500_v18, %v673_v19  ;;  %vm743_vm4 = vcmp.eq.f32.partialorder %v742_v29, 8.507059e+37  ;;  %vm754_vm5 = vweird.f32 %v3504_v8  ;;  %vm753_vm6 = vweird.f32 %v4403_v10 }
 0x145   :  { %v712_v46 = vadd.f32 %v3502_v31, %v711_v6  ;;  %v750_v23 = vsub.f32 1.0, %v749_v16  ;;  %v746_v9 = vsel %vm743_vm4, %v745_v30, %v741_v17  ;;  %vm755_vm7 = vmor %vm753_vm6, %vm754_vm5  ;;  %v4447_v30 = vld [vmem:[#allocation3 + $0x1f0] sm:$0xff]  ;;  %v4463_v16 = vld [vmem:[#allocation3 + $0x1d8] sm:$0xff] }
 0x146   :  { %v678_v13 = vsel %vm677_vm0, %v3500_v18, %v674_v24  ;;  %v759_v18 = vand.u32 2147483648, %v4403_v10  ;;  %1204 = vmatpush.msrb.mxu2 %v4447_v30  ;;  %v4459_v24 = vld [vmem:[#allocation3 + $0x1d0] sm:$0xff]  ;;  %v4475_v17 = vld [vmem:[#allocation3 + $0x1b8] sm:$0xff] }
 0x147   :  { %v683_v28 = vsel %vm680_vm1, %v682_v27, %v678_v13  ;;  %v716_v20 = vsel %vm715_vm2, %v3502_v31, %v712_v46  ;;  %v751_v7 = vmul.f32 %v3504_v8, %v750_v23  ;;  %v757_v31 = vand.u32 2147483647, %v4403_v10  ;;  %v4451_v10 = vld [vmem:[#allocation3 + $0x1f8] sm:$0xff]  ;;  %v4469_v27 = vld [vmem:[#allocation3 + $0x1a8] sm:$0xff]  ;;  %v4471_v46 = vld [vmem:[#allocation3 + $0x1b0] sm:$0xff] }
 0x148   :  { %v3508_v19 = vpop.eup %3507  ;;  %v721_v5 = vsel %vm718_vm3, %v720_v37, %v716_v20  ;;  %v766_v32 = vmul.f32 %v3506_v26, %v683_v28  ;;  %1227 = vmatpush.msrb.mxu3 %v4451_v10  ;;  %1205 = vmatpush.msrb.mxu2 %v4459_v24  ;;  %v4467_v26 = vld [vmem:[#allocation3 + $0x1a0] sm:$0xff]  ;;  %v4481_v13 = vld [vmem:[#allocation3 + $0x188] sm:$0xff]  ;;  %v4483_v23 = vld [vmem:[#allocation3 + $0x190] sm:$0xff] }
 0x149   :  { %v764_v6 = vmul.f32 0.0, %v721_v5  ;;  %v771_v1 = vmul.f32 %v3508_v19, %v746_v9  ;;  %v752_v34 = vadd.f32 %v3504_v8, %v751_v7  ;;  %v760_v5 = vor.u32 1.1754944e-38, %v759_v18  ;;  %v4443_v7 = vld [vmem:[#allocation3 + $0x1e0] sm:$0xff]  ;;  %v4487_v28 = vld [vmem:[#allocation3 + $0x198] sm:$0xff]  ;;  %v4493_v19 = vld [vmem:[#allocation3 + $0x168] sm:$0xff] }
 0x14a   :  { %vm758_vm8 = vcmp.eq.f32.partialorder %v757_v31, 8.507059e+37  ;;  %1158 = vmatpush.msrb.mxu0 %v4443_v7  ;;  %1228 = vmatpush.msrb.mxu3 %v4463_v16  ;;  %v4479_v37 = vld [vmem:[#allocation3 + $0x180] sm:$0xff]  ;;  %v4499_v9 = vld [vmem:[#allocation3 + $0x178] sm:$0xff]  ;;  %v4509_v31 = vld [vmem:[#allocation3 + $0x148] sm:$0xff] }
 0x14b   :  { %v4437_v4 = vadd.f32 %v766_v32, %v764_v6  ;;  %868 = vmatmul.f32.vlgmr.msra.gmra.mxu0 %v771_v1  ;;  %891 = vmatmul.f32.vlgmr.msra.gmra.mxu1 %v771_v1  ;;  %v756_v11 = vsel %vm755_vm7, %v3504_v8, %v752_v34  ;;  %v4457_v8 = vld [vmem:[#allocation3 + $0x1c8] sm:$0xff]  ;;  %v4491_v20 = vld [vmem:[#allocation3 + $0x160] sm:$0xff]  ;;  %v4495_v32 = vld [vmem:[#allocation3 + $0x170] sm:$0xff]  ;;  %v199_v6 = vadd.f32 %v4228_v35, %v4362_v21 }
 0x14c   :  { %914 = vmatmul.f32.vlgmr.msra.gmra.mxu2 %v771_v1  ;;  %937 = vmatmul.f32.vlgmr.msra.gmra.mxu3 %v771_v1  ;;  %v761_v55 = vsel %vm758_vm8, %v760_v5, %v756_v11  ;;  %v253_v34 = vadd.f32 %v4232_v36, %v4364_v25  ;;  %v4507_v18 = vld [vmem:[#allocation3 + $0x140] sm:$0xff]  ;;  %v4511_v11 = vld [vmem:[#allocation3 + $0x150] sm:$0xff]  ;;  %v4515_v35 = vld [vmem:[#allocation3 + $0x158] sm:$0xff] }
 0x14d   :  { %5955 = vst [vmem:[#allocation68_spill] sm:$0xff] %v4437_v4  ;;  %3509 = vtanh.f32 %v4437_v4  ;;  %1182 = vmatpush.msrb.mxu1 %v4457_v8  ;;  %1206 = vmatpush.msrb.mxu2 %v4471_v46  ;;  %v4595_v4 = vld [vmem:[#allocation3 + $0x98] sm:$0xff] }
 0x14e   :  { %1229 = vmatpush.msrb.mxu3 %v4475_v17  ;;  %5961 = vst [vmem:[#allocation74_spill] sm:$0xff] %v4595_v4 }
 0x14f   :  { %1183 = vmatpush.msrb.mxu1 %v4469_v27  ;;  %1207 = vmatpush.msrb.mxu2 %v4483_v23 }
 0x150   :  { %1230 = vmatpush.msrb.mxu3 %v4487_v28 }
 0x151   :  { %1184 = vmatpush.msrb.mxu1 %v4481_v13  ;;  %1208 = vmatpush.msrb.mxu2 %v4495_v32 }
 0x152   :  { %1231 = vmatpush.msrb.mxu3 %v4499_v9 }
 0x153   :  { %v3510_v62 = vpop.eup %3509  ;;  %1185 = vmatpush.msrb.mxu1 %v4493_v19  ;;  %1209 = vmatpush.msrb.mxu2 %v4511_v11 }
 0x154   :  { %v772_v14 = vmul.f32 %v3510_v62, %v761_v55  ;;  %1232 = vmatpush.msrb.mxu3 %v4515_v35 }
 0x155   :  { %1186 = vmatpush.msrb.mxu1 %v4509_v31  ;;  %1210 = vmatpush.msrb.mxu2 %v4523_v3 }
 0x156   :  { %v3430_v29 = vpack.c.bf16 %v772_v14, %v771_v1  ;;  %871 = vmatmul.f32.gmra.mxu0 %v772_v14  ;;  %894 = vmatmul.f32.gmra.mxu1 %v772_v14  ;;  %v4455_v1 = vld [vmem:[#allocation3 + $0x1c0] sm:$0xff] }
 0x157   :  { %917 = vmatmul.f32.gmra.mxu2 %v772_v14  ;;  %940 = vmatmul.f32.gmra.mxu3 %v772_v14  ;;  %v4519_v14 = vld [vmem:[#allocation3 + $0x120] sm:$0xff] }
 0x158   :  { %3431 = vst [vmem:[#allocation6] sm:$0xff] %v3430_v29   ;;  %1159 = vmatpush.msrb.mxu0 %v4455_v1  ;;  %v4521_v29 = vld [vmem:[#allocation3 + $0x128] sm:$0xff]  ;;  %1233 = vmatpush.msrb.mxu3 %v4527_v2 }
 0x159   :  { %1187 = vmatpush.msrb.mxu1 %v4521_v29 }
 0x15a   :  { %1160 = vmatpush.msrb.mxu0 %v4467_v26 }
 0x15c   :  { %1161 = vmatpush.msrb.mxu0 %v4479_v37 }
 0x15e   :  { %1162 = vmatpush.msrb.mxu0 %v4491_v20 }
 0x160   :  { %1163 = vmatpush.msrb.mxu0 %v4507_v18 }
 0x162   :  { %1164 = vmatpush.msrb.mxu0 %v4519_v14 }
 0x1c8   :  { %v869_v5 = vpop.f32.mrf.mxu0  ;;  %v892_v62 = vpop.f32.mrf.mxu1 }
 0x1c9   :  { %v944_v55 = vadd.f32 %v869_v5, %v199_v6  ;;  %v945_v36 = vadd.f32 %v892_v62, %v253_v34  ;;  %v4531_v6 = vld [vmem:[#allocation3 + $0x100] sm:$0xff]  ;;  %v4533_v34 = vld [vmem:[#allocation3 + $0x108] sm:$0xff]  ;;  %v4537_v5 = vld [vmem:[#allocation3 + $0x110] sm:$0xff] }
 0x1ca   :  { %1165 = vmatpush.msrb.mxu0 %v4531_v6  ;;  %1188 = vmatpush.msrb.mxu1 %v4533_v34  ;;  %v4539_v62 = vld [vmem:[#allocation3 + $0x118] sm:$0xff] }
 0x1cb   :  { %v3362_v0 = vmul.f32 -1.442695, %v944_v55  ;;  %v3364_v63 = vmul.f32 -1.442695, %v945_v36  ;;  %1211 = vmatpush.msrb.mxu2 %v4537_v5  ;;  %1234 = vmatpush.msrb.mxu3 %v4539_v62  ;;  %v4543_v55 = vld [vmem:[#allocation3 + $0xe0] sm:$0xff]  ;;  %v4545_v36 = vld [vmem:[#allocation3 + $0xe8] sm:$0xff] }
 0x1cc   :  { %1166 = vmatpush.msrb.mxu0 %v4543_v55  ;;  %1189 = vmatpush.msrb.mxu1 %v4545_v36 }
 0x1cd   :  { %3511 = vpow2.f32 %v3362_v0  ;;  %1212 = vmatpush.msrb.mxu2 %v4547_v60  ;;  %1235 = vmatpush.msrb.mxu3 %v4553_v56 }
 0x1ce   :  { %3513 = vpow2.f32 %v3364_v63  ;;  %1167 = vmatpush.msrb.mxu0 %v4557_v59  ;;  %1190 = vmatpush.msrb.mxu1 %v4559_v58  ;;  %v4569_v63 = vld [vmem:[#allocation3 + $0xa0] sm:$0xff] }
 0x1cf   :  { %v938_v0 = vpop.f32.mrf.mxu3  ;;  %1213 = vmatpush.msrb.mxu2 %v4561_v57  ;;  %1236 = vmatpush.msrb.mxu3 %v4565_v39 }
 0x1d0   :  { %v947_v54 = vadd.f32 %v938_v0, %v361_v61  ;;  %v255_v61 = vadd.f32 %v4247_v41, %v4364_v25  ;;  %1168 = vmatpush.msrb.mxu0 %v4569_v63  ;;  %1191 = vmatpush.msrb.mxu1 %v4571_v53  ;;  %v4603_v53 = vld [vmem:[#allocation3 + $0x68] sm:$0xff] }
 0x1d1   :  { %1214 = vmatpush.msrb.mxu2 %v4573_v51  ;;  %1237 = vmatpush.msrb.mxu3 %v4581_v47  ;;  %v4601_v47 = vld [vmem:[#allocation3 + $0x60] sm:$0xff]  ;;  %5963 = vst [vmem:[#allocation76_spill] sm:$0xff] %v4603_v53 }
 0x1d2   :  { %v3366_v0 = vmul.f32 -1.442695, %v947_v54  ;;  %1169 = vmatpush.msrb.mxu0 %v4585_v45  ;;  %1192 = vmatpush.msrb.mxu1 %v4587_v40  ;;  %5962 = vst [vmem:[#allocation75_spill] sm:$0xff] %v4601_v47 }
 0x1d3   :  { %v3512_v50 = vpop.eup %3511  ;;  %v872_v49 = vpop.f32.mrf.mxu0  ;;  %1215 = vmatpush.msrb.mxu2 %v4589_v44  ;;  %1238 = vmatpush.msrb.mxu3 %v4595_v4  ;;  %v4632_v44 = vld [vmem:[#allocation3 + $0x28] sm:$0xff] }
 0x1d4   :  { %v895_v48 = vpop.f32.mrf.mxu1  ;;  %v3514_v41 = vpop.eup %3513  ;;  %v4591_v54 = vadd.f32 1.0, %v3512_v50  ;;  %3515 = vpow2.f32 %v3366_v0  ;;  %v948_v25 = vadd.f32 %v872_v49, %v201_v52  ;;  %v4605_v50 = vld [vmem:[#allocation3 + $0x70] sm:$0xff]  ;;  %1170 = vmatpush.msrb.mxu0 %v4601_v47  ;;  %1193 = vmatpush.msrb.mxu1 %v4603_v53  ;;  %v4615_v49 = vld [vmem:[#allocation3 + $0x40] sm:$0xff]  ;;  %v4617_v52 = vld [vmem:[#allocation3 + $0x48] sm:$0xff]  ;;  %v307_v53 = vadd.f32 %v4241_v38, %v4384_v15 }
 0x1d5   :  { %v949_v21 = vadd.f32 %v895_v48, %v255_v61  ;;  %v4597_v51 = vadd.f32 1.0, %v3514_v41  ;;  %5964 = vst [vmem:[#allocation77_spill] sm:$0xff] %v4605_v50  ;;  %v4610_v48 = vld [vmem:[#allocation3 + $0x78] sm:$0xff]  ;;  %1216 = vmatpush.msrb.mxu2 %v4605_v50  ;;  %v4619_v61 = vld [vmem:[#allocation3 + $0x50] sm:$0xff]  ;;  %v915_v0 = vpop.f32.mrf.mxu2  ;;  %v363_v50 = vadd.f32 %v4251_v43, %v4374_v22  ;;  %v4630_v47 = vld [vmem:[#allocation3 + $0x20] sm:$0xff] }
 0x1d6   :  { %3517 = vrcp.f32 %v4591_v54  ;;  %5965 = vst [vmem:[#allocation78_spill] sm:$0xff] %v4610_v48  ;;  %1239 = vmatpush.msrb.mxu3 %v4610_v48  ;;  %v3363_v41 = vmul.f32 -1.442695, %v948_v25  ;;  %1171 = vmatpush.msrb.mxu0 %v4615_v49  ;;  %v4628_v48 = vld [vmem:[#allocation3 + $0x58] sm:$0xff]  ;;  %v4640_v43 = vld [vmem:[#allocation3] sm:$0xff]  ;;  %v946_v22 = vadd.f32 %v915_v0, %v307_v53  ;;  %vm965_vm12 = vweird.f32 %v4591_v54 }
 0x1d7   :  { %3519 = vrcp.f32 %v4597_v51  ;;  %5966 = vst [vmem:[#allocation79_spill] sm:$0xff] %v4615_v49  ;;  %v3365_v4 = vmul.f32 -1.442695, %v949_v21  ;;  %1194 = vmatpush.msrb.mxu1 %v4617_v52  ;;  %1217 = vmatpush.msrb.mxu2 %v4619_v61  ;;  %v4638_v38 = vld [vmem:[#allocation3 + $0x38] sm:$0xff]  ;;  %vm1003_vm11 = vweird.f32 %v4597_v51 }
 0x1d8   :  { %5967 = vst [vmem:[#allocation80_spill] sm:$0xff] %v4617_v52  ;;  %3521 = vpow2.f32 %v3363_v41  ;;  %1240 = vmatpush.msrb.mxu3 %v4628_v48  ;;  %1172 = vmatpush.msrb.mxu0 %v4630_v47  ;;  %v4636_v52 = vld [vmem:[#allocation3 + $0x30] sm:$0xff]  ;;  %v4646_v41 = vld [vmem:[#allocation3 + $0x8] sm:$0xff] }
 0x1d9   :  { %5968 = vst [vmem:[#allocation81_spill] sm:$0xff] %v4619_v61  ;;  %3523 = vpow2.f32 %v3365_v4  ;;  %1195 = vmatpush.msrb.mxu1 %v4632_v44  ;;  %1218 = vmatpush.msrb.mxu2 %v4636_v52 }
 0x1da   :  { %5969 = vst [vmem:[#allocation82_spill] sm:$0xff] %v4628_v48  ;;  %v3516_v25 = vpop.eup %3515  ;;  %v941_v21 = vpop.f32.mrf.mxu3  ;;  %v4648_v48 = vld [vmem:[#allocation3 + $0x10] sm:$0xff]  ;;  %1241 = vmatpush.msrb.mxu3 %v4638_v38  ;;  %1173 = vmatpush.msrb.mxu0 %v4640_v43 }
 0x1db   :  { %5970 = vst [vmem:[#allocation83_spill] sm:$0xff] %v4630_v47  ;;  %v4642_v61 = vadd.f32 1.0, %v3516_v25  ;;  %v951_v49 = vadd.f32 %v941_v21, %v363_v50  ;;  %v4650_v47 = vld [vmem:[#allocation3 + $0x18] sm:$0xff]  ;;  %1196 = vmatpush.msrb.mxu1 %v4646_v41  ;;  %1219 = vmatpush.msrb.mxu2 %v4648_v48 }
 0x1dc   :  { %5971 = vst [vmem:[#allocation84_spill] sm:$0xff] %v4638_v38  ;;  %v3518_v40 = vpop.eup %3517  ;;  %1242 = vmatpush.msrb.mxu3 %v4650_v47  ;;  %1464 = vmatpush.msra.mxu0 %v4443_v7  ;;  %v971_v38 = vand.u32 2147483648, %v4591_v54 }
 0x1dd   :  { %5972 = vst [vmem:[#allocation85_spill] sm:$0xff] %v4640_v43  ;;  %v4654_v53 = vpop.eup %3519  ;;  %v961_v4 = vmul.f32 %v3518_v40, %v4591_v54  ;;  %3525 = vrcp.f32 %v4642_v61  ;;  %v3367_v25 = vmul.f32 -1.442695, %v951_v49  ;;  %1487 = vmatpush.msra.mxu1 %v4445_v33  ;;  %1510 = vmatpush.msra.mxu2 %v4447_v30  ;;  %vm966_vm9 = vweird.f32 %v3518_v40 }
 0x1de   :  { %5973 = vst [vmem:[#allocation86_spill] sm:$0xff] %v4646_v41  ;;  %v999_v50 = vmul.f32 %v4654_v53, %v4597_v51  ;;  %3527 = vtanh.f32 %v946_v22  ;;  %v3522_v21 = vpop.eup %3521  ;;  %v1009_v41 = vand.u32 2147483648, %v4597_v51  ;;  %1533 = vmatpush.msra.mxu3 %v4451_v10  ;;  %1465 = vmatpush.msra.mxu0 %v4455_v1  ;;  %vm1004_vm10 = vweird.f32 %v4654_v53  ;;  %vm967_vm13 = vmor %vm965_vm12, %vm966_vm9 }
 0x1df   :  { %5974 = vst [vmem:[#allocation87_spill] sm:$0xff] %v4648_v48  ;;  %v962_v0 = vsub.f32 1.0, %v961_v4  ;;  %v969_v48 = vand.u32 2147483647, %v4591_v54  ;;  %v3524_v7 = vpop.eup %3523  ;;  %v4671_v22 = vadd.f32 1.0, %v3522_v21  ;;  %3529 = vpow2.f32 %v3367_v25  ;;  %1488 = vmatpush.msra.mxu1 %v4457_v8  ;;  %1511 = vmatpush.msra.mxu2 %v4459_v24  ;;  %vm4698_vm14 = vmor %vm1003_vm11, %vm1004_vm10 }
 0x1e0   :  { %v1000_v43 = vsub.f32 1.0, %v999_v50  ;;  %v1007_v30 = vand.u32 2147483647, %v4597_v51  ;;  %v4678_v49 = vadd.f32 1.0, %v3524_v7  ;;  %1534 = vmatpush.msra.mxu3 %v4463_v16  ;;  %1466 = vmatpush.msra.mxu0 %v4467_v26  ;;  %v972_v8 = vor.u32 1.1754944e-38, %v971_v38  ;;  %v918_v38 = vpop.f32.mrf.mxu2  ;;  %v5986_v26 = vld [vmem:[#allocation73_spill] sm:$0xff] }
 0x1e1   :  { %v963_v4 = vmul.f32 %v3518_v40, %v962_v0  ;;  %3531 = vrcp.f32 %v4671_v22  ;;  %1489 = vmatpush.msra.mxu1 %v4469_v27  ;;  %1512 = vmatpush.msra.mxu2 %v4471_v46  ;;  %v1010_v27 = vor.u32 1.1754944e-38, %v1009_v41  ;;  %vm970_vm15 = vcmp.eq.f32.partialorder %v969_v48, 8.507059e+37 }
 0x1e2   :  { %v1001_v33 = vmul.f32 %v4654_v53, %v1000_v43  ;;  %3533 = vrcp.f32 %v4678_v49  ;;  %1535 = vmatpush.msra.mxu3 %v4475_v17  ;;  %1467 = vmatpush.msra.mxu0 %v4479_v37  ;;  %vm1008_vm0 = vcmp.eq.f32.partialorder %v1007_v30, 8.507059e+37  ;;  %vm1043_vm1 = vweird.f32 %v4642_v61  ;;  %v5981_v30 = vld [vmem:[#allocation69_spill] sm:$0xff] }
 0x1e3   :  { %v4682_v10 = vpop.eup %3525  ;;  %v964_v1 = vadd.f32 %v3518_v40, %v963_v4  ;;  %1490 = vmatpush.msra.mxu1 %v4481_v13  ;;  %1513 = vmatpush.msra.mxu2 %v4483_v23  ;;  %v986_v50 = vand.u32 2147483648, %v4671_v22  ;;  %vm1018_vm6 = vweird.f32 %v4678_v49  ;;  %vm980_vm7 = vweird.f32 %v4671_v22 }
 0x1e4   :  { %v1002_v24 = vadd.f32 %v4654_v53, %v1001_v33  ;;  %v1039_v16 = vmul.f32 %v4682_v10, %v4642_v61  ;;  %v3528_v51 = vpop.eup %3527  ;;  %1536 = vmatpush.msra.mxu3 %v4487_v28  ;;  %1468 = vmatpush.msra.mxu0 %v4491_v20  ;;  %vm1044_vm2 = vweird.f32 %v4682_v10 }
 0x1e5   :  { %v968_v46 = vsel %vm967_vm13, %v3518_v40, %v964_v1  ;;  %v3530_v43 = vpop.eup %3529  ;;  %v309_v40 = vadd.f32 %v4249_v42, %v4384_v15  ;;  %1491 = vmatpush.msra.mxu1 %v4493_v19  ;;  %1514 = vmatpush.msra.mxu2 %v4495_v32  ;;  %v1049_v32 = vand.u32 2147483648, %v4642_v61  ;;  %vm4752_vm3 = vmor %vm1043_vm1, %vm1044_vm2 }
 0x1e6   :  { %v973_v54 = vsel %vm970_vm15, %v972_v8, %v968_v46  ;;  %v1006_v17 = vsel %vm4698_vm14, %v4654_v53, %v1002_v24  ;;  %v1040_v37 = vsub.f32 1.0, %v1039_v16  ;;  %v4715_v53 = vadd.f32 1.0, %v3530_v43  ;;  %1537 = vmatpush.msra.mxu3 %v4499_v9  ;;  %1469 = vmatpush.msra.mxu0 %v4507_v18  ;;  %v5983_v8 = vld [vmem:[#allocation71_spill] sm:$0xff]  ;;  %v5984_v24 = vld [vmem:[#allocation68_spill] sm:$0xff]  ;;  %v5987_v46 = vld [vmem:[#allocation74_spill] sm:$0xff] }
 0x1e7   :  { %v1011_v48 = vsel %vm1008_vm0, %v1010_v27, %v1006_v17  ;;  %v1070_v13 = vmul.f32 %v3528_v51, %v973_v54  ;;  %v4719_v28 = vpop.eup %3531  ;;  %v950_v20 = vadd.f32 %v918_v38, %v309_v40  ;;  %1492 = vmatpush.msra.mxu1 %v4509_v31  ;;  %1515 = vmatpush.msra.mxu2 %v4511_v11  ;;  %v1047_v11 = vand.u32 2147483647, %v4642_v61  ;;  %v5985_v51 = vld [vmem:[#allocation72_spill] sm:$0xff]  ;;  %v5991_v43 = vld [vmem:[#allocation78_spill] sm:$0xff]  ;;  %v5992_v40 = vld [vmem:[#allocation79_spill] sm:$0xff] }
 0x1e8   :  { %v1068_v23 = vmul.f32 %v1011_v48, %v4413_v12  ;;  %v1041_v41 = vmul.f32 %v4682_v10, %v1040_v37  ;;  %v4723_v42 = vpop.eup %3533  ;;  %v976_v12 = vmul.f32 %v4719_v28, %v4671_v22  ;;  %3535 = vrcp.f32 %v4715_v53  ;;  %1538 = vmatpush.msra.mxu3 %v4515_v35  ;;  %1470 = vmatpush.msra.mxu0 %v4519_v14  ;;  %v5989_v17 = vld [vmem:[#allocation76_spill] sm:$0xff]  ;;  %v5990_v37 = vld [vmem:[#allocation77_spill] sm:$0xff] }
 0x1e9   :  { %v1014_v9 = vmul.f32 %v4723_v42, %v4678_v49  ;;  %1493 = vmatpush.msra.mxu1 %v4521_v29  ;;  %1516 = vmatpush.msra.mxu2 %v4523_v3  ;;  %v984_v14 = vand.u32 2147483647, %v4671_v22  ;;  %vm981_vm4 = vweird.f32 %v4719_v28  ;;  %vm1019_vm5 = vweird.f32 %v4723_v42  ;;  %v5993_v48 = vld [vmem:[#allocation80_spill] sm:$0xff] }
 0x1ea   :  { %v4725_v19 = vadd.f32 %v1070_v13, %v1068_v23  ;;  %v977_v18 = vsub.f32 1.0, %v976_v12  ;;  %v1042_v31 = vadd.f32 %v4682_v10, %v1041_v41  ;;  %1539 = vmatpush.msra.mxu3 %v4527_v2  ;;  %1471 = vmatpush.msra.mxu0 %v4531_v6  ;;  %v1024_v2 = vand.u32 2147483648, %v4678_v49  ;;  %vm4778_vm9 = vmor %vm980_vm7, %vm981_vm4  ;;  %v5994_v13 = vld [vmem:[#allocation81_spill] sm:$0xff]  ;;  %v5995_v41 = vld [vmem:[#allocation82_spill] sm:$0xff] }
 0x1eb   :  { %v1015_v35 = vsub.f32 1.0, %v1014_v9  ;;  %1494 = vmatpush.msra.mxu1 %v4533_v34  ;;  %1517 = vmatpush.msra.mxu2 %v4537_v5  ;;  %v1022_v6 = vand.u32 2147483647, %v4678_v49  ;;  %v1050_v34 = vor.u32 1.1754944e-38, %v1049_v32  ;;  %vm1048_vm8 = vcmp.eq.f32.partialorder %v1047_v11, 8.507059e+37  ;;  %vm1020_vm11 = vmor %vm1018_vm6, %vm1019_vm5  ;;  %v5982_v49 = vld [vmem:[#allocation70_spill] sm:$0xff] }
 0x1ec   :  { %3537 = vtanh.f32 %v4725_v19  ;;  %v978_v29 = vmul.f32 %v4719_v28, %v977_v18  ;;  %1540 = vmatpush.msra.mxu3 %v4539_v62  ;;  %1472 = vmatpush.msra.mxu0 %v4543_v55  ;;  %v1046_v61 = vsel %vm4752_vm3, %v4682_v10, %v1042_v31  ;;  %vm985_vm10 = vcmp.eq.f32.partialorder %v984_v14, 8.507059e+37  ;;  %v5999_v9 = vld [vmem:[#allocation86_spill] sm:$0xff]  ;;  %v6000_v18 = vld [vmem:[#allocation87_spill] sm:$0xff] }
 0x1ed   :  { %3539 = vtanh.f32 %v950_v20  ;;  %v1016_v5 = vmul.f32 %v4723_v42, %v1015_v35  ;;  %1495 = vmatpush.msra.mxu1 %v4545_v36  ;;  %1518 = vmatpush.msra.mxu2 %v4547_v60  ;;  %v987_v60 = vor.u32 1.1754944e-38, %v986_v50  ;;  %vm1023_vm12 = vcmp.eq.f32.partialorder %v1022_v6, 8.507059e+37  ;;  %v6003_v14 = vld [vmem:[#allocation63_spill] sm:$0xff]  ;;  %v6004_v50 = vld [vmem:[#allocation10_spill] sm:$0xff] }
 0x1ee   :  { %v4769_v0 = vpop.eup %3535  ;;  %v979_v62 = vadd.f32 %v4719_v28, %v978_v29  ;;  %1541 = vmatpush.msra.mxu3 %v4553_v56  ;;  %1473 = vmatpush.msra.mxu0 %v4557_v59  ;;  %v1025_v59 = vor.u32 1.1754944e-38, %v1024_v2  ;;  %v1051_v7 = vsel %vm1048_vm8, %v1050_v34, %v1046_v61  ;;  %v1064_v54 = vand.u32 2147483648, %v4715_v53 }
 0x1ef   :  { %v1017_v36 = vadd.f32 %v4723_v42, %v1016_v5  ;;  %v1054_v25 = vmul.f32 %v4769_v0, %v4715_v53  ;;  %1496 = vmatpush.msra.mxu1 %v4559_v58  ;;  %1519 = vmatpush.msra.mxu2 %v4561_v57  ;;  %vm1059_vm13 = vweird.f32 %v4769_v0  ;;  %vm1058_vm14 = vweird.f32 %v4715_v53 }
 0x1f0   :  { %v983_v21 = vsel %vm4778_vm9, %v4719_v28, %v979_v62  ;;  %1542 = vmatpush.msra.mxu3 %v4565_v39  ;;  %1474 = vmatpush.msra.mxu0 %v4569_v63  ;;  %v1062_v38 = vand.u32 2147483647, %v4715_v53  ;;  %vm1060_vm15 = vmor %vm1058_vm14, %vm1059_vm13  ;;  %v5996_v28 = vld [vmem:[#allocation83_spill] sm:$0xff]  ;;  %v1065_v20 = vor.u32 1.1754944e-38, %v1064_v54  ;;  %v5997_v53 = vld [vmem:[#allocation84_spill] sm:$0xff]  ;;  %v258_v3 = vadd.f32 %v6004_v50, %v6003_v14 }
 0x1f1   :  { %v988_v22 = vsel %vm985_vm10, %v987_v60, %v983_v21  ;;  %v1021_v58 = vsel %vm1020_vm11, %v4723_v42, %v1017_v36  ;;  %v1055_v57 = vsub.f32 1.0, %v1054_v25  ;;  %1497 = vmatpush.msra.mxu1 %v5981_v30  ;;  %1520 = vmatpush.msra.mxu2 %v5982_v49  ;;  %v5998_v42 = vld [vmem:[#allocation85_spill] sm:$0xff]  ;;  %v6010_v54 = vld [vmem:[#allocation16_spill] sm:$0xff] }
 0x1f2   :  { %v3538_v56 = vpop.eup %3537  ;;  %v1026_v10 = vsel %vm1023_vm12, %v1025_v59, %v1021_v58  ;;  %1543 = vmatpush.msra.mxu3 %v5983_v8  ;;  %1475 = vmatpush.msra.mxu0 %v4585_v45  ;;  %v5988_v45 = vld [vmem:[#allocation75_spill] sm:$0xff]  ;;  %vm1063_vm0 = vcmp.eq.f32.partialorder %v1062_v38, 8.507059e+37 }
 0x1f3   :  { %v3540_v4 = vpop.eup %3539  ;;  %v1076_v33 = vmul.f32 %v3538_v56, %v1051_v7  ;;  %v1069_v39 = vmul.f32 %v1026_v10, %v5984_v24  ;;  %v1056_v63 = vmul.f32 %v4769_v0, %v1055_v57  ;;  %1498 = vmatpush.msra.mxu1 %v5985_v51  ;;  %1521 = vmatpush.msra.mxu2 %v5986_v26  ;;  %v6008_v57 = vld [vmem:[#allocation14_spill] sm:$0xff]  ;;  %v6009_v8 = vld [vmem:[#allocation11_spill] sm:$0xff] }
 0x1f4   :  { %v1071_v1 = vmul.f32 %v3540_v4, %v988_v22  ;;  %1544 = vmatpush.msra.mxu3 %v5987_v46  ;;  %1476 = vmatpush.msra.mxu0 %v5988_v45  ;;  %v6007_v22 = vld [vmem:[#allocation13_spill] sm:$0xff]  ;;  %v312_v24 = vadd.f32 %v6009_v8, %v4384_v15 }
 0x1f5   :  { %1174 = vmatmul.f32.vlgmr.msrb.gmra.mxu0 %v1076_v33  ;;  %1197 = vmatmul.f32.vlgmr.msrb.gmra.mxu1 %v1076_v33  ;;  %v1057_v27 = vadd.f32 %v4769_v0, %v1056_v63 }
 0x1f6   :  { %1220 = vmatmul.f32.vlgmr.msrb.gmra.mxu2 %v1076_v33  ;;  %1243 = vmatmul.f32.vlgmr.msrb.gmra.mxu3 %v1076_v33  ;;  %v4801_v16 = vadd.f32 %v1071_v1, %v1069_v39 }
 0x1f7   :  { %1499 = vmatpush.msra.mxu1 %v5989_v17  ;;  %1522 = vmatpush.msra.mxu2 %v5990_v37  ;;  %v1061_v23 = vsel %vm1060_vm15, %v4769_v0, %v1057_v27  ;;  %v6006_v0 = vld [vmem:[#allocation12_spill] sm:$0xff] }
 0x1f8   :  { %3541 = vtanh.f32 %v4801_v16  ;;  %1545 = vmatpush.msra.mxu3 %v5991_v43  ;;  %1477 = vmatpush.msra.mxu0 %v5992_v40  ;;  %v1066_v32 = vsel %vm1063_vm0, %v1065_v20, %v1061_v23 }
 0x1f9   :  { %1500 = vmatpush.msra.mxu1 %v5993_v48  ;;  %1523 = vmatpush.msra.mxu2 %v5994_v13 }
 0x1fa   :  { %1546 = vmatpush.msra.mxu3 %v5995_v41  ;;  %1478 = vmatpush.msra.mxu0 %v5996_v28 }
 0x1fb   :  { %1501 = vmatpush.msra.mxu1 %v4632_v44  ;;  %1524 = vmatpush.msra.mxu2 %v4636_v52  ;;  %v6001_v44 = vld [vmem:[#allocation62_spill] sm:$0xff]  ;;  %v6002_v52 = vld [vmem:[#allocation9_spill] sm:$0xff] }
 0x1fc   :  { %1547 = vmatpush.msra.mxu3 %v5997_v53  ;;  %1479 = vmatpush.msra.mxu0 %v5998_v42  ;;  %v204_v35 = vadd.f32 %v6002_v52, %v6001_v44  ;;  %v206_v58 = vadd.f32 %v6007_v22, %v6001_v44 }
 0x1fd   :  { %1502 = vmatpush.msra.mxu1 %v5999_v9  ;;  %1525 = vmatpush.msra.mxu2 %v6000_v18 }
 0x1fe   :  { %v3542_v12 = vpop.eup %3541  ;;  %1548 = vmatpush.msra.mxu3 %v4650_v47  ;;  %v6005_v47 = vld [vmem:[#allocation66_spill] sm:$0xff] }
 0x1ff   :  { %v1077_v31 = vmul.f32 %v3542_v12, %v1066_v32  ;;  %v366_v62 = vadd.f32 %v6006_v0, %v6005_v47  ;;  %v368_v17 = vadd.f32 %v6010_v54, %v6005_v47 }
 0x201   :  { %v3435_v11 = vpack.c.bf16 %v1077_v31, %v1076_v33  ;;  %1177 = vmatmul.f32.gmra.mxu0 %v1077_v31  ;;  %1200 = vmatmul.f32.gmra.mxu1 %v1077_v31  ;;  %v260_v33 = vadd.f32 %v6008_v57, %v6003_v14 }
 0x202   :  { %1223 = vmatmul.f32.gmra.mxu2 %v1077_v31  ;;  %1246 = vmatmul.f32.gmra.mxu3 %v1077_v31 }
 0x203   :  { %3436 = vst [vmem:[#allocation6 + $0x8] sm:$0xff] %v3435_v11  }
 0x272   :  { %v1175_v2 = vpop.f32.mrf.mxu0  ;;  %v1198_v29 = vpop.f32.mrf.mxu1 }
 0x273   :  { %v1250_v6 = vadd.f32 %v1175_v2, %v204_v35  ;;  %v1251_v34 = vadd.f32 %v1198_v29, %v258_v3 }
 0x275   :  { %v3368_v5 = vmul.f32 -1.442695, %v1250_v6  ;;  %v3370_v61 = vmul.f32 -1.442695, %v1251_v34 }
 0x277   :  { %3543 = vpow2.f32 %v3368_v5 }
 0x278   :  { %3545 = vpow2.f32 %v3370_v61 }
 0x279   :  { %v1244_v55 = vpop.f32.mrf.mxu3  ;;  %v1221_v10 = vpop.f32.mrf.mxu2 }
 0x27a   :  { %v1253_v60 = vadd.f32 %v1244_v55, %v366_v62  ;;  %v1252_v27 = vadd.f32 %v1221_v10, %v312_v24 }
 0x27c   :  { %v3372_v36 = vmul.f32 -1.442695, %v1253_v60 }
 0x27d   :  { %v3544_v25 = vpop.eup %3543 }
 0x27e   :  { %v3546_v56 = vpop.eup %3545  ;;  %v1264_v59 = vadd.f32 1.0, %v3544_v25  ;;  %3547 = vpow2.f32 %v3372_v36  ;;  %v1178_v7 = vpop.f32.mrf.mxu0  ;;  %v6011_v25 = vld [vmem:[#allocation15_spill] sm:$0xff] }
 0x27f   :  { %v1302_v21 = vadd.f32 1.0, %v3546_v56  ;;  %v1201_v4 = vpop.f32.mrf.mxu1  ;;  %v1254_v30 = vadd.f32 %v1178_v7, %v206_v58  ;;  %v314_v56 = vadd.f32 %v6011_v25, %v4384_v15  ;;  %v4920_v25 = vld [vmem:[#allocation3 + $0x1a8] sm:$0xff] }
 0x280   :  { %3549 = vrcp.f32 %v1264_v59  ;;  %v1255_v49 = vadd.f32 %v1201_v4, %v260_v33  ;;  %v1275_v13 = vand.u32 2147483647, %v1264_v59  ;;  %v1277_v23 = vand.u32 2147483648, %v1264_v59 }
 0x281   :  { %3551 = vrcp.f32 %v1302_v21  ;;  %v3369_v39 = vmul.f32 -1.442695, %v1254_v30  ;;  %v1315_v41 = vand.u32 2147483648, %v1302_v21  ;;  %vm1271_vm3 = vweird.f32 %v1264_v59 }
 0x282   :  { %v3371_v63 = vmul.f32 -1.442695, %v1255_v49  ;;  %v1313_v12 = vand.u32 2147483647, %v1302_v21  ;;  %vm1309_vm4 = vweird.f32 %v1302_v21  ;;  %vm1276_vm6 = vcmp.eq.f32.partialorder %v1275_v13, 8.507059e+37 }
 0x283   :  { %3553 = vpow2.f32 %v3369_v39  ;;  %v1278_v11 = vor.u32 1.1754944e-38, %v1277_v23  ;;  %v1316_v50 = vor.u32 1.1754944e-38, %v1315_v41 }
 0x284   :  { %v3548_v1 = vpop.eup %3547  ;;  %vm1314_vm8 = vcmp.eq.f32.partialorder %v1313_v12, 8.507059e+37 }
 0x285   :  { %v4841_v51 = vadd.f32 1.0, %v3548_v1  ;;  %v1247_v46 = vpop.f32.mrf.mxu3  ;;  %v1224_v60 = vpop.f32.mrf.mxu2 }
 0x286   :  { %v3550_v26 = vpop.eup %3549  ;;  %v1257_v40 = vadd.f32 %v1247_v46, %v368_v17  ;;  %v1256_v22 = vadd.f32 %v1224_v60, %v314_v56  ;;  %v4914_v60 = vld [vmem:[#allocation3 + $0x1d8] sm:$0xff]  ;;  %v4922_v56 = vld [vmem:[#allocation3 + $0x1b0] sm:$0xff] }
 0x287   :  { %v3552_v45 = vpop.eup %3551  ;;  %v1267_v37 = vmul.f32 %v3550_v26, %v1264_v59  ;;  %3555 = vrcp.f32 %v4841_v51  ;;  %vm1272_vm1 = vweird.f32 %v3550_v26  ;;  %v1355_v4 = vand.u32 2147483648, %v4841_v51 }
 0x288   :  { %v1305_v38 = vmul.f32 %v3552_v45, %v1302_v21  ;;  %3557 = vpow2.f32 %v3371_v63  ;;  %v3373_v20 = vmul.f32 -1.442695, %v1257_v40  ;;  %vm1310_vm2 = vweird.f32 %v3552_v45  ;;  %vm1273_vm5 = vmor %vm1271_vm3, %vm1272_vm1 }
 0x289   :  { %v1268_v43 = vsub.f32 1.0, %v1267_v37  ;;  %3559 = vtanh.f32 %v1252_v27  ;;  %v3554_v53 = vpop.eup %3553  ;;  %vm1311_vm7 = vmor %vm1309_vm4, %vm1310_vm2  ;;  %vm1349_vm10 = vweird.f32 %v4841_v51  ;;  %v1353_v33 = vand.u32 2147483647, %v4841_v51 }
 0x28a   :  { %v1306_v48 = vsub.f32 1.0, %v1305_v38  ;;  %v4848_v18 = vadd.f32 1.0, %v3554_v53  ;;  %3561 = vpow2.f32 %v3373_v20  ;;  %v1356_v1 = vor.u32 1.1754944e-38, %v1355_v4  ;;  %v4932_v4 = vld [vmem:[#allocation3 + $0x188] sm:$0xff] }
 0x28b   :  { %v1269_v28 = vmul.f32 %v3550_v26, %v1268_v43  ;;  %vm1354_vm14 = vcmp.eq.f32.partialorder %v1353_v33, 8.507059e+37  ;;  %v6016_v33 = vld [vmem:[#allocation18_spill] sm:$0xff] }
 0x28c   :  { %v1307_v42 = vmul.f32 %v3552_v45, %v1306_v48  ;;  %3563 = vrcp.f32 %v4848_v18  ;;  %v1292_v8 = vand.u32 2147483648, %v4848_v18  ;;  %vm1286_vm13 = vweird.f32 %v4848_v18 }
 0x28d   :  { %v4846_v32 = vpop.eup %3555  ;;  %v1270_v9 = vadd.f32 %v3550_v26, %v1269_v28  ;;  %v263_v30 = vadd.f32 %v6016_v33, %v6003_v14 }
 0x28e   :  { %v3558_v31 = vpop.eup %3557  ;;  %v1308_v52 = vadd.f32 %v3552_v45, %v1307_v42  ;;  %v1345_v35 = vmul.f32 %v4846_v32, %v4841_v51  ;;  %vm1350_vm9 = vweird.f32 %v4846_v32  ;;  %v1290_v51 = vand.u32 2147483647, %v4848_v18 }
 0x28f   :  { %v1274_v3 = vsel %vm1273_vm5, %v3550_v26, %v1270_v9  ;;  %v4853_v2 = vadd.f32 1.0, %v3558_v31  ;;  %v3560_v29 = vpop.eup %3559  ;;  %vm4872_vm11 = vmor %vm1349_vm10, %vm1350_vm9  ;;  %v1293_v38 = vor.u32 1.1754944e-38, %v1292_v8 }
 0x290   :  { %v1279_v6 = vsel %vm1276_vm6, %v1278_v11, %v1274_v3  ;;  %v1312_v34 = vsel %vm1311_vm7, %v3552_v45, %v1308_v52  ;;  %v1346_v5 = vsub.f32 1.0, %v1345_v35  ;;  %v3562_v36 = vpop.eup %3561  ;;  %vm1291_vm2 = vcmp.eq.f32.partialorder %v1290_v51, 8.507059e+37 }
 0x291   :  { %v1317_v61 = vsel %vm1314_vm8, %v1316_v50, %v1312_v34  ;;  %v1376_v0 = vmul.f32 %v3560_v29, %v1279_v6  ;;  %3565 = vrcp.f32 %v4853_v2  ;;  %v4862_v21 = vadd.f32 1.0, %v3562_v36  ;;  %v4894_v6 = vld [vmem:[#allocation3 + $0x1e0] sm:$0xff]  ;;  %v4896_v34 = vld [vmem:[#allocation3 + $0x1e8] sm:$0xff] }
 0x292   :  { %v1374_v62 = vmul.f32 %v1317_v61, %v4725_v19  ;;  %v1347_v55 = vmul.f32 %v4846_v32, %v1346_v5  ;;  %v3564_v7 = vpop.eup %3563  ;;  %v1330_v26 = vand.u32 2147483648, %v4853_v2  ;;  %v1328_v27 = vand.u32 2147483647, %v4853_v2  ;;  %v4898_v5 = vld [vmem:[#allocation3 + $0x1f0] sm:$0xff]  ;;  %1770 = vmatpush.msrb.mxu0 %v4894_v6  ;;  %1793 = vmatpush.msrb.mxu1 %v4896_v34  ;;  %v4902_v61 = vld [vmem:[#allocation3 + $0x1f8] sm:$0xff]  ;;  %v4918_v36 = vld [vmem:[#allocation3 + $0x1a0] sm:$0xff] }
 0x293   :  { %v1282_v19 = vmul.f32 %v3564_v7, %v4848_v18  ;;  %vm1287_vm12 = vweird.f32 %v3564_v7  ;;  %vm1324_vm0 = vweird.f32 %v4853_v2  ;;  %v1370_v11 = vand.u32 2147483648, %v4862_v21  ;;  %1816 = vmatpush.msrb.mxu2 %v4898_v5  ;;  %1839 = vmatpush.msrb.mxu3 %v4902_v61 }
 0x294   :  { %v4860_v59 = vadd.f32 %v1376_v0, %v1374_v62  ;;  %v1348_v58 = vadd.f32 %v4846_v32, %v1347_v55  ;;  %vm1288_vm1 = vmor %vm1286_vm13, %vm1287_vm12  ;;  %v1331_v41 = vor.u32 1.1754944e-38, %v1330_v26  ;;  %vm1329_vm4 = vcmp.eq.f32.partialorder %v1328_v27, 8.507059e+37  ;;  %v4906_v0 = vld [vmem:[#allocation3 + $0x1c0] sm:$0xff]  ;;  %v4908_v62 = vld [vmem:[#allocation3 + $0x1c8] sm:$0xff] }
 0x295   :  { %v1283_v49 = vsub.f32 1.0, %v1282_v19  ;;  %vm1364_vm6 = vweird.f32 %v4862_v21  ;;  %v1368_v52 = vand.u32 2147483647, %v4862_v21  ;;  %v1371_v50 = vor.u32 1.1754944e-38, %v1370_v11  ;;  %v4910_v55 = vld [vmem:[#allocation3 + $0x1d0] sm:$0xff]  ;;  %1771 = vmatpush.msrb.mxu0 %v4906_v0  ;;  %1794 = vmatpush.msrb.mxu1 %v4908_v62  ;;  %v6015_v19 = vld [vmem:[#allocation17_spill] sm:$0xff] }
 0x296   :  { %3567 = vtanh.f32 %v4860_v59  ;;  %v1352_v24 = vsel %vm4872_vm11, %v4846_v32, %v1348_v58  ;;  %1817 = vmatpush.msrb.mxu2 %v4910_v55  ;;  %1840 = vmatpush.msrb.mxu3 %v4914_v60  ;;  %v4938_v58 = vld [vmem:[#allocation3 + $0x198] sm:$0xff]  ;;  %v4958_v26 = vld [vmem:[#allocation3 + $0x140] sm:$0xff]  ;;  %v4960_v27 = vld [vmem:[#allocation3 + $0x148] sm:$0xff] }
 0x297   :  { %v3566_v57 = vpop.eup %3565  ;;  %3569 = vrcp.f32 %v4862_v21  ;;  %v1284_v63 = vmul.f32 %v3564_v7, %v1283_v49  ;;  %v1357_v17 = vsel %vm1354_vm14, %v1356_v1, %v1352_v24  ;;  %vm1369_vm8 = vcmp.eq.f32.partialorder %v1368_v52, 8.507059e+37  ;;  %1772 = vmatpush.msrb.mxu0 %v4918_v36  ;;  %1795 = vmatpush.msrb.mxu1 %v4920_v25  ;;  %v4946_v49 = vld [vmem:[#allocation3 + $0x160] sm:$0xff]  ;;  %v4950_v1 = vld [vmem:[#allocation3 + $0x170] sm:$0xff]  ;;  %v5010_v52 = vld [vmem:[#allocation3 + $0xc8] sm:$0xff] }
 0x298   :  { %v1320_v10 = vmul.f32 %v3566_v57, %v4853_v2  ;;  %3571 = vtanh.f32 %v1256_v22  ;;  %vm1325_vm15 = vweird.f32 %v3566_v57  ;;  %1818 = vmatpush.msrb.mxu2 %v4922_v56  ;;  %v4934_v22 = vld [vmem:[#allocation3 + $0x190] sm:$0xff]  ;;  %v5008_v11 = vld [vmem:[#allocation3 + $0xc0] sm:$0xff] }
 0x299   :  { %v1285_v54 = vadd.f32 %v3564_v7, %v1284_v63  ;;  %vm1326_vm3 = vmor %vm1324_vm0, %vm1325_vm15  ;;  %1796 = vmatpush.msrb.mxu1 %v4932_v4 }
 0x29a   :  { %v1321_v39 = vsub.f32 1.0, %v1320_v10  ;;  %1819 = vmatpush.msrb.mxu2 %v4934_v22  ;;  %v4948_v10 = vld [vmem:[#allocation3 + $0x168] sm:$0xff] }
 0x29b   :  { %v1289_v40 = vsel %vm1288_vm1, %v3564_v7, %v1285_v54  ;;  %v4930_v7 = vld [vmem:[#allocation3 + $0x180] sm:$0xff]  ;;  %1797 = vmatpush.msrb.mxu1 %v4948_v10 }
 0x29c   :  { %v3568_v46 = vpop.eup %3567  ;;  %v1322_v45 = vmul.f32 %v3566_v57, %v1321_v39  ;;  %v1294_v28 = vsel %vm1291_vm2, %v1293_v38, %v1289_v40  ;;  %1773 = vmatpush.msrb.mxu0 %v4930_v7  ;;  %v4954_v39 = vld [vmem:[#allocation3 + $0x178] sm:$0xff]  ;;  %1820 = vmatpush.msrb.mxu2 %v4950_v1  ;;  %v4972_v38 = vld [vmem:[#allocation3 + $0x128] sm:$0xff] }
 0x29d   :  { %v3570_v37 = vpop.eup %3569  ;;  %v1382_v43 = vmul.f32 %v3568_v46, %v1357_v17  ;;  %v4962_v46 = vld [vmem:[#allocation3 + $0x150] sm:$0xff]  ;;  %1798 = vmatpush.msrb.mxu1 %v4960_v27  ;;  %v4978_v40 = vld [vmem:[#allocation3 + $0x138] sm:$0xff] }
 0x29e   :  { %v1323_v48 = vadd.f32 %v3566_v57, %v1322_v45  ;;  %v1360_v13 = vmul.f32 %v3570_v37, %v4862_v21  ;;  %v3572_v23 = vpop.eup %3571  ;;  %vm1365_vm5 = vweird.f32 %v3570_v37  ;;  %v4926_v21 = vld [vmem:[#allocation3 + $0x1b8] sm:$0xff]  ;;  %1774 = vmatpush.msrb.mxu0 %v4946_v49  ;;  %1821 = vmatpush.msrb.mxu2 %v4962_v46 }
 0x29f   :  { %1480 = vmatmul.f32.vlgmr.msra.gmra.mxu0 %v1382_v43  ;;  %1503 = vmatmul.f32.vlgmr.msra.gmra.mxu1 %v1382_v43  ;;  %v1377_v53 = vmul.f32 %v3572_v23, %v1294_v28  ;;  %vm1366_vm7 = vmor %vm1364_vm6, %vm1365_vm5  ;;  %v4966_v45 = vld [vmem:[#allocation3 + $0x158] sm:$0xff]  ;;  %v4986_v23 = vld [vmem:[#allocation3 + $0x110] sm:$0xff] }
 0x2a0   :  { %v1327_v20 = vsel %vm1326_vm3, %v3566_v57, %v1323_v48  ;;  %v1361_v42 = vsub.f32 1.0, %v1360_v13  ;;  %1526 = vmatmul.f32.vlgmr.msra.gmra.mxu2 %v1382_v43  ;;  %1549 = vmatmul.f32.vlgmr.msra.gmra.mxu3 %v1382_v43  ;;  %v209_v57 = vadd.f32 %v6015_v19, %v6001_v44  ;;  %v4982_v48 = vld [vmem:[#allocation3 + $0x100] sm:$0xff]  ;;  %v4984_v13 = vld [vmem:[#allocation3 + $0x108] sm:$0xff]  ;;  %v5024_v19 = vld [vmem:[#allocation3 + $0xb0] sm:$0xff] }
 0x2a1   :  { %v1332_v12 = vsel %vm1329_vm4, %v1331_v41, %v1327_v20  ;;  %1841 = vmatpush.msrb.mxu3 %v4926_v21  ;;  %1775 = vmatpush.msrb.mxu0 %v4958_v26  ;;  %v6017_v41 = vld [vmem:[#allocation20_spill] sm:$0xff]  ;;  %v4992_v20 = vld [vmem:[#allocation3 + $0x118] sm:$0xff]  ;;  %6019 = vst [vmem:[#allocation71_spill] sm:$0xff] %v5024_v19 }
 0x2a2   :  { %v1375_v32 = vmul.f32 %v1332_v12, %v4801_v16  ;;  %v1362_v9 = vmul.f32 %v3570_v37, %v1361_v42  ;;  %1799 = vmatpush.msrb.mxu1 %v4972_v38  ;;  %v371_v28 = vadd.f32 %v6017_v41, %v6005_v47  ;;  %v4996_v42 = vld [vmem:[#allocation3 + $0xe0] sm:$0xff]  ;;  %v4998_v12 = vld [vmem:[#allocation3 + $0xe8] sm:$0xff] }
 0x2a3   :  { %1842 = vmatpush.msrb.mxu3 %v4938_v58 }
 0x2a4   :  { %v4888_v18 = vadd.f32 %v1377_v53, %v1375_v32  ;;  %v1363_v31 = vadd.f32 %v3570_v37, %v1362_v9  ;;  %1800 = vmatpush.msrb.mxu1 %v4984_v13  ;;  %v5000_v32 = vld [vmem:[#allocation3 + $0xf0] sm:$0xff] }
 0x2a5   :  { %1843 = vmatpush.msrb.mxu3 %v4954_v39 }
 0x2a6   :  { %6014 = vst [vmem:[#allocation69_spill] sm:$0xff] %v4888_v18  ;;  %3573 = vtanh.f32 %v4888_v18  ;;  %v1367_v35 = vsel %vm1366_vm7, %v3570_v37, %v1363_v31  ;;  %v4970_v37 = vld [vmem:[#allocation3 + $0x120] sm:$0xff]  ;;  %1801 = vmatpush.msrb.mxu1 %v4998_v12  ;;  %v5004_v31 = vld [vmem:[#allocation3 + $0xf8] sm:$0xff]  ;;  %v5070_v18 = vld [vmem:[#allocation3 + $0x50] sm:$0xff] }
 0x2a7   :  { %v1372_v2 = vsel %vm1369_vm8, %v1371_v50, %v1367_v35  ;;  %1844 = vmatpush.msrb.mxu3 %v4966_v45  ;;  %1776 = vmatpush.msrb.mxu0 %v4970_v37  ;;  %v5012_v35 = vld [vmem:[#allocation3 + $0xd0] sm:$0xff]  ;;  %6033 = vst [vmem:[#allocation82_spill] sm:$0xff] %v5070_v18 }
 0x2a8   :  { %1802 = vmatpush.msrb.mxu1 %v5010_v52 }
 0x2a9   :  { %1845 = vmatpush.msrb.mxu3 %v4978_v40  ;;  %1777 = vmatpush.msrb.mxu0 %v4982_v48 }
 0x2ab   :  { %1846 = vmatpush.msrb.mxu3 %v4992_v20  ;;  %1778 = vmatpush.msrb.mxu0 %v4996_v42 }
 0x2ac   :  { %v3574_v3 = vpop.eup %3573 }
 0x2ad   :  { %v1383_v16 = vmul.f32 %v3574_v3, %v1372_v2  ;;  %1847 = vmatpush.msrb.mxu3 %v5004_v31  ;;  %1779 = vmatpush.msrb.mxu0 %v5008_v11  ;;  %v5016_v3 = vld [vmem:[#allocation3 + $0xd8] sm:$0xff] }
 0x2af   :  { %v3440_v29 = vpack.c.bf16 %v1383_v16, %v1382_v43  ;;  %1483 = vmatmul.f32.gmra.mxu0 %v1383_v16  ;;  %1506 = vmatmul.f32.gmra.mxu1 %v1383_v16  ;;  %v4976_v43 = vld [vmem:[#allocation3 + $0x130] sm:$0xff] }
 0x2b0   :  { %1529 = vmatmul.f32.gmra.mxu2 %v1383_v16  ;;  %1552 = vmatmul.f32.gmra.mxu3 %v1383_v16  ;;  %v5020_v16 = vld [vmem:[#allocation3 + $0xa0] sm:$0xff] }
 0x2b1   :  { %3441 = vst [vmem:[#allocation6 + $0x10] sm:$0xff] %v3440_v29   ;;  %1822 = vmatpush.msrb.mxu2 %v4976_v43  ;;  %1848 = vmatpush.msrb.mxu3 %v5016_v3  ;;  %v5022_v29 = vld [vmem:[#allocation3 + $0xa8] sm:$0xff] }
 0x2b2   :  { %6018 = vst [vmem:[#allocation70_spill] sm:$0xff] %v5022_v29  ;;  %1780 = vmatpush.msrb.mxu0 %v5020_v16  ;;  %1803 = vmatpush.msrb.mxu1 %v5022_v29 }
 0x2b3   :  { %1823 = vmatpush.msrb.mxu2 %v4986_v23 }
 0x2b5   :  { %1824 = vmatpush.msrb.mxu2 %v5000_v32 }
 0x2b7   :  { %1825 = vmatpush.msrb.mxu2 %v5012_v35 }
 0x2b9   :  { %1826 = vmatpush.msrb.mxu2 %v5024_v19 }
 0x31c   :  { %v1481_v8 = vpop.f32.mrf.mxu0  ;;  %v1504_v24 = vpop.f32.mrf.mxu1 }
 0x31d   :  { %v1556_v63 = vadd.f32 %v1481_v8, %v209_v57  ;;  %v1557_v51 = vadd.f32 %v1504_v24, %v263_v30  ;;  %v5030_v30 = vld [vmem:[#allocation3 + $0xb8] sm:$0xff]  ;;  %v5036_v24 = vld [vmem:[#allocation3 + $0x80] sm:$0xff] }
 0x31e   :  { %6020 = vst [vmem:[#allocation68_spill] sm:$0xff] %v5030_v30  ;;  %1849 = vmatpush.msrb.mxu3 %v5030_v30  ;;  %1781 = vmatpush.msrb.mxu0 %v5036_v24 }
 0x31f   :  { %v3374_v54 = vmul.f32 -1.442695, %v1556_v63  ;;  %v3376_v17 = vmul.f32 -1.442695, %v1557_v51  ;;  %6021 = vst [vmem:[#allocation72_spill] sm:$0xff] %v5036_v24  ;;  %v5038_v63 = vld [vmem:[#allocation3 + $0x88] sm:$0xff] }
 0x320   :  { %6022 = vst [vmem:[#allocation73_spill] sm:$0xff] %v5038_v63  ;;  %v5040_v51 = vld [vmem:[#allocation3 + $0x90] sm:$0xff]  ;;  %1804 = vmatpush.msrb.mxu1 %v5038_v63 }
 0x321   :  { %3575 = vpow2.f32 %v3374_v54  ;;  %6023 = vst [vmem:[#allocation74_spill] sm:$0xff] %v5040_v51  ;;  %v5045_v54 = vld [vmem:[#allocation3 + $0x98] sm:$0xff]  ;;  %1827 = vmatpush.msrb.mxu2 %v5040_v51  ;;  %v5068_v51 = vld [vmem:[#allocation3 + $0x48] sm:$0xff] }
 0x322   :  { %3577 = vpow2.f32 %v3376_v17  ;;  %6024 = vst [vmem:[#allocation75_spill] sm:$0xff] %v5045_v54  ;;  %v6025_v17 = vld [vmem:[#allocation21_spill] sm:$0xff]  ;;  %1850 = vmatpush.msrb.mxu3 %v5045_v54  ;;  %v5066_v54 = vld [vmem:[#allocation3 + $0x40] sm:$0xff] }
 0x323   :  { %v1550_v53 = vpop.f32.mrf.mxu3  ;;  %v211_v41 = vadd.f32 %v6025_v17, %v6001_v44  ;;  %v5062_v17 = vld [vmem:[#allocation3 + $0x78] sm:$0xff]  ;;  %6031 = vst [vmem:[#allocation80_spill] sm:$0xff] %v5066_v54 }
 0x324   :  { %v1559_v9 = vadd.f32 %v1550_v53, %v371_v28  ;;  %v6026_v28 = vld [vmem:[#allocation22_spill] sm:$0xff]  ;;  %6030 = vst [vmem:[#allocation79_spill] sm:$0xff] %v5062_v17  ;;  %1851 = vmatpush.msrb.mxu3 %v5062_v17  ;;  %v5082_v17 = vld [vmem:[#allocation3 + $0x20] sm:$0xff] }
 0x325   :  { %v265_v53 = vadd.f32 %v6026_v28, %v6003_v14  ;;  %v1527_v28 = vpop.f32.mrf.mxu2  ;;  %6032 = vst [vmem:[#allocation81_spill] sm:$0xff] %v5068_v51 }
 0x326   :  { %v3378_v50 = vmul.f32 -1.442695, %v1559_v9  ;;  %v5054_v9 = vld [vmem:[#allocation3 + $0x60] sm:$0xff]  ;;  %6036 = vst [vmem:[#allocation84_spill] sm:$0xff] %v5082_v17 }
 0x327   :  { %v3576_v2 = vpop.eup %3575  ;;  %6027 = vst [vmem:[#allocation76_spill] sm:$0xff] %v5054_v9  ;;  %1782 = vmatpush.msrb.mxu0 %v5054_v9  ;;  %v6034_v9 = vld [vmem:[#allocation19_spill] sm:$0xff] }
 0x328   :  { %v3578_v57 = vpop.eup %3577  ;;  %v5026_v33 = vadd.f32 1.0, %v3576_v2  ;;  %3579 = vpow2.f32 %v3378_v50  ;;  %v5056_v50 = vld [vmem:[#allocation3 + $0x68] sm:$0xff]  ;;  %v5058_v2 = vld [vmem:[#allocation3 + $0x70] sm:$0xff]  ;;  %v317_v30 = vadd.f32 %v6034_v9, %v4384_v15 }
 0x329   :  { %v5032_v8 = vadd.f32 1.0, %v3578_v57  ;;  %6028 = vst [vmem:[#allocation77_spill] sm:$0xff] %v5056_v50  ;;  %1805 = vmatpush.msrb.mxu1 %v5056_v50  ;;  %1828 = vmatpush.msrb.mxu2 %v5058_v2  ;;  %v5087_v9 = vld [vmem:[#allocation3 + $0x28] sm:$0xff] }
 0x32a   :  { %3581 = vrcp.f32 %v5026_v33  ;;  %6029 = vst [vmem:[#allocation78_spill] sm:$0xff] %v5058_v2  ;;  %1783 = vmatpush.msrb.mxu0 %v5066_v54  ;;  %v1558_v50 = vadd.f32 %v1527_v28, %v317_v30  ;;  %v5091_v54 = vld [vmem:[#allocation3 + $0x38] sm:$0xff]  ;;  %v5102_v30 = vld [vmem:[#allocation3 + $0x8] sm:$0xff]  ;;  %v5104_v28 = vld [vmem:[#allocation3 + $0x10] sm:$0xff]  ;;  %v1581_v19 = vand.u32 2147483647, %v5026_v33  ;;  %vm1577_vm12 = vweird.f32 %v5026_v33 }
 0x32b   :  { %3583 = vrcp.f32 %v5032_v8  ;;  %1806 = vmatpush.msrb.mxu1 %v5068_v51  ;;  %1829 = vmatpush.msrb.mxu2 %v5070_v18  ;;  %6037 = vst [vmem:[#allocation85_spill] sm:$0xff] %v5087_v9  ;;  %v5089_v51 = vld [vmem:[#allocation3 + $0x30] sm:$0xff]  ;;  %vm1615_vm11 = vweird.f32 %v5032_v8 }
 0x32c   :  { %v1484_v57 = vpop.f32.mrf.mxu0  ;;  %v1507_v63 = vpop.f32.mrf.mxu1  ;;  %1784 = vmatpush.msrb.mxu0 %v5082_v17  ;;  %6038 = vst [vmem:[#allocation86_spill] sm:$0xff] %v5089_v51  ;;  %v6040_v17 = vld [vmem:[#allocation24_spill] sm:$0xff]  ;;  %vm5135_vm13 = vcmp.eq.f32.partialorder %v1581_v19, 8.507059e+37 }
 0x32d   :  { %v1560_v14 = vadd.f32 %v1484_v57, %v211_v41  ;;  %v1561_v44 = vadd.f32 %v1507_v63, %v265_v53  ;;  %v5076_v41 = vld [vmem:[#allocation3 + $0x58] sm:$0xff]  ;;  %1807 = vmatpush.msrb.mxu1 %v5087_v9  ;;  %1830 = vmatpush.msrb.mxu2 %v5089_v51 }
 0x32e   :  { %v3580_v24 = vpop.eup %3579  ;;  %6035 = vst [vmem:[#allocation83_spill] sm:$0xff] %v5076_v41  ;;  %1852 = vmatpush.msrb.mxu3 %v5076_v41  ;;  %v373_v41 = vadd.f32 %v6040_v17, %v6005_v47  ;;  %v5112_v9 = vld [vmem:[#allocation3 + $0x18] sm:$0xff]  ;;  %v1583_v47 = vand.u32 2147483648, %v5026_v33 }
 0x32f   :  { %v5078_v63 = vadd.f32 1.0, %v3580_v24  ;;  %v3375_v53 = vmul.f32 -1.442695, %v1560_v14  ;;  %v3377_v57 = vmul.f32 -1.442695, %v1561_v44  ;;  %v5100_v14 = vld [vmem:[#allocation3] sm:$0xff]  ;;  %1808 = vmatpush.msrb.mxu1 %v5102_v30  ;;  %1831 = vmatpush.msrb.mxu2 %v5104_v28 }
 0x330   :  { %v5084_v2 = vpop.eup %3581  ;;  %6039 = vst [vmem:[#allocation87_spill] sm:$0xff] %v5100_v14  ;;  %1853 = vmatpush.msrb.mxu3 %v5091_v54  ;;  %1785 = vmatpush.msrb.mxu0 %v5100_v14  ;;  %v1621_v14 = vand.u32 2147483648, %v5032_v8 }
 0x331   :  { %v5093_v24 = vpop.eup %3583  ;;  %v1573_v44 = vmul.f32 %v5084_v2, %v5026_v33  ;;  %3585 = vrcp.f32 %v5078_v63  ;;  %vm1578_vm9 = vweird.f32 %v5084_v2  ;;  %2099 = vmatpush.msra.mxu1 %v4896_v34  ;;  %2122 = vmatpush.msra.mxu2 %v4898_v5  ;;  %vm1655_vm2 = vweird.f32 %v5078_v63  ;;  %v6049_v34 = vld [vmem:[#allocation71_spill] sm:$0xff] }
 0x332   :  { %v1611_v18 = vmul.f32 %v5093_v24, %v5032_v8  ;;  %3587 = vpow2.f32 %v3375_v53  ;;  %1854 = vmatpush.msrb.mxu3 %v5112_v9  ;;  %2076 = vmatpush.msra.mxu0 %v4894_v6  ;;  %vm1616_vm10 = vweird.f32 %v5093_v24  ;;  %vm5143_vm14 = vmor %vm1577_vm12, %vm1578_vm9 }
 0x333   :  { %v1574_v51 = vsub.f32 1.0, %v1573_v44  ;;  %3589 = vpow2.f32 %v3377_v57  ;;  %v1553_v29 = vpop.f32.mrf.mxu3  ;;  %v1619_v57 = vand.u32 2147483647, %v5032_v8  ;;  %2100 = vmatpush.msra.mxu1 %v4908_v62  ;;  %2123 = vmatpush.msra.mxu2 %v4910_v55  ;;  %vm1617_vm15 = vmor %vm1615_vm11, %vm1616_vm10  ;;  %v1622_v55 = vor.u32 1.1754944e-38, %v1621_v14 }
 0x334   :  { %v1612_v17 = vsub.f32 1.0, %v1611_v18  ;;  %3591 = vtanh.f32 %v1558_v50  ;;  %v1563_v53 = vadd.f32 %v1553_v29, %v373_v41  ;;  %2145 = vmatpush.msra.mxu3 %v4902_v61  ;;  %2077 = vmatpush.msra.mxu0 %v4906_v0  ;;  %v1584_v0 = vor.u32 1.1754944e-38, %v1583_v47 }
 0x335   :  { %v1575_v44 = vmul.f32 %v5084_v2, %v1574_v51  ;;  %vm1620_vm0 = vcmp.eq.f32.partialorder %v1619_v57, 8.507059e+37  ;;  %2101 = vmatpush.msra.mxu1 %v4920_v25  ;;  %2124 = vmatpush.msra.mxu2 %v4922_v56 }
 0x336   :  { %v1613_v18 = vmul.f32 %v5093_v24, %v1612_v17  ;;  %v3379_v29 = vmul.f32 -1.442695, %v1563_v53  ;;  %2146 = vmatpush.msra.mxu3 %v4914_v60  ;;  %2078 = vmatpush.msra.mxu0 %v4918_v36 }
 0x337   :  { %v5130_v6 = vpop.eup %3585  ;;  %v1576_v51 = vadd.f32 %v5084_v2, %v1575_v44  ;;  %2102 = vmatpush.msra.mxu1 %v4932_v4  ;;  %2125 = vmatpush.msra.mxu2 %v4934_v22  ;;  %v1530_v4 = vpop.f32.mrf.mxu2 }
 0x338   :  { %v3588_v5 = vpop.eup %3587  ;;  %v1614_v50 = vadd.f32 %v5093_v24, %v1613_v18  ;;  %v1651_v19 = vmul.f32 %v5130_v6, %v5078_v63  ;;  %3593 = vpow2.f32 %v3379_v29  ;;  %2147 = vmatpush.msra.mxu3 %v4926_v21  ;;  %2079 = vmatpush.msra.mxu0 %v4930_v7  ;;  %vm1656_vm1 = vweird.f32 %v5130_v6 }
 0x339   :  { %v3590_v62 = vpop.eup %3589  ;;  %v1580_v47 = vsel %vm5143_vm14, %v5084_v2, %v1576_v51  ;;  %v5159_v33 = vadd.f32 1.0, %v3588_v5  ;;  %2103 = vmatpush.msra.mxu1 %v4948_v10  ;;  %2126 = vmatpush.msra.mxu2 %v4950_v1  ;;  %v1659_v1 = vand.u32 2147483647, %v5078_v63  ;;  %vm5202_vm3 = vmor %vm1655_vm2, %vm1656_vm1  ;;  %v6048_v51 = vld [vmem:[#allocation70_spill] sm:$0xff] }
 0x33a   :  { %v3592_v60 = vpop.eup %3591  ;;  %v1585_v36 = vsel %vm5135_vm13, %v1584_v0, %v1580_v47  ;;  %v1618_v41 = vsel %vm1617_vm15, %v5093_v24, %v1614_v50  ;;  %v1652_v8 = vsub.f32 1.0, %v1651_v19  ;;  %v5166_v17 = vadd.f32 1.0, %v3590_v62  ;;  %2148 = vmatpush.msra.mxu3 %v4938_v58  ;;  %2080 = vmatpush.msra.mxu0 %v4946_v49  ;;  %v6050_v0 = vld [vmem:[#allocation68_spill] sm:$0xff]  ;;  %v6052_v19 = vld [vmem:[#allocation69_spill] sm:$0xff] }
 0x33b   :  { %v1623_v2 = vsel %vm1620_vm0, %v1622_v55, %v1618_v41  ;;  %v1682_v14 = vmul.f32 %v3592_v60, %v1585_v36  ;;  %3595 = vrcp.f32 %v5159_v33  ;;  %2104 = vmatpush.msra.mxu1 %v4960_v27  ;;  %2127 = vmatpush.msra.mxu2 %v4962_v46  ;;  %v1661_v49 = vand.u32 2147483648, %v5078_v63  ;;  %v6051_v50 = vld [vmem:[#allocation72_spill] sm:$0xff]  ;;  %v6053_v47 = vld [vmem:[#allocation73_spill] sm:$0xff]  ;;  %v6055_v60 = vld [vmem:[#allocation75_spill] sm:$0xff] }
 0x33c   :  { %v1680_v25 = vmul.f32 %v1623_v2, %v4860_v59  ;;  %v1653_v56 = vmul.f32 %v5130_v6, %v1652_v8  ;;  %3597 = vrcp.f32 %v5166_v17  ;;  %2149 = vmatpush.msra.mxu3 %v4954_v39  ;;  %2081 = vmatpush.msra.mxu0 %v4958_v26  ;;  %v6045_v59 = vld [vmem:[#allocation23_spill] sm:$0xff]  ;;  %vm1660_vm4 = vcmp.eq.f32.partialorder %v1659_v1, 8.507059e+37  ;;  %v6056_v36 = vld [vmem:[#allocation76_spill] sm:$0xff]  ;;  %v6057_v8 = vld [vmem:[#allocation77_spill] sm:$0xff] }
 0x33d   :  { %v319_v22 = vadd.f32 %v6045_v59, %v4384_v15  ;;  %2105 = vmatpush.msra.mxu1 %v4972_v38  ;;  %2128 = vmatpush.msra.mxu2 %v4976_v43  ;;  %v1662_v38 = vor.u32 1.1754944e-38, %v1661_v49  ;;  %v1598_v63 = vand.u32 2147483648, %v5159_v33  ;;  %vm1592_vm7 = vweird.f32 %v5159_v33  ;;  %v6065_v49 = vld [vmem:[#allocation85_spill] sm:$0xff]  ;;  %v6066_v1 = vld [vmem:[#allocation86_spill] sm:$0xff] }
 0x33e   :  { %v3594_v21 = vpop.eup %3593  ;;  %v5180_v7 = vadd.f32 %v1682_v14, %v1680_v25  ;;  %v1654_v58 = vadd.f32 %v5130_v6, %v1653_v56  ;;  %2150 = vmatpush.msra.mxu3 %v4966_v45  ;;  %2082 = vmatpush.msra.mxu0 %v4970_v37  ;;  %vm1630_vm8 = vweird.f32 %v5166_v17  ;;  %v6059_v14 = vld [vmem:[#allocation79_spill] sm:$0xff]  ;;  %v6060_v25 = vld [vmem:[#allocation80_spill] sm:$0xff] }
 0x33f   :  { %v5192_v10 = vadd.f32 1.0, %v3594_v21  ;;  %v1562_v26 = vadd.f32 %v1530_v4, %v319_v22  ;;  %2106 = vmatpush.msra.mxu1 %v4984_v13  ;;  %2129 = vmatpush.msra.mxu2 %v4986_v23  ;;  %v1596_v23 = vand.u32 2147483647, %v5159_v33  ;;  %v6061_v21 = vld [vmem:[#allocation81_spill] sm:$0xff]  ;;  %v6062_v4 = vld [vmem:[#allocation82_spill] sm:$0xff]  ;;  %v6063_v22 = vld [vmem:[#allocation83_spill] sm:$0xff] }
 0x340   :  { %3599 = vtanh.f32 %v5180_v7  ;;  %2151 = vmatpush.msra.mxu3 %v4978_v40  ;;  %2083 = vmatpush.msra.mxu0 %v4982_v48  ;;  %v1658_v37 = vsel %vm5202_vm3, %v5130_v6, %v1654_v58  ;;  %v1636_v48 = vand.u32 2147483648, %v5166_v17  ;;  %v6064_v58 = vld [vmem:[#allocation84_spill] sm:$0xff] }
 0x341   :  { %v3596_v39 = vpop.eup %3595  ;;  %3601 = vrcp.f32 %v5192_v10  ;;  %2107 = vmatpush.msra.mxu1 %v4998_v12  ;;  %2130 = vmatpush.msra.mxu2 %v5000_v32  ;;  %v1663_v44 = vsel %vm1660_vm4, %v1662_v38, %v1658_v37  ;;  %vm1597_vm11 = vcmp.eq.f32.partialorder %v1596_v23, 8.507059e+37  ;;  %v1676_v56 = vand.u32 2147483648, %v5192_v10  ;;  %v6069_v37 = vld [vmem:[#allocation25_spill] sm:$0xff]  ;;  %v6072_v23 = vld [vmem:[#allocation66_spill] sm:$0xff] }
 0x342   :  { %v3598_v27 = vpop.eup %3597  ;;  %v1588_v24 = vmul.f32 %v3596_v39, %v5159_v33  ;;  %2152 = vmatpush.msra.mxu3 %v4992_v20  ;;  %2084 = vmatpush.msra.mxu0 %v4996_v42  ;;  %3603 = vtanh.f32 %v1562_v26  ;;  %vm1593_vm5 = vweird.f32 %v3596_v39  ;;  %v1634_v42 = vand.u32 2147483647, %v5166_v17  ;;  %v6054_v33 = vld [vmem:[#allocation74_spill] sm:$0xff]  ;;  %v6067_v26 = vld [vmem:[#allocation87_spill] sm:$0xff] }
 0x343   :  { %v1626_v45 = vmul.f32 %v3598_v27, %v5166_v17  ;;  %vm1631_vm6 = vweird.f32 %v3598_v27  ;;  %2108 = vmatpush.msra.mxu1 %v5010_v52  ;;  %2131 = vmatpush.msra.mxu2 %v5012_v35  ;;  %vm1594_vm9 = vmor %vm1592_vm7, %vm1593_vm5  ;;  %v1637_v35 = vor.u32 1.1754944e-38, %v1636_v48  ;;  %v6058_v17 = vld [vmem:[#allocation78_spill] sm:$0xff]  ;;  %vm1670_vm14 = vweird.f32 %v5192_v10 }
 0x344   :  { %v1589_v43 = vsub.f32 1.0, %v1588_v24  ;;  %2153 = vmatpush.msra.mxu3 %v5004_v31  ;;  %2085 = vmatpush.msra.mxu0 %v5008_v11  ;;  %v1599_v31 = vor.u32 1.1754944e-38, %v1598_v63  ;;  %vm1632_vm10 = vmor %vm1630_vm8, %vm1631_vm6  ;;  %vm1635_vm12 = vcmp.eq.f32.partialorder %v1634_v42, 8.507059e+37  ;;  %v1674_v59 = vand.u32 2147483647, %v5192_v10 }
 0x345   :  { %v1627_v40 = vsub.f32 1.0, %v1626_v45  ;;  %2109 = vmatpush.msra.mxu1 %v6048_v51  ;;  %2132 = vmatpush.msra.mxu2 %v6049_v34 }
 0x346   :  { %v3600_v13 = vpop.eup %3599  ;;  %v1590_v53 = vmul.f32 %v3596_v39, %v1589_v43  ;;  %2154 = vmatpush.msra.mxu3 %v5016_v3  ;;  %2086 = vmatpush.msra.mxu0 %v5020_v16  ;;  %vm1675_vm0 = vcmp.eq.f32.partialorder %v1674_v59, 8.507059e+37  ;;  %v6070_v43 = vld [vmem:[#allocation63_spill] sm:$0xff] }
 0x347   :  { %v1628_v20 = vmul.f32 %v3598_v27, %v1627_v40  ;;  %v5226_v57 = vmul.f32 %v3600_v13, %v1663_v44  ;;  %v5230_v12 = vpop.eup %3601  ;;  %2110 = vmatpush.msra.mxu1 %v6053_v47  ;;  %2133 = vmatpush.msra.mxu2 %v6054_v33  ;;  %v6073_v44 = vld [vmem:[#allocation28_spill] sm:$0xff] }
 0x348   :  { %v1591_v32 = vadd.f32 %v3596_v39, %v1590_v53  ;;  %v1666_v52 = vmul.f32 %v5230_v12, %v5192_v10  ;;  %v3604_v3 = vpop.eup %3603  ;;  %2155 = vmatpush.msra.mxu3 %v6050_v0  ;;  %2087 = vmatpush.msra.mxu0 %v6051_v50  ;;  %vm1671_vm13 = vweird.f32 %v5230_v12 }
 0x349   :  { %v1629_v11 = vadd.f32 %v3598_v27, %v1628_v20  ;;  %1786 = vmatmul.f32.vlgmr.msrb.gmra.mxu0 %v5226_v57  ;;  %1809 = vmatmul.f32.vlgmr.msrb.gmra.mxu1 %v5226_v57  ;;  %vm1672_vm15 = vmor %vm1670_vm14, %vm1671_vm13  ;;  %v376_v20 = vadd.f32 %v6073_v44, %v6072_v23 }
 0x34a   :  { %v1595_v18 = vsel %vm1594_vm9, %v3596_v39, %v1591_v32  ;;  %1832 = vmatmul.f32.vlgmr.msrb.gmra.mxu2 %v5226_v57  ;;  %1855 = vmatmul.f32.vlgmr.msrb.gmra.mxu3 %v5226_v57  ;;  %v1667_v6 = vsub.f32 1.0, %v1666_v52 }
 0x34b   :  { %v1600_v16 = vsel %vm1597_vm11, %v1599_v31, %v1595_v18  ;;  %v1633_v29 = vsel %vm1632_vm10, %v3598_v27, %v1629_v11  ;;  %2156 = vmatpush.msra.mxu3 %v6055_v60  ;;  %2088 = vmatpush.msra.mxu0 %v6056_v36  ;;  %v1677_v27 = vor.u32 1.1754944e-38, %v1676_v56 }
 0x34c   :  { %v1638_v5 = vsel %vm1635_vm12, %v1637_v35, %v1633_v29  ;;  %v1683_v61 = vmul.f32 %v3604_v3, %v1600_v16  ;;  %v1668_v55 = vmul.f32 %v5230_v12, %v1667_v6  ;;  %2111 = vmatpush.msra.mxu1 %v6057_v8  ;;  %2134 = vmatpush.msra.mxu2 %v6058_v17  ;;  %v6074_v35 = vld [vmem:[#allocation29_spill] sm:$0xff]  ;;  %v6075_v3 = vld [vmem:[#allocation30_spill] sm:$0xff]  ;;  %v6077_v17 = vld [vmem:[#allocation32_spill] sm:$0xff] }
 0x34d   :  { %v1681_v62 = vmul.f32 %v1638_v5, %v6052_v19  ;;  %2157 = vmatpush.msra.mxu3 %v6059_v14  ;;  %2089 = vmatpush.msra.mxu0 %v6060_v25  ;;  %v270_v16 = vadd.f32 %v6075_v3, %v6070_v43  ;;  %v6076_v5 = vld [vmem:[#allocation27_spill] sm:$0xff] }
 0x34e   :  { %v1669_v2 = vadd.f32 %v5230_v12, %v1668_v55  ;;  %2112 = vmatpush.msra.mxu1 %v6061_v21  ;;  %2135 = vmatpush.msra.mxu2 %v6062_v4 }
 0x34f   :  { %v5254_v41 = vadd.f32 %v1683_v61, %v1681_v62  ;;  %2158 = vmatpush.msra.mxu3 %v6063_v22  ;;  %2090 = vmatpush.msra.mxu0 %v6064_v58  ;;  %v322_v61 = vadd.f32 %v6076_v5, %v4384_v15 }
 0x350   :  { %2113 = vmatpush.msra.mxu1 %v6065_v49  ;;  %2136 = vmatpush.msra.mxu2 %v6066_v1  ;;  %v1673_v39 = vsel %vm1672_vm15, %v5230_v12, %v1669_v2  ;;  %v378_v2 = vadd.f32 %v6077_v17, %v6072_v23 }
 0x351   :  { %3605 = vtanh.f32 %v5254_v41  ;;  %2159 = vmatpush.msra.mxu3 %v5091_v54  ;;  %2091 = vmatpush.msra.mxu0 %v6067_v26  ;;  %v1678_v46 = vsel %vm1675_vm0, %v1677_v27, %v1673_v39  ;;  %v6068_v54 = vld [vmem:[#allocation62_spill] sm:$0xff] }
 0x352   :  { %2114 = vmatpush.msra.mxu1 %v5102_v30  ;;  %2137 = vmatpush.msra.mxu2 %v5104_v28  ;;  %v214_v38 = vadd.f32 %v6069_v37, %v6068_v54  ;;  %v6071_v30 = vld [vmem:[#allocation26_spill] sm:$0xff]  ;;  %v216_v18 = vadd.f32 %v6074_v35, %v6068_v54 }
 0x353   :  { %2160 = vmatpush.msra.mxu3 %v5112_v9  ;;  %v268_v40 = vadd.f32 %v6071_v30, %v6070_v43 }
 0x357   :  { %v3606_v10 = vpop.eup %3605 }
 0x358   :  { %v1689_v24 = vmul.f32 %v3606_v10, %v1678_v46 }
 0x35a   :  { %v3445_v45 = vpack.c.bf16 %v1689_v24, %v5226_v57  ;;  %1789 = vmatmul.f32.gmra.mxu0 %v1689_v24  ;;  %1812 = vmatmul.f32.gmra.mxu1 %v1689_v24 }
 0x35b   :  { %1835 = vmatmul.f32.gmra.mxu2 %v1689_v24  ;;  %1858 = vmatmul.f32.gmra.mxu3 %v1689_v24 }
 0x35c   :  { %3446 = vst [vmem:[#allocation6 + $0x18] sm:$0xff] %v3445_v45  }
 0x3c6   :  { %v1787_v28 = vpop.f32.mrf.mxu0  ;;  %v1810_v48 = vpop.f32.mrf.mxu1 }
 0x3c7   :  { %v1862_v63 = vadd.f32 %v1787_v28, %v214_v38  ;;  %v1863_v9 = vadd.f32 %v1810_v48, %v268_v40 }
 0x3c9   :  { %v3380_v13 = vmul.f32 -1.442695, %v1862_v63  ;;  %v3382_v53 = vmul.f32 -1.442695, %v1863_v9 }
 0x3cb   :  { %3607 = vpow2.f32 %v3380_v13 }
 0x3cc   :  { %3609 = vpow2.f32 %v3382_v53 }
 0x3cd   :  { %v1856_v42 = vpop.f32.mrf.mxu3  ;;  %v1833_v29 = vpop.f32.mrf.mxu2 }
 0x3ce   :  { %v1865_v57 = vadd.f32 %v1856_v42, %v376_v20  ;;  %v1864_v55 = vadd.f32 %v1833_v29, %v322_v61 }
 0x3d0   :  { %v3384_v12 = vmul.f32 -1.442695, %v1865_v57 }
 0x3d1   :  { %v3608_v32 = vpop.eup %3607 }
 0x3d2   :  { %v3610_v31 = vpop.eup %3609  ;;  %v1876_v11 = vadd.f32 1.0, %v3608_v32  ;;  %3611 = vpow2.f32 %v3384_v12 }
 0x3d3   :  { %v1914_v52 = vadd.f32 1.0, %v3610_v31  ;;  %v6078_v31 = vld [vmem:[#allocation31_spill] sm:$0xff] }
 0x3d4   :  { %3613 = vrcp.f32 %v1876_v11  ;;  %v1887_v25 = vand.u32 2147483647, %v1876_v11  ;;  %v1889_v4 = vand.u32 2147483648, %v1876_v11  ;;  %vm1883_vm3 = vweird.f32 %v1876_v11 }
 0x3d5   :  { %3615 = vrcp.f32 %v1914_v52  ;;  %v1927_v21 = vand.u32 2147483648, %v1914_v52  ;;  %v1925_v58 = vand.u32 2147483647, %v1914_v52  ;;  %vm1921_vm4 = vweird.f32 %v1914_v52 }
 0x3d6   :  { %vm1888_vm5 = vcmp.eq.f32.partialorder %v1887_v25, 8.507059e+37  ;;  %v1890_v24 = vor.u32 1.1754944e-38, %v1889_v4 }
 0x3d7   :  { %v1790_v6 = vpop.f32.mrf.mxu0  ;;  %v1813_v51 = vpop.f32.mrf.mxu1  ;;  %v1928_v46 = vor.u32 1.1754944e-38, %v1927_v21  ;;  %vm1926_vm8 = vcmp.eq.f32.partialorder %v1925_v58, 8.507059e+37 }
 0x3d8   :  { %v3612_v34 = vpop.eup %3611  ;;  %v1866_v0 = vadd.f32 %v1790_v6, %v216_v18  ;;  %v1867_v50 = vadd.f32 %v1813_v51, %v270_v16  ;;  %v6083_v6 = vld [vmem:[#allocation34_spill] sm:$0xff] }
 0x3d9   :  { %v5291_v19 = vadd.f32 1.0, %v3612_v34 }
 0x3da   :  { %v3614_v62 = vpop.eup %3613  ;;  %v3381_v47 = vmul.f32 -1.442695, %v1866_v0  ;;  %v3383_v33 = vmul.f32 -1.442695, %v1867_v50 }
 0x3db   :  { %v3616_v60 = vpop.eup %3615  ;;  %v1879_v36 = vmul.f32 %v3614_v62, %v1876_v11  ;;  %3617 = vrcp.f32 %v5291_v19  ;;  %vm1884_vm1 = vweird.f32 %v3614_v62  ;;  %v324_v11 = vadd.f32 %v6078_v31, %v4384_v15  ;;  %v5342_v31 = vld [vmem:[#allocation3 + $0x1a8] sm:$0xff] }
 0x3dc   :  { %v1917_v8 = vmul.f32 %v3616_v60, %v1914_v52  ;;  %3619 = vpow2.f32 %v3381_v47  ;;  %vm1922_vm2 = vweird.f32 %v3616_v60  ;;  %vm1885_vm6 = vmor %vm1883_vm3, %vm1884_vm1  ;;  %v1967_v35 = vand.u32 2147483648, %v5291_v19 }
 0x3dd   :  { %v1880_v14 = vsub.f32 1.0, %v1879_v36  ;;  %3621 = vpow2.f32 %v3383_v33  ;;  %vm1923_vm7 = vmor %vm1921_vm4, %vm1922_vm2  ;;  %v1965_v3 = vand.u32 2147483647, %v5291_v19  ;;  %vm1961_vm10 = vweird.f32 %v5291_v19 }
 0x3de   :  { %v1918_v56 = vsub.f32 1.0, %v1917_v8  ;;  %3623 = vtanh.f32 %v1864_v55  ;;  %v1859_v59 = vpop.f32.mrf.mxu3  ;;  %v1836_v12 = vpop.f32.mrf.mxu2  ;;  %v1968_v61 = vor.u32 1.1754944e-38, %v1967_v35  ;;  %v5352_v35 = vld [vmem:[#allocation3 + $0x180] sm:$0xff] }
 0x3df   :  { %v1881_v22 = vmul.f32 %v3614_v62, %v1880_v14  ;;  %v1869_v49 = vadd.f32 %v1859_v59, %v378_v2  ;;  %vm1966_vm12 = vcmp.eq.f32.partialorder %v1965_v3, 8.507059e+37  ;;  %v5356_v3 = vld [vmem:[#allocation3 + $0x190] sm:$0xff] }
 0x3e0   :  { %v1919_v1 = vmul.f32 %v3616_v60, %v1918_v56 }
 0x3e1   :  { %v3618_v39 = vpop.eup %3617  ;;  %v1882_v26 = vadd.f32 %v3614_v62, %v1881_v22  ;;  %v3385_v27 = vmul.f32 -1.442695, %v1869_v49 }
 0x3e2   :  { %v3620_v10 = vpop.eup %3619  ;;  %v1920_v45 = vadd.f32 %v3616_v60, %v1919_v1  ;;  %v1957_v37 = vmul.f32 %v3618_v39, %v5291_v19  ;;  %vm1962_vm9 = vweird.f32 %v3618_v39 }
 0x3e3   :  { %v3622_v38 = vpop.eup %3621  ;;  %v1886_v30 = vsel %vm1885_vm6, %v3614_v62, %v1882_v26  ;;  %v1877_v40 = vadd.f32 1.0, %v3620_v10  ;;  %3625 = vpow2.f32 %v3385_v27  ;;  %vm5306_vm11 = vmor %vm1961_vm10, %vm1962_vm9 }
 0x3e4   :  { %v3624_v28 = vpop.eup %3623  ;;  %v1891_v48 = vsel %vm1888_vm5, %v1890_v24, %v1886_v30  ;;  %v1924_v63 = vsel %vm1923_vm7, %v3616_v60, %v1920_v45  ;;  %v1958_v9 = vsub.f32 1.0, %v1957_v37  ;;  %v1915_v13 = vadd.f32 1.0, %v3622_v38 }
 0x3e5   :  { %v1929_v53 = vsel %vm1926_vm8, %v1928_v46, %v1924_v63  ;;  %v1988_v44 = vmul.f32 %v3624_v28, %v1891_v48  ;;  %3627 = vrcp.f32 %v1877_v40  ;;  %v1904_v55 = vand.u32 2147483648, %v1877_v40 }
 0x3e6   :  { %v1986_v20 = vmul.f32 %v1929_v53, %v5180_v7  ;;  %v1959_v42 = vmul.f32 %v3618_v39, %v1958_v9  ;;  %3629 = vrcp.f32 %v1915_v13  ;;  %v1868_v7 = vadd.f32 %v1836_v12, %v324_v11  ;;  %v5318_v9 = vld [vmem:[#allocation3 + $0x1e8] sm:$0xff]  ;;  %v5324_v53 = vld [vmem:[#allocation3 + $0x1f8] sm:$0xff]  ;;  %v5344_v11 = vld [vmem:[#allocation3 + $0x1b0] sm:$0xff] }
 0x3e7   :  { %v1942_v62 = vand.u32 2147483648, %v1915_v13  ;;  %v1902_v33 = vand.u32 2147483647, %v1877_v40  ;;  %v1940_v8 = vand.u32 2147483647, %v1915_v13  ;;  %vm1898_vm15 = vweird.f32 %v1877_v40  ;;  %2405 = vmatpush.msrb.mxu1 %v5318_v9  ;;  %2451 = vmatpush.msrb.mxu3 %v5324_v53  ;;  %v5336_v12 = vld [vmem:[#allocation3 + $0x1d8] sm:$0xff] }
 0x3e8   :  { %v5298_v57 = vadd.f32 %v1988_v44, %v1986_v20  ;;  %v1960_v52 = vadd.f32 %v3618_v39, %v1959_v42  ;;  %vm1936_vm0 = vweird.f32 %v1915_v13  ;;  %v1905_v25 = vor.u32 1.1754944e-38, %v1904_v55  ;;  %v5328_v44 = vld [vmem:[#allocation3 + $0x1c0] sm:$0xff]  ;;  %v5330_v20 = vld [vmem:[#allocation3 + $0x1c8] sm:$0xff]  ;;  %v5332_v42 = vld [vmem:[#allocation3 + $0x1d0] sm:$0xff] }
 0x3e9   :  { %v3626_v32 = vpop.eup %3625  ;;  %v1943_v4 = vor.u32 1.1754944e-38, %v1942_v62  ;;  %vm1903_vm3 = vcmp.eq.f32.partialorder %v1902_v33, 8.507059e+37  ;;  %vm1941_vm4 = vcmp.eq.f32.partialorder %v1940_v8, 8.507059e+37  ;;  %2406 = vmatpush.msrb.mxu1 %v5330_v20  ;;  %2452 = vmatpush.msrb.mxu3 %v5336_v12  ;;  %v5376_v62 = vld [vmem:[#allocation3 + $0x178] sm:$0xff]  ;;  %v5382_v33 = vld [vmem:[#allocation3 + $0x148] sm:$0xff] }
 0x3ea   :  { %3631 = vtanh.f32 %v5298_v57  ;;  %v1955_v18 = vadd.f32 1.0, %v3626_v32  ;;  %v1964_v5 = vsel %vm5306_vm11, %v3618_v39, %v1960_v52  ;;  %v5340_v32 = vld [vmem:[#allocation3 + $0x1a0] sm:$0xff]  ;;  %v5348_v52 = vld [vmem:[#allocation3 + $0x1b8] sm:$0xff] }
 0x3eb   :  { %v3628_v16 = vpop.eup %3627  ;;  %v1969_v60 = vsel %vm1966_vm12, %v1968_v61, %v1964_v5  ;;  %2407 = vmatpush.msrb.mxu1 %v5342_v31  ;;  %2453 = vmatpush.msrb.mxu3 %v5348_v52  ;;  %v5370_v5 = vld [vmem:[#allocation3 + $0x168] sm:$0xff]  ;;  %v5372_v61 = vld [vmem:[#allocation3 + $0x170] sm:$0xff] }
 0x3ec   :  { %v3630_v29 = vpop.eup %3629  ;;  %v1894_v51 = vmul.f32 %v3628_v16, %v1877_v40  ;;  %3633 = vrcp.f32 %v1955_v18  ;;  %vm1899_vm13 = vweird.f32 %v3628_v16  ;;  %v1982_v45 = vand.u32 2147483648, %v1955_v18 }
 0x3ed   :  { %v1932_v34 = vmul.f32 %v3630_v29, %v1915_v13  ;;  %3635 = vtanh.f32 %v1868_v7  ;;  %vm1937_vm14 = vweird.f32 %v3630_v29  ;;  %vm1900_vm1 = vmor %vm1898_vm15, %vm1899_vm13  ;;  %vm1976_vm6 = vweird.f32 %v1955_v18  ;;  %v5320_v13 = vld [vmem:[#allocation3 + $0x1f0] sm:$0xff]  ;;  %v6082_v7 = vld [vmem:[#allocation33_spill] sm:$0xff] }
 0x3ee   :  { %v1895_v0 = vsub.f32 1.0, %v1894_v51  ;;  %vm1938_vm2 = vmor %vm1936_vm0, %vm1937_vm14  ;;  %v1980_v37 = vand.u32 2147483647, %v1955_v18  ;;  %v1983_v30 = vor.u32 1.1754944e-38, %v1982_v45  ;;  %2428 = vmatpush.msrb.mxu2 %v5320_v13  ;;  %v273_v51 = vadd.f32 %v6083_v6, %v6070_v43  ;;  %v5430_v45 = vld [vmem:[#allocation3 + $0xc0] sm:$0xff] }
 0x3ef   :  { %v1933_v50 = vsub.f32 1.0, %v1932_v34  ;;  %v5368_v34 = vld [vmem:[#allocation3 + $0x160] sm:$0xff] }
 0x3f0   :  { %v3632_v19 = vpop.eup %3631  ;;  %v1896_v47 = vmul.f32 %v3628_v16, %v1895_v0  ;;  %vm1981_vm8 = vcmp.eq.f32.partialorder %v1980_v37, 8.507059e+37  ;;  %2429 = vmatpush.msrb.mxu2 %v5332_v42  ;;  %v5432_v37 = vld [vmem:[#allocation3 + $0xc8] sm:$0xff] }
 0x3f1   :  { %v1934_v36 = vmul.f32 %v3630_v29, %v1933_v50  ;;  %v1994_v17 = vmul.f32 %v3632_v19, %v1969_v60  ;;  %v5384_v60 = vld [vmem:[#allocation3 + $0x150] sm:$0xff] }
 0x3f2   :  { %v3634_v2 = vpop.eup %3633  ;;  %v1897_v14 = vadd.f32 %v3628_v16, %v1896_v47  ;;  %2430 = vmatpush.msrb.mxu2 %v5344_v11  ;;  %v5380_v47 = vld [vmem:[#allocation3 + $0x140] sm:$0xff] }
 0x3f3   :  { %v1935_v56 = vadd.f32 %v3630_v29, %v1934_v36  ;;  %v1972_v21 = vmul.f32 %v3634_v2, %v1955_v18  ;;  %2092 = vmatmul.f32.vlgmr.msra.gmra.mxu0 %v1994_v17  ;;  %2115 = vmatmul.f32.vlgmr.msra.gmra.mxu1 %v1994_v17  ;;  %v3636_v22 = vpop.eup %3635  ;;  %vm1977_vm5 = vweird.f32 %v3634_v2  ;;  %v5354_v18 = vld [vmem:[#allocation3 + $0x188] sm:$0xff]  ;;  %v5388_v36 = vld [vmem:[#allocation3 + $0x158] sm:$0xff] }
 0x3f4   :  { %v1901_v59 = vsel %vm1900_vm1, %v3628_v16, %v1897_v14  ;;  %2138 = vmatmul.f32.vlgmr.msra.gmra.mxu2 %v1994_v17  ;;  %2161 = vmatmul.f32.vlgmr.msra.gmra.mxu3 %v1994_v17  ;;  %vm1978_vm7 = vmor %vm1976_vm6, %vm1977_vm5  ;;  %v5360_v16 = vld [vmem:[#allocation3 + $0x198] sm:$0xff]  ;;  %v5394_v14 = vld [vmem:[#allocation3 + $0x128] sm:$0xff] }
 0x3f5   :  { %v1906_v58 = vsel %vm1903_vm3, %v1905_v25, %v1901_v59  ;;  %v1939_v49 = vsel %vm1938_vm2, %v3630_v29, %v1935_v56  ;;  %v1973_v1 = vsub.f32 1.0, %v1972_v21  ;;  %2408 = vmatpush.msrb.mxu1 %v5354_v18  ;;  %v219_v29 = vadd.f32 %v6082_v7, %v6068_v54  ;;  %2431 = vmatpush.msrb.mxu2 %v5356_v3  ;;  %v5398_v25 = vld [vmem:[#allocation3 + $0x130] sm:$0xff]  ;;  %v5400_v56 = vld [vmem:[#allocation3 + $0x138] sm:$0xff]  ;;  %v5404_v21 = vld [vmem:[#allocation3 + $0x100] sm:$0xff] }
 0x3f6   :  { %v1944_v39 = vsel %vm1941_vm4, %v1943_v4, %v1939_v49  ;;  %v1989_v26 = vmul.f32 %v3636_v22, %v1906_v58  ;;  %2454 = vmatpush.msrb.mxu3 %v5360_v16  ;;  %v5406_v4 = vld [vmem:[#allocation3 + $0x108] sm:$0xff]  ;;  %v5408_v59 = vld [vmem:[#allocation3 + $0x110] sm:$0xff]  ;;  %v6084_v22 = vld [vmem:[#allocation36_spill] sm:$0xff] }
 0x3f7   :  { %v1987_v27 = vmul.f32 %v1944_v39, %v5254_v41  ;;  %v1974_v10 = vmul.f32 %v3634_v2, %v1973_v1  ;;  %v5316_v41 = vld [vmem:[#allocation3 + $0x1e0] sm:$0xff]  ;;  %2409 = vmatpush.msrb.mxu1 %v5370_v5  ;;  %2432 = vmatpush.msrb.mxu2 %v5372_v61  ;;  %v381_v58 = vadd.f32 %v6084_v22, %v6072_v23  ;;  %v5414_v49 = vld [vmem:[#allocation3 + $0x118] sm:$0xff]  ;;  %v5446_v7 = vld [vmem:[#allocation3 + $0xb0] sm:$0xff] }
 0x3f8   :  { %2382 = vmatpush.msrb.mxu0 %v5316_v41  ;;  %2455 = vmatpush.msrb.mxu3 %v5376_v62  ;;  %v5418_v39 = vld [vmem:[#allocation3 + $0xe0] sm:$0xff]  ;;  %6086 = vst [vmem:[#allocation12_spill] sm:$0xff] %v5446_v7  ;;  %v5474_v22 = vld [vmem:[#allocation3 + $0x68] sm:$0xff] }
 0x3f9   :  { %v5313_v46 = vadd.f32 %v1989_v26, %v1987_v27  ;;  %v1975_v24 = vadd.f32 %v3634_v2, %v1974_v10  ;;  %2410 = vmatpush.msrb.mxu1 %v5382_v33  ;;  %2433 = vmatpush.msrb.mxu2 %v5384_v60  ;;  %v5420_v26 = vld [vmem:[#allocation3 + $0xe8] sm:$0xff]  ;;  %v5422_v27 = vld [vmem:[#allocation3 + $0xf0] sm:$0xff]  ;;  %6093 = vst [vmem:[#allocation18_spill] sm:$0xff] %v5474_v22 }
 0x3fa   :  { %2383 = vmatpush.msrb.mxu0 %v5328_v44  ;;  %2456 = vmatpush.msrb.mxu3 %v5388_v36 }
 0x3fb   :  { %6081 = vst [vmem:[#allocation9_spill] sm:$0xff] %v5313_v46  ;;  %3637 = vtanh.f32 %v5313_v46  ;;  %v1979_v38 = vsel %vm1978_vm7, %v3634_v2, %v1975_v24  ;;  %v5392_v2 = vld [vmem:[#allocation3 + $0x120] sm:$0xff]  ;;  %2411 = vmatpush.msrb.mxu1 %v5394_v14  ;;  %2434 = vmatpush.msrb.mxu2 %v5398_v25  ;;  %v5426_v24 = vld [vmem:[#allocation3 + $0xf8] sm:$0xff] }
 0x3fc   :  { %v1984_v28 = vsel %vm1981_vm8, %v1983_v30, %v1979_v38  ;;  %2384 = vmatpush.msrb.mxu0 %v5340_v32  ;;  %2457 = vmatpush.msrb.mxu3 %v5400_v56  ;;  %v5434_v38 = vld [vmem:[#allocation3 + $0xd0] sm:$0xff] }
 0x3fd   :  { %2412 = vmatpush.msrb.mxu1 %v5406_v4  ;;  %2435 = vmatpush.msrb.mxu2 %v5408_v59 }
 0x3fe   :  { %2385 = vmatpush.msrb.mxu0 %v5352_v35  ;;  %2458 = vmatpush.msrb.mxu3 %v5414_v49 }
 0x3ff   :  { %2413 = vmatpush.msrb.mxu1 %v5420_v26  ;;  %2436 = vmatpush.msrb.mxu2 %v5422_v27 }
 0x400   :  { %2386 = vmatpush.msrb.mxu0 %v5368_v34  ;;  %2459 = vmatpush.msrb.mxu3 %v5426_v24 }
 0x401   :  { %v3638_v40 = vpop.eup %3637  ;;  %2414 = vmatpush.msrb.mxu1 %v5432_v37  ;;  %2437 = vmatpush.msrb.mxu2 %v5434_v38 }
 0x402   :  { %v1995_v48 = vmul.f32 %v3638_v40, %v1984_v28  ;;  %2387 = vmatpush.msrb.mxu0 %v5380_v47  ;;  %v5438_v40 = vld [vmem:[#allocation3 + $0xd8] sm:$0xff] }
 0x403   :  { %2460 = vmatpush.msrb.mxu3 %v5438_v40  ;;  %2438 = vmatpush.msrb.mxu2 %v5446_v7  ;;  %v5506_v7 = vld [vmem:[#allocation3 + $0x28] sm:$0xff] }
 0x404   :  { %v3450_v63 = vpack.c.bf16 %v1995_v48, %v1994_v17  ;;  %2095 = vmatmul.f32.gmra.mxu0 %v1995_v48  ;;  %2118 = vmatmul.f32.gmra.mxu1 %v1995_v48  ;;  %6103 = vst [vmem:[#allocation70_spill] sm:$0xff] %v5506_v7 }
 0x405   :  { %2141 = vmatmul.f32.gmra.mxu2 %v1995_v48  ;;  %2164 = vmatmul.f32.gmra.mxu3 %v1995_v48  ;;  %v5442_v48 = vld [vmem:[#allocation3 + $0xa0] sm:$0xff] }
 0x406   :  { %3451 = vst [vmem:[#allocation6 + $0x20] sm:$0xff] %v3450_v63   ;;  %2388 = vmatpush.msrb.mxu0 %v5392_v2  ;;  %v5444_v63 = vld [vmem:[#allocation3 + $0xa8] sm:$0xff] }
 0x407   :  { %6085 = vst [vmem:[#allocation10_spill] sm:$0xff] %v5444_v63  ;;  %2415 = vmatpush.msrb.mxu1 %v5444_v63  ;;  %v5508_v63 = vld [vmem:[#allocation3 + $0x30] sm:$0xff] }
 0x408   :  { %2389 = vmatpush.msrb.mxu0 %v5404_v21  ;;  %6104 = vst [vmem:[#allocation71_spill] sm:$0xff] %v5508_v63 }
 0x40a   :  { %2390 = vmatpush.msrb.mxu0 %v5418_v39 }
 0x40c   :  { %2391 = vmatpush.msrb.mxu0 %v5430_v45 }
 0x40e   :  { %2392 = vmatpush.msrb.mxu0 %v5442_v48 }
 0x470   :  { %v2093_v0 = vpop.f32.mrf.mxu0  ;;  %v2116_v50 = vpop.f32.mrf.mxu1 }
 0x471   :  { %v2168_v55 = vadd.f32 %v2093_v0, %v219_v29  ;;  %v2169_v19 = vadd.f32 %v2116_v50, %v273_v51  ;;  %v5452_v51 = vld [vmem:[#allocation3 + $0xb8] sm:$0xff]  ;;  %v5458_v50 = vld [vmem:[#allocation3 + $0x80] sm:$0xff] }
 0x472   :  { %6087 = vst [vmem:[#allocation13_spill] sm:$0xff] %v5452_v51  ;;  %2461 = vmatpush.msrb.mxu3 %v5452_v51  ;;  %2393 = vmatpush.msrb.mxu0 %v5458_v50  ;;  %v5498_v51 = vld [vmem:[#allocation3 + $0x58] sm:$0xff] }
 0x473   :  { %v3386_v8 = vmul.f32 -1.442695, %v2168_v55  ;;  %v3388_v17 = vmul.f32 -1.442695, %v2169_v19  ;;  %6088 = vst [vmem:[#allocation14_spill] sm:$0xff] %v5458_v50  ;;  %v5460_v55 = vld [vmem:[#allocation3 + $0x88] sm:$0xff] }
 0x474   :  { %6089 = vst [vmem:[#allocation11_spill] sm:$0xff] %v5460_v55  ;;  %v5462_v19 = vld [vmem:[#allocation3 + $0x90] sm:$0xff]  ;;  %2416 = vmatpush.msrb.mxu1 %v5460_v55  ;;  %v5488_v55 = vld [vmem:[#allocation3 + $0x40] sm:$0xff]  ;;  %v5490_v50 = vld [vmem:[#allocation3 + $0x48] sm:$0xff] }
 0x475   :  { %3639 = vpow2.f32 %v3386_v8  ;;  %6090 = vst [vmem:[#allocation16_spill] sm:$0xff] %v5462_v19  ;;  %v5467_v8 = vld [vmem:[#allocation3 + $0x98] sm:$0xff]  ;;  %2439 = vmatpush.msrb.mxu2 %v5462_v19 }
 0x476   :  { %3641 = vpow2.f32 %v3388_v17  ;;  %6091 = vst [vmem:[#allocation15_spill] sm:$0xff] %v5467_v8  ;;  %2462 = vmatpush.msrb.mxu3 %v5467_v8  ;;  %v5472_v17 = vld [vmem:[#allocation3 + $0x60] sm:$0xff]  ;;  %2417 = vmatpush.msrb.mxu1 %v5474_v22  ;;  %v5484_v19 = vld [vmem:[#allocation3 + $0x78] sm:$0xff] }
 0x477   :  { %v2162_v1 = vpop.f32.mrf.mxu3  ;;  %6092 = vst [vmem:[#allocation17_spill] sm:$0xff] %v5472_v17  ;;  %2394 = vmatpush.msrb.mxu0 %v5472_v17 }
 0x478   :  { %v2171_v10 = vadd.f32 %v2162_v1, %v381_v58  ;;  %v5476_v58 = vld [vmem:[#allocation3 + $0x70] sm:$0xff]  ;;  %v6095_v1 = vld [vmem:[#allocation37_spill] sm:$0xff]  ;;  %6097 = vst [vmem:[#allocation21_spill] sm:$0xff] %v5484_v19  ;;  %2463 = vmatpush.msrb.mxu3 %v5484_v19  ;;  %2418 = vmatpush.msrb.mxu1 %v5490_v50  ;;  %v5504_v19 = vld [vmem:[#allocation3 + $0x20] sm:$0xff] }
 0x479   :  { %6094 = vst [vmem:[#allocation20_spill] sm:$0xff] %v5476_v58  ;;  %2440 = vmatpush.msrb.mxu2 %v5476_v58  ;;  %2395 = vmatpush.msrb.mxu0 %v5488_v55 }
 0x47a   :  { %v3390_v30 = vmul.f32 -1.442695, %v2171_v10  ;;  %v221_v10 = vadd.f32 %v6095_v1, %v6068_v54  ;;  %6098 = vst [vmem:[#allocation22_spill] sm:$0xff] %v5490_v50  ;;  %v5492_v1 = vld [vmem:[#allocation3 + $0x50] sm:$0xff]  ;;  %2464 = vmatpush.msrb.mxu3 %v5498_v51  ;;  %2419 = vmatpush.msrb.mxu1 %v5506_v7  ;;  %v5533_v7 = vld [vmem:[#allocation3 + $0x18] sm:$0xff] }
 0x47b   :  { %v3640_v28 = vpop.eup %3639  ;;  %6099 = vst [vmem:[#allocation19_spill] sm:$0xff] %v5492_v1  ;;  %2441 = vmatpush.msrb.mxu2 %v5492_v1  ;;  %2396 = vmatpush.msrb.mxu0 %v5504_v19 }
 0x47c   :  { %v3642_v29 = vpop.eup %3641  ;;  %v5448_v6 = vadd.f32 1.0, %v3640_v28  ;;  %3643 = vpow2.f32 %v3390_v30  ;;  %v6096_v30 = vld [vmem:[#allocation38_spill] sm:$0xff]  ;;  %6101 = vst [vmem:[#allocation24_spill] sm:$0xff] %v5498_v51 }
 0x47d   :  { %v5454_v0 = vadd.f32 1.0, %v3642_v29  ;;  %v275_v28 = vadd.f32 %v6096_v30, %v6070_v43  ;;  %v2139_v29 = vpop.f32.mrf.mxu2  ;;  %v6100_v43 = vld [vmem:[#allocation35_spill] sm:$0xff]  ;;  %6102 = vst [vmem:[#allocation23_spill] sm:$0xff] %v5504_v19  ;;  %2442 = vmatpush.msrb.mxu2 %v5508_v63  ;;  %v6108_v63 = vld [vmem:[#allocation40_spill] sm:$0xff] }
 0x47e   :  { %3645 = vrcp.f32 %v5448_v6  ;;  %v327_v54 = vadd.f32 %v6100_v43, %v4384_v15  ;;  %v383_v19 = vadd.f32 %v6108_v63, %v6072_v23  ;;  %v2193_v1 = vand.u32 2147483647, %v5448_v6 }
 0x47f   :  { %3647 = vrcp.f32 %v5454_v0  ;;  %vm2189_vm11 = vweird.f32 %v5448_v6  ;;  %vm2227_vm12 = vweird.f32 %v5454_v0 }
 0x480   :  { %vm5558_vm13 = vcmp.eq.f32.partialorder %v2193_v1, 8.507059e+37 }
 0x481   :  { %v2096_v8 = vpop.f32.mrf.mxu0  ;;  %v2119_v46 = vpop.f32.mrf.mxu1 }
 0x482   :  { %v3644_v30 = vpop.eup %3643  ;;  %v2172_v17 = vadd.f32 %v2096_v8, %v221_v10  ;;  %v2173_v22 = vadd.f32 %v2119_v46, %v275_v28  ;;  %v2170_v46 = vadd.f32 %v2139_v29, %v327_v54  ;;  %v5514_v28 = vld [vmem:[#allocation3 + $0x38] sm:$0xff]  ;;  %v5523_v54 = vld [vmem:[#allocation3] sm:$0xff] }
 0x483   :  { %v5500_v58 = vadd.f32 1.0, %v3644_v30  ;;  %6105 = vst [vmem:[#allocation68_spill] sm:$0xff] %v5514_v28  ;;  %2465 = vmatpush.msrb.mxu3 %v5514_v28  ;;  %2397 = vmatpush.msrb.mxu0 %v5523_v54 }
 0x484   :  { %v5510_v43 = vpop.eup %3645  ;;  %v3387_v8 = vmul.f32 -1.442695, %v2172_v17  ;;  %v3389_v10 = vmul.f32 -1.442695, %v2173_v22  ;;  %6106 = vst [vmem:[#allocation72_spill] sm:$0xff] %v5523_v54  ;;  %v5525_v17 = vld [vmem:[#allocation3 + $0x8] sm:$0xff] }
 0x485   :  { %v5516_v30 = vpop.eup %3647  ;;  %v2185_v51 = vmul.f32 %v5510_v43, %v5448_v6  ;;  %3649 = vrcp.f32 %v5500_v58  ;;  %6107 = vst [vmem:[#allocation69_spill] sm:$0xff] %v5525_v17  ;;  %v5527_v22 = vld [vmem:[#allocation3 + $0x10] sm:$0xff]  ;;  %2420 = vmatpush.msrb.mxu1 %v5525_v17  ;;  %2466 = vmatpush.msrb.mxu3 %v5533_v7  ;;  %v2195_v54 = vand.u32 2147483648, %v5448_v6  ;;  %vm2190_vm9 = vweird.f32 %v5510_v43 }
 0x486   :  { %v2223_v29 = vmul.f32 %v5516_v30, %v5454_v0  ;;  %3651 = vpow2.f32 %v3387_v8  ;;  %2443 = vmatpush.msrb.mxu2 %v5527_v22  ;;  %v2233_v8 = vand.u32 2147483648, %v5454_v0  ;;  %2688 = vmatpush.msra.mxu0 %v5316_v41  ;;  %vm2228_vm10 = vweird.f32 %v5516_v30  ;;  %vm5566_vm14 = vmor %vm2189_vm11, %vm2190_vm9 }
 0x487   :  { %v2186_v28 = vsub.f32 1.0, %v2185_v51  ;;  %3653 = vpow2.f32 %v3389_v10  ;;  %2711 = vmatpush.msra.mxu1 %v5318_v9  ;;  %v2231_v51 = vand.u32 2147483647, %v5454_v0  ;;  %2757 = vmatpush.msra.mxu3 %v5324_v53  ;;  %vm2229_vm15 = vmor %vm2227_vm12, %vm2228_vm10  ;;  %vm2267_vm2 = vweird.f32 %v5500_v58 }
 0x488   :  { %v2224_v50 = vsub.f32 1.0, %v2223_v29  ;;  %3655 = vtanh.f32 %v2170_v46  ;;  %v2165_v17 = vpop.f32.mrf.mxu3  ;;  %2734 = vmatpush.msra.mxu2 %v5320_v13  ;;  %2689 = vmatpush.msra.mxu0 %v5328_v44 }
 0x489   :  { %v2187_v63 = vmul.f32 %v5510_v43, %v2186_v28  ;;  %v2175_v10 = vadd.f32 %v2165_v17, %v383_v19  ;;  %2712 = vmatpush.msra.mxu1 %v5330_v20  ;;  %2758 = vmatpush.msra.mxu3 %v5336_v12  ;;  %v2196_v20 = vor.u32 1.1754944e-38, %v2195_v54  ;;  %vm2232_vm0 = vcmp.eq.f32.partialorder %v2231_v51, 8.507059e+37 }
 0x48a   :  { %v2225_v29 = vmul.f32 %v5516_v30, %v2224_v50  ;;  %2735 = vmatpush.msra.mxu2 %v5332_v42  ;;  %v2234_v50 = vor.u32 1.1754944e-38, %v2233_v8  ;;  %2690 = vmatpush.msra.mxu0 %v5340_v32 }
 0x48b   :  { %v5554_v41 = vpop.eup %3649  ;;  %v2188_v9 = vadd.f32 %v5510_v43, %v2187_v63  ;;  %v3391_v53 = vmul.f32 -1.442695, %v2175_v10  ;;  %2713 = vmatpush.msra.mxu1 %v5342_v31  ;;  %2759 = vmatpush.msra.mxu3 %v5348_v52 }
 0x48c   :  { %v3652_v6 = vpop.eup %3651  ;;  %v2226_v19 = vadd.f32 %v5516_v30, %v2225_v29  ;;  %v2263_v1 = vmul.f32 %v5554_v41, %v5500_v58  ;;  %2736 = vmatpush.msra.mxu2 %v5344_v11  ;;  %2691 = vmatpush.msra.mxu0 %v5352_v35  ;;  %vm2268_vm1 = vweird.f32 %v5554_v41 }
 0x48d   :  { %v3654_v42 = vpop.eup %3653  ;;  %v2192_v12 = vsel %vm5566_vm14, %v5510_v43, %v2188_v9  ;;  %v5582_v46 = vadd.f32 1.0, %v3652_v6  ;;  %3657 = vpow2.f32 %v3391_v53  ;;  %2714 = vmatpush.msra.mxu1 %v5354_v18  ;;  %2760 = vmatpush.msra.mxu3 %v5360_v16  ;;  %v2142_v18 = vpop.f32.mrf.mxu2  ;;  %vm5625_vm3 = vmor %vm2267_vm2, %vm2268_vm1  ;;  %v6117_v53 = vld [vmem:[#allocation12_spill] sm:$0xff]  ;;  %v6118_v6 = vld [vmem:[#allocation13_spill] sm:$0xff] }
 0x48e   :  { %v3656_v32 = vpop.eup %3655  ;;  %v2197_v31 = vsel %vm5558_vm13, %v2196_v20, %v2192_v12  ;;  %v2230_v28 = vsel %vm2229_vm15, %v5516_v30, %v2226_v19  ;;  %v2264_v0 = vsub.f32 1.0, %v2263_v1  ;;  %v5589_v54 = vadd.f32 1.0, %v3654_v42  ;;  %2737 = vmatpush.msra.mxu2 %v5356_v3  ;;  %2692 = vmatpush.msra.mxu0 %v5368_v34  ;;  %v6113_v3 = vld [vmem:[#allocation39_spill] sm:$0xff]  ;;  %v6119_v20 = vld [vmem:[#allocation14_spill] sm:$0xff]  ;;  %v6121_v1 = vld [vmem:[#allocation9_spill] sm:$0xff] }
 0x48f   :  { %v2235_v43 = vsel %vm2232_vm0, %v2234_v50, %v2230_v28  ;;  %v2294_v17 = vmul.f32 %v3656_v32, %v2197_v31  ;;  %3659 = vrcp.f32 %v5582_v46  ;;  %2715 = vmatpush.msra.mxu1 %v5370_v5  ;;  %2761 = vmatpush.msra.mxu3 %v5376_v62  ;;  %v329_v16 = vadd.f32 %v6113_v3, %v4384_v15  ;;  %v6120_v19 = vld [vmem:[#allocation11_spill] sm:$0xff]  ;;  %v6124_v31 = vld [vmem:[#allocation17_spill] sm:$0xff]  ;;  %v6125_v28 = vld [vmem:[#allocation18_spill] sm:$0xff] }
 0x490   :  { %v2292_v11 = vmul.f32 %v2235_v43, %v5298_v57  ;;  %v2265_v52 = vmul.f32 %v5554_v41, %v2264_v0  ;;  %3661 = vrcp.f32 %v5589_v54  ;;  %2738 = vmatpush.msra.mxu2 %v5372_v61  ;;  %2693 = vmatpush.msra.mxu0 %v5380_v47  ;;  %v2273_v5 = vand.u32 2147483648, %v5500_v58  ;;  %v6123_v32 = vld [vmem:[#allocation15_spill] sm:$0xff]  ;;  %v6127_v43 = vld [vmem:[#allocation21_spill] sm:$0xff] }
 0x491   :  { %2716 = vmatpush.msra.mxu1 %v5382_v33  ;;  %2762 = vmatpush.msra.mxu3 %v5388_v36  ;;  %v2271_v62 = vand.u32 2147483647, %v5500_v58  ;;  %v2174_v33 = vadd.f32 %v2142_v18, %v329_v16  ;;  %v2210_v58 = vand.u32 2147483648, %v5582_v46  ;;  %vm2204_vm7 = vweird.f32 %v5582_v46  ;;  %v6129_v18 = vld [vmem:[#allocation19_spill] sm:$0xff] }
 0x492   :  { %v5603_v35 = vadd.f32 %v2294_v17, %v2292_v11  ;;  %v2266_v34 = vadd.f32 %v5554_v41, %v2265_v52  ;;  %2739 = vmatpush.msra.mxu2 %v5384_v60  ;;  %2694 = vmatpush.msra.mxu0 %v5392_v2  ;;  %vm2242_vm8 = vweird.f32 %v5589_v54  ;;  %v6128_v11 = vld [vmem:[#allocation22_spill] sm:$0xff]  ;;  %v6131_v16 = vld [vmem:[#allocation23_spill] sm:$0xff] }
 0x493   :  { %v3658_v57 = vpop.eup %3657  ;;  %2717 = vmatpush.msra.mxu1 %v5394_v14  ;;  %2763 = vmatpush.msra.mxu3 %v5400_v56  ;;  %vm2272_vm4 = vcmp.eq.f32.partialorder %v2271_v62, 8.507059e+37 }
 0x494   :  { %3663 = vtanh.f32 %v5603_v35  ;;  %v5615_v61 = vadd.f32 1.0, %v3658_v57  ;;  %2740 = vmatpush.msra.mxu2 %v5398_v25  ;;  %2695 = vmatpush.msra.mxu0 %v5404_v21  ;;  %v2270_v14 = vsel %vm5625_vm3, %v5554_v41, %v2266_v34  ;;  %v2274_v25 = vor.u32 1.1754944e-38, %v2273_v5  ;;  %v6130_v57 = vld [vmem:[#allocation24_spill] sm:$0xff]  ;;  %v6132_v34 = vld [vmem:[#allocation70_spill] sm:$0xff] }
 0x495   :  { %v3660_v47 = vpop.eup %3659  ;;  %2718 = vmatpush.msra.mxu1 %v5406_v4  ;;  %2764 = vmatpush.msra.mxu3 %v5414_v49  ;;  %v2248_v4 = vand.u32 2147483648, %v5589_v54  ;;  %v2208_v49 = vand.u32 2147483647, %v5582_v46  ;;  %v6134_v5 = vld [vmem:[#allocation68_spill] sm:$0xff] }
 0x496   :  { %v3662_v60 = vpop.eup %3661  ;;  %v2200_v30 = vmul.f32 %v3660_v47, %v5582_v46  ;;  %3665 = vrcp.f32 %v5615_v61  ;;  %2741 = vmatpush.msra.mxu2 %v5408_v59  ;;  %2696 = vmatpush.msra.mxu0 %v5418_v39  ;;  %vm2205_vm5 = vweird.f32 %v3660_v47  ;;  %v2275_v63 = vsel %vm2272_vm4, %v2274_v25, %v2270_v14  ;;  %v6122_v46 = vld [vmem:[#allocation16_spill] sm:$0xff]  ;;  %v6137_v14 = vld [vmem:[#allocation62_spill] sm:$0xff]  ;;  %v6138_v25 = vld [vmem:[#allocation41_spill] sm:$0xff] }
 0x497   :  { %v2238_v2 = vmul.f32 %v3662_v60, %v5589_v54  ;;  %2719 = vmatpush.msra.mxu1 %v5420_v26  ;;  %3667 = vtanh.f32 %v2174_v33  ;;  %2765 = vmatpush.msra.mxu3 %v5426_v24  ;;  %vm2243_vm6 = vweird.f32 %v3662_v60  ;;  %v2246_v26 = vand.u32 2147483647, %v5589_v54  ;;  %vm2206_vm9 = vmor %vm2204_vm7, %vm2205_vm5  ;;  %v6126_v54 = vld [vmem:[#allocation20_spill] sm:$0xff]  ;;  %v6136_v33 = vld [vmem:[#allocation69_spill] sm:$0xff] }
 0x498   :  { %v2201_v56 = vsub.f32 1.0, %v2200_v30  ;;  %2742 = vmatpush.msra.mxu2 %v5422_v27  ;;  %2697 = vmatpush.msra.mxu0 %v5430_v45  ;;  %v6116_v45 = vld [vmem:[#allocation10_spill] sm:$0xff]  ;;  %vm2244_vm10 = vmor %vm2242_vm8, %vm2243_vm6  ;;  %vm2209_vm11 = vcmp.eq.f32.partialorder %v2208_v49, 8.507059e+37  ;;  %v2288_v52 = vand.u32 2147483648, %v5615_v61  ;;  %vm2282_vm14 = vweird.f32 %v5615_v61 }
 0x499   :  { %v2239_v21 = vsub.f32 1.0, %v2238_v2  ;;  %2720 = vmatpush.msra.mxu1 %v5432_v37  ;;  %2766 = vmatpush.msra.mxu3 %v5438_v40  ;;  %v2211_v37 = vor.u32 1.1754944e-38, %v2210_v58  ;;  %v2249_v40 = vor.u32 1.1754944e-38, %v2248_v4  ;;  %vm2247_vm12 = vcmp.eq.f32.partialorder %v2246_v26, 8.507059e+37  ;;  %v6140_v4 = vld [vmem:[#allocation42_spill] sm:$0xff] }
 0x49a   :  { %v3664_v59 = vpop.eup %3663  ;;  %v2202_v8 = vmul.f32 %v3660_v47, %v2201_v56  ;;  %2743 = vmatpush.msra.mxu2 %v5434_v38  ;;  %2698 = vmatpush.msra.mxu0 %v5442_v48  ;;  %v2286_v3 = vand.u32 2147483647, %v5615_v61  ;;  %v224_v56 = vadd.f32 %v6138_v25, %v6137_v14 }
 0x49b   :  { %v2240_v39 = vmul.f32 %v3662_v60, %v2239_v21  ;;  %v5649_v51 = vmul.f32 %v3664_v59, %v2275_v63  ;;  %2721 = vmatpush.msra.mxu1 %v6116_v45  ;;  %2767 = vmatpush.msra.mxu3 %v6118_v6  ;;  %v6139_v21 = vld [vmem:[#allocation63_spill] sm:$0xff] }
 0x49c   :  { %v5653_v27 = vpop.eup %3665  ;;  %v2203_v24 = vadd.f32 %v3660_v47, %v2202_v8  ;;  %2744 = vmatpush.msra.mxu2 %v6117_v53  ;;  %2699 = vmatpush.msra.mxu0 %v6119_v20  ;;  %vm2287_vm0 = vcmp.eq.f32.partialorder %v2286_v3, 8.507059e+37  ;;  %v278_v58 = vadd.f32 %v6140_v4, %v6139_v21 }
 0x49d   :  { %v2241_v10 = vadd.f32 %v3662_v60, %v2240_v39  ;;  %v2278_v38 = vmul.f32 %v5653_v27, %v5615_v61  ;;  %2398 = vmatmul.f32.vlgmr.msrb.gmra.mxu0 %v5649_v51  ;;  %2421 = vmatmul.f32.vlgmr.msrb.gmra.mxu1 %v5649_v51  ;;  %v3668_v48 = vpop.eup %3667  ;;  %vm2283_vm13 = vweird.f32 %v5653_v27  ;;  %v6141_v39 = vld [vmem:[#allocation44_spill] sm:$0xff] }
 0x49e   :  { %v2207_v29 = vsel %vm2206_vm9, %v3660_v47, %v2203_v24  ;;  %2444 = vmatmul.f32.vlgmr.msrb.gmra.mxu2 %v5649_v51  ;;  %2467 = vmatmul.f32.vlgmr.msrb.gmra.mxu3 %v5649_v51  ;;  %vm2284_vm15 = vmor %vm2282_vm14, %vm2283_vm13  ;;  %v6135_v47 = vld [vmem:[#allocation72_spill] sm:$0xff]  ;;  %v386_v26 = vadd.f32 %v6141_v39, %v6072_v23 }
 0x49f   :  { %v2212_v41 = vsel %vm2209_vm11, %v2211_v37, %v2207_v29  ;;  %v2245_v9 = vsel %vm2244_vm10, %v3662_v60, %v2241_v10  ;;  %v2279_v13 = vsub.f32 1.0, %v2278_v38  ;;  %2722 = vmatpush.msra.mxu1 %v6120_v19  ;;  %2745 = vmatpush.msra.mxu2 %v6122_v46  ;;  %v2289_v60 = vor.u32 1.1754944e-38, %v2288_v52 }
 0x4a0   :  { %v2250_v50 = vsel %vm2247_vm12, %v2249_v40, %v2245_v9  ;;  %v2295_v44 = vmul.f32 %v3668_v48, %v2212_v41  ;;  %2768 = vmatpush.msra.mxu3 %v6123_v32  ;;  %2700 = vmatpush.msra.mxu0 %v6124_v31  ;;  %v6142_v40 = vld [vmem:[#allocation45_spill] sm:$0xff]  ;;  %v6143_v48 = vld [vmem:[#allocation46_spill] sm:$0xff] }
 0x4a1   :  { %v2293_v42 = vmul.f32 %v2250_v50, %v6121_v1  ;;  %v2280_v12 = vmul.f32 %v5653_v27, %v2279_v13  ;;  %2723 = vmatpush.msra.mxu1 %v6125_v28  ;;  %2746 = vmatpush.msra.mxu2 %v6126_v54  ;;  %v226_v29 = vadd.f32 %v6142_v40, %v6137_v14  ;;  %v6144_v50 = vld [vmem:[#allocation43_spill] sm:$0xff] }
 0x4a2   :  { %2769 = vmatpush.msra.mxu3 %v6127_v43  ;;  %2701 = vmatpush.msra.mxu0 %v5488_v55  ;;  %v6133_v55 = vld [vmem:[#allocation71_spill] sm:$0xff]  ;;  %v280_v41 = vadd.f32 %v6143_v48, %v6139_v21  ;;  %v6145_v43 = vld [vmem:[#allocation48_spill] sm:$0xff] }
 0x4a3   :  { %v5677_v0 = vadd.f32 %v2295_v44, %v2293_v42  ;;  %v2281_v17 = vadd.f32 %v5653_v27, %v2280_v12  ;;  %2724 = vmatpush.msra.mxu1 %v6128_v11  ;;  %2747 = vmatpush.msra.mxu2 %v6129_v18  ;;  %v332_v44 = vadd.f32 %v6144_v50, %v4384_v15 }
 0x4a4   :  { %2770 = vmatpush.msra.mxu3 %v6130_v57  ;;  %2702 = vmatpush.msra.mxu0 %v6131_v16 }
 0x4a5   :  { %3669 = vtanh.f32 %v5677_v0  ;;  %2725 = vmatpush.msra.mxu1 %v6132_v34  ;;  %2748 = vmatpush.msra.mxu2 %v6133_v55  ;;  %v2285_v62 = vsel %vm2284_vm15, %v5653_v27, %v2281_v17  ;;  %v388_v17 = vadd.f32 %v6145_v43, %v6072_v23 }
 0x4a6   :  { %2771 = vmatpush.msra.mxu3 %v6134_v5  ;;  %2703 = vmatpush.msra.mxu0 %v6135_v47  ;;  %v2290_v36 = vsel %vm2287_vm0, %v2289_v60, %v2285_v62 }
 0x4a7   :  { %2726 = vmatpush.msra.mxu1 %v6136_v33  ;;  %2749 = vmatpush.msra.mxu2 %v5527_v22 }
 0x4a8   :  { %2772 = vmatpush.msra.mxu3 %v5533_v7 }
 0x4ab   :  { %v3670_v61 = vpop.eup %3669 }
 0x4ac   :  { %v2301_v30 = vmul.f32 %v3670_v61, %v2290_v36 }
 0x4ae   :  { %v3455_v2 = vpack.c.bf16 %v2301_v30, %v5649_v51  ;;  %2401 = vmatmul.f32.gmra.mxu0 %v2301_v30  ;;  %2424 = vmatmul.f32.gmra.mxu1 %v2301_v30 }
 0x4af   :  { %2447 = vmatmul.f32.gmra.mxu2 %v2301_v30  ;;  %2470 = vmatmul.f32.gmra.mxu3 %v2301_v30 }
 0x4b0   :  { %3456 = vst [vmem:[#allocation6 + $0x28] sm:$0xff] %v3455_v2  }
 0x51a   :  { %v2399_v22 = vpop.f32.mrf.mxu0  ;;  %v2422_v59 = vpop.f32.mrf.mxu1 }
 0x51b   :  { %v2474_v7 = vadd.f32 %v2399_v22, %v224_v56  ;;  %v2475_v8 = vadd.f32 %v2422_v59, %v278_v58 }
 0x51d   :  { %v3392_v49 = vmul.f32 -1.442695, %v2474_v7  ;;  %v3394_v63 = vmul.f32 -1.442695, %v2475_v8 }
 0x51f   :  { %3671 = vpow2.f32 %v3392_v49 }
 0x520   :  { %3673 = vpow2.f32 %v3394_v63 }
 0x521   :  { %v2468_v51 = vpop.f32.mrf.mxu3  ;;  %v2445_v9 = vpop.f32.mrf.mxu2 }
 0x522   :  { %v2477_v27 = vadd.f32 %v2468_v51, %v386_v26  ;;  %v2476_v12 = vadd.f32 %v2445_v9, %v332_v44 }
 0x524   :  { %v3396_v24 = vmul.f32 -1.442695, %v2477_v27 }
 0x525   :  { %v3672_v45 = vpop.eup %3671 }
 0x526   :  { %v3674_v37 = vpop.eup %3673  ;;  %v2488_v10 = vadd.f32 1.0, %v3672_v45  ;;  %3675 = vpow2.f32 %v3396_v24 }
 0x527   :  { %v2526_v38 = vadd.f32 1.0, %v3674_v37  ;;  %v6146_v37 = vld [vmem:[#allocation47_spill] sm:$0xff] }
 0x528   :  { %3677 = vrcp.f32 %v2488_v10  ;;  %v2499_v52 = vand.u32 2147483647, %v2488_v10  ;;  %v2501_v3 = vand.u32 2147483648, %v2488_v10  ;;  %vm2495_vm3 = vweird.f32 %v2488_v10 }
 0x529   :  { %3679 = vrcp.f32 %v2526_v38  ;;  %v2539_v57 = vand.u32 2147483648, %v2526_v38  ;;  %v2537_v55 = vand.u32 2147483647, %v2526_v38  ;;  %vm2533_vm4 = vweird.f32 %v2526_v38 }
 0x52a   :  { %vm2500_vm5 = vcmp.eq.f32.partialorder %v2499_v52, 8.507059e+37  ;;  %v2502_v30 = vor.u32 1.1754944e-38, %v2501_v3 }
 0x52b   :  { %v2402_v13 = vpop.f32.mrf.mxu0  ;;  %v2425_v53 = vpop.f32.mrf.mxu1  ;;  %v2540_v36 = vor.u32 1.1754944e-38, %v2539_v57  ;;  %vm2538_vm8 = vcmp.eq.f32.partialorder %v2537_v55, 8.507059e+37 }
 0x52c   :  { %v3676_v6 = vpop.eup %3675  ;;  %v2478_v20 = vadd.f32 %v2402_v13, %v226_v29  ;;  %v2479_v19 = vadd.f32 %v2425_v53, %v280_v41  ;;  %v6150_v13 = vld [vmem:[#allocation50_spill] sm:$0xff] }
 0x52d   :  { %v5713_v1 = vadd.f32 1.0, %v3676_v6 }
 0x52e   :  { %v3678_v42 = vpop.eup %3677  ;;  %v3393_v46 = vmul.f32 -1.442695, %v2478_v20  ;;  %v3395_v32 = vmul.f32 -1.442695, %v2479_v19 }
 0x52f   :  { %v3680_v31 = vpop.eup %3679  ;;  %v2491_v28 = vmul.f32 %v3678_v42, %v2488_v10  ;;  %3681 = vrcp.f32 %v5713_v1  ;;  %vm2496_vm1 = vweird.f32 %v3678_v42  ;;  %v334_v10 = vadd.f32 %v6146_v37, %v4384_v15  ;;  %v2983_v37 = vld [vmem:[#allocation3 + $0x1a8] sm:$0xff] }
 0x530   :  { %v2529_v54 = vmul.f32 %v3680_v31, %v2526_v38  ;;  %3683 = vpow2.f32 %v3393_v46  ;;  %vm2534_vm2 = vweird.f32 %v3680_v31  ;;  %vm2497_vm6 = vmor %vm2495_vm3, %vm2496_vm1  ;;  %v2579_v40 = vand.u32 2147483648, %v5713_v1 }
 0x531   :  { %v2492_v11 = vsub.f32 1.0, %v2491_v28  ;;  %3685 = vpow2.f32 %v3395_v32  ;;  %vm2535_vm7 = vmor %vm2533_vm4, %vm2534_vm2  ;;  %v2577_v48 = vand.u32 2147483647, %v5713_v1  ;;  %vm2573_vm10 = vweird.f32 %v5713_v1 }
 0x532   :  { %v2530_v18 = vsub.f32 1.0, %v2529_v54  ;;  %3687 = vtanh.f32 %v2476_v12  ;;  %v2471_v16 = vpop.f32.mrf.mxu3  ;;  %v2448_v24 = vpop.f32.mrf.mxu2  ;;  %v2580_v44 = vor.u32 1.1754944e-38, %v2579_v40  ;;  %v2978_v40 = vld [vmem:[#allocation3 + $0x180] sm:$0xff] }
 0x533   :  { %v2493_v34 = vmul.f32 %v3678_v42, %v2492_v11  ;;  %v2481_v5 = vadd.f32 %v2471_v16, %v388_v17  ;;  %vm2578_vm12 = vcmp.eq.f32.partialorder %v2577_v48, 8.507059e+37  ;;  %v2980_v48 = vld [vmem:[#allocation3 + $0x190] sm:$0xff] }
 0x534   :  { %v2531_v62 = vmul.f32 %v3680_v31, %v2530_v18 }
 0x535   :  { %v3682_v47 = vpop.eup %3681  ;;  %v2494_v33 = vadd.f32 %v3678_v42, %v2493_v34  ;;  %v3397_v60 = vmul.f32 -1.442695, %v2481_v5 }
 0x536   :  { %v3684_v61 = vpop.eup %3683  ;;  %v2532_v2 = vadd.f32 %v3680_v31, %v2531_v62  ;;  %v2569_v25 = vmul.f32 %v3682_v47, %v5713_v1  ;;  %vm2574_vm9 = vweird.f32 %v3682_v47 }
 0x537   :  { %v3686_v56 = vpop.eup %3685  ;;  %v2498_v4 = vsel %vm2497_vm6, %v3678_v42, %v2494_v33  ;;  %v2489_v58 = vadd.f32 1.0, %v3684_v61  ;;  %3689 = vpow2.f32 %v3397_v60  ;;  %vm5728_vm11 = vmor %vm2573_vm10, %vm2574_vm9 }
 0x538   :  { %v3688_v22 = vpop.eup %3687  ;;  %v2503_v59 = vsel %vm2500_vm5, %v2502_v30, %v2498_v4  ;;  %v2536_v7 = vsel %vm2535_vm7, %v3680_v31, %v2532_v2  ;;  %v2570_v8 = vsub.f32 1.0, %v2569_v25  ;;  %v2527_v49 = vadd.f32 1.0, %v3686_v56 }
 0x539   :  { %v2541_v63 = vsel %vm2538_vm8, %v2540_v36, %v2536_v7  ;;  %v2600_v39 = vmul.f32 %v3688_v22, %v2503_v59  ;;  %3691 = vrcp.f32 %v2489_v58  ;;  %v2516_v12 = vand.u32 2147483648, %v2489_v58 }
 0x53a   :  { %v2598_v26 = vmul.f32 %v2541_v63, %v5603_v35  ;;  %v2571_v51 = vmul.f32 %v3682_v47, %v2570_v8  ;;  %3693 = vrcp.f32 %v2527_v49  ;;  %v2480_v35 = vadd.f32 %v2448_v24, %v334_v10  ;;  %v2991_v8 = vld [vmem:[#allocation3 + $0x1e8] sm:$0xff]  ;;  %v2993_v63 = vld [vmem:[#allocation3 + $0x1f8] sm:$0xff]  ;;  %v2984_v10 = vld [vmem:[#allocation3 + $0x1b0] sm:$0xff] }
 0x53b   :  { %v2554_v42 = vand.u32 2147483648, %v2527_v49  ;;  %v2514_v32 = vand.u32 2147483647, %v2489_v58  ;;  %v2552_v54 = vand.u32 2147483647, %v2527_v49  ;;  %vm2510_vm15 = vweird.f32 %v2489_v58  ;;  %3017 = vmatpush.msrb.mxu1 %v2991_v8  ;;  %3063 = vmatpush.msrb.mxu3 %v2993_v63  ;;  %v2989_v24 = vld [vmem:[#allocation3 + $0x1d8] sm:$0xff] }
 0x53c   :  { %v5720_v27 = vadd.f32 %v2600_v39, %v2598_v26  ;;  %v2572_v38 = vadd.f32 %v3682_v47, %v2571_v51  ;;  %vm2548_vm0 = vweird.f32 %v2527_v49  ;;  %v2517_v52 = vor.u32 1.1754944e-38, %v2516_v12  ;;  %v2986_v39 = vld [vmem:[#allocation3 + $0x1c0] sm:$0xff]  ;;  %v2987_v26 = vld [vmem:[#allocation3 + $0x1c8] sm:$0xff]  ;;  %v2988_v51 = vld [vmem:[#allocation3 + $0x1d0] sm:$0xff] }
 0x53d   :  { %v3690_v45 = vpop.eup %3689  ;;  %v2555_v3 = vor.u32 1.1754944e-38, %v2554_v42  ;;  %vm2515_vm3 = vcmp.eq.f32.partialorder %v2514_v32, 8.507059e+37  ;;  %vm2553_vm4 = vcmp.eq.f32.partialorder %v2552_v54, 8.507059e+37  ;;  %3018 = vmatpush.msrb.mxu1 %v2987_v26  ;;  %3064 = vmatpush.msrb.mxu3 %v2989_v24  ;;  %v2977_v42 = vld [vmem:[#allocation3 + $0x178] sm:$0xff]  ;;  %v2971_v32 = vld [vmem:[#allocation3 + $0x148] sm:$0xff]  ;;  %v2946_v26 = vld [vmem:[#allocation3 + $0x80] sm:$0xff] }
 0x53e   :  { %3695 = vtanh.f32 %v5720_v27  ;;  %v2567_v29 = vadd.f32 1.0, %v3690_v45  ;;  %v2576_v50 = vsel %vm5728_vm11, %v3682_v47, %v2572_v38  ;;  %v2982_v45 = vld [vmem:[#allocation3 + $0x1a0] sm:$0xff]  ;;  %v2985_v38 = vld [vmem:[#allocation3 + $0x1b8] sm:$0xff]  ;;  %v2948_v24 = vld [vmem:[#allocation3 + $0x90] sm:$0xff] }
 0x53f   :  { %v3692_v41 = vpop.eup %3691  ;;  %v2581_v31 = vsel %vm2578_vm12, %v2580_v44, %v2576_v50  ;;  %3019 = vmatpush.msrb.mxu1 %v2983_v37  ;;  %3065 = vmatpush.msrb.mxu3 %v2985_v38  ;;  %v2975_v50 = vld [vmem:[#allocation3 + $0x168] sm:$0xff]  ;;  %v2976_v44 = vld [vmem:[#allocation3 + $0x170] sm:$0xff]  ;;  %v2953_v63 = vld [vmem:[#allocation3 + $0xb8] sm:$0xff] }
 0x540   :  { %v3694_v9 = vpop.eup %3693  ;;  %v2506_v53 = vmul.f32 %v3692_v41, %v2489_v58  ;;  %3697 = vrcp.f32 %v2567_v29  ;;  %vm2511_vm13 = vweird.f32 %v3692_v41  ;;  %v2594_v2 = vand.u32 2147483648, %v2567_v29  ;;  %v2942_v37 = vld [vmem:[#allocation3 + $0x60] sm:$0xff]  ;;  %v2944_v38 = vld [vmem:[#allocation3 + $0x70] sm:$0xff] }
 0x541   :  { %v2544_v6 = vmul.f32 %v3694_v9, %v2527_v49  ;;  %3699 = vtanh.f32 %v2480_v35  ;;  %vm2549_vm14 = vweird.f32 %v3694_v9  ;;  %vm2512_vm1 = vmor %vm2510_vm15, %vm2511_vm13  ;;  %vm2588_vm6 = vweird.f32 %v2567_v29  ;;  %v2992_v49 = vld [vmem:[#allocation3 + $0x1f0] sm:$0xff]  ;;  %v6149_v35 = vld [vmem:[#allocation49_spill] sm:$0xff] }
 0x542   :  { %v2507_v20 = vsub.f32 1.0, %v2506_v53  ;;  %vm2550_vm2 = vmor %vm2548_vm0, %vm2549_vm14  ;;  %v2592_v25 = vand.u32 2147483647, %v2567_v29  ;;  %v2595_v4 = vor.u32 1.1754944e-38, %v2594_v2  ;;  %3040 = vmatpush.msrb.mxu2 %v2992_v49  ;;  %v283_v53 = vadd.f32 %v6150_v13, %v6139_v21  ;;  %v2954_v2 = vld [vmem:[#allocation3 + $0xc0] sm:$0xff] }
 0x543   :  { %v2545_v19 = vsub.f32 1.0, %v2544_v6  ;;  %v2974_v6 = vld [vmem:[#allocation3 + $0x160] sm:$0xff] }
 0x544   :  { %v3696_v1 = vpop.eup %3695  ;;  %v2508_v46 = vmul.f32 %v3692_v41, %v2507_v20  ;;  %vm2593_vm8 = vcmp.eq.f32.partialorder %v2592_v25, 8.507059e+37  ;;  %3041 = vmatpush.msrb.mxu2 %v2988_v51  ;;  %v2955_v25 = vld [vmem:[#allocation3 + $0xc8] sm:$0xff] }
 0x545   :  { %v2546_v28 = vmul.f32 %v3694_v9, %v2545_v19  ;;  %v2606_v43 = vmul.f32 %v3696_v1, %v2581_v31  ;;  %v2972_v31 = vld [vmem:[#allocation3 + $0x150] sm:$0xff]  ;;  %v2947_v51 = vld [vmem:[#allocation3 + $0x88] sm:$0xff] }
 0x546   :  { %v3698_v17 = vpop.eup %3697  ;;  %v2509_v11 = vadd.f32 %v3692_v41, %v2508_v46  ;;  %3042 = vmatpush.msrb.mxu2 %v2984_v10  ;;  %v2970_v46 = vld [vmem:[#allocation3 + $0x140] sm:$0xff]  ;;  %v2943_v10 = vld [vmem:[#allocation3 + $0x68] sm:$0xff] }
 0x547   :  { %v2547_v18 = vadd.f32 %v3694_v9, %v2546_v28  ;;  %v2584_v57 = vmul.f32 %v3698_v17, %v2567_v29  ;;  %2704 = vmatmul.f32.vlgmr.msra.gmra.mxu0 %v2606_v43  ;;  %2727 = vmatmul.f32.vlgmr.msra.gmra.mxu1 %v2606_v43  ;;  %v3700_v34 = vpop.eup %3699  ;;  %vm2589_vm5 = vweird.f32 %v3698_v17  ;;  %v2979_v29 = vld [vmem:[#allocation3 + $0x188] sm:$0xff]  ;;  %v2973_v28 = vld [vmem:[#allocation3 + $0x158] sm:$0xff] }
 0x548   :  { %v2513_v16 = vsel %vm2512_vm1, %v3692_v41, %v2509_v11  ;;  %2750 = vmatmul.f32.vlgmr.msra.gmra.mxu2 %v2606_v43  ;;  %2773 = vmatmul.f32.vlgmr.msra.gmra.mxu3 %v2606_v43  ;;  %vm2590_vm7 = vmor %vm2588_vm6, %vm2589_vm5  ;;  %v2981_v41 = vld [vmem:[#allocation3 + $0x198] sm:$0xff]  ;;  %v2967_v11 = vld [vmem:[#allocation3 + $0x128] sm:$0xff] }
 0x549   :  { %v2518_v55 = vsel %vm2515_vm3, %v2517_v52, %v2513_v16  ;;  %v2551_v5 = vsel %vm2550_vm2, %v3694_v9, %v2547_v18  ;;  %v2585_v62 = vsub.f32 1.0, %v2584_v57  ;;  %3020 = vmatpush.msrb.mxu1 %v2979_v29  ;;  %v229_v9 = vadd.f32 %v6149_v35, %v6137_v14  ;;  %3043 = vmatpush.msrb.mxu2 %v2980_v48  ;;  %v2968_v52 = vld [vmem:[#allocation3 + $0x130] sm:$0xff]  ;;  %v2969_v18 = vld [vmem:[#allocation3 + $0x138] sm:$0xff]  ;;  %v2962_v57 = vld [vmem:[#allocation3 + $0x100] sm:$0xff] }
 0x54a   :  { %v2556_v47 = vsel %vm2553_vm4, %v2555_v3, %v2551_v5  ;;  %v2601_v33 = vmul.f32 %v3700_v34, %v2518_v55  ;;  %3066 = vmatpush.msrb.mxu3 %v2981_v41  ;;  %v2963_v3 = vld [vmem:[#allocation3 + $0x108] sm:$0xff]  ;;  %v2964_v16 = vld [vmem:[#allocation3 + $0x110] sm:$0xff]  ;;  %v6151_v34 = vld [vmem:[#allocation52_spill] sm:$0xff] }
 0x54b   :  { %v2599_v60 = vmul.f32 %v2556_v47, %v5677_v0  ;;  %v2586_v61 = vmul.f32 %v3698_v17, %v2585_v62  ;;  %v2990_v0 = vld [vmem:[#allocation3 + $0x1e0] sm:$0xff]  ;;  %3021 = vmatpush.msrb.mxu1 %v2975_v50  ;;  %3044 = vmatpush.msrb.mxu2 %v2976_v44  ;;  %v391_v55 = vadd.f32 %v6151_v34, %v6072_v23  ;;  %v2965_v5 = vld [vmem:[#allocation3 + $0x118] sm:$0xff]  ;;  %v6153_v48 = vld [vmem:[#allocation54_spill] sm:$0xff] }
 0x54c   :  { %2994 = vmatpush.msrb.mxu0 %v2990_v0  ;;  %3067 = vmatpush.msrb.mxu3 %v2977_v42  ;;  %v2958_v47 = vld [vmem:[#allocation3 + $0xe0] sm:$0xff]  ;;  %v2952_v0 = vld [vmem:[#allocation3 + $0xb0] sm:$0xff]  ;;  %v285_v41 = vadd.f32 %v6153_v48, %v6139_v21  ;;  %v2939_v50 = vld [vmem:[#allocation3 + $0x48] sm:$0xff] }
 0x54d   :  { %v5735_v36 = vadd.f32 %v2601_v33, %v2599_v60  ;;  %v2587_v30 = vadd.f32 %v3698_v17, %v2586_v61  ;;  %3022 = vmatpush.msrb.mxu1 %v2971_v32  ;;  %3045 = vmatpush.msrb.mxu2 %v2972_v31  ;;  %v2959_v33 = vld [vmem:[#allocation3 + $0xe8] sm:$0xff]  ;;  %v2960_v60 = vld [vmem:[#allocation3 + $0xf0] sm:$0xff]  ;;  %v2934_v31 = vld [vmem:[#allocation3 + $0x20] sm:$0xff] }
 0x54e   :  { %2995 = vmatpush.msrb.mxu0 %v2986_v39  ;;  %3068 = vmatpush.msrb.mxu3 %v2973_v28  ;;  %v2940_v44 = vld [vmem:[#allocation3 + $0x50] sm:$0xff]  ;;  %v2935_v28 = vld [vmem:[#allocation3 + $0x28] sm:$0xff] }
 0x54f   :  { %3701 = vtanh.f32 %v5735_v36  ;;  %v2591_v56 = vsel %vm2590_vm7, %v3698_v17, %v2587_v30  ;;  %v2966_v17 = vld [vmem:[#allocation3 + $0x120] sm:$0xff]  ;;  %3023 = vmatpush.msrb.mxu1 %v2967_v11  ;;  %3046 = vmatpush.msrb.mxu2 %v2968_v52  ;;  %v2961_v30 = vld [vmem:[#allocation3 + $0xf8] sm:$0xff]  ;;  %v2931_v34 = vld [vmem:[#allocation3 + $0x8] sm:$0xff] }
 0x550   :  { %v2596_v22 = vsel %vm2593_vm8, %v2595_v4, %v2591_v56  ;;  %2996 = vmatpush.msrb.mxu0 %v2982_v45  ;;  %3069 = vmatpush.msrb.mxu3 %v2969_v18  ;;  %v2956_v56 = vld [vmem:[#allocation3 + $0xd0] sm:$0xff]  ;;  %v2949_v45 = vld [vmem:[#allocation3 + $0x98] sm:$0xff] }
 0x551   :  { %3024 = vmatpush.msrb.mxu1 %v2963_v3  ;;  %3047 = vmatpush.msrb.mxu2 %v2964_v16  ;;  %v2937_v18 = vld [vmem:[#allocation3 + $0x38] sm:$0xff]  ;;  %v2930_v16 = vld [vmem:[#allocation3] sm:$0xff] }
 0x552   :  { %2997 = vmatpush.msrb.mxu0 %v2978_v40  ;;  %3070 = vmatpush.msrb.mxu3 %v2965_v5  ;;  %v6152_v40 = vld [vmem:[#allocation53_spill] sm:$0xff] }
 0x553   :  { %3025 = vmatpush.msrb.mxu1 %v2959_v33  ;;  %3048 = vmatpush.msrb.mxu2 %v2960_v60  ;;  %v231_v29 = vadd.f32 %v6152_v40, %v6137_v14 }
 0x554   :  { %2998 = vmatpush.msrb.mxu0 %v2974_v6  ;;  %3071 = vmatpush.msrb.mxu3 %v2961_v30  ;;  %v2938_v6 = vld [vmem:[#allocation3 + $0x40] sm:$0xff] }
 0x555   :  { %v3702_v58 = vpop.eup %3701  ;;  %3026 = vmatpush.msrb.mxu1 %v2955_v25  ;;  %3049 = vmatpush.msrb.mxu2 %v2956_v56 }
 0x556   :  { %v2607_v59 = vmul.f32 %v3702_v58, %v2596_v22  ;;  %2999 = vmatpush.msrb.mxu0 %v2970_v46  ;;  %v2957_v58 = vld [vmem:[#allocation3 + $0xd8] sm:$0xff] }
 0x557   :  { %3072 = vmatpush.msrb.mxu3 %v2957_v58  ;;  %3050 = vmatpush.msrb.mxu2 %v2952_v0  ;;  %v2941_v46 = vld [vmem:[#allocation3 + $0x58] sm:$0xff] }
 0x558   :  { %v3460_v7 = vpack.c.bf16 %v2607_v59, %v2606_v43  ;;  %2707 = vmatmul.f32.gmra.mxu0 %v2607_v59  ;;  %2730 = vmatmul.f32.gmra.mxu1 %v2607_v59 }
 0x559   :  { %2753 = vmatmul.f32.gmra.mxu2 %v2607_v59  ;;  %2776 = vmatmul.f32.gmra.mxu3 %v2607_v59  ;;  %v2950_v59 = vld [vmem:[#allocation3 + $0xa0] sm:$0xff] }
 0x55a   :  { %3461 = vst [vmem:[#allocation6 + $0x30] sm:$0xff] %v3460_v7   ;;  %3000 = vmatpush.msrb.mxu0 %v2966_v17  ;;  %v2951_v7 = vld [vmem:[#allocation3 + $0xa8] sm:$0xff]  ;;  %3073 = vmatpush.msrb.mxu3 %v2953_v63 }
 0x55b   :  { %3027 = vmatpush.msrb.mxu1 %v2951_v7  ;;  %3051 = vmatpush.msrb.mxu2 %v2948_v24 }
 0x55c   :  { %3001 = vmatpush.msrb.mxu0 %v2962_v57  ;;  %3074 = vmatpush.msrb.mxu3 %v2949_v45 }
 0x55d   :  { %3028 = vmatpush.msrb.mxu1 %v2947_v51  ;;  %3052 = vmatpush.msrb.mxu2 %v2944_v38 }
 0x55e   :  { %3002 = vmatpush.msrb.mxu0 %v2958_v47  ;;  %v6155_v47 = vld [vmem:[#allocation55_spill] sm:$0xff] }
 0x55f   :  { %3029 = vmatpush.msrb.mxu1 %v2943_v10  ;;  %3053 = vmatpush.msrb.mxu2 %v2940_v44  ;;  %v393_v33 = vadd.f32 %v6155_v47, %v6072_v23  ;;  %v6156_v44 = vld [vmem:[#allocation58_spill] sm:$0xff] }
 0x560   :  { %3003 = vmatpush.msrb.mxu0 %v2954_v2 }
 0x561   :  { %3030 = vmatpush.msrb.mxu1 %v2939_v50 }
 0x562   :  { %3004 = vmatpush.msrb.mxu0 %v2950_v59 }
 0x563   :  { %3031 = vmatpush.msrb.mxu1 %v2935_v28 }
 0x564   :  { %3005 = vmatpush.msrb.mxu0 %v2946_v26 }
 0x565   :  { %3032 = vmatpush.msrb.mxu1 %v2931_v34 }
 0x566   :  { %3006 = vmatpush.msrb.mxu0 %v2942_v37 }
 0x568   :  { %3007 = vmatpush.msrb.mxu0 %v2938_v6 }
 0x56a   :  { %3008 = vmatpush.msrb.mxu0 %v2934_v31 }
 0x56c   :  { %3009 = vmatpush.msrb.mxu0 %v2930_v16 }
 0x5c4   :  { %v2705_v20 = vpop.f32.mrf.mxu0  ;;  %v2728_v19 = vpop.f32.mrf.mxu1 }
 0x5c5   :  { %v2780_v12 = vadd.f32 %v2705_v20, %v229_v9  ;;  %v2781_v1 = vadd.f32 %v2728_v19, %v283_v53  ;;  %v2945_v9 = vld [vmem:[#allocation3 + $0x78] sm:$0xff] }
 0x5c6   :  { %3075 = vmatpush.msrb.mxu3 %v2945_v9  ;;  %v6154_v19 = vld [vmem:[#allocation51_spill] sm:$0xff] }
 0x5c7   :  { %v3398_v54 = vmul.f32 -1.442695, %v2780_v12  ;;  %v3400_v43 = vmul.f32 -1.442695, %v2781_v1  ;;  %v337_v42 = vadd.f32 %v6154_v19, %v4384_v15 }
 0x5c8   :  { %3076 = vmatpush.msrb.mxu3 %v2941_v46 }
 0x5c9   :  { %3703 = vpow2.f32 %v3398_v54  ;;  %v2936_v54 = vld [vmem:[#allocation3 + $0x30] sm:$0xff] }
 0x5ca   :  { %3705 = vpow2.f32 %v3400_v43  ;;  %3054 = vmatpush.msrb.mxu2 %v2936_v54  ;;  %3077 = vmatpush.msrb.mxu3 %v2937_v18 }
 0x5cb   :  { %v2774_v62 = vpop.f32.mrf.mxu3  ;;  %v2751_v35 = vpop.f32.mrf.mxu2 }
 0x5cc   :  { %v2783_v61 = vadd.f32 %v2774_v62, %v391_v55  ;;  %v2782_v17 = vadd.f32 %v2751_v35, %v337_v42  ;;  %v2932_v55 = vld [vmem:[#allocation3 + $0x10] sm:$0xff]  ;;  %v2933_v62 = vld [vmem:[#allocation3 + $0x18] sm:$0xff] }
 0x5cd   :  { %3055 = vmatpush.msrb.mxu2 %v2932_v55  ;;  %3078 = vmatpush.msrb.mxu3 %v2933_v62 }
 0x5ce   :  { %v3402_v4 = vmul.f32 -1.442695, %v2783_v61 }
 0x5cf   :  { %v3704_v22 = vpop.eup %3703 }
 0x5d0   :  { %v3706_v8 = vpop.eup %3705  ;;  %v5744_v49 = vadd.f32 1.0, %v3704_v22  ;;  %3707 = vpow2.f32 %v3402_v4 }
 0x5d1   :  { %v5746_v39 = vadd.f32 1.0, %v3706_v8 }
 0x5d2   :  { %3709 = vrcp.f32 %v5744_v49  ;;  %v2805_v61 = vand.u32 2147483647, %v5744_v49  ;;  %v2807_v25 = vand.u32 2147483648, %v5744_v49  ;;  %vm2801_vm11 = vweird.f32 %v5744_v49 }
 0x5d3   :  { %3711 = vrcp.f32 %v5746_v39  ;;  %v2845_v2 = vand.u32 2147483648, %v5746_v39  ;;  %v2843_v58 = vand.u32 2147483647, %v5746_v39  ;;  %vm2839_vm12 = vweird.f32 %v5746_v39 }
 0x5d4   :  { %vm2806_vm13 = vcmp.eq.f32.partialorder %v2805_v61, 8.507059e+37  ;;  %v2808_v51 = vor.u32 1.1754944e-38, %v2807_v25 }
 0x5d5   :  { %v2708_v13 = vpop.f32.mrf.mxu0  ;;  %v2731_v53 = vpop.f32.mrf.mxu1  ;;  %v2846_v26 = vor.u32 1.1754944e-38, %v2845_v2  ;;  %vm2844_vm0 = vcmp.eq.f32.partialorder %v2843_v58, 8.507059e+37 }
 0x5d6   :  { %v3708_v20 = vpop.eup %3707  ;;  %v2784_v12 = vadd.f32 %v2708_v13, %v231_v29  ;;  %v2785_v1 = vadd.f32 %v2731_v53, %v285_v41 }
 0x5d7   :  { %v5756_v32 = vadd.f32 1.0, %v3708_v20  ;;  %v339_v20 = vadd.f32 %v6156_v44, %v4384_v15 }
 0x5d8   :  { %v3710_v43 = vpop.eup %3709  ;;  %v3399_v11 = vmul.f32 -1.442695, %v2784_v12  ;;  %v3401_v52 = vmul.f32 -1.442695, %v2785_v1 }
 0x5d9   :  { %v3712_v57 = vpop.eup %3711  ;;  %v2797_v3 = vmul.f32 %v3710_v43, %v5744_v49  ;;  %3713 = vrcp.f32 %v5756_v32  ;;  %vm2802_vm9 = vweird.f32 %v3710_v43  ;;  %v2885_v42 = vand.u32 2147483648, %v5756_v32 }
 0x5da   :  { %v2835_v5 = vmul.f32 %v3712_v57, %v5746_v39  ;;  %3715 = vpow2.f32 %v3399_v11  ;;  %vm2840_vm10 = vweird.f32 %v3712_v57  ;;  %vm2803_vm14 = vmor %vm2801_vm11, %vm2802_vm9  ;;  %v2883_v1 = vand.u32 2147483647, %v5756_v32 }
 0x5db   :  { %v2798_v60 = vsub.f32 1.0, %v2797_v3  ;;  %3717 = vpow2.f32 %v3401_v52  ;;  %vm2841_vm15 = vmor %vm2839_vm12, %vm2840_vm10  ;;  %vm2879_vm2 = vweird.f32 %v5756_v32  ;;  %v2886_v11 = vor.u32 1.1754944e-38, %v2885_v42 }
 0x5dc   :  { %v2836_v30 = vsub.f32 1.0, %v2835_v5  ;;  %3719 = vtanh.f32 %v2782_v17  ;;  %v2777_v56 = vpop.f32.mrf.mxu3  ;;  %v2754_v6 = vpop.f32.mrf.mxu2  ;;  %vm2884_vm4 = vcmp.eq.f32.partialorder %v2883_v1, 8.507059e+37 }
 0x5dd   :  { %v2799_v4 = vmul.f32 %v3710_v43, %v2798_v60  ;;  %v2787_v22 = vadd.f32 %v2777_v56, %v393_v33 }
 0x5de   :  { %v2837_v59 = vmul.f32 %v3712_v57, %v2836_v30 }
 0x5df   :  { %v3714_v7 = vpop.eup %3713  ;;  %v2800_v0 = vadd.f32 %v3710_v43, %v2799_v4  ;;  %v3403_v8 = vmul.f32 -1.442695, %v2787_v22 }
 0x5e0   :  { %v3716_v63 = vpop.eup %3715  ;;  %v2838_v24 = vadd.f32 %v3712_v57, %v2837_v59  ;;  %v2875_v45 = vmul.f32 %v3714_v7, %v5756_v32  ;;  %vm2880_vm1 = vweird.f32 %v3714_v7 }
 0x5e1   :  { %v3718_v37 = vpop.eup %3717  ;;  %v2804_v10 = vsel %vm2803_vm14, %v3710_v43, %v2800_v0  ;;  %v2795_v38 = vadd.f32 1.0, %v3716_v63  ;;  %3721 = vpow2.f32 %v3403_v8  ;;  %vm5779_vm3 = vmor %vm2879_vm2, %vm2880_vm1 }
 0x5e2   :  { %v3720_v49 = vpop.eup %3719  ;;  %v2809_v40 = vsel %vm2806_vm13, %v2808_v51, %v2804_v10  ;;  %v2842_v29 = vsel %vm2841_vm15, %v3712_v57, %v2838_v24  ;;  %v2876_v39 = vsub.f32 1.0, %v2875_v45  ;;  %v2833_v48 = vadd.f32 1.0, %v3718_v37 }
 0x5e3   :  { %v2847_v41 = vsel %vm2844_vm0, %v2846_v26, %v2842_v29  ;;  %v2906_v35 = vmul.f32 %v3720_v49, %v2809_v40  ;;  %3723 = vrcp.f32 %v2795_v38  ;;  %v2822_v3 = vand.u32 2147483648, %v2795_v38 }
 0x5e4   :  { %v2904_v9 = vmul.f32 %v2847_v41, %v5720_v27  ;;  %v2877_v13 = vmul.f32 %v3714_v7, %v2876_v39  ;;  %3725 = vrcp.f32 %v2833_v48  ;;  %v2786_v27 = vadd.f32 %v2754_v6, %v339_v20  ;;  %v6161_v20 = vld [vmem:[#allocation59_spill] sm:$0xff] }
 0x5e5   :  { %v2860_v57 = vand.u32 2147483648, %v2833_v48  ;;  %v2820_v34 = vand.u32 2147483647, %v2795_v38  ;;  %v2858_v62 = vand.u32 2147483647, %v2833_v48  ;;  %vm2816_vm7 = vweird.f32 %v2795_v38 }
 0x5e6   :  { %v5771_v53 = vadd.f32 %v2906_v35, %v2904_v9  ;;  %v2878_v19 = vadd.f32 %v3714_v7, %v2877_v13  ;;  %vm2854_vm8 = vweird.f32 %v2833_v48  ;;  %v2823_v61 = vor.u32 1.1754944e-38, %v2822_v3 }
 0x5e7   :  { %v3722_v50 = vpop.eup %3721  ;;  %v2861_v25 = vor.u32 1.1754944e-38, %v2860_v57  ;;  %vm2821_vm11 = vcmp.eq.f32.partialorder %v2820_v34, 8.507059e+37  ;;  %vm2859_vm12 = vcmp.eq.f32.partialorder %v2858_v62, 8.507059e+37 }
 0x5e8   :  { %3727 = vtanh.f32 %v5771_v53  ;;  %v2873_v12 = vadd.f32 1.0, %v3722_v50  ;;  %v2882_v17 = vsel %vm5779_vm3, %v3714_v7, %v2878_v19  ;;  %v396_v19 = vadd.f32 %v6161_v20, %v6072_v23 }
 0x5e9   :  { %v3724_v46 = vpop.eup %3723  ;;  %v2887_v55 = vsel %vm2884_vm4, %v2886_v11, %v2882_v17  ;;  %v6163_v11 = vld [vmem:[#allocation60_spill] sm:$0xff] }
 0x5ea   :  { %v3726_v31 = vpop.eup %3725  ;;  %v2812_v54 = vmul.f32 %v3724_v46, %v2795_v38  ;;  %3729 = vrcp.f32 %v2873_v12  ;;  %vm2817_vm5 = vweird.f32 %v3724_v46  ;;  %v2900_v24 = vand.u32 2147483648, %v2873_v12 }
 0x5eb   :  { %v2850_v43 = vmul.f32 %v3726_v31, %v2833_v48  ;;  %3731 = vtanh.f32 %v2786_v27  ;;  %vm2855_vm6 = vweird.f32 %v3726_v31  ;;  %vm2818_vm9 = vmor %vm2816_vm7, %vm2817_vm5  ;;  %vm2894_vm14 = vweird.f32 %v2873_v12  ;;  %v6160_v48 = vld [vmem:[#allocation57_spill] sm:$0xff] }
 0x5ec   :  { %v2813_v52 = vsub.f32 1.0, %v2812_v54  ;;  %vm2856_vm10 = vmor %vm2854_vm8, %vm2855_vm6  ;;  %v2898_v45 = vand.u32 2147483647, %v2873_v12  ;;  %v2901_v10 = vor.u32 1.1754944e-38, %v2900_v24  ;;  %v288_v41 = vadd.f32 %v6160_v48, %v6139_v21 }
 0x5ed   :  { %v2851_v18 = vsub.f32 1.0, %v2850_v43  ;;  %v6162_v43 = vld [vmem:[#allocation64_spill] sm:$0xff] }
 0x5ee   :  { %v3728_v32 = vpop.eup %3727  ;;  %v2814_v16 = vmul.f32 %v3724_v46, %v2813_v52  ;;  %vm2899_vm0 = vcmp.eq.f32.partialorder %v2898_v45, 8.507059e+37  ;;  %v342_v17 = vadd.f32 %v6162_v43, %v4384_v15  ;;  %v236_v52 = vadd.f32 %v6163_v11, %v6137_v14 }
 0x5ef   :  { %v2852_v5 = vmul.f32 %v3726_v31, %v2851_v18  ;;  %v2912_v47 = vmul.f32 %v3728_v32, %v2887_v55  ;;  %v6164_v18 = vld [vmem:[#allocation61_spill] sm:$0xff] }
 0x5f0   :  { %v3730_v33 = vpop.eup %3729  ;;  %v2815_v60 = vadd.f32 %v3724_v46, %v2814_v16  ;;  %v290_v57 = vadd.f32 %v6164_v18, %v6139_v21 }
 0x5f1   :  { %v2853_v30 = vadd.f32 %v3726_v31, %v2852_v5  ;;  %v2890_v2 = vmul.f32 %v3730_v33, %v2873_v12  ;;  %3010 = vmatmul.f32.vlgmr.msrb.gmra.mxu0 %v2912_v47  ;;  %3033 = vmatmul.f32.vlgmr.msrb.gmra.mxu1 %v2912_v47  ;;  %v3732_v4 = vpop.eup %3731  ;;  %vm2895_vm13 = vweird.f32 %v3730_v33 }
 0x5f2   :  { %v2819_v56 = vsel %vm2818_vm9, %v3724_v46, %v2815_v60  ;;  %3056 = vmatmul.f32.vlgmr.msrb.gmra.mxu2 %v2912_v47  ;;  %3079 = vmatmul.f32.vlgmr.msrb.gmra.mxu3 %v2912_v47  ;;  %vm2896_vm15 = vmor %vm2894_vm14, %vm2895_vm13 }
 0x5f3   :  { %v2824_v58 = vsel %vm2821_vm11, %v2823_v61, %v2819_v56  ;;  %v2857_v22 = vsel %vm2856_vm10, %v3726_v31, %v2853_v30  ;;  %v2891_v59 = vsub.f32 1.0, %v2890_v2 }
 0x5f4   :  { %v2862_v7 = vsel %vm2859_vm12, %v2861_v25, %v2857_v22  ;;  %v2907_v0 = vmul.f32 %v3732_v4, %v2824_v58 }
 0x5f5   :  { %v2905_v8 = vmul.f32 %v2862_v7, %v5735_v36  ;;  %v2892_v63 = vmul.f32 %v3730_v33, %v2891_v59  ;;  %v6159_v36 = vld [vmem:[#allocation56_spill] sm:$0xff] }
 0x5f6   :  { %v234_v39 = vadd.f32 %v6159_v36, %v6137_v14  ;;  %v6165_v14 = vld [vmem:[#allocation65_spill] sm:$0xff] }
 0x5f7   :  { %v5786_v26 = vadd.f32 %v2907_v0, %v2905_v8  ;;  %v2893_v51 = vadd.f32 %v3730_v33, %v2892_v63  ;;  %v398_v21 = vadd.f32 %v6165_v14, %v6072_v23 }
 0x5f9   :  { %3733 = vtanh.f32 %v5786_v26  ;;  %v2897_v37 = vsel %vm2896_vm15, %v3730_v33, %v2893_v51 }
 0x5fa   :  { %v2902_v49 = vsel %vm2899_vm0, %v2901_v10, %v2897_v37 }
 0x5ff   :  { %v3734_v38 = vpop.eup %3733 }
 0x600   :  { %v2913_v40 = vmul.f32 %v3734_v38, %v2902_v49 }
 0x602   :  { %v3465_v29 = vpack.c.bf16 %v2913_v40, %v2912_v47  ;;  %3013 = vmatmul.f32.gmra.mxu0 %v2913_v40  ;;  %3036 = vmatmul.f32.gmra.mxu1 %v2913_v40 }
 0x603   :  { %3059 = vmatmul.f32.gmra.mxu2 %v2913_v40  ;;  %3082 = vmatmul.f32.gmra.mxu3 %v2913_v40 }
 0x604   :  { %3466 = vst [vmem:[#allocation6 + $0x38] sm:$0xff] %v3465_v29  }
 0x66e   :  { %v3011_v35 = vpop.f32.mrf.mxu0  ;;  %v3034_v9 = vpop.f32.mrf.mxu1 }
 0x66f   :  { %v3086_v13 = vadd.f32 %v3011_v35, %v234_v39  ;;  %v3087_v6 = vadd.f32 %v3034_v9, %v288_v41 }
 0x671   :  { %v3404_v50 = vmul.f32 -1.442695, %v3086_v13  ;;  %v3406_v44 = vmul.f32 -1.442695, %v3087_v6 }
 0x673   :  { %3735 = vpow2.f32 %v3404_v50 }
 0x674   :  { %3737 = vpow2.f32 %v3406_v44 }
 0x675   :  { %v3080_v42 = vpop.f32.mrf.mxu3  ;;  %v3057_v54 = vpop.f32.mrf.mxu2 }
 0x676   :  { %v3089_v12 = vadd.f32 %v3080_v42, %v396_v19  ;;  %v3088_v34 = vadd.f32 %v3057_v54, %v342_v17 }
 0x678   :  { %v3408_v1 = vmul.f32 -1.442695, %v3089_v12  ;;  %v6166_v12 = vld [vmem:[#allocation67_spill] sm:$0xff] }
 0x679   :  { %v3736_v46 = vpop.eup %3735 }
 0x67a   :  { %v3738_v27 = vpop.eup %3737  ;;  %v3100_v31 = vadd.f32 1.0, %v3736_v46  ;;  %3739 = vpow2.f32 %v3408_v1  ;;  %v344_v1 = vadd.f32 %v6166_v12, %v4384_v15 }
 0x67b   :  { %v3138_v28 = vadd.f32 1.0, %v3738_v27 }
 0x67c   :  { %3741 = vrcp.f32 %v3100_v31  ;;  %v3111_v56 = vand.u32 2147483647, %v3100_v31  ;;  %v3113_v22 = vand.u32 2147483648, %v3100_v31  ;;  %vm3107_vm4 = vweird.f32 %v3100_v31 }
 0x67d   :  { %3743 = vrcp.f32 %v3138_v28  ;;  %v3151_v58 = vand.u32 2147483648, %v3138_v28  ;;  %v3149_v0 = vand.u32 2147483647, %v3138_v28  ;;  %vm3145_vm3 = vweird.f32 %v3138_v28 }
 0x67e   :  { %vm3112_vm6 = vcmp.eq.f32.partialorder %v3111_v56, 8.507059e+37  ;;  %v3114_v37 = vor.u32 1.1754944e-38, %v3113_v22 }
 0x67f   :  { %v3014_v3 = vpop.f32.mrf.mxu0  ;;  %v3037_v32 = vpop.f32.mrf.mxu1  ;;  %v3152_v40 = vor.u32 1.1754944e-38, %v3151_v58  ;;  %vm3150_vm8 = vcmp.eq.f32.partialorder %v3149_v0, 8.507059e+37 }
 0x680   :  { %v3740_v16 = vpop.eup %3739  ;;  %v3090_v55 = vadd.f32 %v3014_v3, %v236_v52  ;;  %v3091_v5 = vadd.f32 %v3037_v32, %v290_v57 }
 0x681   :  { %v5801_v62 = vadd.f32 1.0, %v3740_v16 }
 0x682   :  { %v3742_v47 = vpop.eup %3741  ;;  %v3405_v33 = vmul.f32 -1.442695, %v3090_v55  ;;  %v3407_v60 = vmul.f32 -1.442695, %v3091_v5 }
 0x683   :  { %v3744_v61 = vpop.eup %3743  ;;  %v3103_v30 = vmul.f32 %v3742_v47, %v3100_v31  ;;  %3745 = vrcp.f32 %v5801_v62  ;;  %vm3108_vm1 = vweird.f32 %v3742_v47  ;;  %v3191_v27 = vand.u32 2147483648, %v5801_v62 }
 0x684   :  { %v3141_v2 = vmul.f32 %v3744_v61, %v3138_v28  ;;  %3747 = vtanh.f32 %v3088_v34  ;;  %vm3146_vm2 = vweird.f32 %v3744_v61  ;;  %vm3109_vm5 = vmor %vm3107_vm4, %vm3108_vm1  ;;  %vm3185_vm10 = vweird.f32 %v5801_v62 }
 0x685   :  { %v3104_v25 = vsub.f32 1.0, %v3103_v30  ;;  %3749 = vpow2.f32 %v3405_v33  ;;  %vm3147_vm7 = vmor %vm3145_vm3, %vm3146_vm2  ;;  %v3189_v31 = vand.u32 2147483647, %v5801_v62  ;;  %v3192_v52 = vor.u32 1.1754944e-38, %v3191_v27 }
 0x686   :  { %v3142_v4 = vsub.f32 1.0, %v3141_v2  ;;  %3751 = vpow2.f32 %v3407_v60  ;;  %v3083_v59 = vpop.f32.mrf.mxu3  ;;  %v3060_v19 = vpop.f32.mrf.mxu2 }
 0x687   :  { %v3105_v7 = vmul.f32 %v3742_v47, %v3104_v25  ;;  %v3093_v8 = vadd.f32 %v3083_v59, %v398_v21  ;;  %v3092_v28 = vadd.f32 %v3060_v19, %v344_v1  ;;  %vm3190_vm12 = vcmp.eq.f32.partialorder %v3189_v31, 8.507059e+37 }
 0x688   :  { %v3143_v63 = vmul.f32 %v3744_v61, %v3142_v4 }
 0x689   :  { %v3746_v51 = vpop.eup %3745  ;;  %v3106_v24 = vadd.f32 %v3742_v47, %v3105_v7  ;;  %v3409_v45 = vmul.f32 -1.442695, %v3093_v8 }
 0x68a   :  { %v3748_v23 = vpop.eup %3747  ;;  %v3144_v10 = vadd.f32 %v3744_v61, %v3143_v63  ;;  %v3181_v38 = vmul.f32 %v3746_v51, %v5801_v62  ;;  %vm3186_vm9 = vweird.f32 %v3746_v51 }
 0x68b   :  { %v3750_v49 = vpop.eup %3749  ;;  %v3110_v29 = vsel %vm3109_vm5, %v3742_v47, %v3106_v24  ;;  %3753 = vpow2.f32 %v3409_v45  ;;  %vm3187_vm11 = vmor %vm3185_vm10, %vm3186_vm9 }
 0x68c   :  { %v3752_v36 = vpop.eup %3751  ;;  %v3115_v39 = vsel %vm3112_vm6, %v3114_v37, %v3110_v29  ;;  %v3148_v48 = vsel %vm3147_vm7, %v3744_v61, %v3144_v10  ;;  %v3182_v41 = vsub.f32 1.0, %v3181_v38  ;;  %v3101_v35 = vadd.f32 1.0, %v3750_v49 }
 0x68d   :  { %v3153_v9 = vsel %vm3150_vm8, %v3152_v40, %v3148_v48  ;;  %v3212_v13 = vmul.f32 %v3748_v23, %v3115_v39  ;;  %v3139_v6 = vadd.f32 1.0, %v3752_v36 }
 0x68e   :  { %v3210_v50 = vmul.f32 %v3153_v9, %v5771_v53  ;;  %v3183_v44 = vmul.f32 %v3746_v51, %v3182_v41  ;;  %3755 = vrcp.f32 %v3101_v35  ;;  %v3128_v34 = vand.u32 2147483648, %v3101_v35 }
 0x68f   :  { %3757 = vrcp.f32 %v3139_v6  ;;  %v3166_v16 = vand.u32 2147483648, %v3139_v6  ;;  %v3126_v62 = vand.u32 2147483647, %v3101_v35  ;;  %v3164_v33 = vand.u32 2147483647, %v3139_v6 }
 0x690   :  { %v3214_v20 = vadd.f32 %v3212_v13, %v3210_v50  ;;  %v3184_v46 = vadd.f32 %v3746_v51, %v3183_v44  ;;  %vm3122_vm15 = vweird.f32 %v3101_v35  ;;  %vm3160_vm0 = vweird.f32 %v3139_v6 }
 0x691   :  { %v3754_v42 = vpop.eup %3753  ;;  %v3129_v30 = vor.u32 1.1754944e-38, %v3128_v34  ;;  %v3167_v25 = vor.u32 1.1754944e-38, %v3166_v16  ;;  %vm3127_vm3 = vcmp.eq.f32.partialorder %v3126_v62, 8.507059e+37  ;;  %vm3165_vm4 = vcmp.eq.f32.partialorder %v3164_v33, 8.507059e+37 }
 0x692   :  { %3759 = vtanh.f32 %v3214_v20  ;;  %v3179_v53 = vadd.f32 1.0, %v3754_v42  ;;  %v3188_v17 = vsel %vm3187_vm11, %v3746_v51, %v3184_v46 }
 0x693   :  { %v3193_v3 = vsel %vm3190_vm12, %v3192_v52, %v3188_v17 }
 0x694   :  { %v3756_v54 = vpop.eup %3755  ;;  %3761 = vrcp.f32 %v3179_v53  ;;  %v3206_v24 = vand.u32 2147483648, %v3179_v53  ;;  %vm3200_vm6 = vweird.f32 %v3179_v53  ;;  %v3204_v45 = vand.u32 2147483647, %v3179_v53 }
 0x695   :  { %v3758_v43 = vpop.eup %3757  ;;  %v3118_v11 = vmul.f32 %v3756_v54, %v3101_v35  ;;  %3763 = vtanh.f32 %v3092_v28  ;;  %vm3123_vm13 = vweird.f32 %v3756_v54 }
 0x696   :  { %v3156_v18 = vmul.f32 %v3758_v43, %v3139_v6  ;;  %vm3161_vm14 = vweird.f32 %v3758_v43  ;;  %vm3124_vm1 = vmor %vm3122_vm15, %vm3123_vm13  ;;  %v3207_v37 = vor.u32 1.1754944e-38, %v3206_v24  ;;  %vm3205_vm8 = vcmp.eq.f32.partialorder %v3204_v45, 8.507059e+37 }
 0x697   :  { %v3119_v15 = vsub.f32 1.0, %v3118_v11  ;;  %vm3162_vm2 = vmor %vm3160_vm0, %vm3161_vm14 }
 0x698   :  { %v3760_v57 = vpop.eup %3759  ;;  %v3157_v32 = vsub.f32 1.0, %v3156_v18 }
 0x699   :  { %v3218_v55 = vmul.f32 %v3760_v57, %v3193_v3  ;;  %v3120_v5 = vmul.f32 %v3756_v54, %v3119_v15 }
 0x69a   :  { %v3158_v47 = vmul.f32 %v3758_v43, %v3157_v32  ;;  %v3762_v60 = vpop.eup %3761 }
 0x69b   :  { %v3121_v61 = vadd.f32 %v3756_v54, %v3120_v5  ;;  %v3196_v14 = vmul.f32 %v3762_v60, %v3179_v53  ;;  %v3764_v21 = vpop.eup %3763  ;;  %vm3201_vm5 = vweird.f32 %v3762_v60 }
 0x69c   :  { %v3159_v2 = vadd.f32 %v3758_v43, %v3158_v47  ;;  %vm3202_vm7 = vmor %vm3200_vm6, %vm3201_vm5 }
 0x69d   :  { %v3125_v56 = vsel %vm3124_vm1, %v3756_v54, %v3121_v61  ;;  %v3197_v22 = vsub.f32 1.0, %v3196_v14 }
 0x69e   :  { %v3130_v4 = vsel %vm3127_vm3, %v3129_v30, %v3125_v56  ;;  %v3163_v58 = vsel %vm3162_vm2, %v3758_v43, %v3159_v2 }
 0x69f   :  { %v3168_v59 = vsel %vm3165_vm4, %v3167_v25, %v3163_v58  ;;  %v3213_v7 = vmul.f32 %v3764_v21, %v3130_v4  ;;  %v3198_v8 = vmul.f32 %v3762_v60, %v3197_v22 }
 0x6a0   :  { %v3211_v0 = vmul.f32 %v3168_v59, %v5786_v26 }
 0x6a1   :  { %v3199_v51 = vadd.f32 %v3762_v60, %v3198_v8 }
 0x6a2   :  { %v3215_v63 = vadd.f32 %v3213_v7, %v3211_v0 }
 0x6a3   :  { %v3203_v23 = vsel %vm3202_vm7, %v3762_v60, %v3199_v51 }
 0x6a4   :  { %3765 = vtanh.f32 %v3215_v63  ;;  %v3208_v26 = vsel %vm3205_vm8, %v3207_v37, %v3203_v23 }
 0x6aa   :  { %v3766_v10 = vpop.eup %3765 }
 0x6ab   :  { %v3219_v38 = vmul.f32 %v3766_v10, %v3208_v26 }
 0x6ad   :  { %v3470_v49 = vpack.c.bf16 %v3219_v38, %v3218_v55 }
 0x6af   :  { %3471 = vst [vmem:[#allocation6 + $0x40] sm:$0xff] %v3470_v49  }
 0x6b0   :  { %3237 = dma.vmem_to_hbm [thread:$0]  %s3230_s18, 1152, %s3232_s21, [#allocation5], %s3824_s22, %s3824_s22, %s3825_s23  }
 0x6b1   :  { %3817 = dma.done.wait [#allocation5], 1152  }
 0x6b2   :  { %3818 = vsyncadd [#allocation5], 4294966144 }
 0x6b3   :  { %3242 = vsyncpa [#allocation4], 1 }
 0x6b4   :  { %3243 = vsyncpa [#allocation5], 1 }

</bundles_post_ra>
